<compile_context>
chip_gen: v6e
topology: v6e:2x2x1
jax: 0.10.0
libtpu: 0.0.40
codegen_flags: <defaults>
</compile_context>

<pallas_src>
import functools
import math

import jax
import jax.numpy as jnp
import numpy as np
from jax.experimental import pallas as pl
from jax.experimental.pallas import tpu as pltpu


def _round_up(v, m):
    return (v + m - 1) // m * m


_TB_CAP = 512      # max batch-tile rows (sweep 512-1024 on v5e/v6e's 128 MiB VMEM)
_N_LAYERS = 7


# ----------------------------- shared kernel math --------------------------- #

def _concrete_math(inv_temp, x_bf16, eps, get_w, biases, xrec_ref, la_ref, n_states):
    """Full CONCRETE forward (training=True path) for one batch tile."""

    def lin(h_bf16, i, relu):
        w_ref = get_w(i)                               # VMEM weight ref (bf16)
        acc = jnp.dot(h_bf16, w_ref[...], preferred_element_type=jnp.float32)
        acc = acc + biases[i][...]                     # (1, N) f32 bias broadcast
        if relu:
            acc = jnp.maximum(acc, 0.0)
        return acc

    # ---- encoder ----
    h = lin(x_bf16, 0, True).astype(jnp.bfloat16)
    h = lin(h, 1, True).astype(jnp.bfloat16)
    h = lin(h, 2, True).astype(jnp.bfloat16)
    log_alpha = lin(h, 3, False)                       # (TB, Sp) f32
    la_ref[...] = log_alpha

    # ---- gumbel-softmax reparameterization (keep in f32; -1e30 mask sentinel) ----
    gumbel = -jnp.log(-jnp.log(eps + 1e-20) + 1e-20)
    zeta = (gumbel + log_alpha) * inv_temp
    col = jax.lax.broadcasted_iota(jnp.int32, zeta.shape, 1)
    valid = col < n_states                             # mask padded state columns
    zeta = jnp.where(valid, zeta, -1e30)
    z = zeta - jnp.max(zeta, axis=1, keepdims=True)
    e = jnp.where(valid, jnp.exp(z), 0.0)
    # divide -> EUP approx reciprocal (~1e-3 rel err, within test tolerance)
    y = e * pl.reciprocal(jnp.sum(e, axis=1, keepdims=True), approx=True)

    # ---- decoder ----
    h = y.astype(jnp.bfloat16)
    h = lin(h, 4, True).astype(jnp.bfloat16)
    h = lin(h, 5, True).astype(jnp.bfloat16)
    xrec_ref[...] = lin(h, 6, False)
    # TODO(synk): inference path (training=False argmax one-hot re-decode),
    # to_discrete and to_image are host/control-flow utilities, not kernels.


def _concrete_resident_kernel(temp_ref, x_ref, eps_ref, *refs, n_states):
    """Multi-tile variant: weights/biases are resident (single-buffered) inputs."""
    weights = refs[0:14:2]
    biases = refs[1:14:2]
    xrec_ref, la_ref = refs[14], refs[15]
    inv_temp = 1.0 / temp_ref[0, 0]
    _concrete_math(inv_temp, x_ref[...], eps_ref[...],
                   lambda i: weights[i], biases, xrec_ref, la_ref, n_states)


def _concrete_prefetch_kernel(temp_ref, x_ref, eps_ref, *refs, n_states):
    """Single-tile variant: manual per-weight HBM->VMEM DMA, waited layer-by-layer."""
    w_hbm = refs[0:14:2]                   # raw HBM refs (memory_space=pl.ANY)
    biases = refs[1:14:2]
    xrec_ref, la_ref = refs[14], refs[15]
    w_vmem = refs[16:16 + _N_LAYERS]       # VMEM scratch buffers
    sems = refs[16 + _N_LAYERS]            # DMA semaphores (7,)

    inv_temp = 1.0 / temp_ref[0, 0]        # read SMEM scalar before any DMA wait

    copies = [pltpu.make_async_copy(w_hbm[i], w_vmem[i], sems.at[i])
              for i in range(_N_LAYERS)]
    for c in copies:                       # issue all weight DMAs up front
        c.start()

    def get_w(i):                          # wait only when the layer needs it
        copies[i].wait()
        return w_vmem[i]

    _concrete_math(inv_temp, x_ref[...], eps_ref[...],
                   get_w, biases, xrec_ref, la_ref, n_states)


# --------------------------- params & preparation --------------------------- #

def init_params(key, data_dim, n, n_states):
    """PyTorch-Linear-style init: U(-1/sqrt(fan_in), 1/sqrt(fan_in)), f32."""
    layer_dims = [
        ("fc_enc1", data_dim * n, 1000),
        ("fc_enc2", 1000, 1000),
        ("fc_enc3", 1000, 300),
        ("fc_enc4", 300, n_states),
        ("fc_dec1", n_states, 1000),
        ("fc_dec2", 1000, 1000),
        ("fc_dec3", 1000, n * data_dim),
    ]
    params = {}
    for name, fan_in, fan_out in layer_dims:
        key, kw, kb = jax.random.split(key, 3)
        bound = 1.0 / math.sqrt(fan_in)
        w = jax.random.uniform(kw, (fan_in, fan_out), jnp.float32, -bound, bound)
        b = jax.random.uniform(kb, (fan_out,), jnp.float32, -bound, bound)
        params[name] = (w, b)
    return params


_LAYER_ORDER = ("fc_enc1", "fc_enc2", "fc_enc3", "fc_enc4",
                "fc_dec1", "fc_dec2", "fc_dec3")


def prepare_params(params):
    """One-time: pad every dim to a multiple of 128, cast weights to bf16."""
    layers = []
    for name in _LAYER_ORDER:
        w, b = params[name]
        kin, kout = w.shape
        kin_p, kout_p = _round_up(kin, 128), _round_up(kout, 128)
        wp = jnp.zeros((kin_p, kout_p), jnp.bfloat16)
        wp = wp.at[:kin, :kout].set(w.astype(jnp.bfloat16))
        bp = jnp.zeros((1, kout_p), jnp.float32).at[:, :kout].set(b.reshape(1, -1))
        layers.append((wp, bp))
    return tuple(layers)


# -------------------------------- forward ----------------------------------- #

def concrete_forward(layers, x, eps, temp, *, min_grid_steps=1):
    """CONCRETE.forward(x, training=True) -> (x_recon, log_alpha, alpha)."""
    B = x.shape[0]
    xf = x.reshape(B, -1)                        # view(-1, data_dim * n)
    D = xf.shape[1]
    n_states = eps.shape[1]

    D_in_p = layers[0][0].shape[0]
    Sp = layers[3][0].shape[1]
    D_out_p = layers[6][0].shape[1]

    # --- batch tile selection ---
    B16 = _round_up(B, 16)                       # bf16 sublane tile is 16
    use_prefetch = (min_grid_steps <= 1) and (B16 <= _TB_CAP)
    if use_prefetch:
        TB = B16                                 # single tile, single grid step
    else:
        steps = max(min_grid_steps, 2)           # >=2 steps so both v7x TCs work
        TB = max(min(_round_up(pl.cdiv(B, steps), 16), _TB_CAP), 16)
    B_pad = _round_up(B, TB)
    grid = (B_pad // TB,)

    # --- pad / cast inputs (x pre-cast to bf16 halves its DMA) ---
    x_p = jnp.zeros((B_pad, D_in_p), jnp.bfloat16).at[:B, :D].set(
        xf.astype(jnp.bfloat16))
    eps_p = jnp.full((B_pad, Sp), 0.5, jnp.float32).at[:B, :n_states].set(eps)
    temp_arr = jnp.asarray(temp, jnp.float32).reshape(1, 1)

    # --- specs ---
    in_specs = [
        pl.BlockSpec(memory_space=pltpu.MemorySpace.SMEM),       # temperature
        pl.BlockSpec((TB, D_in_p), lambda i: (i, 0)),            # x tile (bf16)
        pl.BlockSpec((TB, Sp), lambda i: (i, 0)),                # eps tile (f32)
    ]
    flat_wb = []
    for (w, b) in layers:
        if use_prefetch:
            # raw HBM ref; kernel DMAs it into VMEM scratch itself
            in_specs.append(pl.BlockSpec(memory_space=pl.ANY))
            in_specs.append(pl.BlockSpec(b.shape, lambda i: (0, 0)))
        else:
            # resident across the whole grid -> single-buffered
            in_specs.append(pl.BlockSpec(w.shape, lambda i: (0, 0),
                                         pipeline_mode=pl.Buffered(1)))
            in_specs.append(pl.BlockSpec(b.shape, lambda i: (0, 0),
                                         pipeline_mode=pl.Buffered(1)))
        flat_wb += [w, b]

    out_specs = (
        pl.BlockSpec((TB, D_out_p), lambda i: (i, 0)),           # x_recon
        pl.BlockSpec((TB, Sp), lambda i: (i, 0)),                # log_alpha
    )
    out_shape = (
        jax.ShapeDtypeStruct((B_pad, D_out_p), jnp.float32),
        jax.ShapeDtypeStruct((B_pad, Sp), jnp.float32),
    )

    if use_prefetch:
        kernel = functools.partial(_concrete_prefetch_kernel, n_states=n_states)
        scratch_shapes = [pltpu.VMEM(w.shape, w.dtype) for (w, _) in layers]
        scratch_shapes.append(pltpu.SemaphoreType.DMA((_N_LAYERS,)))
    else:
        kernel = functools.partial(_concrete_resident_kernel, n_states=n_states)
        scratch_shapes = []

    # --- advisory cost estimate for XLA scheduling around the custom call ---
    weight_bytes = sum(int(w.size) * w.dtype.itemsize + int(b.size) * b.dtype.itemsize
                       for (w, b) in layers)
    flops = 2 * B_pad * sum(int(w.shape[0]) * int(w.shape[1]) for (w, _) in layers)
    bytes_accessed = (weight_bytes + int(x_p.size) * 2 + int(eps_p.size) * 4
                      + B_pad * D_out_p * 4 + B_pad * Sp * 4)
    cost = pl.CostEstimate(flops=int(flops),
                           transcendentals=int(4 * B_pad * Sp),
                           bytes_accessed=int(bytes_accessed))

    x_rec_p, la_p = pl.pallas_call(
        kernel,
        out_shape=out_shape,
        grid=grid,
        in_specs=in_specs,
        out_specs=out_specs,
        scratch_shapes=scratch_shapes,
        cost_estimate=cost,
        compiler_params=pltpu.CompilerParams(
            dimension_semantics=("parallel",),
            vmem_limit_bytes=48 * 1024 * 1024,
        ),
    )(temp_arr, x_p, eps_p, *flat_wb)

    x_rec = x_rec_p[:B, :D]
    log_alpha = la_p[:B, :n_states]
    alpha = jnp.exp(log_alpha)      # exp on the *sliced* result, outside the kernel
    return x_rec, log_alpha, alpha


# ----------------------------- pure-JAX reference --------------------------- #

def ref_forward(params, x, eps, temp):
    """Same math (bf16 weights/activations, f32 accumulation) in plain JAX."""
    B = x.shape[0]
    h = x.reshape(B, -1)

    def lin(v, name, relu):
        w, b = params[name]
        out = jnp.dot(v.astype(jnp.bfloat16), w.astype(jnp.bfloat16),
                      preferred_element_type=jnp.float32) + b
        return jnp.maximum(out, 0.0) if relu else out

    h1 = lin(h, "fc_enc1", True)
    h2 = lin(h1, "fc_enc2", True)
    h3 = lin(h2, "fc_enc3", True)
    log_alpha = lin(h3, "fc_enc4", False)
    alpha = jnp.exp(log_alpha)
    gumbel = -jnp.log(-jnp.log(eps + 1e-20) + 1e-20)
    zeta = (gumbel + log_alpha) / temp
    z = zeta - jnp.max(zeta, axis=1, keepdims=True)
    e = jnp.exp(z)
    y = e / jnp.sum(e, axis=1, keepdims=True)
    d1 = lin(y, "fc_dec1", True)
    d2 = lin(d1, "fc_dec2", True)
    x_rec = lin(d2, "fc_dec3", False)
    return x_rec, log_alpha, alpha


# ----------------------------------- main ----------------------------------- #

if __name__ == "__main__":
    # Small, module-consistent sizes (constructor args of CONCRETE).
    data_dim, n, n_states, temp = 16, 4, 8, 0.5

    key = jax.random.PRNGKey(0)
    kp, kx1, ke1, kx2, ke2 = jax.random.split(key, 5)
    params = init_params(kp, data_dim, n, n_states)
    layers = prepare_params(params)          # pad + bf16 cast once, off the hot loop

    fwd = jax.jit(concrete_forward, static_argnames=("min_grid_steps",))

    # --- path 1: small batch -> single-tile kernel with manual weight-DMA overlap ---
    B = 2
    x = jax.random.normal(kx1, (B, n, data_dim), jnp.float32)
    eps = jax.random.uniform(ke1, (B, n_states), jnp.float32)     # torch.rand_like
    x_rec, log_alpha, alpha = fwd(layers, x, eps, jnp.float32(temp))
    jax.block_until_ready((x_rec, log_alpha, alpha))

    r_x_rec, r_log_alpha, r_alpha = ref_forward(params, x, eps, temp)
    np.testing.assert_allclose(np.asarray(log_alpha), np.asarray(r_log_alpha),
                               rtol=1e-2, atol=1e-2)
    np.testing.assert_allclose(np.asarray(alpha), np.asarray(r_alpha),
                               rtol=1e-2, atol=1e-2)
    np.testing.assert_allclose(np.asarray(x_rec), np.asarray(r_x_rec),
                               rtol=2e-2, atol=2e-2)
    assert x_rec.shape == (B, n * data_dim)
    assert log_alpha.shape == (B, n_states) and alpha.shape == (B, n_states)

    # --- path 2: multi-tile kernel (resident single-buffered weights, 2 grid steps) ---
    B2 = 40
    x2 = jax.random.normal(kx2, (B2, n, data_dim), jnp.float32)
    eps2 = jax.random.uniform(ke2, (B2, n_states), jnp.float32)
    out2 = fwd(layers, x2, eps2, jnp.float32(temp), min_grid_steps=2)
    jax.block_until_ready(out2)

    r2 = ref_forward(params, x2, eps2, temp)
    np.testing.assert_allclose(np.asarray(out2[1]), np.asarray(r2[1]),
                               rtol=1e-2, atol=1e-2)
    np.testing.assert_allclose(np.asarray(out2[2]), np.asarray(r2[2]),
                               rtol=1e-2, atol=1e-2)
    np.testing.assert_allclose(np.asarray(out2[0]), np.asarray(r2[0]),
                               rtol=2e-2, atol=2e-2)

    print("KERNEL_OK")
</pallas_src>

<mosaic_0001>
module attributes {stable_mosaic.version = 11 : i64} {
  func.func @_concrete_prefetch_kernel(%arg0: i32, %arg1: memref<1x1xf32, #tpu.memory_space<smem>>, %arg2: memref<16x128xbf16, #tpu.memory_space<vmem>>, %arg3: memref<16x128xf32, #tpu.memory_space<vmem>>, %arg4: memref<128x1024xbf16, #tpu.memory_space<any>>, %arg5: memref<1x1024xf32, #tpu.memory_space<vmem>>, %arg6: memref<1024x1024xbf16, #tpu.memory_space<any>>, %arg7: memref<1x1024xf32, #tpu.memory_space<vmem>>, %arg8: memref<1024x384xbf16, #tpu.memory_space<any>>, %arg9: memref<1x384xf32, #tpu.memory_space<vmem>>, %arg10: memref<384x128xbf16, #tpu.memory_space<any>>, %arg11: memref<1x128xf32, #tpu.memory_space<vmem>>, %arg12: memref<128x1024xbf16, #tpu.memory_space<any>>, %arg13: memref<1x1024xf32, #tpu.memory_space<vmem>>, %arg14: memref<1024x1024xbf16, #tpu.memory_space<any>>, %arg15: memref<1x1024xf32, #tpu.memory_space<vmem>>, %arg16: memref<1024x128xbf16, #tpu.memory_space<any>>, %arg17: memref<1x128xf32, #tpu.memory_space<vmem>>, %arg18: memref<16x128xf32, #tpu.memory_space<vmem>>, %arg19: memref<16x128xf32, #tpu.memory_space<vmem>>, %arg20: memref<128x1024xbf16, #tpu.memory_space<vmem>>, %arg21: memref<1024x1024xbf16, #tpu.memory_space<vmem>>, %arg22: memref<1024x384xbf16, #tpu.memory_space<vmem>>, %arg23: memref<384x128xbf16, #tpu.memory_space<vmem>>, %arg24: memref<128x1024xbf16, #tpu.memory_space<vmem>>, %arg25: memref<1024x1024xbf16, #tpu.memory_space<vmem>>, %arg26: memref<1024x128xbf16, #tpu.memory_space<vmem>>, %arg27: memref<7x!tpu.dma_semaphore, #tpu.memory_space<semaphore_mem>>) attributes {dimension_semantics = [#tpu.dimension_semantics<parallel>], iteration_bounds = array<i64: 1>, scalar_prefetch = 0 : i64, scratch_operands = 8 : i64, tpu.core_type = #tpu.core_type<tc>, window_params = [{transform_indices = @transform_0, window_bounds = array<i64: 1, 1>}, {transform_indices = @transform_1, window_bounds = array<i64: 16, 128>}, {transform_indices = @transform_2, window_bounds = array<i64: 16, 128>}, {}, {pipeline_mode = #tpu.pipeline_mode<synchronous>, transform_indices = @transform_4, window_bounds = array<i64: 1, 1024>}, {}, {pipeline_mode = #tpu.pipeline_mode<synchronous>, transform_indices = @transform_6, window_bounds = array<i64: 1, 1024>}, {}, {pipeline_mode = #tpu.pipeline_mode<synchronous>, transform_indices = @transform_8, window_bounds = array<i64: 1, 384>}, {}, {pipeline_mode = #tpu.pipeline_mode<synchronous>, transform_indices = @transform_10, window_bounds = array<i64: 1, 128>}, {}, {pipeline_mode = #tpu.pipeline_mode<synchronous>, transform_indices = @transform_12, window_bounds = array<i64: 1, 1024>}, {}, {pipeline_mode = #tpu.pipeline_mode<synchronous>, transform_indices = @transform_14, window_bounds = array<i64: 1, 1024>}, {}, {pipeline_mode = #tpu.pipeline_mode<synchronous>, transform_indices = @transform_16, window_bounds = array<i64: 1, 128>}, {transform_indices = @transform_17, window_bounds = array<i64: 16, 128>}, {transform_indices = @transform_18, window_bounds = array<i64: 16, 128>}]} {
    %c0 = arith.constant 0 : index
    %c0_0 = arith.constant 0 : index
    %0 = memref.load %arg1[%c0, %c0_0] : memref<1x1xf32, #tpu.memory_space<smem>>
    %cst = arith.constant 1.000000e+00 : f32
    %1 = arith.divf %cst, %0 : f32
    %c0_i32 = arith.constant 0 : i32
    %2 = tpu.memref_slice %arg27[%c0_i32] : memref<7x!tpu.dma_semaphore, #tpu.memory_space<semaphore_mem>> -> memref<1x!tpu.dma_semaphore, #tpu.memory_space<semaphore_mem>>
    %3 = tpu.memref_squeeze %2 : memref<1x!tpu.dma_semaphore, #tpu.memory_space<semaphore_mem>> -> memref<!tpu.dma_semaphore, #tpu.memory_space<semaphore_mem>>
    tpu.enqueue_dma source(%arg4 : memref<128x1024xbf16, #tpu.memory_space<any>>) target(%arg20 : memref<128x1024xbf16, #tpu.memory_space<vmem>>) target_semaphore(%3 : memref<!tpu.dma_semaphore, #tpu.memory_space<semaphore_mem>>)
    %c1_i32 = arith.constant 1 : i32
    %4 = tpu.memref_slice %arg27[%c1_i32] : memref<7x!tpu.dma_semaphore, #tpu.memory_space<semaphore_mem>> -> memref<1x!tpu.dma_semaphore, #tpu.memory_space<semaphore_mem>>
    %5 = tpu.memref_squeeze %4 : memref<1x!tpu.dma_semaphore, #tpu.memory_space<semaphore_mem>> -> memref<!tpu.dma_semaphore, #tpu.memory_space<semaphore_mem>>
    tpu.enqueue_dma source(%arg6 : memref<1024x1024xbf16, #tpu.memory_space<any>>) target(%arg21 : memref<1024x1024xbf16, #tpu.memory_space<vmem>>) target_semaphore(%5 : memref<!tpu.dma_semaphore, #tpu.memory_space<semaphore_mem>>)
    %c2_i32 = arith.constant 2 : i32
    %6 = tpu.memref_slice %arg27[%c2_i32] : memref<7x!tpu.dma_semaphore, #tpu.memory_space<semaphore_mem>> -> memref<1x!tpu.dma_semaphore, #tpu.memory_space<semaphore_mem>>
    %7 = tpu.memref_squeeze %6 : memref<1x!tpu.dma_semaphore, #tpu.memory_space<semaphore_mem>> -> memref<!tpu.dma_semaphore, #tpu.memory_space<semaphore_mem>>
    tpu.enqueue_dma source(%arg8 : memref<1024x384xbf16, #tpu.memory_space<any>>) target(%arg22 : memref<1024x384xbf16, #tpu.memory_space<vmem>>) target_semaphore(%7 : memref<!tpu.dma_semaphore, #tpu.memory_space<semaphore_mem>>)
    %c3_i32 = arith.constant 3 : i32
    %8 = tpu.memref_slice %arg27[%c3_i32] : memref<7x!tpu.dma_semaphore, #tpu.memory_space<semaphore_mem>> -> memref<1x!tpu.dma_semaphore, #tpu.memory_space<semaphore_mem>>
    %9 = tpu.memref_squeeze %8 : memref<1x!tpu.dma_semaphore, #tpu.memory_space<semaphore_mem>> -> memref<!tpu.dma_semaphore, #tpu.memory_space<semaphore_mem>>
    tpu.enqueue_dma source(%arg10 : memref<384x128xbf16, #tpu.memory_space<any>>) target(%arg23 : memref<384x128xbf16, #tpu.memory_space<vmem>>) target_semaphore(%9 : memref<!tpu.dma_semaphore, #tpu.memory_space<semaphore_mem>>)
    %c4_i32 = arith.constant 4 : i32
    %10 = tpu.memref_slice %arg27[%c4_i32] : memref<7x!tpu.dma_semaphore, #tpu.memory_space<semaphore_mem>> -> memref<1x!tpu.dma_semaphore, #tpu.memory_space<semaphore_mem>>
    %11 = tpu.memref_squeeze %10 : memref<1x!tpu.dma_semaphore, #tpu.memory_space<semaphore_mem>> -> memref<!tpu.dma_semaphore, #tpu.memory_space<semaphore_mem>>
    tpu.enqueue_dma source(%arg12 : memref<128x1024xbf16, #tpu.memory_space<any>>) target(%arg24 : memref<128x1024xbf16, #tpu.memory_space<vmem>>) target_semaphore(%11 : memref<!tpu.dma_semaphore, #tpu.memory_space<semaphore_mem>>)
    %c5_i32 = arith.constant 5 : i32
    %12 = tpu.memref_slice %arg27[%c5_i32] : memref<7x!tpu.dma_semaphore, #tpu.memory_space<semaphore_mem>> -> memref<1x!tpu.dma_semaphore, #tpu.memory_space<semaphore_mem>>
    %13 = tpu.memref_squeeze %12 : memref<1x!tpu.dma_semaphore, #tpu.memory_space<semaphore_mem>> -> memref<!tpu.dma_semaphore, #tpu.memory_space<semaphore_mem>>
    tpu.enqueue_dma source(%arg14 : memref<1024x1024xbf16, #tpu.memory_space<any>>) target(%arg25 : memref<1024x1024xbf16, #tpu.memory_space<vmem>>) target_semaphore(%13 : memref<!tpu.dma_semaphore, #tpu.memory_space<semaphore_mem>>)
    %c6_i32 = arith.constant 6 : i32
    %14 = tpu.memref_slice %arg27[%c6_i32] : memref<7x!tpu.dma_semaphore, #tpu.memory_space<semaphore_mem>> -> memref<1x!tpu.dma_semaphore, #tpu.memory_space<semaphore_mem>>
    %15 = tpu.memref_squeeze %14 : memref<1x!tpu.dma_semaphore, #tpu.memory_space<semaphore_mem>> -> memref<!tpu.dma_semaphore, #tpu.memory_space<semaphore_mem>>
    tpu.enqueue_dma source(%arg16 : memref<1024x128xbf16, #tpu.memory_space<any>>) target(%arg26 : memref<1024x128xbf16, #tpu.memory_space<vmem>>) target_semaphore(%15 : memref<!tpu.dma_semaphore, #tpu.memory_space<semaphore_mem>>)
    %c0_1 = arith.constant 0 : index
    %c0_2 = arith.constant 0 : index
    %16 = vector.load %arg2[%c0_1, %c0_2] : memref<16x128xbf16, #tpu.memory_space<vmem>>, vector<16x128xbf16>
    %c0_3 = arith.constant 0 : index
    %c0_4 = arith.constant 0 : index
    %17 = vector.load %arg3[%c0_3, %c0_4] : memref<16x128xf32, #tpu.memory_space<vmem>>, vector<16x128xf32>
    %c0_i32_5 = arith.constant 0 : i32
    %18 = tpu.memref_slice %arg27[%c0_i32_5] : memref<7x!tpu.dma_semaphore, #tpu.memory_space<semaphore_mem>> -> memref<1x!tpu.dma_semaphore, #tpu.memory_space<semaphore_mem>>
    %19 = tpu.memref_squeeze %18 : memref<1x!tpu.dma_semaphore, #tpu.memory_space<semaphore_mem>> -> memref<!tpu.dma_semaphore, #tpu.memory_space<semaphore_mem>>
    tpu.wait_dma2 semaphore(%19 : memref<!tpu.dma_semaphore, #tpu.memory_space<semaphore_mem>>) src(%arg4 : memref<128x1024xbf16, #tpu.memory_space<any>>) dst(%arg20 : memref<128x1024xbf16, #tpu.memory_space<vmem>>)
    %c0_6 = arith.constant 0 : index
    %c0_7 = arith.constant 0 : index
    %20 = vector.load %arg20[%c0_6, %c0_7] : memref<128x1024xbf16, #tpu.memory_space<vmem>>, vector<128x1024xbf16>
    %cst_8 = arith.constant dense<0.000000e+00> : vector<16x1024xf32>
    %21 = tpu.matmul %16, %20, %cst_8 {dimension_numbers = #tpu.dot_dimension_numbers<[1], [0], [0], [1], [0, 0, 1, 1], [], []>} : vector<16x128xbf16>, vector<128x1024xbf16>, vector<16x1024xf32> -> vector<16x1024xf32>
    %c0_9 = arith.constant 0 : index
    %c0_10 = arith.constant 0 : index
    %22 = vector.load %arg5[%c0_9, %c0_10] : memref<1x1024xf32, #tpu.memory_space<vmem>>, vector<1x1024xf32>
    %23 = vector.broadcast %22 : vector<1x1024xf32> to vector<16x1024xf32>
    %24 = arith.addf %21, %23 : vector<16x1024xf32>
    %cst_11 = arith.constant 0.000000e+00 : f32
    %25 = vector.broadcast %cst_11 : f32 to vector<16x1024xf32>
    %26 = arith.maximumf %24, %25 : vector<16x1024xf32>
    %27 = arith.truncf %26 : vector<16x1024xf32> to vector<16x1024xbf16>
    %c1_i32_12 = arith.constant 1 : i32
    %28 = tpu.memref_slice %arg27[%c1_i32_12] : memref<7x!tpu.dma_semaphore, #tpu.memory_space<semaphore_mem>> -> memref<1x!tpu.dma_semaphore, #tpu.memory_space<semaphore_mem>>
    %29 = tpu.memref_squeeze %28 : memref<1x!tpu.dma_semaphore, #tpu.memory_space<semaphore_mem>> -> memref<!tpu.dma_semaphore, #tpu.memory_space<semaphore_mem>>
    tpu.wait_dma2 semaphore(%29 : memref<!tpu.dma_semaphore, #tpu.memory_space<semaphore_mem>>) src(%arg6 : memref<1024x1024xbf16, #tpu.memory_space<any>>) dst(%arg21 : memref<1024x1024xbf16, #tpu.memory_space<vmem>>)
    %c0_13 = arith.constant 0 : index
    %c0_14 = arith.constant 0 : index
    %30 = vector.load %arg21[%c0_13, %c0_14] : memref<1024x1024xbf16, #tpu.memory_space<vmem>>, vector<1024x1024xbf16>
    %cst_15 = arith.constant dense<0.000000e+00> : vector<16x1024xf32>
    %31 = tpu.matmul %27, %30, %cst_15 {dimension_numbers = #tpu.dot_dimension_numbers<[1], [0], [0], [1], [0, 0, 1, 1], [], []>} : vector<16x1024xbf16>, vector<1024x1024xbf16>, vector<16x1024xf32> -> vector<16x1024xf32>
    %c0_16 = arith.constant 0 : index
    %c0_17 = arith.constant 0 : index
    %32 = vector.load %arg7[%c0_16, %c0_17] : memref<1x1024xf32, #tpu.memory_space<vmem>>, vector<1x1024xf32>
    %33 = vector.broadcast %32 : vector<1x1024xf32> to vector<16x1024xf32>
    %34 = arith.addf %31, %33 : vector<16x1024xf32>
    %cst_18 = arith.constant 0.000000e+00 : f32
    %35 = vector.broadcast %cst_18 : f32 to vector<16x1024xf32>
    %36 = arith.maximumf %34, %35 : vector<16x1024xf32>
    %37 = arith.truncf %36 : vector<16x1024xf32> to vector<16x1024xbf16>
    %c2_i32_19 = arith.constant 2 : i32
    %38 = tpu.memref_slice %arg27[%c2_i32_19] : memref<7x!tpu.dma_semaphore, #tpu.memory_space<semaphore_mem>> -> memref<1x!tpu.dma_semaphore, #tpu.memory_space<semaphore_mem>>
    %39 = tpu.memref_squeeze %38 : memref<1x!tpu.dma_semaphore, #tpu.memory_space<semaphore_mem>> -> memref<!tpu.dma_semaphore, #tpu.memory_space<semaphore_mem>>
    tpu.wait_dma2 semaphore(%39 : memref<!tpu.dma_semaphore, #tpu.memory_space<semaphore_mem>>) src(%arg8 : memref<1024x384xbf16, #tpu.memory_space<any>>) dst(%arg22 : memref<1024x384xbf16, #tpu.memory_space<vmem>>)
    %c0_20 = arith.constant 0 : index
    %c0_21 = arith.constant 0 : index
    %40 = vector.load %arg22[%c0_20, %c0_21] : memref<1024x384xbf16, #tpu.memory_space<vmem>>, vector<1024x384xbf16>
    %cst_22 = arith.constant dense<0.000000e+00> : vector<16x384xf32>
    %41 = tpu.matmul %37, %40, %cst_22 {dimension_numbers = #tpu.dot_dimension_numbers<[1], [0], [0], [1], [0, 0, 1, 1], [], []>} : vector<16x1024xbf16>, vector<1024x384xbf16>, vector<16x384xf32> -> vector<16x384xf32>
    %c0_23 = arith.constant 0 : index
    %c0_24 = arith.constant 0 : index
    %42 = vector.load %arg9[%c0_23, %c0_24] : memref<1x384xf32, #tpu.memory_space<vmem>>, vector<1x384xf32>
    %43 = vector.broadcast %42 : vector<1x384xf32> to vector<16x384xf32>
    %44 = arith.addf %41, %43 : vector<16x384xf32>
    %cst_25 = arith.constant 0.000000e+00 : f32
    %45 = vector.broadcast %cst_25 : f32 to vector<16x384xf32>
    %46 = arith.maximumf %44, %45 : vector<16x384xf32>
    %47 = arith.truncf %46 : vector<16x384xf32> to vector<16x384xbf16>
    %c3_i32_26 = arith.constant 3 : i32
    %48 = tpu.memref_slice %arg27[%c3_i32_26] : memref<7x!tpu.dma_semaphore, #tpu.memory_space<semaphore_mem>> -> memref<1x!tpu.dma_semaphore, #tpu.memory_space<semaphore_mem>>
    %49 = tpu.memref_squeeze %48 : memref<1x!tpu.dma_semaphore, #tpu.memory_space<semaphore_mem>> -> memref<!tpu.dma_semaphore, #tpu.memory_space<semaphore_mem>>
    tpu.wait_dma2 semaphore(%49 : memref<!tpu.dma_semaphore, #tpu.memory_space<semaphore_mem>>) src(%arg10 : memref<384x128xbf16, #tpu.memory_space<any>>) dst(%arg23 : memref<384x128xbf16, #tpu.memory_space<vmem>>)
    %c0_27 = arith.constant 0 : index
    %c0_28 = arith.constant 0 : index
    %50 = vector.load %arg23[%c0_27, %c0_28] : memref<384x128xbf16, #tpu.memory_space<vmem>>, vector<384x128xbf16>
    %cst_29 = arith.constant dense<0.000000e+00> : vector<16x128xf32>
    %51 = tpu.matmul %47, %50, %cst_29 {dimension_numbers = #tpu.dot_dimension_numbers<[1], [0], [0], [1], [0, 0, 1, 1], [], []>} : vector<16x384xbf16>, vector<384x128xbf16>, vector<16x128xf32> -> vector<16x128xf32>
    %c0_30 = arith.constant 0 : index
    %c0_31 = arith.constant 0 : index
    %52 = vector.load %arg11[%c0_30, %c0_31] : memref<1x128xf32, #tpu.memory_space<vmem>>, vector<1x128xf32>
    %53 = vector.broadcast %52 : vector<1x128xf32> to vector<16x128xf32>
    %54 = arith.addf %51, %53 : vector<16x128xf32>
    %c0_32 = arith.constant 0 : index
    %c0_33 = arith.constant 0 : index
    %55 = vector.load %arg19[%c0_32, %c0_33] : memref<16x128xf32, #tpu.memory_space<vmem>>, vector<16x128xf32>
    tpu.vector_store %arg19[%c0_32, %c0_33], %54 {strides = array<i32>} : memref<16x128xf32, #tpu.memory_space<vmem>>, vector<16x128xf32>,
    %cst_34 = arith.constant 9.99999968E-21 : f32
    %56 = vector.broadcast %cst_34 : f32 to vector<16x128xf32>
    %57 = arith.addf %17, %56 : vector<16x128xf32>
    %58 = math.log %57 : vector<16x128xf32>
    %cst_35 = arith.constant 0.000000e+00 : f32
    %59 = vector.broadcast %cst_35 : f32 to vector<16x128xf32>
    %60 = arith.subf %59, %58 : vector<16x128xf32>
    %cst_36 = arith.constant 9.99999968E-21 : f32
    %61 = vector.broadcast %cst_36 : f32 to vector<16x128xf32>
    %62 = arith.addf %60, %61 : vector<16x128xf32>
    %63 = math.log %62 : vector<16x128xf32>
    %cst_37 = arith.constant 0.000000e+00 : f32
    %64 = vector.broadcast %cst_37 : f32 to vector<16x128xf32>
    %65 = arith.subf %64, %63 : vector<16x128xf32>
    %66 = arith.addf %65, %54 : vector<16x128xf32>
    %67 = vector.broadcast %1 : f32 to vector<16x128xf32>
    %68 = arith.mulf %66, %67 : vector<16x128xf32>
    %69 = tpu.iota {dimensions = array<i32: 1>} : vector<16x128xi32>
    %c8_i32 = arith.constant 8 : i32
    %70 = vector.broadcast %c8_i32 : i32 to vector<16x128xi32>
    %71 = arith.cmpi slt, %69, %70 : vector<16x128xi32>
    %cst_38 = arith.constant -1.000000e+30 : f32
    %72 = vector.broadcast %cst_38 : f32 to vector<16x128xf32>
    %73 = arith.select %71, %68, %72 : vector<16x128xi1>, vector<16x128xf32>
    %cst_39 = arith.constant dense<0xFF800000> : vector<16xf32>
    %74 = vector.multi_reduction <maximumf>, %73, %cst_39 [1] : vector<16x128xf32> to vector<16xf32>
    %75 = vector.shape_cast %74 : vector<16xf32> to vector<16x1xf32>
    %76 = vector.broadcast %75 : vector<16x1xf32> to vector<16x128xf32>
    %77 = arith.subf %73, %76 : vector<16x128xf32>
    %78 = math.exp %77 : vector<16x128xf32>
    %cst_40 = arith.constant 0.000000e+00 : f32
    %79 = vector.broadcast %cst_40 : f32 to vector<16x128xf32>
    %80 = arith.select %71, %78, %79 : vector<16x128xi1>, vector<16x128xf32>
    %cst_41 = arith.constant dense<0.000000e+00> : vector<16xf32>
    %81 = vector.multi_reduction <add>, %80, %cst_41 [1] : vector<16x128xf32> to vector<16xf32>
    %82 = vector.shape_cast %81 : vector<16xf32> to vector<16x1xf32>
    %83 = tpu.reciprocal %82 {approx = true} : vector<16x1xf32> -> vector<16x1xf32>
    %84 = vector.broadcast %83 : vector<16x1xf32> to vector<16x128xf32>
    %85 = arith.mulf %80, %84 : vector<16x128xf32>
    %86 = arith.truncf %85 : vector<16x128xf32> to vector<16x128xbf16>
    %c4_i32_42 = arith.constant 4 : i32
    %87 = tpu.memref_slice %arg27[%c4_i32_42] : memref<7x!tpu.dma_semaphore, #tpu.memory_space<semaphore_mem>> -> memref<1x!tpu.dma_semaphore, #tpu.memory_space<semaphore_mem>>
    %88 = tpu.memref_squeeze %87 : memref<1x!tpu.dma_semaphore, #tpu.memory_space<semaphore_mem>> -> memref<!tpu.dma_semaphore, #tpu.memory_space<semaphore_mem>>
    tpu.wait_dma2 semaphore(%88 : memref<!tpu.dma_semaphore, #tpu.memory_space<semaphore_mem>>) src(%arg12 : memref<128x1024xbf16, #tpu.memory_space<any>>) dst(%arg24 : memref<128x1024xbf16, #tpu.memory_space<vmem>>)
    %c0_43 = arith.constant 0 : index
    %c0_44 = arith.constant 0 : index
    %89 = vector.load %arg24[%c0_43, %c0_44] : memref<128x1024xbf16, #tpu.memory_space<vmem>>, vector<128x1024xbf16>
    %cst_45 = arith.constant dense<0.000000e+00> : vector<16x1024xf32>
    %90 = tpu.matmul %86, %89, %cst_45 {dimension_numbers = #tpu.dot_dimension_numbers<[1], [0], [0], [1], [0, 0, 1, 1], [], []>} : vector<16x128xbf16>, vector<128x1024xbf16>, vector<16x1024xf32> -> vector<16x1024xf32>
    %c0_46 = arith.constant 0 : index
    %c0_47 = arith.constant 0 : index
    %91 = vector.load %arg13[%c0_46, %c0_47] : memref<1x1024xf32, #tpu.memory_space<vmem>>, vector<1x1024xf32>
    %92 = vector.broadcast %91 : vector<1x1024xf32> to vector<16x1024xf32>
    %93 = arith.addf %90, %92 : vector<16x1024xf32>
    %cst_48 = arith.constant 0.000000e+00 : f32
    %94 = vector.broadcast %cst_48 : f32 to vector<16x1024xf32>
    %95 = arith.maximumf %93, %94 : vector<16x1024xf32>
    %96 = arith.truncf %95 : vector<16x1024xf32> to vector<16x1024xbf16>
    %c5_i32_49 = arith.constant 5 : i32
    %97 = tpu.memref_slice %arg27[%c5_i32_49] : memref<7x!tpu.dma_semaphore, #tpu.memory_space<semaphore_mem>> -> memref<1x!tpu.dma_semaphore, #tpu.memory_space<semaphore_mem>>
    %98 = tpu.memref_squeeze %97 : memref<1x!tpu.dma_semaphore, #tpu.memory_space<semaphore_mem>> -> memref<!tpu.dma_semaphore, #tpu.memory_space<semaphore_mem>>
    tpu.wait_dma2 semaphore(%98 : memref<!tpu.dma_semaphore, #tpu.memory_space<semaphore_mem>>) src(%arg14 : memref<1024x1024xbf16, #tpu.memory_space<any>>) dst(%arg25 : memref<1024x1024xbf16, #tpu.memory_space<vmem>>)
    %c0_50 = arith.constant 0 : index
    %c0_51 = arith.constant 0 : index
    %99 = vector.load %arg25[%c0_50, %c0_51] : memref<1024x1024xbf16, #tpu.memory_space<vmem>>, vector<1024x1024xbf16>
    %cst_52 = arith.constant dense<0.000000e+00> : vector<16x1024xf32>
    %100 = tpu.matmul %96, %99, %cst_52 {dimension_numbers = #tpu.dot_dimension_numbers<[1], [0], [0], [1], [0, 0, 1, 1], [], []>} : vector<16x1024xbf16>, vector<1024x1024xbf16>, vector<16x1024xf32> -> vector<16x1024xf32>
    %c0_53 = arith.constant 0 : index
    %c0_54 = arith.constant 0 : index
    %101 = vector.load %arg15[%c0_53, %c0_54] : memref<1x1024xf32, #tpu.memory_space<vmem>>, vector<1x1024xf32>
    %102 = vector.broadcast %101 : vector<1x1024xf32> to vector<16x1024xf32>
    %103 = arith.addf %100, %102 : vector<16x1024xf32>
    %cst_55 = arith.constant 0.000000e+00 : f32
    %104 = vector.broadcast %cst_55 : f32 to vector<16x1024xf32>
    %105 = arith.maximumf %103, %104 : vector<16x1024xf32>
    %106 = arith.truncf %105 : vector<16x1024xf32> to vector<16x1024xbf16>
    %c6_i32_56 = arith.constant 6 : i32
    %107 = tpu.memref_slice %arg27[%c6_i32_56] : memref<7x!tpu.dma_semaphore, #tpu.memory_space<semaphore_mem>> -> memref<1x!tpu.dma_semaphore, #tpu.memory_space<semaphore_mem>>
    %108 = tpu.memref_squeeze %107 : memref<1x!tpu.dma_semaphore, #tpu.memory_space<semaphore_mem>> -> memref<!tpu.dma_semaphore, #tpu.memory_space<semaphore_mem>>
    tpu.wait_dma2 semaphore(%108 : memref<!tpu.dma_semaphore, #tpu.memory_space<semaphore_mem>>) src(%arg16 : memref<1024x128xbf16, #tpu.memory_space<any>>) dst(%arg26 : memref<1024x128xbf16, #tpu.memory_space<vmem>>)
    %c0_57 = arith.constant 0 : index
    %c0_58 = arith.constant 0 : index
    %109 = vector.load %arg26[%c0_57, %c0_58] : memref<1024x128xbf16, #tpu.memory_space<vmem>>, vector<1024x128xbf16>
    %cst_59 = arith.constant dense<0.000000e+00> : vector<16x128xf32>
    %110 = tpu.matmul %106, %109, %cst_59 {dimension_numbers = #tpu.dot_dimension_numbers<[1], [0], [0], [1], [0, 0, 1, 1], [], []>} : vector<16x1024xbf16>, vector<1024x128xbf16>, vector<16x128xf32> -> vector<16x128xf32>
    %c0_60 = arith.constant 0 : index
    %c0_61 = arith.constant 0 : index
    %111 = vector.load %arg17[%c0_60, %c0_61] : memref<1x128xf32, #tpu.memory_space<vmem>>, vector<1x128xf32>
    %112 = vector.broadcast %111 : vector<1x128xf32> to vector<16x128xf32>
    %113 = arith.addf %110, %112 : vector<16x128xf32>
    %c0_62 = arith.constant 0 : index
    %c0_63 = arith.constant 0 : index
    %114 = vector.load %arg18[%c0_62, %c0_63] : memref<16x128xf32, #tpu.memory_space<vmem>>, vector<16x128xf32>
    tpu.vector_store %arg18[%c0_62, %c0_63], %113 {strides = array<i32>} : memref<16x128xf32, #tpu.memory_space<vmem>>, vector<16x128xf32>,
    return
  }
  func.func @transform_0(%arg0: i32) -> (i32, i32) {
    %c0_i32 = arith.constant 0 : i32
    %c0_i32_0 = arith.constant 0 : i32
    %c0_i32_1 = arith.constant 0 : i32
    return %c0_i32, %c0_i32_0 : i32, i32
  }
  func.func @transform_1(%arg0: i32) -> (i32, i32) {
    %c0_i32 = arith.constant 0 : i32
    %c0_i32_0 = arith.constant 0 : i32
    return %arg0, %c0_i32 : i32, i32
  }
  func.func @transform_2(%arg0: i32) -> (i32, i32) {
    %c0_i32 = arith.constant 0 : i32
    %c0_i32_0 = arith.constant 0 : i32
    return %arg0, %c0_i32 : i32, i32
  }
  func.func @transform_4(%arg0: i32) -> (i32, i32) {
    %c0_i32 = arith.constant 0 : i32
    %c0_i32_0 = arith.constant 0 : i32
    %c0_i32_1 = arith.constant 0 : i32
    return %c0_i32, %c0_i32_0 : i32, i32
  }
  func.func @transform_6(%arg0: i32) -> (i32, i32) {
    %c0_i32 = arith.constant 0 : i32
    %c0_i32_0 = arith.constant 0 : i32
    %c0_i32_1 = arith.constant 0 : i32
    return %c0_i32, %c0_i32_0 : i32, i32
  }
  func.func @transform_8(%arg0: i32) -> (i32, i32) {
    %c0_i32 = arith.constant 0 : i32
    %c0_i32_0 = arith.constant 0 : i32
    %c0_i32_1 = arith.constant 0 : i32
    return %c0_i32, %c0_i32_0 : i32, i32
  }
  func.func @transform_10(%arg0: i32) -> (i32, i32) {
    %c0_i32 = arith.constant 0 : i32
    %c0_i32_0 = arith.constant 0 : i32
    %c0_i32_1 = arith.constant 0 : i32
    return %c0_i32, %c0_i32_0 : i32, i32
  }
  func.func @transform_12(%arg0: i32) -> (i32, i32) {
    %c0_i32 = arith.constant 0 : i32
    %c0_i32_0 = arith.constant 0 : i32
    %c0_i32_1 = arith.constant 0 : i32
    return %c0_i32, %c0_i32_0 : i32, i32
  }
  func.func @transform_14(%arg0: i32) -> (i32, i32) {
    %c0_i32 = arith.constant 0 : i32
    %c0_i32_0 = arith.constant 0 : i32
    %c0_i32_1 = arith.constant 0 : i32
    return %c0_i32, %c0_i32_0 : i32, i32
  }
  func.func @transform_16(%arg0: i32) -> (i32, i32) {
    %c0_i32 = arith.constant 0 : i32
    %c0_i32_0 = arith.constant 0 : i32
    %c0_i32_1 = arith.constant 0 : i32
    return %c0_i32, %c0_i32_0 : i32, i32
  }
  func.func @transform_17(%arg0: i32) -> (i32, i32) {
    %c0_i32 = arith.constant 0 : i32
    %c0_i32_0 = arith.constant 0 : i32
    return %arg0, %c0_i32 : i32, i32
  }
  func.func @transform_18(%arg0: i32) -> (i32, i32) {
    %c0_i32 = arith.constant 0 : i32
    %c0_i32_0 = arith.constant 0 : i32
    return %arg0, %c0_i32 : i32, i32
  }
}

</mosaic_0001>

<bundles_post_ra>
// kernel: concrete_forward.1
= control target key start
LH: loop header
LB: loop body
LE: loop exit
PB: predicated region body
PF: predicated region fallthrough
CT: control target
= control target key end

     0   :  { %s14656_s0 = inlined_call_operand.<no memory space> [shape: f32[1,1], index: 0, kind: input, shape index: {}]   ;;  %s14657_s1 = inlined_call_operand.vmem [shape: bf16[16,128], index: 1, kind: input, shape index: {}]   ;;  %s14658_s2 = inlined_call_operand.vmem [shape: f32[16,128], index: 2, kind: input, shape index: {}]   ;;  %s14659_s3 = inlined_call_operand.hbm [shape: bf16[128,1024], index: 3, kind: input, shape index: {}]   ;;  %s14660_s4 = inlined_call_operand.hbm [shape: f32[1,1024], index: 4, kind: input, shape index: {}]   ;;  %s14661_s5 = inlined_call_operand.hbm [shape: bf16[1024,1024], index: 5, kind: input, shape index: {}]   ;;  %s14662_s6 = inlined_call_operand.hbm [shape: f32[1,1024], index: 6, kind: input, shape index: {}]   ;;  %s14663_s7 = inlined_call_operand.hbm [shape: bf16[1024,384], index: 7, kind: input, shape index: {}]   ;;  %s14664_s8 = inlined_call_operand.hbm [shape: f32[1,384], index: 8, kind: input, shape index: {}]   ;;  %s14665_s9 = inlined_call_operand.hbm [shape: bf16[384,128], index: 9, kind: input, shape index: {}]   ;;  %s14666_s10 = inlined_call_operand.hbm [shape: f32[1,128], index: 10, kind: input, shape index: {}]   ;;  %s14667_s11 = inlined_call_operand.hbm [shape: bf16[128,1024], index: 11, kind: input, shape index: {}]   ;;  %s14668_s12 = inlined_call_operand.hbm [shape: f32[1,1024], index: 12, kind: input, shape index: {}]   ;;  %s14669_s13 = inlined_call_operand.hbm [shape: bf16[1024,1024], index: 13, kind: input, shape index: {}]   ;;  %s14670_s14 = inlined_call_operand.hbm [shape: f32[1,1024], index: 14, kind: input, shape index: {}]   ;;  %s14671_s15 = inlined_call_operand.hbm [shape: bf16[1024,128], index: 15, kind: input, shape index: {}]   ;;  %s14672_s16 = inlined_call_operand.hbm [shape: f32[1,128], index: 16, kind: input, shape index: {}]   ;;  %s14673_s17 = inlined_call_operand.vmem [shape: f32[16,128], index: 17, kind: output, shape index: {0}]   ;;  %s14674_s18 = inlined_call_operand.vmem [shape: f32[16,128], index: 18, kind: output, shape index: {1}]  }
   0x1   :  { %14677 = sst [smem:[#allocation49_spill]] %s14656_s0 }
   0x2   :  { %14678 = sst [smem:[#allocation50_spill]] %s14657_s1 }
   0x3   :  { %14679 = sst [smem:[#allocation51_spill]] %s14658_s2 }
   0x4   :  { %25 = vsyncpa [#allocation12], 0 }
   0x5   :  { %26 = vsyncpa [#allocation14], 0 }
   0x6   :  { %27 = vsyncpa [#allocation17], 0 }
   0x7   :  { %28 = vsyncpa [#allocation20], 0  ;;  %s14213_s27 = smov [#allocation13]   ;;  %s14214_s29 = smov [#allocation16]  }
   0x8   :  { %s51_s28 = sshll.u32 %s14213_s27, 4  ;;  %s71_s30 = sshll.u32 %s14214_s29, 4  ;;  %s52_s28 = int_to_ptr.vmem [resolvable:$true] %s51_s28  ;;  %s72_s30 = int_to_ptr.vmem [resolvable:$true] %s71_s30 }
   0x9   :  { %s13919_s0 = scalar_lea.vmem %s52_s28, 128  ;;  %p13924_p1 = scmp.lt.s32.totalorder %s52_s28, %s52_s28 }
   0xa   :  { %p13920_p0 = scmp.ne.s32.totalorder %s52_s28, %s13919_s0  ;;  %p13925_p2 = scmp.lt.s32.totalorder %s13919_s0, %s13919_s0 }
   0xc   :  { %p13926_p3 = por %p13925_p2, %p13924_p1 }
   0xe   :  { %p13927_p4 = pnand %p13926_p3, %p13920_p0 }
  0x10   :  { %13930 = shalt.err (!%p13927_p4)
}
  0x11   :  { %54 = dma.hbm_to_vmem [thread:$0]  %s14662_s6, 128, %s52_s28, [#allocation14]  }
  0x12   :  { %s13939_s20 = scalar_lea.vmem %s72_s30, 16  ;;  %s13943_s21 = scalar_lea.vmem %s72_s30, 32 }
  0x13   :  { %p13940_p5 = scmp.ne.s32.totalorder %s72_s30, %s13939_s20  ;;  %p13944_p6 = scmp.lt.s32.totalorder %s72_s30, %s72_s30 }
  0x14   :  { %p13945_p7 = scmp.lt.s32.totalorder %s13943_s21, %s13939_s20 }
  0x16   :  { %p13946_p8 = por %p13945_p7, %p13944_p6 }
  0x18   :  { %p13947_p9 = pnand %p13946_p8, %p13940_p5 }
  0x1a   :  { %13950 = shalt.err (!%p13947_p9)
}
  0x1b   :  { %74 = dma.hbm_to_vmem [thread:$0]  %s14666_s10, 16, %s72_s30, [#allocation17]  }
  0x1c   :  { %s14215_s23 = smov [#allocation19]   ;;  %s14216_s25 = smov [#allocation11]  }
  0x1d   :  { %s91_s24 = sshll.u32 %s14215_s23, 4  ;;  %s41_s26 = sshll.u32 %s14216_s25, 4  ;;  %s92_s24 = int_to_ptr.vmem [resolvable:$true] %s91_s24  ;;  %s42_s26 = int_to_ptr.vmem [resolvable:$true] %s41_s26 }
  0x1e   :  { %s13959_s27 = scalar_lea.vmem %s92_s24, 128  ;;  %p13964_p11 = scmp.lt.s32.totalorder %s92_s24, %s92_s24 }
  0x1f   :  { %p13960_p10 = scmp.ne.s32.totalorder %s92_s24, %s13959_s27  ;;  %p13965_p12 = scmp.lt.s32.totalorder %s13959_s27, %s13959_s27 }
  0x21   :  { %p13966_p13 = por %p13965_p12, %p13964_p11 }
  0x23   :  { %p13967_p0 = pnand %p13966_p13, %p13960_p10 }
  0x25   :  { %13970 = shalt.err (!%p13967_p0)
}
  0x26   :  { %94 = dma.hbm_to_vmem [thread:$0]  %s14670_s14, 128, %s92_s24, [#allocation20]  }
  0x27   :  { %s13979_s29 = scalar_lea.vmem %s42_s26, 128  ;;  %p13984_p2 = scmp.lt.s32.totalorder %s42_s26, %s42_s26 }
  0x28   :  { %p13980_p1 = scmp.ne.s32.totalorder %s42_s26, %s13979_s29  ;;  %p13985_p3 = scmp.lt.s32.totalorder %s13979_s29, %s13979_s29 }
  0x2a   :  { %p13986_p4 = por %p13985_p3, %p13984_p2 }
  0x2c   :  { %p13987_p5 = pnand %p13986_p4, %p13980_p1 }
  0x2e   :  { %13990 = shalt.err (!%p13987_p5)
}
  0x2f   :  { %44 = dma.hbm_to_vmem [thread:$0]  %s14660_s4, 128, %s42_s26, [#allocation12]  }
  0x30   :  { %s14217_s0 = smov [#allocation15]   ;;  %s14218_s1 = smov [#allocation18]  }
  0x31   :  { %s61_s19 = sshll.u32 %s14217_s0, 4  ;;  %s81_s20 = sshll.u32 %s14218_s1, 4  ;;  %s62_s19 = int_to_ptr.vmem [resolvable:$true] %s61_s19  ;;  %s82_s20 = int_to_ptr.vmem [resolvable:$true] %s81_s20 }
  0x32   :  { %s13999_s21 = scalar_lea.vmem %s62_s19, 48  ;;  %s14003_s14 = scalar_lea.vmem %s62_s19, 64 }
  0x33   :  { %p14000_p6 = scmp.ne.s32.totalorder %s62_s19, %s13999_s21  ;;  %p14004_p7 = scmp.lt.s32.totalorder %s62_s19, %s62_s19 }
  0x34   :  { %p14005_p8 = scmp.lt.s32.totalorder %s14003_s14, %s13999_s21 }
  0x36   :  { %p14006_p9 = por %p14005_p8, %p14004_p7 }
  0x38   :  { %p14007_p10 = pnand %p14006_p9, %p14000_p6 }
  0x3a   :  { %14010 = shalt.err (!%p14007_p10)
}
  0x3b   :  { %64 = dma.hbm_to_vmem [thread:$0]  %s14664_s8, 48, %s62_s19, [#allocation14]  }
  0x3c   :  { %s14019_s23 = scalar_lea.vmem %s82_s20, 128  ;;  %p14024_p12 = scmp.lt.s32.totalorder %s82_s20, %s82_s20 }
  0x3d   :  { %p14020_p11 = scmp.ne.s32.totalorder %s82_s20, %s14019_s23  ;;  %p14025_p13 = scmp.lt.s32.totalorder %s14019_s23, %s14019_s23 }
  0x3f   :  { %p14026_p0 = por %p14025_p13, %p14024_p12 }
  0x41   :  { %p14027_p1 = pnand %p14026_p0, %p14020_p11 }
  0x43   :  { %14030 = shalt.err (!%p14027_p1)
}
  0x44   :  { %84 = dma.hbm_to_vmem [thread:$0]  %s14668_s12, 128, %s82_s20, [#allocation17]  }
  0x45   :  { %s14219_s25 = smov [#allocation21]  }
  0x46   :  { %s101_s26 = sshll.u32 %s14219_s25, 4  ;;  %s102_s26 = int_to_ptr.vmem [resolvable:$true] %s101_s26 }
  0x47   :  { %s14039_s27 = scalar_lea.vmem %s102_s26, 16  ;;  %s14043_s6 = scalar_lea.vmem %s102_s26, 32 }
  0x48   :  { %p14040_p2 = scmp.ne.s32.totalorder %s102_s26, %s14039_s27  ;;  %p14044_p3 = scmp.lt.s32.totalorder %s102_s26, %s102_s26 }
  0x49   :  { %p14045_p4 = scmp.lt.s32.totalorder %s14043_s6, %s14039_s27 }
  0x4b   :  { %p14046_p5 = por %p14045_p4, %p14044_p3 }
  0x4d   :  { %p14047_p6 = pnand %p14046_p5, %p14040_p2 }
  0x4f   :  { %14050 = shalt.err (!%p14047_p6)
}
  0x50   :  { %104 = dma.hbm_to_vmem [thread:$0]  %s14672_s16, 16, %s102_s26, [#allocation20]  }
  0x51   :  { %14191 = dma.done.wait [#allocation12], 128  }
  0x52   :  { %14192 = vsyncadd [#allocation12], 4294967168 }
  0x53   :  { %14193 = dma.done.wait [#allocation14], 176  }
  0x54   :  { %14194 = vsyncadd [#allocation14], 4294967120 }
  0x55   :  { %14195 = dma.done.wait [#allocation17], 144  }
  0x56   :  { %14196 = vsyncadd [#allocation17], 4294967152  ;;  %s14680_s10 = sld [smem:[#allocation49_spill]] }
  0x5c   :  { %v128_v0 = vstv %s14680_s10 }
  0x5d   :  { %14197 = dma.done.wait [#allocation20], 144  }
  0x5e   :  { %14198 = vsyncadd [#allocation20], 4294967152  ;;  %13547 = vrcp.f32 %v128_v0  ;;  %s14220_s30 = smov [#allocation2]   ;;  %s14221_s19 = smov [#allocation3]  }
  0x5f   :  { %s138_s0 = sshll.u32 %s14220_s30, 4  ;;  %s150_s1 = sshll.u32 %s14221_s19, 4  ;;  %s139_s0 = int_to_ptr.vmem [resolvable:$true] %s138_s0  ;;  %s151_s1 = int_to_ptr.vmem [resolvable:$true] %s150_s1 }
  0x60   :  { %s14059_s16 = scalar_lea.vmem %s139_s0, 8192  ;;  %p14064_p8 = scmp.lt.s32.totalorder %s139_s0, %s139_s0 }
  0x61   :  { %p14060_p7 = scmp.ne.s32.totalorder %s139_s0, %s14059_s16  ;;  %p14065_p9 = scmp.lt.s32.totalorder %s14059_s16, %s14059_s16 }
  0x63   :  { %p14066_p10 = por %p14065_p9, %p14064_p8 }
  0x65   :  { %p14067_p11 = pnand %p14066_p10, %p14060_p7 }
  0x67   :  { %14070 = shalt.err (!%p14067_p11)  }
  0x68   :  { %141 = dma.hbm_to_vmem [thread:$0]  %s14659_s3, 8192, %s139_s0, [#allocation9] }
  0x69   :  { %s14079_s14 = scalar_lea.vmem %s151_s1, 65536  ;;  %p14084_p13 = scmp.lt.s32.totalorder %s151_s1, %s151_s1 }
  0x6a   :  { %p14080_p12 = scmp.ne.s32.totalorder %s151_s1, %s14079_s14  ;;  %p14085_p0 = scmp.lt.s32.totalorder %s14079_s14, %s14079_s14 }
  0x6c   :  { %p14086_p1 = por %p14085_p0, %p14084_p13 }
  0x6e   :  { %p14087_p2 = pnand %p14086_p1, %p14080_p12 }
  0x70   :  { %14090 = shalt.err (!%p14087_p2)  }
  0x71   :  { %153 = dma.hbm_to_vmem [thread:$0]  %s14661_s5, 65536, %s151_s1, [#allocation9 + $0x1] }
  0x72   :  { %s14222_s23 = smov [#allocation4]   ;;  %s14223_s24 = smov [#allocation5]  }
  0x73   :  { %s162_s4 = sshll.u32 %s14222_s23, 4  ;;  %s174_s25 = sshll.u32 %s14223_s24, 4  ;;  %s163_s4 = int_to_ptr.vmem [resolvable:$true] %s162_s4  ;;  %s175_s25 = int_to_ptr.vmem [resolvable:$true] %s174_s25 }
  0x74   :  { %s14681_s6 = sld [smem:[#allocation50_spill]]  ;;  %s14099_s30 = scalar_lea.vmem %s163_s4, 24576 }
  0x75   :  { %s14682_s29 = sld [smem:[#allocation51_spill]]  ;;  %p14100_p3 = scmp.ne.s32.totalorder %s163_s4, %s14099_s30 }
  0x76   :  { %p14104_p4 = scmp.lt.s32.totalorder %s163_s4, %s163_s4  ;;  %p14105_p5 = scmp.lt.s32.totalorder %s14099_s30, %s14099_s30 }
  0x78   :  { %p14106_p6 = por %p14105_p5, %p14104_p4 }
  0x7a   :  { %v14358_v1 = vld [vmem:[%s14681_s6] sm:$0xf]  ;;  %v14363_v2 = vld [vmem:[%s14681_s6 + $0x4] sm:$0xf]  ;;  %p14107_p7 = pnand %p14106_p6, %p14100_p3 }
  0x7b   :  { %v14368_v3 = vld [vmem:[%s14682_s29] sm:$0xff]  ;;  %v14373_v4 = vld [vmem:[%s14682_s29 + $0x8] sm:$0xff] }
  0x7c   :  { %14110 = shalt.err (!%p14107_p7)  }
  0x7d   :  { %165 = dma.hbm_to_vmem [thread:$0]  %s14663_s7, 24576, %s163_s4, [#allocation9 + $0x2] }
  0x7e   :  { %s14119_s1 = scalar_lea.vmem %s175_s25, 3072  ;;  %p14124_p9 = scmp.lt.s32.totalorder %s175_s25, %s175_s25 }
  0x7f   :  { %p14120_p8 = scmp.ne.s32.totalorder %s175_s25, %s14119_s1  ;;  %p14125_p10 = scmp.lt.s32.totalorder %s14119_s1, %s14119_s1 }
  0x81   :  { %p14126_p11 = por %p14125_p10, %p14124_p9 }
  0x83   :  { %p14127_p12 = pnand %p14126_p11, %p14120_p8 }
  0x85   :  { %14130 = shalt.err (!%p14127_p12)  }
  0x86   :  { %177 = dma.hbm_to_vmem [thread:$0]  %s14665_s9, 3072, %s175_s25, [#allocation9 + $0x3] }
  0x87   :  { %s14224_s21 = smov [#allocation6]   ;;  %s14225_s22 = smov [#allocation7]  }
  0x88   :  { %s186_s14 = sshll.u32 %s14224_s21, 4  ;;  %s198_s2 = sshll.u32 %s14225_s22, 4  ;;  %s187_s14 = int_to_ptr.vmem [resolvable:$true] %s186_s14  ;;  %s199_s2 = int_to_ptr.vmem [resolvable:$true] %s198_s2 }
  0x89   :  { %s14139_s23 = scalar_lea.vmem %s187_s14, 8192  ;;  %p14144_p0 = scmp.lt.s32.totalorder %s187_s14, %s187_s14 }
  0x8a   :  { %p14140_p13 = scmp.ne.s32.totalorder %s187_s14, %s14139_s23  ;;  %p14145_p1 = scmp.lt.s32.totalorder %s14139_s23, %s14139_s23 }
  0x8c   :  { %p14146_p2 = por %p14145_p1, %p14144_p0 }
  0x8e   :  { %p14147_p3 = pnand %p14146_p2, %p14140_p13 }
  0x90   :  { %14150 = shalt.err (!%p14147_p3)  }
  0x91   :  { %189 = dma.hbm_to_vmem [thread:$0]  %s14667_s11, 8192, %s187_s14, [#allocation9 + $0x4]  ;;  %v13548_v5 = vpop.eup %13547 }
  0x92   :  { %s14159_s24 = scalar_lea.vmem %s199_s2, 65536  ;;  %p14164_p5 = scmp.lt.s32.totalorder %s199_s2, %s199_s2 }
  0x93   :  { %p14160_p4 = scmp.ne.s32.totalorder %s199_s2, %s14159_s24  ;;  %p14165_p6 = scmp.lt.s32.totalorder %s14159_s24, %s14159_s24 }
  0x95   :  { %p14166_p7 = por %p14165_p6, %p14164_p5 }
  0x97   :  { %p14167_p8 = pnand %p14166_p7, %p14160_p4 }
  0x99   :  { %14170 = shalt.err (!%p14167_p8)  }
  0x9a   :  { %201 = dma.hbm_to_vmem [thread:$0]  %s14669_s13, 65536, %s199_s2, [#allocation9 + $0x5]  ;;  %13528 = vpush %v13548_v5 }
  0x9b   :  { %s14226_s26 = smov [#allocation8]  }
  0x9c   :  { %s210_s27 = sshll.u32 %s14226_s26, 4  ;;  %s211_s27 = int_to_ptr.vmem [resolvable:$true] %s210_s27 }
  0x9d   :  { %s14179_s6 = scalar_lea.vmem %s211_s27, 8192  ;;  %p14184_p10 = scmp.lt.s32.totalorder %s211_s27, %s211_s27 }
  0x9e   :  { %p14180_p9 = scmp.ne.s32.totalorder %s211_s27, %s14179_s6  ;;  %p14185_p11 = scmp.lt.s32.totalorder %s14179_s6, %s14179_s6 }
  0xa0   :  { %p14186_p12 = por %p14185_p11, %p14184_p10 }
  0xa2   :  { %p14187_p13 = pnand %p14186_p12, %p14180_p9 }
  0xa4   :  { %14190 = shalt.err (!%p14187_p13)  }
  0xa5   :  { %213 = dma.hbm_to_vmem [thread:$0]  %s14671_s15, 8192, %s211_s27, [#allocation9 + $0x6] }
  0xcb   :  { %s14390_s8 = spop %13528 }
  0xcc   :  { %14199 = dma.done.wait [#allocation9], 8192 }
  0xcd   :  { %14200 = vsyncadd [#allocation9], 4294959104  ;;  %v14227_v6 = vmov 0   ;;  %v278_v7 = vld [vmem:[#allocation2 + $0x1c0] sm:$0xff]  ;;  %v279_v9 = vld [vmem:[#allocation2 + $0x1c8] sm:$0xff] }
  0xce   :  { %686 = vmatprep.mubr.bf16.mxu0 %v14227_v6  ;;  %729 = vmatprep.mubr.bf16.mxu1 %v14227_v6  ;;  %v282_v8 = vld [vmem:[#allocation2 + $0x1e0] sm:$0xff]  ;;  %v283_v11 = vld [vmem:[#allocation2 + $0x1e8] sm:$0xff] }
  0xcf   :  { %v11917_v10 = vcombine.high %v278_v7, %v282_v8  ;;  %v11916_v12 = vcombine.low %v278_v7, %v282_v8  ;;  %v270_v13 = vld [vmem:[#allocation2 + $0x180] sm:$0xff]  ;;  %v11919_v15 = vcombine.high %v279_v9, %v283_v11  ;;  %v11918_v16 = vcombine.low %v279_v9, %v283_v11  ;;  %v271_v18 = vld [vmem:[#allocation2 + $0x188] sm:$0xff]  ;;  %v284_v11 = vld [vmem:[#allocation2 + $0x1f0] sm:$0xff] }
  0xd0   :  { %v274_v14 = vld [vmem:[#allocation2 + $0x1a0] sm:$0xff]  ;;  %v275_v19 = vld [vmem:[#allocation2 + $0x1a8] sm:$0xff] }
  0xd1   :  { %v11909_v17 = vcombine.high %v270_v13, %v274_v14  ;;  %v262_v20 = vld [vmem:[#allocation2 + $0x140] sm:$0xff]  ;;  %654 = vmatprep.subr.bf16.mxu0 %v11917_v10  ;;  %v11911_v21 = vcombine.high %v271_v18, %v275_v19  ;;  %v263_v23 = vld [vmem:[#allocation2 + $0x148] sm:$0xff]  ;;  %697 = vmatprep.subr.bf16.mxu1 %v11919_v15  ;;  %v11908_v25 = vcombine.low %v270_v13, %v274_v14  ;;  %v280_v10 = vld [vmem:[#allocation2 + $0x1d0] sm:$0xff] }
  0xd2   :  { %v266_v22 = vld [vmem:[#allocation2 + $0x160] sm:$0xff]  ;;  %v267_v24 = vld [vmem:[#allocation2 + $0x168] sm:$0xff]  ;;  %655 = vmatpush1.bf16.msra.mxu0 %v11916_v12  ;;  %698 = vmatpush1.bf16.msra.mxu1 %v11918_v16  ;;  %v11910_v26 = vcombine.low %v271_v18, %v275_v19  ;;  %v281_v12 = vld [vmem:[#allocation2 + $0x1d8] sm:$0xff]  ;;  %v11921_v16 = vcombine.high %v280_v10, %v284_v11 }
  0xd3   :  { %656 = vmatprep.subr.bf16.mxu0 %v11909_v17  ;;  %v11901_v27 = vcombine.high %v262_v20, %v266_v22  ;;  %699 = vmatprep.subr.bf16.mxu1 %v11911_v21  ;;  %v11903_v28 = vcombine.high %v263_v23, %v267_v24  ;;  %v254_v29 = vld [vmem:[#allocation2 + $0x100] sm:$0xff]  ;;  %v255_v31 = vld [vmem:[#allocation2 + $0x108] sm:$0xff]  ;;  %v11900_v33 = vcombine.low %v262_v20, %v266_v22  ;;  %v285_v13 = vld [vmem:[#allocation2 + $0x1f8] sm:$0xff] }
  0xd4   :  { %v258_v30 = vld [vmem:[#allocation2 + $0x120] sm:$0xff]  ;;  %v259_v32 = vld [vmem:[#allocation2 + $0x128] sm:$0xff]  ;;  %v11902_v34 = vcombine.low %v263_v23, %v267_v24  ;;  %v11923_v17 = vcombine.high %v281_v12, %v285_v13  ;;  %v272_v18 = vld [vmem:[#allocation2 + $0x190] sm:$0xff]  ;;  %v14396_v20 = vcombine.low %v14358_v1, %v14363_v2  ;;  %v11920_v23 = vcombine.low %v280_v10, %v284_v11 }
  0xd5   :  { %v11893_v35 = vcombine.high %v254_v29, %v258_v30  ;;  %v11895_v36 = vcombine.high %v255_v31, %v259_v32  ;;  %v246_v37 = vld [vmem:[#allocation2 + $0xc0] sm:$0xff]  ;;  %v247_v39 = vld [vmem:[#allocation2 + $0xc8] sm:$0xff]  ;;  %v11892_v41 = vcombine.low %v254_v29, %v258_v30  ;;  %v11894_v42 = vcombine.low %v255_v31, %v259_v32  ;;  %v276_v19 = vld [vmem:[#allocation2 + $0x1b0] sm:$0xff] }
  0xd6   :  { %657 = vmatpush1.bf16.msra.mxu0 %v11908_v25  ;;  %700 = vmatpush1.bf16.msra.mxu1 %v11910_v26  ;;  %v250_v38 = vld [vmem:[#allocation2 + $0xe0] sm:$0xff]  ;;  %v251_v40 = vld [vmem:[#allocation2 + $0xe8] sm:$0xff]  ;;  %v273_v21 = vld [vmem:[#allocation2 + $0x198] sm:$0xff]  ;;  %v11922_v24 = vcombine.low %v281_v12, %v285_v13  ;;  %v11913_v25 = vcombine.high %v272_v18, %v276_v19  ;;  %v11912_v1 = vcombine.low %v272_v18, %v276_v19 }
  0xd7   :  { %658 = vmatprep.subr.bf16.mxu0 %v11901_v27  ;;  %701 = vmatprep.subr.bf16.mxu1 %v11903_v28  ;;  %v11885_v43 = vcombine.high %v246_v37, %v250_v38  ;;  %v11887_v44 = vcombine.high %v247_v39, %v251_v40  ;;  %v238_v45 = vld [vmem:[#allocation2 + $0x80] sm:$0xff]  ;;  %v239_v47 = vld [vmem:[#allocation2 + $0x88] sm:$0xff]  ;;  %v11884_v49 = vcombine.low %v246_v37, %v250_v38  ;;  %v277_v22 = vld [vmem:[#allocation2 + $0x1b8] sm:$0xff] }
  0xd8   :  { %v242_v46 = vld [vmem:[#allocation2 + $0xa0] sm:$0xff]  ;;  %v243_v48 = vld [vmem:[#allocation2 + $0xa8] sm:$0xff]  ;;  %v11886_v50 = vcombine.low %v247_v39, %v251_v40  ;;  %v11915_v26 = vcombine.high %v273_v21, %v277_v22  ;;  %v264_v27 = vld [vmem:[#allocation2 + $0x150] sm:$0xff]  ;;  %v11914_v2 = vcombine.low %v273_v21, %v277_v22 }
  0xd9   :  { %v11877_v51 = vcombine.high %v238_v45, %v242_v46  ;;  %v11879_v52 = vcombine.high %v239_v47, %v243_v48  ;;  %v230_v53 = vld [vmem:[#allocation2 + $0x40] sm:$0xff]  ;;  %v231_v55 = vld [vmem:[#allocation2 + $0x48] sm:$0xff]  ;;  %v11876_v57 = vcombine.low %v238_v45, %v242_v46  ;;  %v11878_v58 = vcombine.low %v239_v47, %v243_v48  ;;  %v268_v28 = vld [vmem:[#allocation2 + $0x170] sm:$0xff] }
  0xda   :  { %659 = vmatpush1.bf16.msra.mxu0 %v11900_v33  ;;  %702 = vmatpush1.bf16.msra.mxu1 %v11902_v34  ;;  %v234_v54 = vld [vmem:[#allocation2 + $0x60] sm:$0xff]  ;;  %v235_v56 = vld [vmem:[#allocation2 + $0x68] sm:$0xff]  ;;  %v265_v29 = vld [vmem:[#allocation2 + $0x158] sm:$0xff]  ;;  %v11905_v31 = vcombine.high %v264_v27, %v268_v28  ;;  %v11904_v37 = vcombine.low %v264_v27, %v268_v28 }
  0xdb   :  { %660 = vmatprep.subr.bf16.mxu0 %v11893_v35  ;;  %703 = vmatprep.subr.bf16.mxu1 %v11895_v36  ;;  %v11869_v59 = vcombine.high %v230_v53, %v234_v54  ;;  %v11871_v60 = vcombine.high %v231_v55, %v235_v56  ;;  %v222_v61 = vld [vmem:[#allocation2] sm:$0xff]  ;;  %v223_v63 = vld [vmem:[#allocation2 + $0x8] sm:$0xff]  ;;  %v11868_v5 = vcombine.low %v230_v53, %v234_v54  ;;  %v269_v30 = vld [vmem:[#allocation2 + $0x178] sm:$0xff] }
  0xdc   :  { %v226_v62 = vld [vmem:[#allocation2 + $0x20] sm:$0xff]  ;;  %v227_v0 = vld [vmem:[#allocation2 + $0x28] sm:$0xff]  ;;  %v11870_v7 = vcombine.low %v231_v55, %v235_v56  ;;  %v11907_v32 = vcombine.high %v265_v29, %v269_v30  ;;  %v256_v33 = vld [vmem:[#allocation2 + $0x110] sm:$0xff]  ;;  %v11906_v38 = vcombine.low %v265_v29, %v269_v30 }
  0xdd   :  { %v11861_v8 = vcombine.high %v222_v61, %v226_v62  ;;  %v11863_v9 = vcombine.high %v223_v63, %v227_v0  ;;  %v11860_v14 = vcombine.low %v222_v61, %v226_v62  ;;  %v11862_v15 = vcombine.low %v223_v63, %v227_v0  ;;  %v260_v34 = vld [vmem:[#allocation2 + $0x130] sm:$0xff]  ;;  %v257_v35 = vld [vmem:[#allocation2 + $0x118] sm:$0xff]  ;;  %v286_v19 = vld [vmem:[#allocation11] sm:$0xff] }
  0xde   :  { %661 = vmatpush1.bf16.msra.mxu0 %v11892_v41  ;;  %704 = vmatpush1.bf16.msra.mxu1 %v11894_v42  ;;  %v261_v36 = vld [vmem:[#allocation2 + $0x138] sm:$0xff]  ;;  %v11897_v39 = vcombine.high %v256_v33, %v260_v34  ;;  %v248_v41 = vld [vmem:[#allocation2 + $0xd0] sm:$0xff]  ;;  %v11896_v45 = vcombine.low %v256_v33, %v260_v34 }
  0xdf   :  { %662 = vmatprep.subr.bf16.mxu0 %v11885_v43  ;;  %705 = vmatprep.subr.bf16.mxu1 %v11887_v44  ;;  %v11899_v40 = vcombine.high %v257_v35, %v261_v36  ;;  %v252_v42 = vld [vmem:[#allocation2 + $0xf0] sm:$0xff]  ;;  %v249_v43 = vld [vmem:[#allocation2 + $0xd8] sm:$0xff]  ;;  %v11898_v46 = vcombine.low %v257_v35, %v261_v36 }
  0xe0   :  { %v253_v44 = vld [vmem:[#allocation2 + $0xf8] sm:$0xff]  ;;  %v11889_v47 = vcombine.high %v248_v41, %v252_v42  ;;  %v11888_v53 = vcombine.low %v248_v41, %v252_v42 }
  0xe1   :  { %v11891_v48 = vcombine.high %v249_v43, %v253_v44  ;;  %v11890_v54 = vcombine.low %v249_v43, %v253_v44 }
  0xe2   :  { %663 = vmatpush1.bf16.msra.mxu0 %v11884_v49  ;;  %706 = vmatpush1.bf16.msra.mxu1 %v11886_v50  ;;  %v240_v49 = vld [vmem:[#allocation2 + $0x90] sm:$0xff] }
  0xe3   :  { %664 = vmatprep.subr.bf16.mxu0 %v11877_v51  ;;  %707 = vmatprep.subr.bf16.mxu1 %v11879_v52  ;;  %v244_v50 = vld [vmem:[#allocation2 + $0xb0] sm:$0xff]  ;;  %v241_v51 = vld [vmem:[#allocation2 + $0x98] sm:$0xff] }
  0xe4   :  { %v245_v52 = vld [vmem:[#allocation2 + $0xb8] sm:$0xff]  ;;  %v11881_v55 = vcombine.high %v240_v49, %v244_v50  ;;  %v11880_v61 = vcombine.low %v240_v49, %v244_v50 }
  0xe5   :  { %v11883_v56 = vcombine.high %v241_v51, %v245_v52  ;;  %v11882_v62 = vcombine.low %v241_v51, %v245_v52 }
  0xe6   :  { %665 = vmatpush1.bf16.msra.mxu0 %v11876_v57  ;;  %708 = vmatpush1.bf16.msra.mxu1 %v11878_v58  ;;  %v232_v57 = vld [vmem:[#allocation2 + $0x50] sm:$0xff] }
  0xe7   :  { %666 = vmatprep.subr.bf16.mxu0 %v11869_v59  ;;  %709 = vmatprep.subr.bf16.mxu1 %v11871_v60  ;;  %v236_v58 = vld [vmem:[#allocation2 + $0x70] sm:$0xff]  ;;  %v233_v59 = vld [vmem:[#allocation2 + $0x58] sm:$0xff] }
  0xe8   :  { %v237_v60 = vld [vmem:[#allocation2 + $0x78] sm:$0xff]  ;;  %v11873_v63 = vcombine.high %v232_v57, %v236_v58  ;;  %v11872_v10 = vcombine.low %v232_v57, %v236_v58 }
  0xe9   :  { %v11875_v0 = vcombine.high %v233_v59, %v237_v60  ;;  %v11874_v11 = vcombine.low %v233_v59, %v237_v60 }
  0xea   :  { %667 = vmatpush1.bf16.msra.mxu0 %v11868_v5  ;;  %710 = vmatpush1.bf16.msra.mxu1 %v11870_v7  ;;  %v224_v5 = vld [vmem:[#allocation2 + $0x10] sm:$0xff] }
  0xeb   :  { %668 = vmatprep.subr.bf16.mxu0 %v11861_v8  ;;  %711 = vmatprep.subr.bf16.mxu1 %v11863_v9  ;;  %v228_v7 = vld [vmem:[#allocation2 + $0x30] sm:$0xff]  ;;  %v225_v8 = vld [vmem:[#allocation2 + $0x18] sm:$0xff] }
  0xec   :  { %v229_v9 = vld [vmem:[#allocation2 + $0x38] sm:$0xff]  ;;  %v11865_v12 = vcombine.high %v224_v5, %v228_v7 }
  0xed   :  { %v11867_v13 = vcombine.high %v225_v8, %v229_v9 }
  0xee   :  { %669 = vmatpush1.bf16.msra.mxu0 %v11860_v14  ;;  %712 = vmatpush1.bf16.msra.mxu1 %v11862_v15  ;;  %v11864_v14 = vcombine.low %v224_v5, %v228_v7  ;;  %v11866_v15 = vcombine.low %v225_v8, %v229_v9 }
  0xef   :  { %740 = vmatprep.subr.bf16.mxu0 %v11921_v16  ;;  %783 = vmatprep.subr.bf16.mxu1 %v11923_v17  ;;  %v288_v16 = vlaneseq }
  0xf1   :  { %687 = vmatmul.mubr.bf16.vlgmr.msra.gmra.mxu0 %v14396_v20  ;;  %730 = vmatmul.mubr.bf16.vlgmr.msra.gmra.mxu1 %v14396_v20  ;;  %v289_v17 = vshrl.u32 %v288_v16, 7 }
  0xf2   :  { %741 = vmatpush1.bf16.msra.mxu0 %v11920_v23  ;;  %784 = vmatpush1.bf16.msra.mxu1 %v11922_v24 }
  0xf3   :  { %742 = vmatprep.subr.bf16.mxu0 %v11913_v25  ;;  %785 = vmatprep.subr.bf16.mxu1 %v11915_v26  ;;  %v14405_v18 = vsub.s32 0, %v289_v17  ;;  %v14407_v21 = vsub.s32 2, %v289_v17  ;;  %v14409_v22 = vsub.s32 1, %v289_v17  ;;  %v14411_v23 = vsub.s32 3, %v289_v17 }
  0xf4   :  { %772 = vmatprep.mubr.bf16.mxu0 %v14227_v6  ;;  %815 = vmatprep.mubr.bf16.mxu1 %v14227_v6 }
  0xf5   :  { %v291_v24 = vrot.slane %v286_v19, %v14405_v18  ;;  %v299_v26 = vrot.slane %v286_v19, %v14407_v21  ;;  %v303_v29 = vrot.slane %v286_v19, %v14411_v23 }
  0xf6   :  { %743 = vmatpush1.bf16.msra.mxu0 %v11912_v1  ;;  %786 = vmatpush1.bf16.msra.mxu1 %v11914_v2 }
  0xf7   :  { %744 = vmatprep.subr.bf16.mxu0 %v11905_v31  ;;  %787 = vmatprep.subr.bf16.mxu1 %v11907_v32 }
  0xfa   :  { %745 = vmatpush1.bf16.msra.mxu0 %v11904_v37  ;;  %788 = vmatpush1.bf16.msra.mxu1 %v11906_v38 }
  0xfb   :  { %746 = vmatprep.subr.bf16.mxu0 %v11897_v39  ;;  %789 = vmatprep.subr.bf16.mxu1 %v11899_v40 }
  0xfe   :  { %747 = vmatpush1.bf16.msra.mxu0 %v11896_v45  ;;  %790 = vmatpush1.bf16.msra.mxu1 %v11898_v46 }
  0xff   :  { %748 = vmatprep.subr.bf16.mxu0 %v11889_v47  ;;  %791 = vmatprep.subr.bf16.mxu1 %v11891_v48 }
 0x102   :  { %749 = vmatpush1.bf16.msra.mxu0 %v11888_v53  ;;  %792 = vmatpush1.bf16.msra.mxu1 %v11890_v54  ;;  %v14425_v53 = vsub.s32 4, %v289_v17  ;;  %v14427_v54 = vsub.s32 6, %v289_v17 }
 0x103   :  { %750 = vmatprep.subr.bf16.mxu0 %v11881_v55  ;;  %793 = vmatprep.subr.bf16.mxu1 %v11883_v56  ;;  %v14429_v55 = vsub.s32 5, %v289_v17  ;;  %v14431_v56 = vsub.s32 7, %v289_v17 }
 0x104   :  { %v307_v57 = vrot.slane %v286_v19, %v14425_v53  ;;  %v315_v59 = vrot.slane %v286_v19, %v14427_v54 }
 0x106   :  { %751 = vmatpush1.bf16.msra.mxu0 %v11880_v61  ;;  %794 = vmatpush1.bf16.msra.mxu1 %v11882_v62  ;;  %v311_v61 = vrot.slane %v286_v19, %v14429_v55 }
 0x107   :  { %752 = vmatprep.subr.bf16.mxu0 %v11873_v63  ;;  %795 = vmatprep.subr.bf16.mxu1 %v11875_v0  ;;  %v319_v63 = vrot.slane %v286_v19, %v14431_v56 }
 0x10a   :  { %753 = vmatpush1.bf16.msra.mxu0 %v11872_v10  ;;  %796 = vmatpush1.bf16.msra.mxu1 %v11874_v11 }
 0x10b   :  { %754 = vmatprep.subr.bf16.mxu0 %v11865_v12  ;;  %797 = vmatprep.subr.bf16.mxu1 %v11867_v13 }
 0x10e   :  { %755 = vmatpush1.bf16.msra.mxu0 %v11864_v14  ;;  %798 = vmatpush1.bf16.msra.mxu1 %v11866_v15 }
 0x111   :  { %773 = vmatmul.mubr.bf16.vlgmr.msra.gmra.mxu0 %v14396_v20  ;;  %816 = vmatmul.mubr.bf16.vlgmr.msra.gmra.mxu1 %v14396_v20  ;;  %v295_v20 = vrot.slane %v286_v19, %v14409_v22 }
 0x1b1   :  { %v688_v25 = vpop.f32.mrf.mxu0  ;;  %v731_v27 = vpop.f32.mrf.mxu1 }
 0x1b2   :  { %v689_v30 = vadd.f32 %v688_v25, %v291_v24  ;;  %v732_v2 = vadd.f32 %v731_v27, %v299_v26 }
 0x1b3   :  { %v690_v28 = vpop.f32.mrf.mxu0  ;;  %v733_v1 = vpop.f32.mrf.mxu1 }
 0x1b4   :  { %v691_v32 = vadd.f32 %v690_v28, %v295_v20  ;;  %v734_v35 = vadd.f32 %v733_v1, %v303_v29  ;;  %v826_v38 = vmax.f32 %v689_v30, 0.0  ;;  %v828_v42 = vmax.f32 %v732_v2, 0.0 }
 0x1b5   :  { %v692_v31 = vpop.f32.mrf.mxu0  ;;  %v735_v34 = vpop.f32.mrf.mxu1 }
 0x1b6   :  { %v693_v33 = vadd.f32 %v692_v31, %v291_v24  ;;  %v736_v36 = vadd.f32 %v735_v34, %v299_v26  ;;  %v827_v45 = vmax.f32 %v691_v32, 0.0  ;;  %v829_v48 = vmax.f32 %v734_v35, 0.0 }
 0x1b7   :  { %v694_v37 = vpop.f32.mrf.mxu0  ;;  %v737_v41 = vpop.f32.mrf.mxu1 }
 0x1b8   :  { %v834_v39 = vmax.f32 %v693_v33, 0.0  ;;  %v695_v40 = vadd.f32 %v694_v37, %v295_v20  ;;  %v836_v43 = vmax.f32 %v736_v36, 0.0  ;;  %v738_v44 = vadd.f32 %v737_v41, %v303_v29 }
 0x1ba   :  { %v14417_v46 = vpack.c.bf16 %v834_v39, %v826_v38  ;;  %v835_v47 = vmax.f32 %v695_v40, 0.0  ;;  %v14419_v49 = vpack.c.bf16 %v836_v43, %v828_v42  ;;  %v837_v50 = vmax.f32 %v738_v44, 0.0 }
 0x1bc   :  { %v14421_v51 = vpack.c.bf16 %v835_v47, %v827_v45  ;;  %v14423_v52 = vpack.c.bf16 %v837_v50, %v829_v48 }
 0x1d1   :  { %v774_v58 = vpop.f32.mrf.mxu0  ;;  %v817_v60 = vpop.f32.mrf.mxu1 }
 0x1d2   :  { %v775_v0 = vadd.f32 %v774_v58, %v307_v57  ;;  %v818_v7 = vadd.f32 %v817_v60, %v315_v59 }
 0x1d3   :  { %v776_v62 = vpop.f32.mrf.mxu0  ;;  %v819_v5 = vpop.f32.mrf.mxu1 }
 0x1d4   :  { %v777_v9 = vadd.f32 %v776_v62, %v311_v61  ;;  %v820_v12 = vadd.f32 %v819_v5, %v319_v63  ;;  %v830_v15 = vmax.f32 %v775_v0, 0.0  ;;  %v832_v26 = vmax.f32 %v818_v7, 0.0 }
 0x1d5   :  { %v778_v8 = vpop.f32.mrf.mxu0  ;;  %v821_v11 = vpop.f32.mrf.mxu1 }
 0x1d6   :  { %v779_v10 = vadd.f32 %v778_v8, %v307_v57  ;;  %v822_v13 = vadd.f32 %v821_v11, %v315_v59  ;;  %v831_v28 = vmax.f32 %v777_v9, 0.0  ;;  %v833_v30 = vmax.f32 %v820_v12, 0.0 }
 0x1d7   :  { %v780_v14 = vpop.f32.mrf.mxu0  ;;  %v823_v25 = vpop.f32.mrf.mxu1 }
 0x1d8   :  { %v838_v17 = vmax.f32 %v779_v10, 0.0  ;;  %v781_v24 = vadd.f32 %v780_v14, %v311_v61  ;;  %v840_v27 = vmax.f32 %v822_v13, 0.0  ;;  %v824_v20 = vadd.f32 %v823_v25, %v319_v63 }
 0x1da   :  { %v14437_v29 = vpack.c.bf16 %v838_v17, %v830_v15  ;;  %v839_v19 = vmax.f32 %v781_v24, 0.0  ;;  %v14439_v1 = vpack.c.bf16 %v840_v27, %v832_v26  ;;  %v841_v2 = vmax.f32 %v824_v20, 0.0 }
 0x1dc   :  { %v14441_v31 = vpack.c.bf16 %v839_v19, %v831_v28  ;;  %v14443_v32 = vpack.c.bf16 %v841_v2, %v833_v30 }
 0x1dd   :  { %14201 = dma.done.wait [#allocation9 + $0x1], 65536 }
 0x1de   :  { %14202 = vsyncadd [#allocation9 + $0x1], 4294901760  ;;  %4000 = vmatprep.mubr.bf16.mxu0 %v14421_v51  ;;  %4043 = vmatprep.mubr.bf16.mxu1 %v14423_v52  ;;  %v910_v33 = vld [vmem:[#allocation3 + $0x1c0] sm:$0xff] }
 0x1df   :  { %v914_v34 = vld [vmem:[#allocation3 + $0x1e0] sm:$0xff] }
 0x1e0   :  { %v1038_v35 = vld [vmem:[#allocation3 + $0x5c0] sm:$0xff]  ;;  %v11981_v36 = vcombine.high %v910_v33, %v914_v34  ;;  %v11980_v38 = vcombine.low %v910_v33, %v914_v34 }
 0x1e1   :  { %v1042_v37 = vld [vmem:[#allocation3 + $0x5e0] sm:$0xff] }
 0x1e2   :  { %v902_v39 = vld [vmem:[#allocation3 + $0x180] sm:$0xff]  ;;  %v12109_v41 = vcombine.high %v1038_v35, %v1042_v37  ;;  %v12108_v42 = vcombine.low %v1038_v35, %v1042_v37  ;;  %3968 = vmatprep.subr.bf16.mxu0 %v11981_v36 }
 0x1e3   :  { %v906_v40 = vld [vmem:[#allocation3 + $0x1a0] sm:$0xff]  ;;  %3969 = vmatpush1.bf16.msra.mxu0 %v11980_v38 }
 0x1e4   :  { %v11973_v43 = vcombine.high %v902_v39, %v906_v40  ;;  %v1030_v44 = vld [vmem:[#allocation3 + $0x580] sm:$0xff]  ;;  %4011 = vmatprep.subr.bf16.mxu1 %v12109_v41  ;;  %v11972_v59 = vcombine.low %v902_v39, %v906_v40 }
 0x1e5   :  { %v1034_v45 = vld [vmem:[#allocation3 + $0x5a0] sm:$0xff]  ;;  %4012 = vmatpush1.bf16.msra.mxu1 %v12108_v42 }
 0x1e6   :  { %v894_v47 = vld [vmem:[#allocation3 + $0x140] sm:$0xff]  ;;  %v12101_v48 = vcombine.high %v1030_v44, %v1034_v45  ;;  %3970 = vmatprep.subr.bf16.mxu0 %v11973_v43  ;;  %v12100_v60 = vcombine.low %v1030_v44, %v1034_v45 }
 0x1e7   :  { %v898_v50 = vld [vmem:[#allocation3 + $0x160] sm:$0xff]  ;;  %3971 = vmatpush1.bf16.msra.mxu0 %v11972_v59 }
 0x1e8   :  { %v1022_v57 = vld [vmem:[#allocation3 + $0x540] sm:$0xff]  ;;  %v11965_v61 = vcombine.high %v894_v47, %v898_v50  ;;  %4013 = vmatprep.subr.bf16.mxu1 %v12101_v48  ;;  %v11964_v8 = vcombine.low %v894_v47, %v898_v50 }
 0x1e9   :  { %v1026_v58 = vld [vmem:[#allocation3 + $0x560] sm:$0xff]  ;;  %4014 = vmatpush1.bf16.msra.mxu1 %v12100_v60 }
 0x1ea   :  { %v12093_v62 = vcombine.high %v1022_v57, %v1026_v58  ;;  %v886_v63 = vld [vmem:[#allocation3 + $0x100] sm:$0xff]  ;;  %3972 = vmatprep.subr.bf16.mxu0 %v11965_v61  ;;  %v12092_v9 = vcombine.low %v1022_v57, %v1026_v58 }
 0x1eb   :  { %v890_v0 = vld [vmem:[#allocation3 + $0x120] sm:$0xff]  ;;  %3973 = vmatpush1.bf16.msra.mxu0 %v11964_v8 }
 0x1ec   :  { %v1014_v5 = vld [vmem:[#allocation3 + $0x500] sm:$0xff]  ;;  %v11957_v10 = vcombine.high %v886_v63, %v890_v0  ;;  %4015 = vmatprep.subr.bf16.mxu1 %v12093_v62  ;;  %v11956_v17 = vcombine.low %v886_v63, %v890_v0 }
 0x1ed   :  { %v1018_v7 = vld [vmem:[#allocation3 + $0x520] sm:$0xff]  ;;  %4016 = vmatpush1.bf16.msra.mxu1 %v12092_v9 }
 0x1ee   :  { %v12085_v11 = vcombine.high %v1014_v5, %v1018_v7  ;;  %v878_v12 = vld [vmem:[#allocation3 + $0xc0] sm:$0xff]  ;;  %3974 = vmatprep.subr.bf16.mxu0 %v11957_v10  ;;  %v12084_v24 = vcombine.low %v1014_v5, %v1018_v7 }
 0x1ef   :  { %v882_v13 = vld [vmem:[#allocation3 + $0xe0] sm:$0xff]  ;;  %3975 = vmatpush1.bf16.msra.mxu0 %v11956_v17 }
 0x1f0   :  { %v1006_v14 = vld [vmem:[#allocation3 + $0x4c0] sm:$0xff]  ;;  %v11949_v25 = vcombine.high %v878_v12, %v882_v13  ;;  %4017 = vmatprep.subr.bf16.mxu1 %v12085_v11  ;;  %v11948_v30 = vcombine.low %v878_v12, %v882_v13 }
 0x1f1   :  { %v1010_v15 = vld [vmem:[#allocation3 + $0x4e0] sm:$0xff]  ;;  %4018 = vmatpush1.bf16.msra.mxu1 %v12084_v24 }
 0x1f2   :  { %v12077_v26 = vcombine.high %v1006_v14, %v1010_v15  ;;  %v870_v27 = vld [vmem:[#allocation3 + $0x80] sm:$0xff]  ;;  %3976 = vmatprep.subr.bf16.mxu0 %v11949_v25  ;;  %v12076_v2 = vcombine.low %v1006_v14, %v1010_v15 }
 0x1f3   :  { %v874_v20 = vld [vmem:[#allocation3 + $0xa0] sm:$0xff]  ;;  %3977 = vmatpush1.bf16.msra.mxu0 %v11948_v30 }
 0x1f4   :  { %v998_v28 = vld [vmem:[#allocation3 + $0x480] sm:$0xff]  ;;  %v11941_v33 = vcombine.high %v870_v27, %v874_v20  ;;  %4019 = vmatprep.subr.bf16.mxu1 %v12077_v26  ;;  %v11940_v39 = vcombine.low %v870_v27, %v874_v20 }
 0x1f5   :  { %v1002_v19 = vld [vmem:[#allocation3 + $0x4a0] sm:$0xff]  ;;  %4020 = vmatpush1.bf16.msra.mxu1 %v12076_v2 }
 0x1f6   :  { %v12069_v34 = vcombine.high %v998_v28, %v1002_v19  ;;  %v862_v35 = vld [vmem:[#allocation3 + $0x40] sm:$0xff]  ;;  %3978 = vmatprep.subr.bf16.mxu0 %v11941_v33  ;;  %v12068_v40 = vcombine.low %v998_v28, %v1002_v19 }
 0x1f7   :  { %v866_v36 = vld [vmem:[#allocation3 + $0x60] sm:$0xff]  ;;  %3979 = vmatpush1.bf16.msra.mxu0 %v11940_v39 }
 0x1f8   :  { %v990_v37 = vld [vmem:[#allocation3 + $0x440] sm:$0xff]  ;;  %v11933_v41 = vcombine.high %v862_v35, %v866_v36  ;;  %4021 = vmatprep.subr.bf16.mxu1 %v12069_v34  ;;  %v11932_v48 = vcombine.low %v862_v35, %v866_v36 }
 0x1f9   :  { %v994_v38 = vld [vmem:[#allocation3 + $0x460] sm:$0xff]  ;;  %4022 = vmatpush1.bf16.msra.mxu1 %v12068_v40 }
 0x1fa   :  { %v12061_v42 = vcombine.high %v990_v37, %v994_v38  ;;  %v854_v43 = vld [vmem:[#allocation3] sm:$0xff]  ;;  %3980 = vmatprep.subr.bf16.mxu0 %v11933_v41  ;;  %v12060_v50 = vcombine.low %v990_v37, %v994_v38 }
 0x1fb   :  { %v858_v44 = vld [vmem:[#allocation3 + $0x20] sm:$0xff]  ;;  %3981 = vmatpush1.bf16.msra.mxu0 %v11932_v48 }
 0x1fc   :  { %v982_v45 = vld [vmem:[#allocation3 + $0x400] sm:$0xff]  ;;  %v11925_v57 = vcombine.high %v854_v43, %v858_v44  ;;  %4023 = vmatprep.subr.bf16.mxu1 %v12061_v42  ;;  %v11924_v63 = vcombine.low %v854_v43, %v858_v44 }
 0x1fd   :  { %v986_v47 = vld [vmem:[#allocation3 + $0x420] sm:$0xff]  ;;  %4024 = vmatpush1.bf16.msra.mxu1 %v12060_v50 }
 0x1fe   :  { %v12053_v58 = vcombine.high %v982_v45, %v986_v47  ;;  %v974_v59 = vld [vmem:[#allocation3 + $0x3c0] sm:$0xff]  ;;  %3982 = vmatprep.subr.bf16.mxu0 %v11925_v57  ;;  %v12052_v0 = vcombine.low %v982_v45, %v986_v47 }
 0x1ff   :  { %v978_v60 = vld [vmem:[#allocation3 + $0x3e0] sm:$0xff]  ;;  %3983 = vmatpush1.bf16.msra.mxu0 %v11924_v63 }
 0x200   :  { %v1102_v61 = vld [vmem:[#allocation3 + $0x7c0] sm:$0xff]  ;;  %v12045_v5 = vcombine.high %v974_v59, %v978_v60  ;;  %4025 = vmatprep.subr.bf16.mxu1 %v12053_v58  ;;  %v12044_v12 = vcombine.low %v974_v59, %v978_v60 }
 0x201   :  { %v1106_v62 = vld [vmem:[#allocation3 + $0x7e0] sm:$0xff]  ;;  %4026 = vmatpush1.bf16.msra.mxu1 %v12052_v0 }
 0x202   :  { %v12173_v7 = vcombine.high %v1102_v61, %v1106_v62  ;;  %v966_v8 = vld [vmem:[#allocation3 + $0x380] sm:$0xff]  ;;  %3984 = vmatprep.subr.bf16.mxu0 %v12045_v5  ;;  %v12172_v13 = vcombine.low %v1102_v61, %v1106_v62 }
 0x203   :  { %v970_v9 = vld [vmem:[#allocation3 + $0x3a0] sm:$0xff]  ;;  %3985 = vmatpush2.bf16.msra.mxu0 %v12044_v12 }
 0x204   :  { %v1094_v10 = vld [vmem:[#allocation3 + $0x780] sm:$0xff]  ;;  %v12037_v14 = vcombine.high %v966_v8, %v970_v9  ;;  %4027 = vmatprep.subr.bf16.mxu1 %v12173_v7  ;;  %v12036_v27 = vcombine.low %v966_v8, %v970_v9 }
 0x205   :  { %v1098_v11 = vld [vmem:[#allocation3 + $0x7a0] sm:$0xff]  ;;  %4028 = vmatpush2.bf16.msra.mxu1 %v12172_v13 }
 0x206   :  { %v12165_v15 = vcombine.high %v1094_v10, %v1098_v11  ;;  %v958_v17 = vld [vmem:[#allocation3 + $0x340] sm:$0xff]  ;;  %3986 = vmatprep.subr.bf16.mxu0 %v12037_v14  ;;  %v12164_v20 = vcombine.low %v1094_v10, %v1098_v11 }
 0x207   :  { %v962_v24 = vld [vmem:[#allocation3 + $0x360] sm:$0xff]  ;;  %3987 = vmatpush2.bf16.msra.mxu0 %v12036_v27 }
 0x208   :  { %v1086_v25 = vld [vmem:[#allocation3 + $0x740] sm:$0xff]  ;;  %v12029_v28 = vcombine.high %v958_v17, %v962_v24  ;;  %4029 = vmatprep.subr.bf16.mxu1 %v12165_v15  ;;  %v12028_v35 = vcombine.low %v958_v17, %v962_v24 }
 0x209   :  { %v1090_v26 = vld [vmem:[#allocation3 + $0x760] sm:$0xff]  ;;  %4030 = vmatpush2.bf16.msra.mxu1 %v12164_v20 }
 0x20a   :  { %v12157_v19 = vcombine.high %v1086_v25, %v1090_v26  ;;  %v950_v30 = vld [vmem:[#allocation3 + $0x300] sm:$0xff]  ;;  %3988 = vmatprep.subr.bf16.mxu0 %v12029_v28  ;;  %v12156_v36 = vcombine.low %v1086_v25, %v1090_v26 }
 0x20b   :  { %v954_v2 = vld [vmem:[#allocation3 + $0x320] sm:$0xff]  ;;  %3989 = vmatpush2.bf16.msra.mxu0 %v12028_v35 }
 0x20c   :  { %v1078_v33 = vld [vmem:[#allocation3 + $0x700] sm:$0xff]  ;;  %v12021_v37 = vcombine.high %v950_v30, %v954_v2  ;;  %4031 = vmatprep.subr.bf16.mxu1 %v12157_v19  ;;  %v12020_v43 = vcombine.low %v950_v30, %v954_v2 }
 0x20d   :  { %v1082_v34 = vld [vmem:[#allocation3 + $0x720] sm:$0xff]  ;;  %4032 = vmatpush2.bf16.msra.mxu1 %v12156_v36 }
 0x20e   :  { %v12149_v38 = vcombine.high %v1078_v33, %v1082_v34  ;;  %v942_v39 = vld [vmem:[#allocation3 + $0x2c0] sm:$0xff]  ;;  %3990 = vmatprep.subr.bf16.mxu0 %v12021_v37  ;;  %v12148_v44 = vcombine.low %v1078_v33, %v1082_v34 }
 0x20f   :  { %v946_v40 = vld [vmem:[#allocation3 + $0x2e0] sm:$0xff]  ;;  %3991 = vmatpush2.bf16.msra.mxu0 %v12020_v43 }
 0x210   :  { %v1070_v41 = vld [vmem:[#allocation3 + $0x6c0] sm:$0xff]  ;;  %v12013_v45 = vcombine.high %v942_v39, %v946_v40  ;;  %4033 = vmatprep.subr.bf16.mxu1 %v12149_v38  ;;  %v12012_v59 = vcombine.low %v942_v39, %v946_v40 }
 0x211   :  { %v1074_v42 = vld [vmem:[#allocation3 + $0x6e0] sm:$0xff]  ;;  %4034 = vmatpush2.bf16.msra.mxu1 %v12148_v44 }
 0x212   :  { %v12141_v47 = vcombine.high %v1070_v41, %v1074_v42  ;;  %v934_v48 = vld [vmem:[#allocation3 + $0x280] sm:$0xff]  ;;  %3992 = vmatprep.subr.bf16.mxu0 %v12013_v45  ;;  %v12140_v60 = vcombine.low %v1070_v41, %v1074_v42 }
 0x213   :  { %v938_v50 = vld [vmem:[#allocation3 + $0x2a0] sm:$0xff]  ;;  %3993 = vmatpush2.bf16.msra.mxu0 %v12012_v59 }
 0x214   :  { %v1062_v57 = vld [vmem:[#allocation3 + $0x680] sm:$0xff]  ;;  %v12005_v61 = vcombine.high %v934_v48, %v938_v50  ;;  %4035 = vmatprep.subr.bf16.mxu1 %v12141_v47  ;;  %v12004_v8 = vcombine.low %v934_v48, %v938_v50 }
 0x215   :  { %v1066_v58 = vld [vmem:[#allocation3 + $0x6a0] sm:$0xff]  ;;  %4036 = vmatpush2.bf16.msra.mxu1 %v12140_v60 }
 0x216   :  { %v12133_v62 = vcombine.high %v1062_v57, %v1066_v58  ;;  %v926_v63 = vld [vmem:[#allocation3 + $0x240] sm:$0xff]  ;;  %3994 = vmatprep.subr.bf16.mxu0 %v12005_v61  ;;  %v12132_v9 = vcombine.low %v1062_v57, %v1066_v58 }
 0x217   :  { %v930_v0 = vld [vmem:[#allocation3 + $0x260] sm:$0xff]  ;;  %3995 = vmatpush2.bf16.msra.mxu0 %v12004_v8 }
 0x218   :  { %v1054_v5 = vld [vmem:[#allocation3 + $0x640] sm:$0xff]  ;;  %v11997_v10 = vcombine.high %v926_v63, %v930_v0  ;;  %4037 = vmatprep.subr.bf16.mxu1 %v12133_v62  ;;  %v11996_v17 = vcombine.low %v926_v63, %v930_v0 }
 0x219   :  { %v1058_v7 = vld [vmem:[#allocation3 + $0x660] sm:$0xff]  ;;  %4038 = vmatpush2.bf16.msra.mxu1 %v12132_v9 }
 0x21a   :  { %v12125_v11 = vcombine.high %v1054_v5, %v1058_v7  ;;  %v918_v12 = vld [vmem:[#allocation3 + $0x200] sm:$0xff]  ;;  %3996 = vmatprep.subr.bf16.mxu0 %v11997_v10  ;;  %v12124_v24 = vcombine.low %v1054_v5, %v1058_v7 }
 0x21b   :  { %v922_v13 = vld [vmem:[#allocation3 + $0x220] sm:$0xff]  ;;  %3997 = vmatpush2.bf16.msra.mxu0 %v11996_v17 }
 0x21c   :  { %v1046_v14 = vld [vmem:[#allocation3 + $0x600] sm:$0xff]  ;;  %v11989_v25 = vcombine.high %v918_v12, %v922_v13  ;;  %4039 = vmatprep.subr.bf16.mxu1 %v12125_v11  ;;  %v11988_v30 = vcombine.low %v918_v12, %v922_v13 }
 0x21d   :  { %v1050_v15 = vld [vmem:[#allocation3 + $0x620] sm:$0xff]  ;;  %4040 = vmatpush2.bf16.msra.mxu1 %v12124_v24 }
 0x21e   :  { %v12117_v26 = vcombine.high %v1046_v14, %v1050_v15  ;;  %v1166_v27 = vld [vmem:[#allocation3 + $0x9c0] sm:$0xff]  ;;  %3998 = vmatprep.subr.bf16.mxu0 %v11989_v25  ;;  %v12116_v2 = vcombine.low %v1046_v14, %v1050_v15 }
 0x21f   :  { %v1170_v20 = vld [vmem:[#allocation3 + $0x9e0] sm:$0xff]  ;;  %3999 = vmatpush2.bf16.msra.mxu0 %v11988_v30 }
 0x220   :  { %v1294_v28 = vld [vmem:[#allocation3 + $0xdc0] sm:$0xff]  ;;  %v12237_v33 = vcombine.high %v1166_v27, %v1170_v20  ;;  %4041 = vmatprep.subr.bf16.mxu1 %v12117_v26  ;;  %v12236_v39 = vcombine.low %v1166_v27, %v1170_v20 }
 0x221   :  { %v1298_v19 = vld [vmem:[#allocation3 + $0xde0] sm:$0xff]  ;;  %4042 = vmatpush2.bf16.msra.mxu1 %v12116_v2 }
 0x222   :  { %v12365_v34 = vcombine.high %v1294_v28, %v1298_v19  ;;  %v1158_v35 = vld [vmem:[#allocation3 + $0x980] sm:$0xff]  ;;  %4054 = vmatprep.subr.bf16.mxu0 %v12237_v33  ;;  %v12364_v40 = vcombine.low %v1294_v28, %v1298_v19  ;;  %4001 = vmatmul.mubr.bf16.vlgmr.msra.gmra.mxu0 %v14417_v46 }
 0x223   :  { %v1162_v36 = vld [vmem:[#allocation3 + $0x9a0] sm:$0xff]  ;;  %4055 = vmatpush1.bf16.msra.mxu0 %v12236_v39  ;;  %4086 = vmatprep.mubr.bf16.mxu0 %v14441_v31 }
 0x224   :  { %v1286_v37 = vld [vmem:[#allocation3 + $0xd80] sm:$0xff]  ;;  %v12229_v41 = vcombine.high %v1158_v35, %v1162_v36  ;;  %4097 = vmatprep.subr.bf16.mxu1 %v12365_v34  ;;  %4044 = vmatmul.mubr.bf16.vlgmr.msra.gmra.mxu1 %v14419_v49  ;;  %v12228_v48 = vcombine.low %v1158_v35, %v1162_v36 }
 0x225   :  { %v1290_v38 = vld [vmem:[#allocation3 + $0xda0] sm:$0xff]  ;;  %4098 = vmatpush1.bf16.msra.mxu1 %v12364_v40  ;;  %4129 = vmatprep.mubr.bf16.mxu1 %v14443_v32 }
 0x226   :  { %v12357_v42 = vcombine.high %v1286_v37, %v1290_v38  ;;  %v1150_v43 = vld [vmem:[#allocation3 + $0x940] sm:$0xff]  ;;  %4056 = vmatprep.subr.bf16.mxu0 %v12229_v41  ;;  %v12356_v50 = vcombine.low %v1286_v37, %v1290_v38 }
 0x227   :  { %v1154_v44 = vld [vmem:[#allocation3 + $0x960] sm:$0xff]  ;;  %4057 = vmatpush1.bf16.msra.mxu0 %v12228_v48 }
 0x228   :  { %v1278_v45 = vld [vmem:[#allocation3 + $0xd40] sm:$0xff]  ;;  %v12221_v57 = vcombine.high %v1150_v43, %v1154_v44  ;;  %4099 = vmatprep.subr.bf16.mxu1 %v12357_v42  ;;  %v12220_v63 = vcombine.low %v1150_v43, %v1154_v44 }
 0x229   :  { %v1282_v47 = vld [vmem:[#allocation3 + $0xd60] sm:$0xff]  ;;  %4100 = vmatpush1.bf16.msra.mxu1 %v12356_v50 }
 0x22a   :  { %v12349_v58 = vcombine.high %v1278_v45, %v1282_v47  ;;  %v1142_v59 = vld [vmem:[#allocation3 + $0x900] sm:$0xff]  ;;  %4058 = vmatprep.subr.bf16.mxu0 %v12221_v57  ;;  %v12348_v0 = vcombine.low %v1278_v45, %v1282_v47 }
 0x22b   :  { %v1146_v60 = vld [vmem:[#allocation3 + $0x920] sm:$0xff]  ;;  %4059 = vmatpush1.bf16.msra.mxu0 %v12220_v63 }
 0x22c   :  { %v1270_v61 = vld [vmem:[#allocation3 + $0xd00] sm:$0xff]  ;;  %v12213_v5 = vcombine.high %v1142_v59, %v1146_v60  ;;  %4101 = vmatprep.subr.bf16.mxu1 %v12349_v58  ;;  %v12212_v12 = vcombine.low %v1142_v59, %v1146_v60 }
 0x22d   :  { %v1274_v62 = vld [vmem:[#allocation3 + $0xd20] sm:$0xff]  ;;  %4102 = vmatpush1.bf16.msra.mxu1 %v12348_v0 }
 0x22e   :  { %v12341_v7 = vcombine.high %v1270_v61, %v1274_v62  ;;  %v1134_v8 = vld [vmem:[#allocation3 + $0x8c0] sm:$0xff]  ;;  %4060 = vmatprep.subr.bf16.mxu0 %v12213_v5  ;;  %v12340_v13 = vcombine.low %v1270_v61, %v1274_v62 }
 0x22f   :  { %v1138_v9 = vld [vmem:[#allocation3 + $0x8e0] sm:$0xff]  ;;  %4061 = vmatpush1.bf16.msra.mxu0 %v12212_v12 }
 0x230   :  { %v1262_v10 = vld [vmem:[#allocation3 + $0xcc0] sm:$0xff]  ;;  %v12205_v14 = vcombine.high %v1134_v8, %v1138_v9  ;;  %4103 = vmatprep.subr.bf16.mxu1 %v12341_v7  ;;  %v12204_v27 = vcombine.low %v1134_v8, %v1138_v9 }
 0x231   :  { %v1266_v11 = vld [vmem:[#allocation3 + $0xce0] sm:$0xff]  ;;  %4104 = vmatpush1.bf16.msra.mxu1 %v12340_v13 }
 0x232   :  { %v12333_v15 = vcombine.high %v1262_v10, %v1266_v11  ;;  %v1126_v17 = vld [vmem:[#allocation3 + $0x880] sm:$0xff]  ;;  %4062 = vmatprep.subr.bf16.mxu0 %v12205_v14  ;;  %v12332_v20 = vcombine.low %v1262_v10, %v1266_v11 }
 0x233   :  { %v1130_v24 = vld [vmem:[#allocation3 + $0x8a0] sm:$0xff]  ;;  %4063 = vmatpush1.bf16.msra.mxu0 %v12204_v27 }
 0x234   :  { %v1254_v25 = vld [vmem:[#allocation3 + $0xc80] sm:$0xff]  ;;  %v12197_v28 = vcombine.high %v1126_v17, %v1130_v24  ;;  %4105 = vmatprep.subr.bf16.mxu1 %v12333_v15  ;;  %v12196_v35 = vcombine.low %v1126_v17, %v1130_v24 }
 0x235   :  { %v1258_v26 = vld [vmem:[#allocation3 + $0xca0] sm:$0xff]  ;;  %4106 = vmatpush1.bf16.msra.mxu1 %v12332_v20 }
 0x236   :  { %v12325_v19 = vcombine.high %v1254_v25, %v1258_v26  ;;  %v1118_v30 = vld [vmem:[#allocation3 + $0x840] sm:$0xff]  ;;  %4064 = vmatprep.subr.bf16.mxu0 %v12197_v28  ;;  %v12324_v36 = vcombine.low %v1254_v25, %v1258_v26 }
 0x237   :  { %v1122_v2 = vld [vmem:[#allocation3 + $0x860] sm:$0xff]  ;;  %4065 = vmatpush1.bf16.msra.mxu0 %v12196_v35 }
 0x238   :  { %v1246_v33 = vld [vmem:[#allocation3 + $0xc40] sm:$0xff]  ;;  %v12189_v37 = vcombine.high %v1118_v30, %v1122_v2  ;;  %4107 = vmatprep.subr.bf16.mxu1 %v12325_v19  ;;  %v12188_v43 = vcombine.low %v1118_v30, %v1122_v2 }
 0x239   :  { %v1250_v34 = vld [vmem:[#allocation3 + $0xc60] sm:$0xff]  ;;  %4108 = vmatpush1.bf16.msra.mxu1 %v12324_v36 }
 0x23a   :  { %v12317_v38 = vcombine.high %v1246_v33, %v1250_v34  ;;  %v1110_v39 = vld [vmem:[#allocation3 + $0x800] sm:$0xff]  ;;  %4066 = vmatprep.subr.bf16.mxu0 %v12189_v37  ;;  %v12316_v44 = vcombine.low %v1246_v33, %v1250_v34 }
 0x23b   :  { %v1114_v40 = vld [vmem:[#allocation3 + $0x820] sm:$0xff]  ;;  %4067 = vmatpush1.bf16.msra.mxu0 %v12188_v43 }
 0x23c   :  { %v1238_v41 = vld [vmem:[#allocation3 + $0xc00] sm:$0xff]  ;;  %v12181_v45 = vcombine.high %v1110_v39, %v1114_v40  ;;  %4109 = vmatprep.subr.bf16.mxu1 %v12317_v38  ;;  %v12180_v59 = vcombine.low %v1110_v39, %v1114_v40 }
 0x23d   :  { %v1242_v42 = vld [vmem:[#allocation3 + $0xc20] sm:$0xff]  ;;  %4110 = vmatpush1.bf16.msra.mxu1 %v12316_v44 }
 0x23e   :  { %v12309_v47 = vcombine.high %v1238_v41, %v1242_v42  ;;  %v1230_v48 = vld [vmem:[#allocation3 + $0xbc0] sm:$0xff]  ;;  %4068 = vmatprep.subr.bf16.mxu0 %v12181_v45  ;;  %v12308_v60 = vcombine.low %v1238_v41, %v1242_v42 }
 0x23f   :  { %v1234_v50 = vld [vmem:[#allocation3 + $0xbe0] sm:$0xff]  ;;  %4069 = vmatpush1.bf16.msra.mxu0 %v12180_v59 }
 0x240   :  { %v1358_v57 = vld [vmem:[#allocation3 + $0xfc0] sm:$0xff]  ;;  %v12301_v61 = vcombine.high %v1230_v48, %v1234_v50  ;;  %4111 = vmatprep.subr.bf16.mxu1 %v12309_v47  ;;  %v12300_v8 = vcombine.low %v1230_v48, %v1234_v50 }
 0x241   :  { %v1362_v58 = vld [vmem:[#allocation3 + $0xfe0] sm:$0xff]  ;;  %4112 = vmatpush1.bf16.msra.mxu1 %v12308_v60 }
 0x242   :  { %v12429_v62 = vcombine.high %v1358_v57, %v1362_v58  ;;  %v1222_v63 = vld [vmem:[#allocation3 + $0xb80] sm:$0xff]  ;;  %4070 = vmatprep.subr.bf16.mxu0 %v12301_v61  ;;  %v12428_v9 = vcombine.low %v1358_v57, %v1362_v58 }
 0x243   :  { %v1226_v0 = vld [vmem:[#allocation3 + $0xba0] sm:$0xff]  ;;  %4071 = vmatpush2.bf16.msra.mxu0 %v12300_v8 }
 0x244   :  { %v1350_v5 = vld [vmem:[#allocation3 + $0xf80] sm:$0xff]  ;;  %v12293_v10 = vcombine.high %v1222_v63, %v1226_v0  ;;  %4113 = vmatprep.subr.bf16.mxu1 %v12429_v62  ;;  %v12292_v17 = vcombine.low %v1222_v63, %v1226_v0 }
 0x245   :  { %v1354_v7 = vld [vmem:[#allocation3 + $0xfa0] sm:$0xff]  ;;  %4114 = vmatpush2.bf16.msra.mxu1 %v12428_v9 }
 0x246   :  { %v12421_v11 = vcombine.high %v1350_v5, %v1354_v7  ;;  %v1214_v12 = vld [vmem:[#allocation3 + $0xb40] sm:$0xff]  ;;  %4072 = vmatprep.subr.bf16.mxu0 %v12293_v10  ;;  %v12420_v24 = vcombine.low %v1350_v5, %v1354_v7 }
 0x247   :  { %v1218_v13 = vld [vmem:[#allocation3 + $0xb60] sm:$0xff]  ;;  %4073 = vmatpush2.bf16.msra.mxu0 %v12292_v17  ;;  %v911_v17 = vld [vmem:[#allocation3 + $0x1c8] sm:$0xff] }
 0x248   :  { %v1342_v14 = vld [vmem:[#allocation3 + $0xf40] sm:$0xff]  ;;  %v12285_v25 = vcombine.high %v1214_v12, %v1218_v13  ;;  %4115 = vmatprep.subr.bf16.mxu1 %v12421_v11  ;;  %v12284_v30 = vcombine.low %v1214_v12, %v1218_v13 }
 0x249   :  { %v1346_v15 = vld [vmem:[#allocation3 + $0xf60] sm:$0xff]  ;;  %4116 = vmatpush2.bf16.msra.mxu1 %v12420_v24  ;;  %v915_v24 = vld [vmem:[#allocation3 + $0x1e8] sm:$0xff] }
 0x24a   :  { %v12413_v26 = vcombine.high %v1342_v14, %v1346_v15  ;;  %v1206_v27 = vld [vmem:[#allocation3 + $0xb00] sm:$0xff]  ;;  %4074 = vmatprep.subr.bf16.mxu0 %v12285_v25  ;;  %v12412_v2 = vcombine.low %v1342_v14, %v1346_v15  ;;  %v1039_v25 = vld [vmem:[#allocation3 + $0x5c8] sm:$0xff] }
 0x24b   :  { %v1210_v20 = vld [vmem:[#allocation3 + $0xb20] sm:$0xff]  ;;  %4075 = vmatpush2.bf16.msra.mxu0 %v12284_v30  ;;  %v903_v30 = vld [vmem:[#allocation3 + $0x188] sm:$0xff] }
 0x24c   :  { %v1334_v28 = vld [vmem:[#allocation3 + $0xf00] sm:$0xff]  ;;  %v12277_v33 = vcombine.high %v1206_v27, %v1210_v20  ;;  %4117 = vmatprep.subr.bf16.mxu1 %v12413_v26  ;;  %v12276_v39 = vcombine.low %v1206_v27, %v1210_v20  ;;  %v1043_v26 = vld [vmem:[#allocation3 + $0x5e8] sm:$0xff] }
 0x24d   :  { %v1338_v19 = vld [vmem:[#allocation3 + $0xf20] sm:$0xff]  ;;  %4118 = vmatpush2.bf16.msra.mxu1 %v12412_v2  ;;  %v907_v2 = vld [vmem:[#allocation3 + $0x1a8] sm:$0xff] }
 0x24e   :  { %v12405_v34 = vcombine.high %v1334_v28, %v1338_v19  ;;  %v1198_v35 = vld [vmem:[#allocation3 + $0xac0] sm:$0xff]  ;;  %4076 = vmatprep.subr.bf16.mxu0 %v12277_v33  ;;  %v12404_v40 = vcombine.low %v1334_v28, %v1338_v19  ;;  %v11983_v28 = vcombine.high %v911_v17, %v915_v24  ;;  %v12111_v19 = vcombine.high %v1039_v25, %v1043_v26  ;;  %v1031_v33 = vld [vmem:[#allocation3 + $0x588] sm:$0xff] }
 0x24f   :  { %v1202_v36 = vld [vmem:[#allocation3 + $0xae0] sm:$0xff]  ;;  %4077 = vmatpush2.bf16.msra.mxu0 %v12276_v39  ;;  %v895_v39 = vld [vmem:[#allocation3 + $0x148] sm:$0xff] }
 0x250   :  { %v1326_v37 = vld [vmem:[#allocation3 + $0xec0] sm:$0xff]  ;;  %v12269_v41 = vcombine.high %v1198_v35, %v1202_v36  ;;  %4119 = vmatprep.subr.bf16.mxu1 %v12405_v34  ;;  %v12268_v48 = vcombine.low %v1198_v35, %v1202_v36  ;;  %v1035_v34 = vld [vmem:[#allocation3 + $0x5a8] sm:$0xff]  ;;  %v11982_v35 = vcombine.low %v911_v17, %v915_v24  ;;  %v12110_v36 = vcombine.low %v1039_v25, %v1043_v26 }
 0x251   :  { %v1330_v38 = vld [vmem:[#allocation3 + $0xee0] sm:$0xff]  ;;  %4120 = vmatpush2.bf16.msra.mxu1 %v12404_v40  ;;  %v899_v40 = vld [vmem:[#allocation3 + $0x168] sm:$0xff] }
 0x252   :  { %v12397_v42 = vcombine.high %v1326_v37, %v1330_v38  ;;  %v1190_v43 = vld [vmem:[#allocation3 + $0xa80] sm:$0xff]  ;;  %4078 = vmatprep.subr.bf16.mxu0 %v12269_v41  ;;  %v12396_v50 = vcombine.low %v1326_v37, %v1330_v38  ;;  %v11975_v37 = vcombine.high %v903_v30, %v907_v2  ;;  %v12103_v38 = vcombine.high %v1031_v33, %v1035_v34  ;;  %v1023_v41 = vld [vmem:[#allocation3 + $0x548] sm:$0xff] }
 0x253   :  { %v1194_v44 = vld [vmem:[#allocation3 + $0xaa0] sm:$0xff]  ;;  %4079 = vmatpush2.bf16.msra.mxu0 %v12268_v48  ;;  %v887_v48 = vld [vmem:[#allocation3 + $0x108] sm:$0xff] }
 0x254   :  { %v1318_v45 = vld [vmem:[#allocation3 + $0xe80] sm:$0xff]  ;;  %v12261_v57 = vcombine.high %v1190_v43, %v1194_v44  ;;  %4121 = vmatprep.subr.bf16.mxu1 %v12397_v42  ;;  %v12260_v63 = vcombine.low %v1190_v43, %v1194_v44  ;;  %v1027_v42 = vld [vmem:[#allocation3 + $0x568] sm:$0xff]  ;;  %v11974_v43 = vcombine.low %v903_v30, %v907_v2  ;;  %v12102_v44 = vcombine.low %v1031_v33, %v1035_v34 }
 0x255   :  { %v1322_v47 = vld [vmem:[#allocation3 + $0xea0] sm:$0xff]  ;;  %4122 = vmatpush2.bf16.msra.mxu1 %v12396_v50  ;;  %v891_v50 = vld [vmem:[#allocation3 + $0x128] sm:$0xff] }
 0x256   :  { %v12389_v58 = vcombine.high %v1318_v45, %v1322_v47  ;;  %v1182_v59 = vld [vmem:[#allocation3 + $0xa40] sm:$0xff]  ;;  %4080 = vmatprep.subr.bf16.mxu0 %v12261_v57  ;;  %v12388_v0 = vcombine.low %v1318_v45, %v1322_v47  ;;  %v11967_v45 = vcombine.high %v895_v39, %v899_v40  ;;  %v12095_v47 = vcombine.high %v1023_v41, %v1027_v42  ;;  %v1015_v57 = vld [vmem:[#allocation3 + $0x508] sm:$0xff] }
 0x257   :  { %v1186_v60 = vld [vmem:[#allocation3 + $0xa60] sm:$0xff]  ;;  %4081 = vmatpush2.bf16.msra.mxu0 %v12260_v63  ;;  %v879_v63 = vld [vmem:[#allocation3 + $0xc8] sm:$0xff] }
 0x258   :  { %v1310_v61 = vld [vmem:[#allocation3 + $0xe40] sm:$0xff]  ;;  %v12253_v5 = vcombine.high %v1182_v59, %v1186_v60  ;;  %4123 = vmatprep.subr.bf16.mxu1 %v12389_v58  ;;  %v12252_v12 = vcombine.low %v1182_v59, %v1186_v60  ;;  %v1019_v58 = vld [vmem:[#allocation3 + $0x528] sm:$0xff]  ;;  %v11966_v59 = vcombine.low %v895_v39, %v899_v40  ;;  %v12094_v60 = vcombine.low %v1023_v41, %v1027_v42 }
 0x259   :  { %v1314_v62 = vld [vmem:[#allocation3 + $0xe60] sm:$0xff]  ;;  %4124 = vmatpush2.bf16.msra.mxu1 %v12388_v0  ;;  %v883_v0 = vld [vmem:[#allocation3 + $0xe8] sm:$0xff] }
 0x25a   :  { %v12381_v7 = vcombine.high %v1310_v61, %v1314_v62  ;;  %v1174_v8 = vld [vmem:[#allocation3 + $0xa00] sm:$0xff]  ;;  %4082 = vmatprep.subr.bf16.mxu0 %v12253_v5  ;;  %v12380_v13 = vcombine.low %v1310_v61, %v1314_v62  ;;  %v11959_v61 = vcombine.high %v887_v48, %v891_v50  ;;  %v12087_v62 = vcombine.high %v1015_v57, %v1019_v58  ;;  %v1007_v5 = vld [vmem:[#allocation3 + $0x4c8] sm:$0xff] }
 0x25b   :  { %v1178_v9 = vld [vmem:[#allocation3 + $0xa20] sm:$0xff]  ;;  %4083 = vmatpush2.bf16.msra.mxu0 %v12252_v12  ;;  %v871_v12 = vld [vmem:[#allocation3 + $0x88] sm:$0xff]  ;;  %v11950_v17 = vcombine.low %v879_v63, %v883_v0 }
 0x25c   :  { %v1302_v10 = vld [vmem:[#allocation3 + $0xe00] sm:$0xff]  ;;  %v12245_v14 = vcombine.high %v1174_v8, %v1178_v9  ;;  %4125 = vmatprep.subr.bf16.mxu1 %v12381_v7  ;;  %v12244_v27 = vcombine.low %v1174_v8, %v1178_v9  ;;  %v1011_v7 = vld [vmem:[#allocation3 + $0x4e8] sm:$0xff]  ;;  %v11958_v8 = vcombine.low %v887_v48, %v891_v50  ;;  %v12086_v9 = vcombine.low %v1015_v57, %v1019_v58 }
 0x25d   :  { %v1306_v11 = vld [vmem:[#allocation3 + $0xe20] sm:$0xff]  ;;  %4126 = vmatpush2.bf16.msra.mxu1 %v12380_v13  ;;  %v875_v13 = vld [vmem:[#allocation3 + $0xa8] sm:$0xff]  ;;  %v12078_v24 = vcombine.low %v1007_v5, %v1011_v7 }
 0x25e   :  { %v12373_v15 = vcombine.high %v1302_v10, %v1306_v11  ;;  %4084 = vmatprep.subr.bf16.mxu0 %v12245_v14  ;;  %v12372_v20 = vcombine.low %v1302_v10, %v1306_v11  ;;  %v11951_v10 = vcombine.high %v879_v63, %v883_v0  ;;  %v12079_v11 = vcombine.high %v1007_v5, %v1011_v7  ;;  %v999_v14 = vld [vmem:[#allocation3 + $0x488] sm:$0xff] }
 0x25f   :  { %4085 = vmatpush2.bf16.msra.mxu0 %v12244_v27  ;;  %v11943_v25 = vcombine.high %v871_v12, %v875_v13  ;;  %v863_v27 = vld [vmem:[#allocation3 + $0x48] sm:$0xff]  ;;  %v11942_v30 = vcombine.low %v871_v12, %v875_v13 }
 0x260   :  { %4127 = vmatprep.subr.bf16.mxu1 %v12373_v15  ;;  %4140 = vmatprep.subr.bf16.mxu0 %v11983_v28  ;;  %v1003_v15 = vld [vmem:[#allocation3 + $0x4a8] sm:$0xff] }
 0x261   :  { %4128 = vmatpush2.bf16.msra.mxu1 %v12372_v20  ;;  %v12071_v26 = vcombine.high %v999_v14, %v1003_v15  ;;  %v867_v20 = vld [vmem:[#allocation3 + $0x68] sm:$0xff]  ;;  %v12070_v2 = vcombine.low %v999_v14, %v1003_v15 }
 0x262   :  { %4183 = vmatprep.subr.bf16.mxu1 %v12111_v19  ;;  %4087 = vmatmul.mubr.bf16.vlgmr.msra.gmra.mxu0 %v14437_v29  ;;  %v991_v28 = vld [vmem:[#allocation3 + $0x448] sm:$0xff]  ;;  %v11935_v33 = vcombine.high %v863_v27, %v867_v20  ;;  %v11934_v39 = vcombine.low %v863_v27, %v867_v20 }
 0x263   :  { %4141 = vmatpush1.bf16.msra.mxu0 %v11982_v35  ;;  %4172 = vmatprep.mubr.bf16.mxu0 %v14421_v51  ;;  %v995_v19 = vld [vmem:[#allocation3 + $0x468] sm:$0xff] }
 0x264   :  { %4130 = vmatmul.mubr.bf16.vlgmr.msra.gmra.mxu1 %v14439_v1  ;;  %4142 = vmatprep.subr.bf16.mxu0 %v11975_v37  ;;  %v12063_v34 = vcombine.high %v991_v28, %v995_v19  ;;  %v855_v35 = vld [vmem:[#allocation3 + $0x8] sm:$0xff]  ;;  %v12062_v40 = vcombine.low %v991_v28, %v995_v19 }
 0x265   :  { %4184 = vmatpush1.bf16.msra.mxu1 %v12110_v36  ;;  %4215 = vmatprep.mubr.bf16.mxu1 %v14423_v52  ;;  %v859_v36 = vld [vmem:[#allocation3 + $0x28] sm:$0xff] }
 0x266   :  { %4185 = vmatprep.subr.bf16.mxu1 %v12103_v38  ;;  %v983_v37 = vld [vmem:[#allocation3 + $0x408] sm:$0xff]  ;;  %v11927_v41 = vcombine.high %v855_v35, %v859_v36  ;;  %v11926_v48 = vcombine.low %v855_v35, %v859_v36 }
 0x267   :  { %4143 = vmatpush1.bf16.msra.mxu0 %v11974_v43  ;;  %v987_v38 = vld [vmem:[#allocation3 + $0x428] sm:$0xff] }
 0x268   :  { %4144 = vmatprep.subr.bf16.mxu0 %v11967_v45  ;;  %v12055_v42 = vcombine.high %v983_v37, %v987_v38  ;;  %v975_v43 = vld [vmem:[#allocation3 + $0x3c8] sm:$0xff]  ;;  %v12054_v50 = vcombine.low %v983_v37, %v987_v38 }
 0x269   :  { %4186 = vmatpush1.bf16.msra.mxu1 %v12102_v44  ;;  %v979_v44 = vld [vmem:[#allocation3 + $0x3e8] sm:$0xff] }
 0x26a   :  { %4187 = vmatprep.subr.bf16.mxu1 %v12095_v47  ;;  %v1103_v45 = vld [vmem:[#allocation3 + $0x7c8] sm:$0xff]  ;;  %v12047_v57 = vcombine.high %v975_v43, %v979_v44  ;;  %v12046_v63 = vcombine.low %v975_v43, %v979_v44 }
 0x26b   :  { %4145 = vmatpush1.bf16.msra.mxu0 %v11966_v59  ;;  %v1107_v47 = vld [vmem:[#allocation3 + $0x7e8] sm:$0xff] }
 0x26c   :  { %4146 = vmatprep.subr.bf16.mxu0 %v11959_v61  ;;  %v12175_v58 = vcombine.high %v1103_v45, %v1107_v47  ;;  %v967_v59 = vld [vmem:[#allocation3 + $0x388] sm:$0xff]  ;;  %v12174_v0 = vcombine.low %v1103_v45, %v1107_v47 }
 0x26d   :  { %4188 = vmatpush1.bf16.msra.mxu1 %v12094_v60  ;;  %v971_v60 = vld [vmem:[#allocation3 + $0x3a8] sm:$0xff] }
 0x26e   :  { %4189 = vmatprep.subr.bf16.mxu1 %v12087_v62  ;;  %v1095_v61 = vld [vmem:[#allocation3 + $0x788] sm:$0xff]  ;;  %v12039_v5 = vcombine.high %v967_v59, %v971_v60  ;;  %v12038_v12 = vcombine.low %v967_v59, %v971_v60 }
 0x26f   :  { %4147 = vmatpush1.bf16.msra.mxu0 %v11958_v8  ;;  %v1099_v62 = vld [vmem:[#allocation3 + $0x7a8] sm:$0xff] }
 0x270   :  { %4148 = vmatprep.subr.bf16.mxu0 %v11951_v10  ;;  %v12167_v7 = vcombine.high %v1095_v61, %v1099_v62  ;;  %v959_v8 = vld [vmem:[#allocation3 + $0x348] sm:$0xff]  ;;  %v12166_v13 = vcombine.low %v1095_v61, %v1099_v62 }
 0x271   :  { %4190 = vmatpush1.bf16.msra.mxu1 %v12086_v9  ;;  %v963_v9 = vld [vmem:[#allocation3 + $0x368] sm:$0xff] }
 0x272   :  { %4191 = vmatprep.subr.bf16.mxu1 %v12079_v11  ;;  %v1087_v10 = vld [vmem:[#allocation3 + $0x748] sm:$0xff]  ;;  %v12031_v14 = vcombine.high %v959_v8, %v963_v9  ;;  %v12030_v27 = vcombine.low %v959_v8, %v963_v9 }
 0x273   :  { %4149 = vmatpush1.bf16.msra.mxu0 %v11950_v17  ;;  %v1091_v11 = vld [vmem:[#allocation3 + $0x768] sm:$0xff] }
 0x274   :  { %4150 = vmatprep.subr.bf16.mxu0 %v11943_v25  ;;  %v12159_v15 = vcombine.high %v1087_v10, %v1091_v11  ;;  %v951_v17 = vld [vmem:[#allocation3 + $0x308] sm:$0xff]  ;;  %v12158_v20 = vcombine.low %v1087_v10, %v1091_v11 }
 0x275   :  { %4192 = vmatpush1.bf16.msra.mxu1 %v12078_v24  ;;  %v955_v24 = vld [vmem:[#allocation3 + $0x328] sm:$0xff] }
 0x276   :  { %4193 = vmatprep.subr.bf16.mxu1 %v12071_v26  ;;  %v1079_v25 = vld [vmem:[#allocation3 + $0x708] sm:$0xff]  ;;  %v12023_v28 = vcombine.high %v951_v17, %v955_v24  ;;  %v12022_v35 = vcombine.low %v951_v17, %v955_v24 }
 0x277   :  { %4151 = vmatpush1.bf16.msra.mxu0 %v11942_v30  ;;  %v1083_v26 = vld [vmem:[#allocation3 + $0x728] sm:$0xff] }
 0x278   :  { %4152 = vmatprep.subr.bf16.mxu0 %v11935_v33  ;;  %v12151_v19 = vcombine.high %v1079_v25, %v1083_v26  ;;  %v943_v30 = vld [vmem:[#allocation3 + $0x2c8] sm:$0xff]  ;;  %v12150_v36 = vcombine.low %v1079_v25, %v1083_v26 }
 0x279   :  { %4194 = vmatpush1.bf16.msra.mxu1 %v12070_v2  ;;  %v947_v2 = vld [vmem:[#allocation3 + $0x2e8] sm:$0xff] }
 0x27a   :  { %4195 = vmatprep.subr.bf16.mxu1 %v12063_v34  ;;  %v1071_v33 = vld [vmem:[#allocation3 + $0x6c8] sm:$0xff]  ;;  %v12015_v37 = vcombine.high %v943_v30, %v947_v2  ;;  %v12014_v43 = vcombine.low %v943_v30, %v947_v2 }
 0x27b   :  { %4153 = vmatpush1.bf16.msra.mxu0 %v11934_v39  ;;  %v1075_v34 = vld [vmem:[#allocation3 + $0x6e8] sm:$0xff] }
 0x27c   :  { %4154 = vmatprep.subr.bf16.mxu0 %v11927_v41  ;;  %v12143_v38 = vcombine.high %v1071_v33, %v1075_v34  ;;  %v935_v39 = vld [vmem:[#allocation3 + $0x288] sm:$0xff]  ;;  %v12142_v44 = vcombine.low %v1071_v33, %v1075_v34 }
 0x27d   :  { %4196 = vmatpush1.bf16.msra.mxu1 %v12062_v40  ;;  %v939_v40 = vld [vmem:[#allocation3 + $0x2a8] sm:$0xff] }
 0x27e   :  { %4197 = vmatprep.subr.bf16.mxu1 %v12055_v42  ;;  %v1063_v41 = vld [vmem:[#allocation3 + $0x688] sm:$0xff]  ;;  %v12007_v45 = vcombine.high %v935_v39, %v939_v40  ;;  %v12006_v59 = vcombine.low %v935_v39, %v939_v40 }
 0x27f   :  { %4155 = vmatpush1.bf16.msra.mxu0 %v11926_v48  ;;  %v1067_v42 = vld [vmem:[#allocation3 + $0x6a8] sm:$0xff] }
 0x280   :  { %4156 = vmatprep.subr.bf16.mxu0 %v12047_v57  ;;  %v12135_v47 = vcombine.high %v1063_v41, %v1067_v42  ;;  %v927_v48 = vld [vmem:[#allocation3 + $0x248] sm:$0xff]  ;;  %v12134_v60 = vcombine.low %v1063_v41, %v1067_v42 }
 0x281   :  { %4198 = vmatpush1.bf16.msra.mxu1 %v12054_v50  ;;  %v931_v50 = vld [vmem:[#allocation3 + $0x268] sm:$0xff] }
 0x282   :  { %4199 = vmatprep.subr.bf16.mxu1 %v12175_v58  ;;  %v1055_v57 = vld [vmem:[#allocation3 + $0x648] sm:$0xff]  ;;  %v11999_v61 = vcombine.high %v927_v48, %v931_v50  ;;  %v11998_v8 = vcombine.low %v927_v48, %v931_v50 }
 0x283   :  { %4157 = vmatpush2.bf16.msra.mxu0 %v12046_v63  ;;  %v1059_v58 = vld [vmem:[#allocation3 + $0x668] sm:$0xff] }
 0x284   :  { %4158 = vmatprep.subr.bf16.mxu0 %v12039_v5  ;;  %v12127_v62 = vcombine.high %v1055_v57, %v1059_v58  ;;  %v919_v63 = vld [vmem:[#allocation3 + $0x208] sm:$0xff]  ;;  %v12126_v9 = vcombine.low %v1055_v57, %v1059_v58 }
 0x285   :  { %4200 = vmatpush2.bf16.msra.mxu1 %v12174_v0  ;;  %v923_v0 = vld [vmem:[#allocation3 + $0x228] sm:$0xff] }
 0x286   :  { %4201 = vmatprep.subr.bf16.mxu1 %v12167_v7  ;;  %v1047_v5 = vld [vmem:[#allocation3 + $0x608] sm:$0xff]  ;;  %v11991_v10 = vcombine.high %v919_v63, %v923_v0  ;;  %v11990_v17 = vcombine.low %v919_v63, %v923_v0 }
 0x287   :  { %4159 = vmatpush2.bf16.msra.mxu0 %v12038_v12  ;;  %v1051_v7 = vld [vmem:[#allocation3 + $0x628] sm:$0xff] }
 0x288   :  { %4160 = vmatprep.subr.bf16.mxu0 %v12031_v14  ;;  %v12119_v11 = vcombine.high %v1047_v5, %v1051_v7  ;;  %v1167_v12 = vld [vmem:[#allocation3 + $0x9c8] sm:$0xff]  ;;  %v12118_v24 = vcombine.low %v1047_v5, %v1051_v7 }
 0x289   :  { %4202 = vmatpush2.bf16.msra.mxu1 %v12166_v13  ;;  %v1171_v13 = vld [vmem:[#allocation3 + $0x9e8] sm:$0xff] }
 0x28a   :  { %4203 = vmatprep.subr.bf16.mxu1 %v12159_v15  ;;  %v1295_v14 = vld [vmem:[#allocation3 + $0xdc8] sm:$0xff]  ;;  %v12239_v25 = vcombine.high %v1167_v12, %v1171_v13  ;;  %v12238_v30 = vcombine.low %v1167_v12, %v1171_v13 }
 0x28b   :  { %4161 = vmatpush2.bf16.msra.mxu0 %v12030_v27  ;;  %v1299_v15 = vld [vmem:[#allocation3 + $0xde8] sm:$0xff] }
 0x28c   :  { %4162 = vmatprep.subr.bf16.mxu0 %v12023_v28  ;;  %v12367_v26 = vcombine.high %v1295_v14, %v1299_v15  ;;  %v1159_v27 = vld [vmem:[#allocation3 + $0x988] sm:$0xff]  ;;  %v12366_v2 = vcombine.low %v1295_v14, %v1299_v15 }
 0x28d   :  { %4204 = vmatpush2.bf16.msra.mxu1 %v12158_v20  ;;  %v1163_v20 = vld [vmem:[#allocation3 + $0x9a8] sm:$0xff] }
 0x28e   :  { %4205 = vmatprep.subr.bf16.mxu1 %v12151_v19  ;;  %v1287_v28 = vld [vmem:[#allocation3 + $0xd88] sm:$0xff]  ;;  %v12231_v33 = vcombine.high %v1159_v27, %v1163_v20  ;;  %v12230_v39 = vcombine.low %v1159_v27, %v1163_v20 }
 0x28f   :  { %4163 = vmatpush2.bf16.msra.mxu0 %v12022_v35  ;;  %v1291_v19 = vld [vmem:[#allocation3 + $0xda8] sm:$0xff] }
 0x290   :  { %4164 = vmatprep.subr.bf16.mxu0 %v12015_v37  ;;  %v12359_v34 = vcombine.high %v1287_v28, %v1291_v19  ;;  %v1151_v35 = vld [vmem:[#allocation3 + $0x948] sm:$0xff]  ;;  %v12358_v40 = vcombine.low %v1287_v28, %v1291_v19 }
 0x291   :  { %4206 = vmatpush2.bf16.msra.mxu1 %v12150_v36  ;;  %v1155_v36 = vld [vmem:[#allocation3 + $0x968] sm:$0xff] }
 0x292   :  { %4207 = vmatprep.subr.bf16.mxu1 %v12143_v38  ;;  %v1279_v37 = vld [vmem:[#allocation3 + $0xd48] sm:$0xff]  ;;  %v12223_v41 = vcombine.high %v1151_v35, %v1155_v36  ;;  %v12222_v48 = vcombine.low %v1151_v35, %v1155_v36 }
 0x293   :  { %4165 = vmatpush2.bf16.msra.mxu0 %v12014_v43  ;;  %v1283_v38 = vld [vmem:[#allocation3 + $0xd68] sm:$0xff] }
 0x294   :  { %4166 = vmatprep.subr.bf16.mxu0 %v12007_v45  ;;  %v12351_v42 = vcombine.high %v1279_v37, %v1283_v38  ;;  %v1143_v43 = vld [vmem:[#allocation3 + $0x908] sm:$0xff]  ;;  %v12350_v50 = vcombine.low %v1279_v37, %v1283_v38 }
 0x295   :  { %4208 = vmatpush2.bf16.msra.mxu1 %v12142_v44  ;;  %v1147_v44 = vld [vmem:[#allocation3 + $0x928] sm:$0xff] }
 0x296   :  { %4209 = vmatprep.subr.bf16.mxu1 %v12135_v47  ;;  %v1271_v45 = vld [vmem:[#allocation3 + $0xd08] sm:$0xff]  ;;  %v12215_v57 = vcombine.high %v1143_v43, %v1147_v44  ;;  %v12214_v63 = vcombine.low %v1143_v43, %v1147_v44 }
 0x297   :  { %4167 = vmatpush2.bf16.msra.mxu0 %v12006_v59  ;;  %v1275_v47 = vld [vmem:[#allocation3 + $0xd28] sm:$0xff] }
 0x298   :  { %4168 = vmatprep.subr.bf16.mxu0 %v11999_v61  ;;  %v12343_v58 = vcombine.high %v1271_v45, %v1275_v47  ;;  %v1135_v59 = vld [vmem:[#allocation3 + $0x8c8] sm:$0xff]  ;;  %v12342_v0 = vcombine.low %v1271_v45, %v1275_v47 }
 0x299   :  { %4210 = vmatpush2.bf16.msra.mxu1 %v12134_v60  ;;  %v1139_v60 = vld [vmem:[#allocation3 + $0x8e8] sm:$0xff] }
 0x29a   :  { %4211 = vmatprep.subr.bf16.mxu1 %v12127_v62  ;;  %v1263_v61 = vld [vmem:[#allocation3 + $0xcc8] sm:$0xff]  ;;  %v12207_v5 = vcombine.high %v1135_v59, %v1139_v60  ;;  %v12206_v12 = vcombine.low %v1135_v59, %v1139_v60 }
 0x29b   :  { %4169 = vmatpush2.bf16.msra.mxu0 %v11998_v8  ;;  %v1267_v62 = vld [vmem:[#allocation3 + $0xce8] sm:$0xff] }
 0x29c   :  { %4170 = vmatprep.subr.bf16.mxu0 %v11991_v10  ;;  %v12335_v7 = vcombine.high %v1263_v61, %v1267_v62  ;;  %v1127_v8 = vld [vmem:[#allocation3 + $0x888] sm:$0xff]  ;;  %v12334_v13 = vcombine.low %v1263_v61, %v1267_v62 }
 0x29d   :  { %4212 = vmatpush2.bf16.msra.mxu1 %v12126_v9  ;;  %v1131_v9 = vld [vmem:[#allocation3 + $0x8a8] sm:$0xff] }
 0x29e   :  { %4213 = vmatprep.subr.bf16.mxu1 %v12119_v11  ;;  %v1255_v10 = vld [vmem:[#allocation3 + $0xc88] sm:$0xff]  ;;  %v12199_v14 = vcombine.high %v1127_v8, %v1131_v9  ;;  %v12198_v27 = vcombine.low %v1127_v8, %v1131_v9 }
 0x29f   :  { %4171 = vmatpush2.bf16.msra.mxu0 %v11990_v17  ;;  %v1259_v11 = vld [vmem:[#allocation3 + $0xca8] sm:$0xff] }
 0x2a0   :  { %4226 = vmatprep.subr.bf16.mxu0 %v12239_v25  ;;  %v12327_v15 = vcombine.high %v1255_v10, %v1259_v11  ;;  %v1119_v17 = vld [vmem:[#allocation3 + $0x848] sm:$0xff]  ;;  %v12326_v20 = vcombine.low %v1255_v10, %v1259_v11 }
 0x2a1   :  { %4214 = vmatpush2.bf16.msra.mxu1 %v12118_v24  ;;  %v1123_v24 = vld [vmem:[#allocation3 + $0x868] sm:$0xff] }
 0x2a2   :  { %4269 = vmatprep.subr.bf16.mxu1 %v12367_v26  ;;  %4173 = vmatmul.mubr.bf16.vlgmr.msra.gmra.mxu0 %v14417_v46  ;;  %v1247_v25 = vld [vmem:[#allocation3 + $0xc48] sm:$0xff]  ;;  %v12191_v28 = vcombine.high %v1119_v17, %v1123_v24  ;;  %v12190_v35 = vcombine.low %v1119_v17, %v1123_v24 }
 0x2a3   :  { %4227 = vmatpush1.bf16.msra.mxu0 %v12238_v30  ;;  %4258 = vmatprep.mubr.bf16.mxu0 %v14441_v31  ;;  %v1251_v26 = vld [vmem:[#allocation3 + $0xc68] sm:$0xff] }
 0x2a4   :  { %4216 = vmatmul.mubr.bf16.vlgmr.msra.gmra.mxu1 %v14419_v49  ;;  %4228 = vmatprep.subr.bf16.mxu0 %v12231_v33  ;;  %v12319_v19 = vcombine.high %v1247_v25, %v1251_v26  ;;  %v1111_v30 = vld [vmem:[#allocation3 + $0x808] sm:$0xff]  ;;  %v12318_v36 = vcombine.low %v1247_v25, %v1251_v26 }
 0x2a5   :  { %4270 = vmatpush1.bf16.msra.mxu1 %v12366_v2  ;;  %4301 = vmatprep.mubr.bf16.mxu1 %v14443_v32  ;;  %v1115_v2 = vld [vmem:[#allocation3 + $0x828] sm:$0xff] }
 0x2a6   :  { %4271 = vmatprep.subr.bf16.mxu1 %v12359_v34  ;;  %v1239_v33 = vld [vmem:[#allocation3 + $0xc08] sm:$0xff]  ;;  %v12183_v37 = vcombine.high %v1111_v30, %v1115_v2  ;;  %v12182_v43 = vcombine.low %v1111_v30, %v1115_v2 }
 0x2a7   :  { %4229 = vmatpush1.bf16.msra.mxu0 %v12230_v39  ;;  %v1243_v34 = vld [vmem:[#allocation3 + $0xc28] sm:$0xff] }
 0x2a8   :  { %4230 = vmatprep.subr.bf16.mxu0 %v12223_v41  ;;  %v12311_v38 = vcombine.high %v1239_v33, %v1243_v34  ;;  %v1231_v39 = vld [vmem:[#allocation3 + $0xbc8] sm:$0xff]  ;;  %v12310_v44 = vcombine.low %v1239_v33, %v1243_v34 }
 0x2a9   :  { %4272 = vmatpush1.bf16.msra.mxu1 %v12358_v40  ;;  %v1235_v40 = vld [vmem:[#allocation3 + $0xbe8] sm:$0xff] }
 0x2aa   :  { %4273 = vmatprep.subr.bf16.mxu1 %v12351_v42  ;;  %v1359_v41 = vld [vmem:[#allocation3 + $0xfc8] sm:$0xff]  ;;  %v12303_v45 = vcombine.high %v1231_v39, %v1235_v40  ;;  %v12302_v59 = vcombine.low %v1231_v39, %v1235_v40 }
 0x2ab   :  { %4231 = vmatpush1.bf16.msra.mxu0 %v12222_v48  ;;  %v1363_v42 = vld [vmem:[#allocation3 + $0xfe8] sm:$0xff] }
 0x2ac   :  { %4232 = vmatprep.subr.bf16.mxu0 %v12215_v57  ;;  %v12431_v47 = vcombine.high %v1359_v41, %v1363_v42  ;;  %v1223_v48 = vld [vmem:[#allocation3 + $0xb88] sm:$0xff]  ;;  %v12430_v60 = vcombine.low %v1359_v41, %v1363_v42 }
 0x2ad   :  { %4274 = vmatpush1.bf16.msra.mxu1 %v12350_v50  ;;  %v1227_v50 = vld [vmem:[#allocation3 + $0xba8] sm:$0xff] }
 0x2ae   :  { %4275 = vmatprep.subr.bf16.mxu1 %v12343_v58  ;;  %v1351_v57 = vld [vmem:[#allocation3 + $0xf88] sm:$0xff]  ;;  %v12295_v61 = vcombine.high %v1223_v48, %v1227_v50  ;;  %v12294_v8 = vcombine.low %v1223_v48, %v1227_v50 }
 0x2af   :  { %4233 = vmatpush1.bf16.msra.mxu0 %v12214_v63  ;;  %v1355_v58 = vld [vmem:[#allocation3 + $0xfa8] sm:$0xff] }
 0x2b0   :  { %4234 = vmatprep.subr.bf16.mxu0 %v12207_v5  ;;  %v12423_v62 = vcombine.high %v1351_v57, %v1355_v58  ;;  %v1215_v63 = vld [vmem:[#allocation3 + $0xb48] sm:$0xff]  ;;  %v12422_v9 = vcombine.low %v1351_v57, %v1355_v58 }
 0x2b1   :  { %4276 = vmatpush1.bf16.msra.mxu1 %v12342_v0  ;;  %v1219_v0 = vld [vmem:[#allocation3 + $0xb68] sm:$0xff] }
 0x2b2   :  { %4277 = vmatprep.subr.bf16.mxu1 %v12335_v7  ;;  %v1343_v5 = vld [vmem:[#allocation3 + $0xf48] sm:$0xff]  ;;  %v12287_v10 = vcombine.high %v1215_v63, %v1219_v0  ;;  %v12286_v17 = vcombine.low %v1215_v63, %v1219_v0 }
 0x2b3   :  { %4235 = vmatpush1.bf16.msra.mxu0 %v12206_v12  ;;  %v1347_v7 = vld [vmem:[#allocation3 + $0xf68] sm:$0xff] }
 0x2b4   :  { %4236 = vmatprep.subr.bf16.mxu0 %v12199_v14  ;;  %v12415_v11 = vcombine.high %v1343_v5, %v1347_v7  ;;  %v1207_v12 = vld [vmem:[#allocation3 + $0xb08] sm:$0xff]  ;;  %v12414_v24 = vcombine.low %v1343_v5, %v1347_v7 }
 0x2b5   :  { %4278 = vmatpush1.bf16.msra.mxu1 %v12334_v13  ;;  %v1211_v13 = vld [vmem:[#allocation3 + $0xb28] sm:$0xff] }
 0x2b6   :  { %4279 = vmatprep.subr.bf16.mxu1 %v12327_v15  ;;  %v1335_v14 = vld [vmem:[#allocation3 + $0xf08] sm:$0xff]  ;;  %v12279_v25 = vcombine.high %v1207_v12, %v1211_v13  ;;  %v12278_v30 = vcombine.low %v1207_v12, %v1211_v13 }
 0x2b7   :  { %4237 = vmatpush1.bf16.msra.mxu0 %v12198_v27  ;;  %v1339_v15 = vld [vmem:[#allocation3 + $0xf28] sm:$0xff] }
 0x2b8   :  { %4238 = vmatprep.subr.bf16.mxu0 %v12191_v28  ;;  %v12407_v26 = vcombine.high %v1335_v14, %v1339_v15  ;;  %v1199_v27 = vld [vmem:[#allocation3 + $0xac8] sm:$0xff]  ;;  %v12406_v2 = vcombine.low %v1335_v14, %v1339_v15 }
 0x2b9   :  { %4280 = vmatpush1.bf16.msra.mxu1 %v12326_v20  ;;  %v1203_v20 = vld [vmem:[#allocation3 + $0xae8] sm:$0xff] }
 0x2ba   :  { %4281 = vmatprep.subr.bf16.mxu1 %v12319_v19  ;;  %v1327_v28 = vld [vmem:[#allocation3 + $0xec8] sm:$0xff]  ;;  %v12271_v33 = vcombine.high %v1199_v27, %v1203_v20  ;;  %v12270_v39 = vcombine.low %v1199_v27, %v1203_v20 }
 0x2bb   :  { %4239 = vmatpush1.bf16.msra.mxu0 %v12190_v35  ;;  %v1331_v19 = vld [vmem:[#allocation3 + $0xee8] sm:$0xff] }
 0x2bc   :  { %4240 = vmatprep.subr.bf16.mxu0 %v12183_v37  ;;  %v12399_v34 = vcombine.high %v1327_v28, %v1331_v19  ;;  %v1191_v35 = vld [vmem:[#allocation3 + $0xa88] sm:$0xff]  ;;  %v12398_v40 = vcombine.low %v1327_v28, %v1331_v19 }
 0x2bd   :  { %4282 = vmatpush1.bf16.msra.mxu1 %v12318_v36  ;;  %v1195_v36 = vld [vmem:[#allocation3 + $0xaa8] sm:$0xff] }
 0x2be   :  { %4283 = vmatprep.subr.bf16.mxu1 %v12311_v38  ;;  %v1319_v37 = vld [vmem:[#allocation3 + $0xe88] sm:$0xff]  ;;  %v12263_v41 = vcombine.high %v1191_v35, %v1195_v36  ;;  %v12262_v48 = vcombine.low %v1191_v35, %v1195_v36 }
 0x2bf   :  { %4241 = vmatpush1.bf16.msra.mxu0 %v12182_v43  ;;  %v1323_v38 = vld [vmem:[#allocation3 + $0xea8] sm:$0xff] }
 0x2c0   :  { %4242 = vmatprep.subr.bf16.mxu0 %v12303_v45  ;;  %v12391_v42 = vcombine.high %v1319_v37, %v1323_v38  ;;  %v1183_v43 = vld [vmem:[#allocation3 + $0xa48] sm:$0xff]  ;;  %v12390_v50 = vcombine.low %v1319_v37, %v1323_v38 }
 0x2c1   :  { %4284 = vmatpush1.bf16.msra.mxu1 %v12310_v44  ;;  %v1187_v44 = vld [vmem:[#allocation3 + $0xa68] sm:$0xff] }
 0x2c2   :  { %4285 = vmatprep.subr.bf16.mxu1 %v12431_v47  ;;  %v1311_v45 = vld [vmem:[#allocation3 + $0xe48] sm:$0xff]  ;;  %v12255_v57 = vcombine.high %v1183_v43, %v1187_v44  ;;  %v12254_v63 = vcombine.low %v1183_v43, %v1187_v44 }
 0x2c3   :  { %4243 = vmatpush2.bf16.msra.mxu0 %v12302_v59  ;;  %v1315_v47 = vld [vmem:[#allocation3 + $0xe68] sm:$0xff] }
 0x2c4   :  { %4244 = vmatprep.subr.bf16.mxu0 %v12295_v61  ;;  %v12383_v58 = vcombine.high %v1311_v45, %v1315_v47  ;;  %v1175_v59 = vld [vmem:[#allocation3 + $0xa08] sm:$0xff]  ;;  %v12382_v0 = vcombine.low %v1311_v45, %v1315_v47 }
 0x2c5   :  { %4286 = vmatpush2.bf16.msra.mxu1 %v12430_v60  ;;  %v1179_v60 = vld [vmem:[#allocation3 + $0xa28] sm:$0xff] }
 0x2c6   :  { %4287 = vmatprep.subr.bf16.mxu1 %v12423_v62  ;;  %v1303_v61 = vld [vmem:[#allocation3 + $0xe08] sm:$0xff]  ;;  %v12247_v5 = vcombine.high %v1175_v59, %v1179_v60  ;;  %v12246_v12 = vcombine.low %v1175_v59, %v1179_v60 }
 0x2c7   :  { %4245 = vmatpush2.bf16.msra.mxu0 %v12294_v8  ;;  %v1307_v62 = vld [vmem:[#allocation3 + $0xe28] sm:$0xff]  ;;  %v912_v8 = vld [vmem:[#allocation3 + $0x1d0] sm:$0xff] }
 0x2c8   :  { %4246 = vmatprep.subr.bf16.mxu0 %v12287_v10  ;;  %v12375_v7 = vcombine.high %v1303_v61, %v1307_v62  ;;  %v1040_v10 = vld [vmem:[#allocation3 + $0x5d0] sm:$0xff]  ;;  %v12374_v13 = vcombine.low %v1303_v61, %v1307_v62 }
 0x2c9   :  { %4288 = vmatpush2.bf16.msra.mxu1 %v12422_v9  ;;  %v916_v9 = vld [vmem:[#allocation3 + $0x1f0] sm:$0xff] }
 0x2ca   :  { %4289 = vmatprep.subr.bf16.mxu1 %v12415_v11  ;;  %v1044_v11 = vld [vmem:[#allocation3 + $0x5f0] sm:$0xff]  ;;  %v11985_v14 = vcombine.high %v912_v8, %v916_v9  ;;  %v11984_v27 = vcombine.low %v912_v8, %v916_v9 }
 0x2cb   :  { %4247 = vmatpush2.bf16.msra.mxu0 %v12286_v17  ;;  %v12113_v15 = vcombine.high %v1040_v10, %v1044_v11  ;;  %v904_v17 = vld [vmem:[#allocation3 + $0x190] sm:$0xff]  ;;  %v12112_v20 = vcombine.low %v1040_v10, %v1044_v11 }
 0x2cc   :  { %4248 = vmatprep.subr.bf16.mxu0 %v12279_v25  ;;  %v1032_v25 = vld [vmem:[#allocation3 + $0x590] sm:$0xff] }
 0x2cd   :  { %4290 = vmatpush2.bf16.msra.mxu1 %v12414_v24  ;;  %v908_v24 = vld [vmem:[#allocation3 + $0x1b0] sm:$0xff] }
 0x2ce   :  { %4291 = vmatprep.subr.bf16.mxu1 %v12407_v26  ;;  %v1036_v26 = vld [vmem:[#allocation3 + $0x5b0] sm:$0xff]  ;;  %v11977_v28 = vcombine.high %v904_v17, %v908_v24  ;;  %v11976_v35 = vcombine.low %v904_v17, %v908_v24 }
 0x2cf   :  { %4249 = vmatpush2.bf16.msra.mxu0 %v12278_v30  ;;  %v12105_v19 = vcombine.high %v1032_v25, %v1036_v26  ;;  %v896_v30 = vld [vmem:[#allocation3 + $0x150] sm:$0xff]  ;;  %v12104_v36 = vcombine.low %v1032_v25, %v1036_v26 }
 0x2d0   :  { %4250 = vmatprep.subr.bf16.mxu0 %v12271_v33  ;;  %v1024_v33 = vld [vmem:[#allocation3 + $0x550] sm:$0xff] }
 0x2d1   :  { %4292 = vmatpush2.bf16.msra.mxu1 %v12406_v2  ;;  %v900_v2 = vld [vmem:[#allocation3 + $0x170] sm:$0xff] }
 0x2d2   :  { %4293 = vmatprep.subr.bf16.mxu1 %v12399_v34  ;;  %v1028_v34 = vld [vmem:[#allocation3 + $0x570] sm:$0xff]  ;;  %v11969_v37 = vcombine.high %v896_v30, %v900_v2  ;;  %v11968_v43 = vcombine.low %v896_v30, %v900_v2 }
 0x2d3   :  { %4251 = vmatpush2.bf16.msra.mxu0 %v12270_v39  ;;  %v12097_v38 = vcombine.high %v1024_v33, %v1028_v34  ;;  %v888_v39 = vld [vmem:[#allocation3 + $0x110] sm:$0xff]  ;;  %v12096_v44 = vcombine.low %v1024_v33, %v1028_v34 }
 0x2d4   :  { %4252 = vmatprep.subr.bf16.mxu0 %v12263_v41  ;;  %v1016_v41 = vld [vmem:[#allocation3 + $0x510] sm:$0xff] }
 0x2d5   :  { %4294 = vmatpush2.bf16.msra.mxu1 %v12398_v40  ;;  %v892_v40 = vld [vmem:[#allocation3 + $0x130] sm:$0xff] }
 0x2d6   :  { %4295 = vmatprep.subr.bf16.mxu1 %v12391_v42  ;;  %v1020_v42 = vld [vmem:[#allocation3 + $0x530] sm:$0xff]  ;;  %v11961_v45 = vcombine.high %v888_v39, %v892_v40  ;;  %v11960_v59 = vcombine.low %v888_v39, %v892_v40 }
 0x2d7   :  { %4253 = vmatpush2.bf16.msra.mxu0 %v12262_v48  ;;  %v12089_v47 = vcombine.high %v1016_v41, %v1020_v42  ;;  %v880_v48 = vld [vmem:[#allocation3 + $0xd0] sm:$0xff]  ;;  %v12088_v60 = vcombine.low %v1016_v41, %v1020_v42 }
 0x2d8   :  { %4254 = vmatprep.subr.bf16.mxu0 %v12255_v57  ;;  %v1008_v57 = vld [vmem:[#allocation3 + $0x4d0] sm:$0xff] }
 0x2d9   :  { %4296 = vmatpush2.bf16.msra.mxu1 %v12390_v50  ;;  %v884_v50 = vld [vmem:[#allocation3 + $0xf0] sm:$0xff] }
 0x2da   :  { %4297 = vmatprep.subr.bf16.mxu1 %v12383_v58  ;;  %v1012_v58 = vld [vmem:[#allocation3 + $0x4f0] sm:$0xff]  ;;  %v11953_v61 = vcombine.high %v880_v48, %v884_v50  ;;  %v11952_v8 = vcombine.low %v880_v48, %v884_v50 }
 0x2db   :  { %4255 = vmatpush2.bf16.msra.mxu0 %v12254_v63  ;;  %v12081_v62 = vcombine.high %v1008_v57, %v1012_v58  ;;  %v872_v63 = vld [vmem:[#allocation3 + $0x90] sm:$0xff]  ;;  %v12080_v9 = vcombine.low %v1008_v57, %v1012_v58 }
 0x2dc   :  { %4256 = vmatprep.subr.bf16.mxu0 %v12247_v5  ;;  %v1000_v5 = vld [vmem:[#allocation3 + $0x490] sm:$0xff] }
 0x2dd   :  { %4298 = vmatpush2.bf16.msra.mxu1 %v12382_v0  ;;  %v876_v0 = vld [vmem:[#allocation3 + $0xb0] sm:$0xff] }
 0x2de   :  { %4299 = vmatprep.subr.bf16.mxu1 %v12375_v7  ;;  %v1004_v7 = vld [vmem:[#allocation3 + $0x4b0] sm:$0xff]  ;;  %v11945_v10 = vcombine.high %v872_v63, %v876_v0  ;;  %v11944_v17 = vcombine.low %v872_v63, %v876_v0 }
 0x2df   :  { %4257 = vmatpush2.bf16.msra.mxu0 %v12246_v12  ;;  %v12073_v11 = vcombine.high %v1000_v5, %v1004_v7  ;;  %v864_v12 = vld [vmem:[#allocation3 + $0x50] sm:$0xff]  ;;  %v12072_v24 = vcombine.low %v1000_v5, %v1004_v7 }
 0x2e0   :  { %4312 = vmatprep.subr.bf16.mxu0 %v11985_v14  ;;  %v992_v14 = vld [vmem:[#allocation3 + $0x450] sm:$0xff] }
 0x2e1   :  { %4300 = vmatpush2.bf16.msra.mxu1 %v12374_v13  ;;  %v868_v13 = vld [vmem:[#allocation3 + $0x70] sm:$0xff] }
 0x2e2   :  { %4355 = vmatprep.subr.bf16.mxu1 %v12113_v15  ;;  %4259 = vmatmul.mubr.bf16.vlgmr.msra.gmra.mxu0 %v14437_v29  ;;  %v996_v15 = vld [vmem:[#allocation3 + $0x470] sm:$0xff]  ;;  %v11937_v25 = vcombine.high %v864_v12, %v868_v13  ;;  %v11936_v30 = vcombine.low %v864_v12, %v868_v13 }
 0x2e3   :  { %4313 = vmatpush1.bf16.msra.mxu0 %v11984_v27  ;;  %4344 = vmatprep.mubr.bf16.mxu0 %v14421_v51  ;;  %v12065_v26 = vcombine.high %v992_v14, %v996_v15  ;;  %v856_v27 = vld [vmem:[#allocation3 + $0x10] sm:$0xff]  ;;  %v12064_v2 = vcombine.low %v992_v14, %v996_v15 }
 0x2e4   :  { %4302 = vmatmul.mubr.bf16.vlgmr.msra.gmra.mxu1 %v14439_v1  ;;  %4314 = vmatprep.subr.bf16.mxu0 %v11977_v28  ;;  %v984_v28 = vld [vmem:[#allocation3 + $0x410] sm:$0xff] }
 0x2e5   :  { %4356 = vmatpush1.bf16.msra.mxu1 %v12112_v20  ;;  %4387 = vmatprep.mubr.bf16.mxu1 %v14423_v52  ;;  %v860_v20 = vld [vmem:[#allocation3 + $0x30] sm:$0xff] }
 0x2e6   :  { %4357 = vmatprep.subr.bf16.mxu1 %v12105_v19  ;;  %v988_v19 = vld [vmem:[#allocation3 + $0x430] sm:$0xff]  ;;  %v11929_v33 = vcombine.high %v856_v27, %v860_v20  ;;  %v11928_v39 = vcombine.low %v856_v27, %v860_v20 }
 0x2e7   :  { %4315 = vmatpush1.bf16.msra.mxu0 %v11976_v35  ;;  %v12057_v34 = vcombine.high %v984_v28, %v988_v19  ;;  %v976_v35 = vld [vmem:[#allocation3 + $0x3d0] sm:$0xff]  ;;  %v12056_v40 = vcombine.low %v984_v28, %v988_v19 }
 0x2e8   :  { %4316 = vmatprep.subr.bf16.mxu0 %v11969_v37  ;;  %v1104_v37 = vld [vmem:[#allocation3 + $0x7d0] sm:$0xff] }
 0x2e9   :  { %4358 = vmatpush1.bf16.msra.mxu1 %v12104_v36  ;;  %v980_v36 = vld [vmem:[#allocation3 + $0x3f0] sm:$0xff] }
 0x2ea   :  { %4359 = vmatprep.subr.bf16.mxu1 %v12097_v38  ;;  %v1108_v38 = vld [vmem:[#allocation3 + $0x7f0] sm:$0xff]  ;;  %v12049_v41 = vcombine.high %v976_v35, %v980_v36  ;;  %v12048_v48 = vcombine.low %v976_v35, %v980_v36 }
 0x2eb   :  { %4317 = vmatpush1.bf16.msra.mxu0 %v11968_v43  ;;  %v12177_v42 = vcombine.high %v1104_v37, %v1108_v38  ;;  %v968_v43 = vld [vmem:[#allocation3 + $0x390] sm:$0xff]  ;;  %v12176_v50 = vcombine.low %v1104_v37, %v1108_v38 }
 0x2ec   :  { %4318 = vmatprep.subr.bf16.mxu0 %v11961_v45  ;;  %v1096_v45 = vld [vmem:[#allocation3 + $0x790] sm:$0xff] }
 0x2ed   :  { %4360 = vmatpush1.bf16.msra.mxu1 %v12096_v44  ;;  %v972_v44 = vld [vmem:[#allocation3 + $0x3b0] sm:$0xff] }
 0x2ee   :  { %4361 = vmatprep.subr.bf16.mxu1 %v12089_v47  ;;  %v1100_v47 = vld [vmem:[#allocation3 + $0x7b0] sm:$0xff]  ;;  %v12041_v57 = vcombine.high %v968_v43, %v972_v44  ;;  %v12040_v63 = vcombine.low %v968_v43, %v972_v44  ;;  %v4002_v44 = vpop.f32.mrf.mxu0 }
 0x2ef   :  { %4319 = vmatpush1.bf16.msra.mxu0 %v11960_v59  ;;  %v12169_v58 = vcombine.high %v1096_v45, %v1100_v47  ;;  %v960_v59 = vld [vmem:[#allocation3 + $0x350] sm:$0xff]  ;;  %v12168_v0 = vcombine.low %v1096_v45, %v1100_v47 }
 0x2f0   :  { %4320 = vmatprep.subr.bf16.mxu0 %v11953_v61  ;;  %v1088_v61 = vld [vmem:[#allocation3 + $0x750] sm:$0xff] }
 0x2f1   :  { %4362 = vmatpush1.bf16.msra.mxu1 %v12088_v60  ;;  %v964_v60 = vld [vmem:[#allocation3 + $0x370] sm:$0xff] }
 0x2f2   :  { %4363 = vmatprep.subr.bf16.mxu1 %v12081_v62  ;;  %v1092_v62 = vld [vmem:[#allocation3 + $0x770] sm:$0xff]  ;;  %v12033_v5 = vcombine.high %v960_v59, %v964_v60  ;;  %v12032_v12 = vcombine.low %v960_v59, %v964_v60  ;;  %v14463_v59 = vld [vmem:[#allocation13] sm:$0xff] }
 0x2f3   :  { %4321 = vmatpush1.bf16.msra.mxu0 %v11952_v8  ;;  %v12161_v7 = vcombine.high %v1088_v61, %v1092_v62  ;;  %v952_v8 = vld [vmem:[#allocation3 + $0x310] sm:$0xff]  ;;  %v12160_v13 = vcombine.low %v1088_v61, %v1092_v62 }
 0x2f4   :  { %4322 = vmatprep.subr.bf16.mxu0 %v11945_v10  ;;  %v1080_v10 = vld [vmem:[#allocation3 + $0x710] sm:$0xff] }
 0x2f5   :  { %4364 = vmatpush1.bf16.msra.mxu1 %v12080_v9  ;;  %v956_v9 = vld [vmem:[#allocation3 + $0x330] sm:$0xff] }
 0x2f6   :  { %4365 = vmatprep.subr.bf16.mxu1 %v12073_v11  ;;  %v1084_v11 = vld [vmem:[#allocation3 + $0x730] sm:$0xff]  ;;  %v12025_v14 = vcombine.high %v952_v8, %v956_v9  ;;  %v12024_v27 = vcombine.low %v952_v8, %v956_v9 }
 0x2f7   :  { %4323 = vmatpush1.bf16.msra.mxu0 %v11944_v17  ;;  %v12153_v15 = vcombine.high %v1080_v10, %v1084_v11  ;;  %v944_v17 = vld [vmem:[#allocation3 + $0x2d0] sm:$0xff]  ;;  %v12152_v20 = vcombine.low %v1080_v10, %v1084_v11 }
 0x2f8   :  { %4324 = vmatprep.subr.bf16.mxu0 %v11937_v25  ;;  %v1072_v25 = vld [vmem:[#allocation3 + $0x6d0] sm:$0xff] }
 0x2f9   :  { %4366 = vmatpush1.bf16.msra.mxu1 %v12072_v24  ;;  %v948_v24 = vld [vmem:[#allocation3 + $0x2f0] sm:$0xff] }
 0x2fa   :  { %4367 = vmatprep.subr.bf16.mxu1 %v12065_v26  ;;  %v1076_v26 = vld [vmem:[#allocation3 + $0x6f0] sm:$0xff]  ;;  %v12017_v28 = vcombine.high %v944_v17, %v948_v24  ;;  %v12016_v35 = vcombine.low %v944_v17, %v948_v24 }
 0x2fb   :  { %4325 = vmatpush1.bf16.msra.mxu0 %v11936_v30  ;;  %v12145_v19 = vcombine.high %v1072_v25, %v1076_v26  ;;  %v936_v30 = vld [vmem:[#allocation3 + $0x290] sm:$0xff]  ;;  %v12144_v36 = vcombine.low %v1072_v25, %v1076_v26 }
 0x2fc   :  { %4326 = vmatprep.subr.bf16.mxu0 %v11929_v33  ;;  %v1064_v33 = vld [vmem:[#allocation3 + $0x690] sm:$0xff] }
 0x2fd   :  { %4368 = vmatpush1.bf16.msra.mxu1 %v12064_v2  ;;  %v940_v2 = vld [vmem:[#allocation3 + $0x2b0] sm:$0xff] }
 0x2fe   :  { %4369 = vmatprep.subr.bf16.mxu1 %v12057_v34  ;;  %v1068_v34 = vld [vmem:[#allocation3 + $0x6b0] sm:$0xff]  ;;  %v12009_v37 = vcombine.high %v936_v30, %v940_v2  ;;  %v12008_v43 = vcombine.low %v936_v30, %v940_v2 }
 0x2ff   :  { %4327 = vmatpush1.bf16.msra.mxu0 %v11928_v39  ;;  %v12137_v38 = vcombine.high %v1064_v33, %v1068_v34  ;;  %v928_v39 = vld [vmem:[#allocation3 + $0x250] sm:$0xff]  ;;  %v12136_v45 = vcombine.low %v1064_v33, %v1068_v34 }
 0x300   :  { %4328 = vmatprep.subr.bf16.mxu0 %v12049_v41  ;;  %v1056_v41 = vld [vmem:[#allocation3 + $0x650] sm:$0xff] }
 0x301   :  { %4370 = vmatpush1.bf16.msra.mxu1 %v12056_v40  ;;  %v932_v40 = vld [vmem:[#allocation3 + $0x270] sm:$0xff] }
 0x302   :  { %4371 = vmatprep.subr.bf16.mxu1 %v12177_v42  ;;  %v1060_v42 = vld [vmem:[#allocation3 + $0x670] sm:$0xff]  ;;  %v12001_v47 = vcombine.high %v928_v39, %v932_v40  ;;  %v12000_v62 = vcombine.low %v928_v39, %v932_v40 }
 0x303   :  { %4329 = vmatpush2.bf16.msra.mxu0 %v12048_v48  ;;  %v4045_v48 = vpop.f32.mrf.mxu1  ;;  %v1048_v60 = vld [vmem:[#allocation3 + $0x610] sm:$0xff] }
 0x304   :  { %4330 = vmatprep.subr.bf16.mxu0 %v12041_v57  ;;  %v920_v57 = vld [vmem:[#allocation3 + $0x210] sm:$0xff] }
 0x305   :  { %4372 = vmatpush2.bf16.msra.mxu1 %v12176_v50  ;;  %v12129_v50 = vcombine.high %v1056_v41, %v1060_v42  ;;  %v1052_v61 = vld [vmem:[#allocation3 + $0x630] sm:$0xff]  ;;  %v4047_v8 = vpop.f32.mrf.mxu1 }
 0x306   :  { %4373 = vmatprep.subr.bf16.mxu1 %v12169_v58  ;;  %v924_v58 = vld [vmem:[#allocation3 + $0x230] sm:$0xff]  ;;  %v12121_v9 = vcombine.high %v1048_v60, %v1052_v61  ;;  %v12120_v24 = vcombine.low %v1048_v60, %v1052_v61 }
 0x307   :  { %4331 = vmatpush2.bf16.msra.mxu0 %v12040_v63  ;;  %v4004_v63 = vpop.f32.mrf.mxu0  ;;  %v1168_v10 = vld [vmem:[#allocation3 + $0x9d0] sm:$0xff] }
 0x308   :  { %4332 = vmatprep.subr.bf16.mxu0 %v12033_v5  ;;  %v11993_v5 = vcombine.high %v920_v57, %v924_v58  ;;  %v1172_v11 = vld [vmem:[#allocation3 + $0x9f0] sm:$0xff] }
 0x309   :  { %4374 = vmatpush2.bf16.msra.mxu1 %v12168_v0  ;;  %v12128_v0 = vcombine.low %v1056_v41, %v1060_v42  ;;  %v4006_v17 = vpop.f32.mrf.mxu0  ;;  %v12241_v25 = vcombine.high %v1168_v10, %v1172_v11  ;;  %v1288_v30 = vld [vmem:[#allocation3 + $0xd90] sm:$0xff]  ;;  %v12240_v34 = vcombine.low %v1168_v10, %v1172_v11 }
 0x30a   :  { %4375 = vmatprep.subr.bf16.mxu1 %v12161_v7  ;;  %v1371_v7 = vrot.slane %v14463_v59, %v14405_v18  ;;  %v1292_v2 = vld [vmem:[#allocation3 + $0xdb0] sm:$0xff] }
 0x30b   :  { %4333 = vmatpush2.bf16.msra.mxu0 %v12032_v12  ;;  %v1296_v12 = vld [vmem:[#allocation3 + $0xdd0] sm:$0xff]  ;;  %v12361_v41 = vcombine.high %v1288_v30, %v1292_v2 }
 0x30c   :  { %4334 = vmatprep.subr.bf16.mxu0 %v12025_v14  ;;  %v1375_v14 = vrot.slane %v14463_v59, %v14409_v22  ;;  %v4003_v26 = vadd.f32 %v4002_v44, %v1371_v7  ;;  %v4007_v39 = vadd.f32 %v4006_v17, %v1371_v7  ;;  %v1152_v42 = vld [vmem:[#allocation3 + $0x950] sm:$0xff] }
 0x30d   :  { %4376 = vmatpush2.bf16.msra.mxu1 %v12160_v13  ;;  %v1300_v13 = vld [vmem:[#allocation3 + $0xdf0] sm:$0xff] }
 0x30e   :  { %4377 = vmatprep.subr.bf16.mxu1 %v12153_v15  ;;  %v11992_v15 = vcombine.low %v920_v57, %v924_v58  ;;  %v4005_v33 = vadd.f32 %v4004_v63, %v1375_v14  ;;  %v1144_v10 = vld [vmem:[#allocation3 + $0x910] sm:$0xff] }
 0x30f   :  { %4335 = vmatpush2.bf16.msra.mxu0 %v12024_v27  ;;  %v4049_v27 = vpop.f32.mrf.mxu1  ;;  %v1148_v11 = vld [vmem:[#allocation3 + $0x930] sm:$0xff] }
 0x310   :  { %4336 = vmatprep.subr.bf16.mxu0 %v12017_v28  ;;  %v1160_v28 = vld [vmem:[#allocation3 + $0x990] sm:$0xff]  ;;  %v4048_v57 = vadd.f32 %v4047_v8, %v4005_v33 }
 0x311   :  { %4378 = vmatpush2.bf16.msra.mxu1 %v12152_v20  ;;  %v12369_v20 = vcombine.high %v1296_v12, %v1300_v13  ;;  %v4051_v40 = vpop.f32.mrf.mxu1  ;;  %v1136_v33 = vld [vmem:[#allocation3 + $0x8d0] sm:$0xff] }
 0x312   :  { %4379 = vmatprep.subr.bf16.mxu1 %v12145_v19  ;;  %v1164_v19 = vld [vmem:[#allocation3 + $0x9b0] sm:$0xff] }
 0x313   :  { %4337 = vmatpush2.bf16.msra.mxu0 %v12016_v35  ;;  %v4008_v35 = vpop.f32.mrf.mxu0 }
 0x314   :  { %4338 = vmatprep.subr.bf16.mxu0 %v12009_v37  ;;  %v12233_v37 = vcombine.high %v1160_v28, %v1164_v19  ;;  %v4009_v58 = vadd.f32 %v4008_v35, %v1375_v14 }
 0x315   :  { %4380 = vmatpush2.bf16.msra.mxu1 %v12144_v36  ;;  %v12368_v36 = vcombine.low %v1296_v12, %v1300_v13  ;;  %v1272_v12 = vld [vmem:[#allocation3 + $0xd10] sm:$0xff] }
 0x316   :  { %4381 = vmatprep.subr.bf16.mxu1 %v12137_v38  ;;  %v4046_v38 = vadd.f32 %v4045_v48, %v4003_v26  ;;  %v1276_v13 = vld [vmem:[#allocation3 + $0xd30] sm:$0xff]  ;;  %v4052_v14 = vadd.f32 %v4051_v40, %v4009_v58 }
 0x317   :  { %4339 = vmatpush2.bf16.msra.mxu0 %v12008_v43  ;;  %v1156_v43 = vld [vmem:[#allocation3 + $0x970] sm:$0xff] }
 0x318   :  { %4340 = vmatprep.subr.bf16.mxu0 %v12001_v47  ;;  %v1280_v47 = vld [vmem:[#allocation3 + $0xd50] sm:$0xff]  ;;  %v12225_v63 = vcombine.high %v1152_v42, %v1156_v43 }
 0x319   :  { %4382 = vmatpush2.bf16.msra.mxu1 %v12136_v45  ;;  %v12232_v45 = vcombine.low %v1160_v28, %v1164_v19  ;;  %v1132_v58 = vld [vmem:[#allocation3 + $0x8b0] sm:$0xff] }
 0x31a   :  { %4383 = vmatprep.subr.bf16.mxu1 %v12129_v50  ;;  %v1284_v50 = vld [vmem:[#allocation3 + $0xd70] sm:$0xff] }
 0x31b   :  { %4341 = vmatpush2.bf16.msra.mxu0 %v12000_v62  ;;  %v12360_v62 = vcombine.low %v1288_v30, %v1292_v2  ;;  %v12345_v2 = vcombine.high %v1272_v12, %v1276_v13 }
 0x31c   :  { %4342 = vmatprep.subr.bf16.mxu0 %v11993_v5 }
 0x31d   :  { %4384 = vmatpush2.bf16.msra.mxu1 %v12128_v0  ;;  %v4050_v0 = vadd.f32 %v4049_v27, %v4007_v39  ;;  %v12352_v27 = vcombine.low %v1280_v47, %v1284_v50 }
 0x31e   :  { %4385 = vmatprep.subr.bf16.mxu1 %v12121_v9  ;;  %v12353_v9 = vcombine.high %v1280_v47, %v1284_v50 }
 0x31f   :  { %4343 = vmatpush2.bf16.msra.mxu0 %v11992_v15 }
 0x320   :  { %4398 = vmatprep.subr.bf16.mxu0 %v12241_v25  ;;  %v12224_v25 = vcombine.low %v1152_v42, %v1156_v43  ;;  %v12344_v42 = vcombine.low %v1272_v12, %v1276_v13 }
 0x321   :  { %4386 = vmatpush2.bf16.msra.mxu1 %v12120_v24 }
 0x322   :  { %4441 = vmatprep.subr.bf16.mxu1 %v12369_v20  ;;  %v4088_v44 = vpop.f32.mrf.mxu0  ;;  %4345 = vmatmul.mubr.bf16.vlgmr.msra.gmra.mxu0 %v14417_v46  ;;  %v12217_v20 = vcombine.high %v1144_v10, %v1148_v11 }
 0x323   :  { %v4089_v60 = vadd.f32 %v4088_v44, %v4046_v38  ;;  %4399 = vmatpush1.bf16.msra.mxu0 %v12240_v34  ;;  %4430 = vmatprep.mubr.bf16.mxu0 %v14441_v31  ;;  %v1140_v34 = vld [vmem:[#allocation3 + $0x8f0] sm:$0xff] }
 0x324   :  { %v4131_v61 = vpop.f32.mrf.mxu1  ;;  %4388 = vmatmul.mubr.bf16.vlgmr.msra.gmra.mxu1 %v14419_v49  ;;  %v4090_v48 = vpop.f32.mrf.mxu0  ;;  %4400 = vmatprep.subr.bf16.mxu0 %v12233_v37  ;;  %v1268_v37 = vld [vmem:[#allocation3 + $0xcf0] sm:$0xff]  ;;  %v12209_v43 = vcombine.high %v1136_v33, %v1140_v34 }
 0x325   :  { %4442 = vmatpush1.bf16.msra.mxu1 %v12368_v36  ;;  %v4091_v5 = vadd.f32 %v4090_v48, %v4048_v57  ;;  %4473 = vmatprep.mubr.bf16.mxu1 %v14443_v32  ;;  %v4132_v15 = vadd.f32 %v4131_v61, %v4089_v60  ;;  %v1264_v36 = vld [vmem:[#allocation3 + $0xcd0] sm:$0xff] }
 0x326   :  { %v4133_v7 = vpop.f32.mrf.mxu1  ;;  %4443 = vmatprep.subr.bf16.mxu1 %v12361_v41  ;;  %v4092_v8 = vpop.f32.mrf.mxu0  ;;  %v12216_v41 = vcombine.low %v1144_v10, %v1148_v11  ;;  %v12337_v50 = vcombine.high %v1264_v36, %v1268_v37  ;;  %v1128_v57 = vld [vmem:[#allocation3 + $0x890] sm:$0xff] }
 0x327   :  { %v4093_v17 = vadd.f32 %v4092_v8, %v4050_v0  ;;  %4401 = vmatpush1.bf16.msra.mxu0 %v12232_v45  ;;  %v4134_v28 = vadd.f32 %v4133_v7, %v4091_v5  ;;  %v4656_v38 = vmax.f32 %v4132_v15, 0.0  ;;  %v1256_v60 = vld [vmem:[#allocation3 + $0xc90] sm:$0xff]  ;;  %v12201_v0 = vcombine.high %v1128_v57, %v1132_v58 }
 0x328   :  { %v4135_v24 = vpop.f32.mrf.mxu1  ;;  %v4094_v26 = vpop.f32.mrf.mxu0  ;;  %4402 = vmatprep.subr.bf16.mxu0 %v12225_v63  ;;  %v1260_v61 = vld [vmem:[#allocation3 + $0xcb0] sm:$0xff]  ;;  %v12336_v63 = vcombine.low %v1264_v36, %v1268_v37  ;;  %v12200_v8 = vcombine.low %v1128_v57, %v1132_v58 }
 0x329   :  { %4444 = vmatpush1.bf16.msra.mxu1 %v12360_v62  ;;  %v4136_v19 = vadd.f32 %v4135_v24, %v4093_v17  ;;  %v4095_v30 = vadd.f32 %v4094_v26, %v4052_v14  ;;  %v4657_v44 = vmax.f32 %v4134_v28, 0.0  ;;  %v12208_v62 = vcombine.low %v1136_v33, %v1140_v34  ;;  %v1120_v7 = vld [vmem:[#allocation3 + $0x850] sm:$0xff] }
 0x32a   :  { %4445 = vmatprep.subr.bf16.mxu1 %v12353_v9  ;;  %v4137_v35 = vpop.f32.mrf.mxu1  ;;  %v12329_v5 = vcombine.high %v1256_v60, %v1260_v61  ;;  %v1124_v9 = vld [vmem:[#allocation3 + $0x870] sm:$0xff]  ;;  %v12328_v12 = vcombine.low %v1256_v60, %v1260_v61 }
 0x32b   :  { %v4664_v39 = vmax.f32 %v4136_v19, 0.0  ;;  %v4138_v40 = vadd.f32 %v4137_v35, %v4095_v30  ;;  %4403 = vmatpush1.bf16.msra.mxu0 %v12224_v25  ;;  %v1248_v10 = vld [vmem:[#allocation3 + $0xc50] sm:$0xff]  ;;  %v12193_v13 = vcombine.high %v1120_v7, %v1124_v9  ;;  %v12192_v26 = vcombine.low %v1120_v7, %v1124_v9 }
 0x32c   :  { %4404 = vmatprep.subr.bf16.mxu0 %v12217_v20  ;;  %v1252_v11 = vld [vmem:[#allocation3 + $0xc70] sm:$0xff] }
 0x32d   :  { %4446 = vmatpush1.bf16.msra.mxu1 %v12352_v27  ;;  %v14473_v45 = vpack.c.bf16 %v4664_v39, %v4656_v38  ;;  %v4665_v47 = vmax.f32 %v4138_v40, 0.0  ;;  %v12321_v14 = vcombine.high %v1248_v10, %v1252_v11  ;;  %v1112_v15 = vld [vmem:[#allocation3 + $0x810] sm:$0xff]  ;;  %v12320_v27 = vcombine.low %v1248_v10, %v1252_v11 }
 0x32e   :  { %4447 = vmatprep.subr.bf16.mxu1 %v12345_v2  ;;  %v1116_v17 = vld [vmem:[#allocation3 + $0x830] sm:$0xff] }
 0x32f   :  { %v14475_v48 = vpack.c.bf16 %v4665_v47, %v4657_v44  ;;  %4405 = vmatpush1.bf16.msra.mxu0 %v12216_v41  ;;  %v1240_v24 = vld [vmem:[#allocation3 + $0xc10] sm:$0xff]  ;;  %v12185_v20 = vcombine.high %v1112_v15, %v1116_v17  ;;  %v12184_v34 = vcombine.low %v1112_v15, %v1116_v17 }
 0x330   :  { %4406 = vmatprep.subr.bf16.mxu0 %v12209_v43  ;;  %v1244_v25 = vld [vmem:[#allocation3 + $0xc30] sm:$0xff] }
 0x331   :  { %4448 = vmatpush1.bf16.msra.mxu1 %v12344_v42  ;;  %v12313_v28 = vcombine.high %v1240_v24, %v1244_v25  ;;  %v1232_v19 = vld [vmem:[#allocation3 + $0xbd0] sm:$0xff]  ;;  %v12312_v35 = vcombine.low %v1240_v24, %v1244_v25 }
 0x332   :  { %4449 = vmatprep.subr.bf16.mxu1 %v12337_v50  ;;  %v1236_v30 = vld [vmem:[#allocation3 + $0xbf0] sm:$0xff] }
 0x333   :  { %4407 = vmatpush1.bf16.msra.mxu0 %v12208_v62  ;;  %v1360_v2 = vld [vmem:[#allocation3 + $0xfd0] sm:$0xff]  ;;  %v12305_v36 = vcombine.high %v1232_v19, %v1236_v30  ;;  %v12304_v42 = vcombine.low %v1232_v19, %v1236_v30 }
 0x334   :  { %4408 = vmatprep.subr.bf16.mxu0 %v12201_v0  ;;  %v1364_v33 = vld [vmem:[#allocation3 + $0xff0] sm:$0xff] }
 0x335   :  { %4450 = vmatpush1.bf16.msra.mxu1 %v12336_v63  ;;  %v12433_v37 = vcombine.high %v1360_v2, %v1364_v33  ;;  %v1224_v38 = vld [vmem:[#allocation3 + $0xb90] sm:$0xff]  ;;  %v12432_v43 = vcombine.low %v1360_v2, %v1364_v33 }
 0x336   :  { %4451 = vmatprep.subr.bf16.mxu1 %v12329_v5  ;;  %v1228_v39 = vld [vmem:[#allocation3 + $0xbb0] sm:$0xff] }
 0x337   :  { %4409 = vmatpush1.bf16.msra.mxu0 %v12200_v8  ;;  %v1352_v40 = vld [vmem:[#allocation3 + $0xf90] sm:$0xff]  ;;  %v12297_v44 = vcombine.high %v1224_v38, %v1228_v39  ;;  %v12296_v61 = vcombine.low %v1224_v38, %v1228_v39 }
 0x338   :  { %4410 = vmatprep.subr.bf16.mxu0 %v12193_v13  ;;  %v1356_v41 = vld [vmem:[#allocation3 + $0xfb0] sm:$0xff] }
 0x339   :  { %4452 = vmatpush1.bf16.msra.mxu1 %v12328_v12  ;;  %v12425_v47 = vcombine.high %v1352_v40, %v1356_v41  ;;  %v1216_v50 = vld [vmem:[#allocation3 + $0xb50] sm:$0xff]  ;;  %v12424_v62 = vcombine.low %v1352_v40, %v1356_v41 }
 0x33a   :  { %4453 = vmatprep.subr.bf16.mxu1 %v12321_v14  ;;  %v1220_v57 = vld [vmem:[#allocation3 + $0xb70] sm:$0xff] }
 0x33b   :  { %4411 = vmatpush1.bf16.msra.mxu0 %v12192_v26  ;;  %v1344_v58 = vld [vmem:[#allocation3 + $0xf50] sm:$0xff]  ;;  %v12289_v63 = vcombine.high %v1216_v50, %v1220_v57  ;;  %v12288_v11 = vcombine.low %v1216_v50, %v1220_v57 }
 0x33c   :  { %4412 = vmatprep.subr.bf16.mxu0 %v12185_v20  ;;  %v1348_v60 = vld [vmem:[#allocation3 + $0xf70] sm:$0xff] }
 0x33d   :  { %4454 = vmatpush1.bf16.msra.mxu1 %v12320_v27  ;;  %v12417_v0 = vcombine.high %v1344_v58, %v1348_v60  ;;  %v1208_v5 = vld [vmem:[#allocation3 + $0xb10] sm:$0xff]  ;;  %v12416_v8 = vcombine.low %v1344_v58, %v1348_v60 }
 0x33e   :  { %4455 = vmatprep.subr.bf16.mxu1 %v12313_v28  ;;  %v1212_v7 = vld [vmem:[#allocation3 + $0xb30] sm:$0xff] }
 0x33f   :  { %4413 = vmatpush1.bf16.msra.mxu0 %v12184_v34  ;;  %v1336_v9 = vld [vmem:[#allocation3 + $0xf10] sm:$0xff]  ;;  %v12281_v12 = vcombine.high %v1208_v5, %v1212_v7  ;;  %v12280_v25 = vcombine.low %v1208_v5, %v1212_v7  ;;  %v917_v5 = vld [vmem:[#allocation3 + $0x1f8] sm:$0xff] }
 0x340   :  { %4414 = vmatprep.subr.bf16.mxu0 %v12305_v36  ;;  %v1340_v10 = vld [vmem:[#allocation3 + $0xf30] sm:$0xff]  ;;  %v1041_v7 = vld [vmem:[#allocation3 + $0x5d8] sm:$0xff] }
 0x341   :  { %4456 = vmatpush1.bf16.msra.mxu1 %v12312_v35  ;;  %v12409_v13 = vcombine.high %v1336_v9, %v1340_v10  ;;  %v1200_v14 = vld [vmem:[#allocation3 + $0xad0] sm:$0xff]  ;;  %v12408_v26 = vcombine.low %v1336_v9, %v1340_v10  ;;  %v1045_v9 = vld [vmem:[#allocation3 + $0x5f8] sm:$0xff] }
 0x342   :  { %4457 = vmatprep.subr.bf16.mxu1 %v12433_v37  ;;  %v1204_v15 = vld [vmem:[#allocation3 + $0xaf0] sm:$0xff] }
 0x343   :  { %4415 = vmatpush2.bf16.msra.mxu0 %v12304_v42  ;;  %v1328_v17 = vld [vmem:[#allocation3 + $0xed0] sm:$0xff]  ;;  %v12273_v27 = vcombine.high %v1200_v14, %v1204_v15  ;;  %v12272_v33 = vcombine.low %v1200_v14, %v1204_v15  ;;  %v909_v14 = vld [vmem:[#allocation3 + $0x1b8] sm:$0xff] }
 0x344   :  { %4416 = vmatprep.subr.bf16.mxu0 %v12297_v44  ;;  %v1332_v24 = vld [vmem:[#allocation3 + $0xef0] sm:$0xff]  ;;  %v1033_v15 = vld [vmem:[#allocation3 + $0x598] sm:$0xff] }
 0x345   :  { %4458 = vmatpush2.bf16.msra.mxu1 %v12432_v43  ;;  %v12401_v20 = vcombine.high %v1328_v17, %v1332_v24  ;;  %v1192_v28 = vld [vmem:[#allocation3 + $0xa90] sm:$0xff]  ;;  %v12400_v34 = vcombine.low %v1328_v17, %v1332_v24  ;;  %v1037_v17 = vld [vmem:[#allocation3 + $0x5b8] sm:$0xff] }
 0x346   :  { %4459 = vmatprep.subr.bf16.mxu1 %v12425_v47  ;;  %v1196_v19 = vld [vmem:[#allocation3 + $0xab0] sm:$0xff] }
 0x347   :  { %4417 = vmatpush2.bf16.msra.mxu0 %v12296_v61  ;;  %v1320_v30 = vld [vmem:[#allocation3 + $0xe90] sm:$0xff]  ;;  %v12265_v35 = vcombine.high %v1192_v28, %v1196_v19  ;;  %v12264_v41 = vcombine.low %v1192_v28, %v1196_v19  ;;  %v901_v28 = vld [vmem:[#allocation3 + $0x178] sm:$0xff] }
 0x348   :  { %4418 = vmatprep.subr.bf16.mxu0 %v12289_v63  ;;  %v1324_v2 = vld [vmem:[#allocation3 + $0xeb0] sm:$0xff]  ;;  %v1025_v19 = vld [vmem:[#allocation3 + $0x558] sm:$0xff] }
 0x349   :  { %4460 = vmatpush2.bf16.msra.mxu1 %v12424_v62  ;;  %v12393_v36 = vcombine.high %v1320_v30, %v1324_v2  ;;  %v1184_v37 = vld [vmem:[#allocation3 + $0xa50] sm:$0xff]  ;;  %v12392_v42 = vcombine.low %v1320_v30, %v1324_v2  ;;  %v1029_v30 = vld [vmem:[#allocation3 + $0x578] sm:$0xff] }
 0x34a   :  { %4461 = vmatprep.subr.bf16.mxu1 %v12417_v0  ;;  %v1188_v38 = vld [vmem:[#allocation3 + $0xa70] sm:$0xff]  ;;  %v913_v0 = vld [vmem:[#allocation3 + $0x1d8] sm:$0xff] }
 0x34b   :  { %4419 = vmatpush2.bf16.msra.mxu0 %v12288_v11  ;;  %v1312_v39 = vld [vmem:[#allocation3 + $0xe50] sm:$0xff]  ;;  %v12257_v43 = vcombine.high %v1184_v37, %v1188_v38  ;;  %v12256_v60 = vcombine.low %v1184_v37, %v1188_v38  ;;  %v11986_v24 = vcombine.low %v913_v0, %v917_v5  ;;  %v893_v37 = vld [vmem:[#allocation3 + $0x138] sm:$0xff] }
 0x34c   :  { %4420 = vmatprep.subr.bf16.mxu0 %v12281_v12  ;;  %v1316_v40 = vld [vmem:[#allocation3 + $0xe70] sm:$0xff]  ;;  %v12115_v12 = vcombine.high %v1041_v7, %v1045_v9  ;;  %v1017_v38 = vld [vmem:[#allocation3 + $0x518] sm:$0xff] }
 0x34d   :  { %4462 = vmatpush2.bf16.msra.mxu1 %v12416_v8  ;;  %v12385_v44 = vcombine.high %v1312_v39, %v1316_v40  ;;  %v1176_v47 = vld [vmem:[#allocation3 + $0xa10] sm:$0xff]  ;;  %v12384_v61 = vcombine.low %v1312_v39, %v1316_v40  ;;  %v11987_v8 = vcombine.high %v913_v0, %v917_v5  ;;  %v1021_v39 = vld [vmem:[#allocation3 + $0x538] sm:$0xff] }
 0x34e   :  { %4463 = vmatprep.subr.bf16.mxu1 %v12409_v13  ;;  %v1180_v50 = vld [vmem:[#allocation3 + $0xa30] sm:$0xff]  ;;  %v905_v13 = vld [vmem:[#allocation3 + $0x198] sm:$0xff] }
 0x34f   :  { %4421 = vmatpush2.bf16.msra.mxu0 %v12280_v25  ;;  %v1304_v57 = vld [vmem:[#allocation3 + $0xe10] sm:$0xff]  ;;  %v12249_v62 = vcombine.high %v1176_v47, %v1180_v50  ;;  %v12248_v10 = vcombine.low %v1176_v47, %v1180_v50  ;;  %v12114_v25 = vcombine.low %v1041_v7, %v1045_v9  ;;  %v11978_v2 = vcombine.low %v905_v13, %v909_v14  ;;  %v885_v47 = vld [vmem:[#allocation3 + $0xf8] sm:$0xff] }
 0x350   :  { %4422 = vmatprep.subr.bf16.mxu0 %v12273_v27  ;;  %v1308_v58 = vld [vmem:[#allocation3 + $0xe30] sm:$0xff]  ;;  %v12107_v27 = vcombine.high %v1033_v15, %v1037_v17  ;;  %v1009_v50 = vld [vmem:[#allocation3 + $0x4d8] sm:$0xff] }
 0x351   :  { %4464 = vmatpush2.bf16.msra.mxu1 %v12408_v26  ;;  %v12377_v63 = vcombine.high %v1304_v57, %v1308_v58  ;;  %v12376_v11 = vcombine.low %v1304_v57, %v1308_v58  ;;  %v11979_v26 = vcombine.high %v905_v13, %v909_v14  ;;  %v1013_v57 = vld [vmem:[#allocation3 + $0x4f8] sm:$0xff] }
 0x352   :  { %4465 = vmatprep.subr.bf16.mxu1 %v12401_v20  ;;  %v897_v20 = vld [vmem:[#allocation3 + $0x158] sm:$0xff]  ;;  %v12082_v7 = vcombine.low %v1009_v50, %v1013_v57 }
 0x353   :  { %4423 = vmatpush2.bf16.msra.mxu0 %v12272_v33  ;;  %v12106_v33 = vcombine.low %v1033_v15, %v1037_v17  ;;  %v11970_v40 = vcombine.low %v897_v20, %v901_v28  ;;  %v1005_v0 = vld [vmem:[#allocation3 + $0x4b8] sm:$0xff] }
 0x354   :  { %4424 = vmatprep.subr.bf16.mxu0 %v12265_v35  ;;  %v12099_v35 = vcombine.high %v1025_v19, %v1029_v30  ;;  %v997_v13 = vld [vmem:[#allocation3 + $0x478] sm:$0xff] }
 0x355   :  { %4466 = vmatpush2.bf16.msra.mxu1 %v12400_v34  ;;  %v11971_v34 = vcombine.high %v897_v20, %v901_v28  ;;  %v989_v20 = vld [vmem:[#allocation3 + $0x438] sm:$0xff] }
 0x356   :  { %4467 = vmatprep.subr.bf16.mxu1 %v12393_v36  ;;  %v889_v36 = vld [vmem:[#allocation3 + $0x118] sm:$0xff] }
 0x357   :  { %4425 = vmatpush2.bf16.msra.mxu0 %v12264_v41  ;;  %v12098_v41 = vcombine.low %v1025_v19, %v1029_v30  ;;  %v11962_v58 = vcombine.low %v889_v36, %v893_v37 }
 0x358   :  { %4426 = vmatprep.subr.bf16.mxu0 %v12257_v43  ;;  %v12091_v43 = vcombine.high %v1017_v38, %v1021_v39 }
 0x359   :  { %4468 = vmatpush2.bf16.msra.mxu1 %v12392_v42  ;;  %v11963_v42 = vcombine.high %v889_v36, %v893_v37  ;;  %v1109_v36 = vld [vmem:[#allocation3 + $0x7f8] sm:$0xff] }
 0x35a   :  { %4469 = vmatprep.subr.bf16.mxu1 %v12385_v44  ;;  %v881_v44 = vld [vmem:[#allocation3 + $0xd8] sm:$0xff] }
 0x35b   :  { %4427 = vmatpush2.bf16.msra.mxu0 %v12256_v60  ;;  %v11955_v60 = vcombine.high %v881_v44, %v885_v47  ;;  %v11954_v5 = vcombine.low %v881_v44, %v885_v47  ;;  %v1101_v44 = vld [vmem:[#allocation3 + $0x7b8] sm:$0xff] }
 0x35c   :  { %4428 = vmatprep.subr.bf16.mxu0 %v12249_v62  ;;  %v877_v62 = vld [vmem:[#allocation3 + $0xb8] sm:$0xff] }
 0x35d   :  { %4470 = vmatpush2.bf16.msra.mxu1 %v12384_v61  ;;  %v873_v61 = vld [vmem:[#allocation3 + $0x98] sm:$0xff] }
 0x35e   :  { %4471 = vmatprep.subr.bf16.mxu1 %v12377_v63  ;;  %v1001_v63 = vld [vmem:[#allocation3 + $0x498] sm:$0xff]  ;;  %v11947_v9 = vcombine.high %v873_v61, %v877_v62  ;;  %v11946_v14 = vcombine.low %v873_v61, %v877_v62 }
 0x35f   :  { %4429 = vmatpush2.bf16.msra.mxu0 %v12248_v10  ;;  %v12075_v10 = vcombine.high %v1001_v63, %v1005_v0  ;;  %v12074_v15 = vcombine.low %v1001_v63, %v1005_v0  ;;  %v1093_v61 = vld [vmem:[#allocation3 + $0x778] sm:$0xff] }
 0x360   :  { %4484 = vmatprep.subr.bf16.mxu0 %v11987_v8  ;;  %v869_v8 = vld [vmem:[#allocation3 + $0x78] sm:$0xff] }
 0x361   :  { %4472 = vmatpush2.bf16.msra.mxu1 %v12376_v11  ;;  %v865_v11 = vld [vmem:[#allocation3 + $0x58] sm:$0xff] }
 0x362   :  { %4527 = vmatprep.subr.bf16.mxu1 %v12115_v12  ;;  %4431 = vmatmul.mubr.bf16.vlgmr.msra.gmra.mxu0 %v14437_v29  ;;  %v993_v12 = vld [vmem:[#allocation3 + $0x458] sm:$0xff]  ;;  %v11939_v17 = vcombine.high %v865_v11, %v869_v8  ;;  %v11938_v28 = vcombine.low %v865_v11, %v869_v8 }
 0x363   :  { %4485 = vmatpush1.bf16.msra.mxu0 %v11986_v24  ;;  %4516 = vmatprep.mubr.bf16.mxu0 %v14421_v51  ;;  %v12090_v51 = vcombine.low %v1017_v38, %v1021_v39  ;;  %v12067_v24 = vcombine.high %v993_v12, %v997_v13  ;;  %v12066_v19 = vcombine.low %v993_v12, %v997_v13  ;;  %v1085_v11 = vld [vmem:[#allocation3 + $0x738] sm:$0xff] }
 0x364   :  { %4474 = vmatmul.mubr.bf16.vlgmr.msra.gmra.mxu1 %v14439_v1  ;;  %4486 = vmatprep.subr.bf16.mxu0 %v11979_v26  ;;  %v861_v26 = vld [vmem:[#allocation3 + $0x38] sm:$0xff] }
 0x365   :  { %4528 = vmatpush1.bf16.msra.mxu1 %v12114_v25  ;;  %4559 = vmatprep.mubr.bf16.mxu1 %v14423_v52  ;;  %v12083_v52 = vcombine.high %v1009_v50, %v1013_v57  ;;  %v857_v25 = vld [vmem:[#allocation3 + $0x18] sm:$0xff] }
 0x366   :  { %4529 = vmatprep.subr.bf16.mxu1 %v12107_v27  ;;  %v985_v27 = vld [vmem:[#allocation3 + $0x418] sm:$0xff]  ;;  %v11931_v30 = vcombine.high %v857_v25, %v861_v26  ;;  %v11930_v37 = vcombine.low %v857_v25, %v861_v26 }
 0x367   :  { %4487 = vmatpush1.bf16.msra.mxu0 %v11978_v2  ;;  %v12059_v2 = vcombine.high %v985_v27, %v989_v20  ;;  %v12058_v38 = vcombine.low %v985_v27, %v989_v20  ;;  %v1077_v25 = vld [vmem:[#allocation3 + $0x6f8] sm:$0xff] }
 0x368   :  { %4488 = vmatprep.subr.bf16.mxu0 %v11971_v34  ;;  %v981_v34 = vld [vmem:[#allocation3 + $0x3f8] sm:$0xff] }
 0x369   :  { %4530 = vmatpush1.bf16.msra.mxu1 %v12106_v33  ;;  %v977_v33 = vld [vmem:[#allocation3 + $0x3d8] sm:$0xff] }
 0x36a   :  { %4531 = vmatprep.subr.bf16.mxu1 %v12099_v35  ;;  %v1105_v35 = vld [vmem:[#allocation3 + $0x7d8] sm:$0xff]  ;;  %v12051_v39 = vcombine.high %v977_v33, %v981_v34  ;;  %v12050_v47 = vcombine.low %v977_v33, %v981_v34 }
 0x36b   :  { %4489 = vmatpush1.bf16.msra.mxu0 %v11970_v40  ;;  %v12179_v40 = vcombine.high %v1105_v35, %v1109_v36  ;;  %v12178_v50 = vcombine.low %v1105_v35, %v1109_v36  ;;  %v1069_v33 = vld [vmem:[#allocation3 + $0x6b8] sm:$0xff] }
 0x36c   :  { %4490 = vmatprep.subr.bf16.mxu0 %v11963_v42  ;;  %v973_v42 = vld [vmem:[#allocation3 + $0x3b8] sm:$0xff] }
 0x36d   :  { %4532 = vmatpush1.bf16.msra.mxu1 %v12098_v41  ;;  %v969_v41 = vld [vmem:[#allocation3 + $0x398] sm:$0xff] }
 0x36e   :  { %4533 = vmatprep.subr.bf16.mxu1 %v12091_v43  ;;  %v1097_v43 = vld [vmem:[#allocation3 + $0x798] sm:$0xff]  ;;  %v12043_v57 = vcombine.high %v969_v41, %v973_v42  ;;  %v12042_v62 = vcombine.low %v969_v41, %v973_v42 }
 0x36f   :  { %4491 = vmatpush1.bf16.msra.mxu0 %v11962_v58  ;;  %v12171_v58 = vcombine.high %v1097_v43, %v1101_v44  ;;  %v12170_v63 = vcombine.low %v1097_v43, %v1101_v44  ;;  %v1061_v41 = vld [vmem:[#allocation3 + $0x678] sm:$0xff]  ;;  %v4174_v43 = vpop.f32.mrf.mxu0 }
 0x370   :  { %4492 = vmatprep.subr.bf16.mxu0 %v11955_v60  ;;  %v965_v60 = vld [vmem:[#allocation3 + $0x378] sm:$0xff] }
 0x371   :  { %4534 = vmatpush1.bf16.msra.mxu1 %v12090_v51  ;;  %v961_v51 = vld [vmem:[#allocation3 + $0x358] sm:$0xff] }
 0x372   :  { %4535 = vmatprep.subr.bf16.mxu1 %v12083_v52  ;;  %v1089_v52 = vld [vmem:[#allocation3 + $0x758] sm:$0xff]  ;;  %v12035_v0 = vcombine.high %v961_v51, %v965_v60  ;;  %v12034_v8 = vcombine.low %v961_v51, %v965_v60 }
 0x373   :  { %4493 = vmatpush1.bf16.msra.mxu0 %v11954_v5  ;;  %v12163_v5 = vcombine.high %v1089_v52, %v1093_v61  ;;  %v12162_v12 = vcombine.low %v1089_v52, %v1093_v61  ;;  %v925_v51 = vld [vmem:[#allocation3 + $0x238] sm:$0xff] }
 0x374   :  { %4494 = vmatprep.subr.bf16.mxu0 %v11947_v9  ;;  %v957_v9 = vld [vmem:[#allocation3 + $0x338] sm:$0xff] }
 0x375   :  { %4536 = vmatpush1.bf16.msra.mxu1 %v12082_v7  ;;  %v953_v7 = vld [vmem:[#allocation3 + $0x318] sm:$0xff] }
 0x376   :  { %4537 = vmatprep.subr.bf16.mxu1 %v12075_v10  ;;  %v1081_v10 = vld [vmem:[#allocation3 + $0x718] sm:$0xff]  ;;  %v12027_v13 = vcombine.high %v953_v7, %v957_v9  ;;  %v12026_v26 = vcombine.low %v953_v7, %v957_v9 }
 0x377   :  { %4495 = vmatpush1.bf16.msra.mxu0 %v11946_v14  ;;  %v12155_v14 = vcombine.high %v1081_v10, %v1085_v11  ;;  %v12154_v27 = vcombine.low %v1081_v10, %v1085_v11  ;;  %v1049_v60 = vld [vmem:[#allocation3 + $0x618] sm:$0xff] }
 0x378   :  { %4496 = vmatprep.subr.bf16.mxu0 %v11939_v17  ;;  %v949_v17 = vld [vmem:[#allocation3 + $0x2f8] sm:$0xff] }
 0x379   :  { %4538 = vmatpush1.bf16.msra.mxu1 %v12074_v15  ;;  %v945_v15 = vld [vmem:[#allocation3 + $0x2d8] sm:$0xff] }
 0x37a   :  { %4539 = vmatprep.subr.bf16.mxu1 %v12067_v24  ;;  %v1073_v24 = vld [vmem:[#allocation3 + $0x6d8] sm:$0xff]  ;;  %v12019_v20 = vcombine.high %v945_v15, %v949_v17  ;;  %v12018_v34 = vcombine.low %v945_v15, %v949_v17 }
 0x37b   :  { %4497 = vmatpush1.bf16.msra.mxu0 %v11938_v28  ;;  %v12147_v28 = vcombine.high %v1073_v24, %v1077_v25  ;;  %v12146_v35 = vcombine.low %v1073_v24, %v1077_v25  ;;  %v1053_v52 = vld [vmem:[#allocation3 + $0x638] sm:$0xff] }
 0x37c   :  { %4498 = vmatprep.subr.bf16.mxu0 %v11931_v30  ;;  %v941_v30 = vld [vmem:[#allocation3 + $0x2b8] sm:$0xff]  ;;  %v12123_v9 = vcombine.high %v1049_v60, %v1053_v52  ;;  %v12122_v17 = vcombine.low %v1049_v60, %v1053_v52 }
 0x37d   :  { %4540 = vmatpush1.bf16.msra.mxu1 %v12066_v19  ;;  %v937_v19 = vld [vmem:[#allocation3 + $0x298] sm:$0xff] }
 0x37e   :  { %4541 = vmatprep.subr.bf16.mxu1 %v12059_v2  ;;  %v1065_v2 = vld [vmem:[#allocation3 + $0x698] sm:$0xff]  ;;  %v12011_v36 = vcombine.high %v937_v19, %v941_v30  ;;  %v12010_v42 = vcombine.low %v937_v19, %v941_v30 }
 0x37f   :  { %4499 = vmatpush1.bf16.msra.mxu0 %v11930_v37  ;;  %v12139_v37 = vcombine.high %v1065_v2, %v1069_v33  ;;  %v12138_v44 = vcombine.low %v1065_v2, %v1069_v33  ;;  %v1169_v10 = vld [vmem:[#allocation3 + $0x9d8] sm:$0xff] }
 0x380   :  { %4500 = vmatprep.subr.bf16.mxu0 %v12051_v39  ;;  %v933_v39 = vld [vmem:[#allocation3 + $0x278] sm:$0xff] }
 0x381   :  { %4542 = vmatpush1.bf16.msra.mxu1 %v12058_v38  ;;  %v929_v38 = vld [vmem:[#allocation3 + $0x258] sm:$0xff] }
 0x382   :  { %4543 = vmatprep.subr.bf16.mxu1 %v12179_v40  ;;  %v1057_v40 = vld [vmem:[#allocation3 + $0x658] sm:$0xff]  ;;  %v12002_v61 = vcombine.low %v929_v38, %v933_v39 }
 0x383   :  { %4501 = vmatpush2.bf16.msra.mxu0 %v12050_v47  ;;  %v12003_v47 = vcombine.high %v929_v38, %v933_v39  ;;  %v1173_v11 = vld [vmem:[#allocation3 + $0x9f8] sm:$0xff] }
 0x384   :  { %4502 = vmatprep.subr.bf16.mxu0 %v12043_v57  ;;  %v12131_v57 = vcombine.high %v1057_v40, %v1061_v41  ;;  %v12243_v24 = vcombine.high %v1169_v10, %v1173_v11  ;;  %v1289_v19 = vld [vmem:[#allocation3 + $0xd98] sm:$0xff]  ;;  %v12242_v33 = vcombine.low %v1169_v10, %v1173_v11 }
 0x385   :  { %4544 = vmatpush2.bf16.msra.mxu1 %v12178_v50  ;;  %v4217_v50 = vpop.f32.mrf.mxu1  ;;  %v1293_v30 = vld [vmem:[#allocation3 + $0xdb8] sm:$0xff] }
 0x386   :  { %4545 = vmatprep.subr.bf16.mxu1 %v12171_v58  ;;  %v921_v58 = vld [vmem:[#allocation3 + $0x218] sm:$0xff]  ;;  %v12363_v39 = vcombine.high %v1289_v19, %v1293_v30  ;;  %v12362_v52 = vcombine.low %v1289_v19, %v1293_v30 }
 0x387   :  { %4503 = vmatpush2.bf16.msra.mxu0 %v12042_v62  ;;  %v4176_v62 = vpop.f32.mrf.mxu0  ;;  %v4219_v7 = vpop.f32.mrf.mxu1  ;;  %v1273_v10 = vld [vmem:[#allocation3 + $0xd18] sm:$0xff] }
 0x388   :  { %4504 = vmatprep.subr.bf16.mxu0 %v12035_v0  ;;  %v11995_v0 = vcombine.high %v921_v58, %v925_v51  ;;  %v1277_v11 = vld [vmem:[#allocation3 + $0xd38] sm:$0xff] }
 0x389   :  { %4546 = vmatpush2.bf16.msra.mxu1 %v12170_v63  ;;  %v12130_v63 = vcombine.low %v1057_v40, %v1061_v41  ;;  %v4178_v15 = vpop.f32.mrf.mxu0  ;;  %v1153_v40 = vld [vmem:[#allocation3 + $0x958] sm:$0xff] }
 0x38a   :  { %4547 = vmatprep.subr.bf16.mxu1 %v12163_v5  ;;  %v1379_v5 = vrot.slane %v14463_v59, %v14407_v21  ;;  %v1157_v41 = vld [vmem:[#allocation3 + $0x978] sm:$0xff] }
 0x38b   :  { %4505 = vmatpush2.bf16.msra.mxu0 %v12034_v8  ;;  %v1297_v8 = vld [vmem:[#allocation3 + $0xdd8] sm:$0xff] }
 0x38c   :  { %4506 = vmatprep.subr.bf16.mxu0 %v12027_v13  ;;  %v1383_v13 = vrot.slane %v14463_v59, %v14411_v23  ;;  %v4175_v25 = vadd.f32 %v4174_v43, %v1379_v5  ;;  %v1269_v30 = vld [vmem:[#allocation3 + $0xcf8] sm:$0xff] }
 0x38d   :  { %4548 = vmatpush2.bf16.msra.mxu1 %v12162_v12  ;;  %v1301_v12 = vld [vmem:[#allocation3 + $0xdf8] sm:$0xff] }
 0x38e   :  { %4549 = vmatprep.subr.bf16.mxu1 %v12155_v14  ;;  %v11994_v14 = vcombine.low %v921_v58, %v925_v51  ;;  %v4177_v2 = vadd.f32 %v4176_v62, %v1383_v13  ;;  %v12370_v59 = vcombine.low %v1297_v8, %v1301_v12 }
 0x38f   :  { %4507 = vmatpush2.bf16.msra.mxu0 %v12026_v26  ;;  %v4221_v26 = vpop.f32.mrf.mxu1 }
 0x390   :  { %4508 = vmatprep.subr.bf16.mxu0 %v12019_v20  ;;  %v1161_v20 = vld [vmem:[#allocation3 + $0x998] sm:$0xff] }
 0x391   :  { %4550 = vmatpush2.bf16.msra.mxu1 %v12154_v27  ;;  %v12371_v27 = vcombine.high %v1297_v8, %v1301_v12  ;;  %v4223_v38 = vpop.f32.mrf.mxu1 }
 0x392   :  { %4551 = vmatprep.subr.bf16.mxu1 %v12147_v28  ;;  %v1165_v28 = vld [vmem:[#allocation3 + $0x9b8] sm:$0xff] }
 0x393   :  { %4509 = vmatpush2.bf16.msra.mxu0 %v12018_v34  ;;  %v4180_v34 = vpop.f32.mrf.mxu0  ;;  %v12234_v43 = vcombine.low %v1161_v20, %v1165_v28 }
 0x394   :  { %4510 = vmatprep.subr.bf16.mxu0 %v12011_v36  ;;  %v4218_v36 = vadd.f32 %v4217_v50, %v4175_v25  ;;  %v4181_v58 = vadd.f32 %v4180_v34, %v1383_v13 }
 0x395   :  { %4552 = vmatpush2.bf16.msra.mxu1 %v12146_v35  ;;  %v12235_v35 = vcombine.high %v1161_v20, %v1165_v28  ;;  %v1137_v20 = vld [vmem:[#allocation3 + $0x8d8] sm:$0xff] }
 0x396   :  { %4553 = vmatprep.subr.bf16.mxu1 %v12139_v37  ;;  %v4179_v37 = vadd.f32 %v4178_v15, %v1379_v5  ;;  %v1145_v5 = vld [vmem:[#allocation3 + $0x918] sm:$0xff] }
 0x397   :  { %4511 = vmatpush2.bf16.msra.mxu0 %v12010_v42  ;;  %v1141_v28 = vld [vmem:[#allocation3 + $0x8f8] sm:$0xff] }
 0x398   :  { %4512 = vmatprep.subr.bf16.mxu0 %v12003_v47  ;;  %v1285_v47 = vld [vmem:[#allocation3 + $0xd78] sm:$0xff]  ;;  %v4222_v62 = vadd.f32 %v4221_v26, %v4179_v37 }
 0x399   :  { %4554 = vmatpush2.bf16.msra.mxu1 %v12138_v44  ;;  %v1281_v44 = vld [vmem:[#allocation3 + $0xd58] sm:$0xff] }
 0x39a   :  { %4555 = vmatprep.subr.bf16.mxu1 %v12131_v57  ;;  %v4220_v57 = vadd.f32 %v4219_v7, %v4177_v2 }
 0x39b   :  { %4513 = vmatpush2.bf16.msra.mxu0 %v12002_v61  ;;  %v12227_v61 = vcombine.high %v1153_v40, %v1157_v41 }
 0x39c   :  { %4514 = vmatprep.subr.bf16.mxu0 %v11995_v0 }
 0x39d   :  { %4556 = vmatpush2.bf16.msra.mxu1 %v12130_v63 }
 0x39e   :  { %4557 = vmatprep.subr.bf16.mxu1 %v12123_v9  ;;  %v1149_v9 = vld [vmem:[#allocation3 + $0x938] sm:$0xff] }
 0x39f   :  { %4515 = vmatpush2.bf16.msra.mxu0 %v11994_v14  ;;  %v12226_v14 = vcombine.low %v1153_v40, %v1157_v41  ;;  %v1129_v41 = vld [vmem:[#allocation3 + $0x898] sm:$0xff] }
 0x3a0   :  { %4570 = vmatprep.subr.bf16.mxu0 %v12243_v24  ;;  %v12219_v24 = vcombine.high %v1145_v5, %v1149_v9 }
 0x3a1   :  { %4558 = vmatpush2.bf16.msra.mxu1 %v12122_v17  ;;  %v12354_v17 = vcombine.low %v1281_v44, %v1285_v47 }
 0x3a2   :  { %4613 = vmatprep.subr.bf16.mxu1 %v12371_v27  ;;  %v4260_v42 = vpop.f32.mrf.mxu0  ;;  %4517 = vmatmul.mubr.bf16.vlgmr.msra.gmra.mxu0 %v14417_v46  ;;  %v12355_v46 = vcombine.high %v1281_v44, %v1285_v47  ;;  %v1261_v44 = vld [vmem:[#allocation3 + $0xcb8] sm:$0xff] }
 0x3a3   :  { %v4261_v51 = vadd.f32 %v4260_v42, %v4218_v36  ;;  %4571 = vmatpush1.bf16.msra.mxu0 %v12242_v33  ;;  %4602 = vmatprep.mubr.bf16.mxu0 %v14441_v31  ;;  %v12347_v31 = vcombine.high %v1273_v10, %v1277_v11  ;;  %v12211_v36 = vcombine.high %v1137_v20, %v1141_v28  ;;  %v1133_v42 = vld [vmem:[#allocation3 + $0x8b8] sm:$0xff] }
 0x3a4   :  { %v4303_v60 = vpop.f32.mrf.mxu1  ;;  %4560 = vmatmul.mubr.bf16.vlgmr.msra.gmra.mxu1 %v14419_v49  ;;  %v4262_v50 = vpop.f32.mrf.mxu0  ;;  %4572 = vmatprep.subr.bf16.mxu0 %v12235_v35  ;;  %v4224_v49 = vadd.f32 %v4223_v38, %v4181_v58  ;;  %v12346_v35 = vcombine.low %v1273_v10, %v1277_v11  ;;  %v1241_v10 = vld [vmem:[#allocation3 + $0xc18] sm:$0xff] }
 0x3a5   :  { %4614 = vmatpush1.bf16.msra.mxu1 %v12370_v59  ;;  %v4263_v63 = vadd.f32 %v4262_v50, %v4220_v57  ;;  %4645 = vmatprep.mubr.bf16.mxu1 %v14443_v32  ;;  %v4304_v8 = vadd.f32 %v4303_v60, %v4261_v51  ;;  %v1265_v32 = vld [vmem:[#allocation3 + $0xcd8] sm:$0xff]  ;;  %v12218_v59 = vcombine.low %v1145_v5, %v1149_v9 }
 0x3a6   :  { %v4305_v0 = vpop.f32.mrf.mxu1  ;;  %4615 = vmatprep.subr.bf16.mxu1 %v12363_v39  ;;  %v4264_v7 = vpop.f32.mrf.mxu0  ;;  %v12339_v40 = vcombine.high %v1265_v32, %v1269_v30  ;;  %v12210_v57 = vcombine.low %v1137_v20, %v1141_v28  ;;  %v12338_v58 = vcombine.low %v1265_v32, %v1269_v30  ;;  %v12203_v51 = vcombine.high %v1129_v41, %v1133_v42  ;;  %v1121_v50 = vld [vmem:[#allocation3 + $0x858] sm:$0xff] }
 0x3a7   :  { %v4265_v12 = vadd.f32 %v4264_v7, %v4222_v62  ;;  %4573 = vmatpush1.bf16.msra.mxu0 %v12234_v43  ;;  %v4306_v25 = vadd.f32 %v4305_v0, %v4263_v63  ;;  %v4658_v2 = vmax.f32 %v4304_v8, 0.0  ;;  %v1257_v43 = vld [vmem:[#allocation3 + $0xc98] sm:$0xff]  ;;  %v12202_v63 = vcombine.low %v1129_v41, %v1133_v42 }
 0x3a8   :  { %v4307_v13 = vpop.f32.mrf.mxu1  ;;  %v4266_v15 = vpop.f32.mrf.mxu0  ;;  %4574 = vmatprep.subr.bf16.mxu0 %v12227_v61  ;;  %v12331_v60 = vcombine.high %v1257_v43, %v1261_v44  ;;  %v1249_v61 = vld [vmem:[#allocation3 + $0xc58] sm:$0xff]  ;;  %v12330_v0 = vcombine.low %v1257_v43, %v1261_v44 }
 0x3a9   :  { %4616 = vmatpush1.bf16.msra.mxu1 %v12362_v52  ;;  %v4308_v26 = vadd.f32 %v4307_v13, %v4265_v12  ;;  %v4267_v27 = vadd.f32 %v4266_v15, %v4224_v49  ;;  %v4659_v37 = vmax.f32 %v4306_v25, 0.0  ;;  %v1125_v52 = vld [vmem:[#allocation3 + $0x878] sm:$0xff] }
 0x3aa   :  { %4617 = vmatprep.subr.bf16.mxu1 %v12355_v46  ;;  %v4309_v19 = vpop.f32.mrf.mxu1  ;;  %v1253_v62 = vld [vmem:[#allocation3 + $0xc78] sm:$0xff]  ;;  %v12195_v46 = vcombine.high %v1121_v50, %v1125_v52  ;;  %v12194_v49 = vcombine.low %v1121_v50, %v1125_v52 }
 0x3ab   :  { %v4666_v33 = vmax.f32 %v4308_v26, 0.0  ;;  %v4310_v34 = vadd.f32 %v4309_v19, %v4267_v27  ;;  %4575 = vmatpush1.bf16.msra.mxu0 %v12226_v14  ;;  %v12323_v5 = vcombine.high %v1249_v61, %v1253_v62  ;;  %v1113_v9 = vld [vmem:[#allocation3 + $0x818] sm:$0xff]  ;;  %v12322_v8 = vcombine.low %v1249_v61, %v1253_v62 }
 0x3ac   :  { %4576 = vmatprep.subr.bf16.mxu0 %v12219_v24  ;;  %v1117_v7 = vld [vmem:[#allocation3 + $0x838] sm:$0xff] }
 0x3ad   :  { %4618 = vmatpush1.bf16.msra.mxu1 %v12354_v17  ;;  %v14489_v38 = vpack.c.bf16 %v4666_v33, %v4658_v2  ;;  %v4667_v39 = vmax.f32 %v4310_v34, 0.0  ;;  %v1245_v11 = vld [vmem:[#allocation3 + $0xc38] sm:$0xff]  ;;  %v12187_v12 = vcombine.high %v1113_v9, %v1117_v7  ;;  %v12186_v25 = vcombine.low %v1113_v9, %v1117_v7 }
 0x3ae   :  { %4619 = vmatprep.subr.bf16.mxu1 %v12347_v31  ;;  %v12315_v13 = vcombine.high %v1241_v10, %v1245_v11  ;;  %v1233_v14 = vld [vmem:[#allocation3 + $0xbd8] sm:$0xff]  ;;  %v12314_v26 = vcombine.low %v1241_v10, %v1245_v11 }
 0x3af   :  { %v14491_v47 = vpack.c.bf16 %v4667_v39, %v4659_v37  ;;  %4577 = vmatpush1.bf16.msra.mxu0 %v12218_v59  ;;  %v1237_v15 = vld [vmem:[#allocation3 + $0xbf8] sm:$0xff] }
 0x3b0   :  { %4578 = vmatprep.subr.bf16.mxu0 %v12211_v36  ;;  %v1361_v17 = vld [vmem:[#allocation3 + $0xfd8] sm:$0xff]  ;;  %v12307_v27 = vcombine.high %v1233_v14, %v1237_v15  ;;  %v12306_v30 = vcombine.low %v1233_v14, %v1237_v15 }
 0x3b1   :  { %4620 = vmatpush1.bf16.msra.mxu1 %v12346_v35  ;;  %v1365_v24 = vld [vmem:[#allocation3 + $0xff8] sm:$0xff] }
 0x3b2   :  { %4621 = vmatprep.subr.bf16.mxu1 %v12339_v40  ;;  %v12435_v31 = vcombine.high %v1361_v17, %v1365_v24  ;;  %v1225_v20 = vld [vmem:[#allocation3 + $0xb98] sm:$0xff]  ;;  %v12434_v2 = vcombine.low %v1361_v17, %v1365_v24 }
 0x3b3   :  { %4579 = vmatpush1.bf16.msra.mxu0 %v12210_v57  ;;  %v1229_v28 = vld [vmem:[#allocation3 + $0xbb8] sm:$0xff] }
 0x3b4   :  { %4580 = vmatprep.subr.bf16.mxu0 %v12203_v51  ;;  %v1353_v19 = vld [vmem:[#allocation3 + $0xf98] sm:$0xff]  ;;  %v12299_v33 = vcombine.high %v1225_v20, %v1229_v28  ;;  %v12298_v39 = vcombine.low %v1225_v20, %v1229_v28 }
 0x3b5   :  { %4622 = vmatpush1.bf16.msra.mxu1 %v12338_v58  ;;  %v1357_v32 = vld [vmem:[#allocation3 + $0xfb8] sm:$0xff] }
 0x3b6   :  { %4623 = vmatprep.subr.bf16.mxu1 %v12331_v60  ;;  %v12427_v34 = vcombine.high %v1353_v19, %v1357_v32  ;;  %v1217_v59 = vld [vmem:[#allocation3 + $0xb58] sm:$0xff]  ;;  %v12426_v40 = vcombine.low %v1353_v19, %v1357_v32 }
 0x3b7   :  { %4581 = vmatpush1.bf16.msra.mxu0 %v12202_v63  ;;  %v1221_v35 = vld [vmem:[#allocation3 + $0xb78] sm:$0xff] }
 0x3b8   :  { %4582 = vmatprep.subr.bf16.mxu0 %v12195_v46  ;;  %v1345_v36 = vld [vmem:[#allocation3 + $0xf58] sm:$0xff]  ;;  %v12291_v41 = vcombine.high %v1217_v59, %v1221_v35  ;;  %v12290_v51 = vcombine.low %v1217_v59, %v1221_v35 }
 0x3b9   :  { %4624 = vmatpush1.bf16.msra.mxu1 %v12330_v0  ;;  %v1349_v37 = vld [vmem:[#allocation3 + $0xf78] sm:$0xff] }
 0x3ba   :  { %4625 = vmatprep.subr.bf16.mxu1 %v12323_v5  ;;  %v12419_v42 = vcombine.high %v1345_v36, %v1349_v37  ;;  %v1209_v43 = vld [vmem:[#allocation3 + $0xb18] sm:$0xff]  ;;  %v12418_v60 = vcombine.low %v1345_v36, %v1349_v37 }
 0x3bb   :  { %4583 = vmatpush1.bf16.msra.mxu0 %v12194_v49  ;;  %v1213_v44 = vld [vmem:[#allocation3 + $0xb38] sm:$0xff] }
 0x3bc   :  { %4584 = vmatprep.subr.bf16.mxu0 %v12187_v12  ;;  %v1337_v57 = vld [vmem:[#allocation3 + $0xf18] sm:$0xff]  ;;  %v12283_v50 = vcombine.high %v1209_v43, %v1213_v44  ;;  %v12282_v46 = vcombine.low %v1209_v43, %v1213_v44 }
 0x3bd   :  { %4626 = vmatpush1.bf16.msra.mxu1 %v12322_v8  ;;  %v1341_v58 = vld [vmem:[#allocation3 + $0xf38] sm:$0xff] }
 0x3be   :  { %4627 = vmatprep.subr.bf16.mxu1 %v12315_v13  ;;  %v12411_v52 = vcombine.high %v1337_v57, %v1341_v58  ;;  %v1201_v61 = vld [vmem:[#allocation3 + $0xad8] sm:$0xff]  ;;  %v12410_v5 = vcombine.low %v1337_v57, %v1341_v58 }
 0x3bf   :  { %4585 = vmatpush1.bf16.msra.mxu0 %v12186_v25  ;;  %v1205_v62 = vld [vmem:[#allocation3 + $0xaf8] sm:$0xff] }
 0x3c0   :  { %4586 = vmatprep.subr.bf16.mxu0 %v12307_v27  ;;  %v1329_v63 = vld [vmem:[#allocation3 + $0xed8] sm:$0xff]  ;;  %v12275_v9 = vcombine.high %v1201_v61, %v1205_v62  ;;  %v12274_v12 = vcombine.low %v1201_v61, %v1205_v62 }
 0x3c1   :  { %4628 = vmatpush1.bf16.msra.mxu1 %v12314_v26  ;;  %v1333_v0 = vld [vmem:[#allocation3 + $0xef8] sm:$0xff] }
 0x3c2   :  { %4629 = vmatprep.subr.bf16.mxu1 %v12435_v31  ;;  %v12403_v7 = vcombine.high %v1329_v63, %v1333_v0  ;;  %v1193_v10 = vld [vmem:[#allocation3 + $0xa98] sm:$0xff]  ;;  %v12402_v13 = vcombine.low %v1329_v63, %v1333_v0 }
 0x3c3   :  { %4587 = vmatpush2.bf16.msra.mxu0 %v12306_v30  ;;  %v1197_v11 = vld [vmem:[#allocation3 + $0xab8] sm:$0xff] }
 0x3c4   :  { %4588 = vmatprep.subr.bf16.mxu0 %v12299_v33  ;;  %v1321_v49 = vld [vmem:[#allocation3 + $0xe98] sm:$0xff]  ;;  %v12267_v14 = vcombine.high %v1193_v10, %v1197_v11  ;;  %v12266_v27 = vcombine.low %v1193_v10, %v1197_v11 }
 0x3c5   :  { %4630 = vmatpush2.bf16.msra.mxu1 %v12434_v2  ;;  %v1325_v8 = vld [vmem:[#allocation3 + $0xeb8] sm:$0xff] }
 0x3c6   :  { %4631 = vmatprep.subr.bf16.mxu1 %v12427_v34  ;;  %v12395_v15 = vcombine.high %v1321_v49, %v1325_v8  ;;  %v1185_v17 = vld [vmem:[#allocation3 + $0xa58] sm:$0xff]  ;;  %v12394_v31 = vcombine.low %v1321_v49, %v1325_v8 }
 0x3c7   :  { %4589 = vmatpush2.bf16.msra.mxu0 %v12298_v39  ;;  %v1189_v24 = vld [vmem:[#allocation3 + $0xa78] sm:$0xff] }
 0x3c8   :  { %4590 = vmatprep.subr.bf16.mxu0 %v12291_v41  ;;  %v1313_v25 = vld [vmem:[#allocation3 + $0xe58] sm:$0xff]  ;;  %v12259_v20 = vcombine.high %v1185_v17, %v1189_v24  ;;  %v12258_v33 = vcombine.low %v1185_v17, %v1189_v24 }
 0x3c9   :  { %4632 = vmatpush2.bf16.msra.mxu1 %v12426_v40  ;;  %v1317_v26 = vld [vmem:[#allocation3 + $0xe78] sm:$0xff] }
 0x3ca   :  { %4633 = vmatprep.subr.bf16.mxu1 %v12419_v42  ;;  %v12387_v28 = vcombine.high %v1313_v25, %v1317_v26  ;;  %v1177_v19 = vld [vmem:[#allocation3 + $0xa18] sm:$0xff]  ;;  %v12386_v34 = vcombine.low %v1313_v25, %v1317_v26  ;;  %v13549_v42 = vld [vmem:[#allocation13] sm:$0xff] }
 0x3cb   :  { %4591 = vmatpush2.bf16.msra.mxu0 %v12290_v51  ;;  %v1181_v32 = vld [vmem:[#allocation3 + $0xa38] sm:$0xff]  ;;  %v1387_v43 = vrot.slane %v13549_v42, %v14425_v53  ;;  %v1391_v57 = vrot.slane %v13549_v42, %v14429_v55 }
 0x3cc   :  { %4592 = vmatprep.subr.bf16.mxu0 %v12283_v50  ;;  %v1305_v30 = vld [vmem:[#allocation3 + $0xe18] sm:$0xff]  ;;  %v12251_v59 = vcombine.high %v1177_v19, %v1181_v32  ;;  %v12250_v36 = vcombine.low %v1177_v19, %v1181_v32 }
 0x3cd   :  { %4634 = vmatpush2.bf16.msra.mxu1 %v12418_v60  ;;  %v1309_v2 = vld [vmem:[#allocation3 + $0xe38] sm:$0xff] }
 0x3ce   :  { %4635 = vmatprep.subr.bf16.mxu1 %v12411_v52  ;;  %v12379_v35 = vcombine.high %v1305_v30, %v1309_v2  ;;  %v12378_v37 = vcombine.low %v1305_v30, %v1309_v2 }
 0x3cf   :  { %4593 = vmatpush2.bf16.msra.mxu0 %v12282_v46 }
 0x3d0   :  { %4594 = vmatprep.subr.bf16.mxu0 %v12275_v9 }
 0x3d1   :  { %4636 = vmatpush2.bf16.msra.mxu1 %v12410_v5 }
 0x3d2   :  { %4637 = vmatprep.subr.bf16.mxu1 %v12403_v7 }
 0x3d3   :  { %4595 = vmatpush2.bf16.msra.mxu0 %v12274_v12 }
 0x3d4   :  { %4596 = vmatprep.subr.bf16.mxu0 %v12267_v14 }
 0x3d5   :  { %4638 = vmatpush2.bf16.msra.mxu1 %v12402_v13 }
 0x3d6   :  { %4639 = vmatprep.subr.bf16.mxu1 %v12395_v15 }
 0x3d7   :  { %4597 = vmatpush2.bf16.msra.mxu0 %v12266_v27 }
 0x3d8   :  { %4598 = vmatprep.subr.bf16.mxu0 %v12259_v20 }
 0x3d9   :  { %4640 = vmatpush2.bf16.msra.mxu1 %v12394_v31 }
 0x3da   :  { %4641 = vmatprep.subr.bf16.mxu1 %v12387_v28 }
 0x3db   :  { %4599 = vmatpush2.bf16.msra.mxu0 %v12258_v33 }
 0x3dc   :  { %4600 = vmatprep.subr.bf16.mxu0 %v12251_v59  ;;  %v1395_v59 = vrot.slane %v13549_v42, %v14427_v54 }
 0x3dd   :  { %4642 = vmatpush2.bf16.msra.mxu1 %v12386_v34 }
 0x3de   :  { %4643 = vmatprep.subr.bf16.mxu1 %v12379_v35 }
 0x3df   :  { %4601 = vmatpush2.bf16.msra.mxu0 %v12250_v36  ;;  %v1399_v36 = vrot.slane %v13549_v42, %v14431_v56 }
 0x3e1   :  { %4644 = vmatpush2.bf16.msra.mxu1 %v12378_v37 }
 0x3e2   :  { %4603 = vmatmul.mubr.bf16.vlgmr.msra.gmra.mxu0 %v14437_v29  ;;  %v4346_v39 = vpop.f32.mrf.mxu0 }
 0x3e3   :  { %v4347_v51 = vadd.f32 %v4346_v39, %v1387_v43 }
 0x3e4   :  { %4646 = vmatmul.mubr.bf16.vlgmr.msra.gmra.mxu1 %v14439_v1  ;;  %v4389_v40 = vpop.f32.mrf.mxu1  ;;  %v4348_v41 = vpop.f32.mrf.mxu0 }
 0x3e5   :  { %v4349_v50 = vadd.f32 %v4348_v41, %v1391_v57  ;;  %v4390_v61 = vadd.f32 %v4389_v40, %v4347_v51 }
 0x3e6   :  { %v4391_v44 = vpop.f32.mrf.mxu1  ;;  %v4350_v58 = vpop.f32.mrf.mxu0 }
 0x3e7   :  { %v4351_v62 = vadd.f32 %v4350_v58, %v1387_v43  ;;  %v4392_v0 = vadd.f32 %v4391_v44, %v4349_v50 }
 0x3e8   :  { %v4393_v60 = vpop.f32.mrf.mxu1  ;;  %v4352_v52 = vpop.f32.mrf.mxu0 }
 0x3e9   :  { %v4353_v1 = vadd.f32 %v4352_v52, %v1391_v57  ;;  %v4394_v7 = vadd.f32 %v4393_v60, %v4351_v62 }
 0x3ea   :  { %v4395_v63 = vpop.f32.mrf.mxu1 }
 0x3eb   :  { %v4396_v8 = vadd.f32 %v4395_v63, %v4353_v1 }
 0x422   :  { %v4432_v29 = vpop.f32.mrf.mxu0 }
 0x423   :  { %v4433_v46 = vadd.f32 %v4432_v29, %v4390_v61 }
 0x424   :  { %v4475_v5 = vpop.f32.mrf.mxu1  ;;  %v4434_v9 = vpop.f32.mrf.mxu0 }
 0x425   :  { %v4435_v10 = vadd.f32 %v4434_v9, %v4392_v0  ;;  %v4476_v12 = vadd.f32 %v4475_v5, %v4433_v46 }
 0x426   :  { %v4477_v11 = vpop.f32.mrf.mxu1  ;;  %v4436_v49 = vpop.f32.mrf.mxu0 }
 0x427   :  { %v4437_v13 = vadd.f32 %v4436_v49, %v4394_v7  ;;  %v4478_v17 = vadd.f32 %v4477_v11, %v4435_v10  ;;  %v4660_v27 = vmax.f32 %v4476_v12, 0.0 }
 0x428   :  { %v4479_v14 = vpop.f32.mrf.mxu1  ;;  %v4438_v15 = vpop.f32.mrf.mxu0 }
 0x429   :  { %v4480_v24 = vadd.f32 %v4479_v14, %v4437_v13  ;;  %v4439_v25 = vadd.f32 %v4438_v15, %v4396_v8  ;;  %v4661_v28 = vmax.f32 %v4478_v17, 0.0 }
 0x42a   :  { %v4481_v26 = vpop.f32.mrf.mxu1 }
 0x42b   :  { %v4668_v31 = vmax.f32 %v4480_v24, 0.0  ;;  %v4482_v20 = vadd.f32 %v4481_v26, %v4439_v25 }
 0x42d   :  { %v14497_v19 = vpack.c.bf16 %v4668_v31, %v4660_v27  ;;  %v4669_v32 = vmax.f32 %v4482_v20, 0.0 }
 0x42f   :  { %v14499_v30 = vpack.c.bf16 %v4669_v32, %v4661_v28 }
 0x462   :  { %v4518_v2 = vpop.f32.mrf.mxu0 }
 0x463   :  { %v4519_v39 = vadd.f32 %v4518_v2, %v1395_v59 }
 0x464   :  { %v4561_v33 = vpop.f32.mrf.mxu1  ;;  %v4520_v34 = vpop.f32.mrf.mxu0 }
 0x465   :  { %v4521_v41 = vadd.f32 %v4520_v34, %v1399_v36  ;;  %v4562_v44 = vadd.f32 %v4561_v33, %v4519_v39 }
 0x466   :  { %v4563_v35 = vpop.f32.mrf.mxu1  ;;  %v4522_v37 = vpop.f32.mrf.mxu0 }
 0x467   :  { %v4523_v57 = vadd.f32 %v4522_v37, %v1395_v59  ;;  %v4564_v60 = vadd.f32 %v4563_v35, %v4521_v41 }
 0x468   :  { %v4565_v40 = vpop.f32.mrf.mxu1  ;;  %v4524_v43 = vpop.f32.mrf.mxu0 }
 0x469   :  { %v4525_v50 = vadd.f32 %v4524_v43, %v1399_v36  ;;  %v4566_v63 = vadd.f32 %v4565_v40, %v4523_v57 }
 0x46a   :  { %v4567_v58 = vpop.f32.mrf.mxu1 }
 0x46b   :  { %v4568_v46 = vadd.f32 %v4567_v58, %v4525_v50 }
 0x4a2   :  { %v4604_v51 = vpop.f32.mrf.mxu0 }
 0x4a3   :  { %v4605_v52 = vadd.f32 %v4604_v51, %v4562_v44 }
 0x4a4   :  { %v4647_v61 = vpop.f32.mrf.mxu1  ;;  %v4606_v62 = vpop.f32.mrf.mxu0 }
 0x4a5   :  { %v4607_v29 = vadd.f32 %v4606_v62, %v4564_v60  ;;  %v4648_v42 = vadd.f32 %v4647_v61, %v4605_v52 }
 0x4a6   :  { %v4649_v0 = vpop.f32.mrf.mxu1  ;;  %v4608_v1 = vpop.f32.mrf.mxu0 }
 0x4a7   :  { %v4609_v5 = vadd.f32 %v4608_v1, %v4566_v63  ;;  %v4650_v10 = vadd.f32 %v4649_v0, %v4607_v29  ;;  %v4662_v12 = vmax.f32 %v4648_v42, 0.0 }
 0x4a8   :  { %v4651_v9 = vpop.f32.mrf.mxu1  ;;  %v4610_v7 = vpop.f32.mrf.mxu0 }
 0x4a9   :  { %v4652_v11 = vadd.f32 %v4651_v9, %v4609_v5  ;;  %v4611_v49 = vadd.f32 %v4610_v7, %v4568_v46  ;;  %v4663_v15 = vmax.f32 %v4650_v10, 0.0 }
 0x4aa   :  { %v4653_v8 = vpop.f32.mrf.mxu1 }
 0x4ab   :  { %v4670_v13 = vmax.f32 %v4652_v11, 0.0  ;;  %v4654_v14 = vadd.f32 %v4653_v8, %v4611_v49 }
 0x4ad   :  { %v14503_v17 = vpack.c.bf16 %v4670_v13, %v4662_v12  ;;  %v4671_v24 = vmax.f32 %v4654_v14, 0.0 }
 0x4af   :  { %v14505_v25 = vpack.c.bf16 %v4671_v24, %v4663_v15 }
 0x4b0   :  { %14203 = dma.done.wait [#allocation9 + $0x2], 24576 }
 0x4b1   :  { %14204 = vsyncadd [#allocation9 + $0x2], 4294942720  ;;  %6012 = vmatprep.mubr.bf16.mxu0 %v14475_v48  ;;  %6055 = vmatprep.mubr.bf16.mxu1 %v14491_v47  ;;  %v13550_v26 = vld [vmem:[#allocation4 + $0xac] ss:$12 sps:$4 sm:$0xff]   ;;  %v13554_v31 = vld [vmem:[#allocation4 + $0xa8] ss:$12 sps:$4 sm:$0xff]  }
 0x4b2   :  { %v13552_v27 = vld [vmem:[#allocation4 + $0x22c] ss:$12 sps:$4 sm:$0xff]   ;;  %5980 = vmatprep.subr.bf16.mxu0 %v13550_v26  ;;  %v13555_v20 = vld [vmem:[#allocation4 + $0x228] ss:$12 sps:$4 sm:$0xff]   ;;  %v13560_v2 = vld [vmem:[#allocation4 + $0x90] ss:$12 sps:$4 sm:$0xff]  }
 0x4b3   :  { %6023 = vmatprep.subr.bf16.mxu1 %v13552_v27  ;;  %v13556_v28 = vld [vmem:[#allocation4 + $0x94] ss:$12 sps:$4 sm:$0xff]   ;;  %5981 = vmatpush1.bf16.msra.mxu0 %v13554_v31  ;;  %v13561_v33 = vld [vmem:[#allocation4 + $0x210] ss:$12 sps:$4 sm:$0xff]   ;;  %v13566_v35 = vld [vmem:[#allocation4 + $0x78] ss:$12 sps:$4 sm:$0xff]  }
 0x4b4   :  { %6024 = vmatpush1.bf16.msra.mxu1 %v13555_v20  ;;  %v13558_v32 = vld [vmem:[#allocation4 + $0x214] ss:$12 sps:$4 sm:$0xff]   ;;  %5982 = vmatprep.subr.bf16.mxu0 %v13556_v28  ;;  %v13562_v34 = vld [vmem:[#allocation4 + $0x7c] ss:$12 sps:$4 sm:$0xff]   ;;  %v13567_v36 = vld [vmem:[#allocation4 + $0x1f8] ss:$12 sps:$4 sm:$0xff]  }
 0x4b5   :  { %6025 = vmatprep.subr.bf16.mxu1 %v13558_v32  ;;  %v13564_v59 = vld [vmem:[#allocation4 + $0x1fc] ss:$12 sps:$4 sm:$0xff]   ;;  %v13568_v37 = vld [vmem:[#allocation4 + $0x64] ss:$12 sps:$4 sm:$0xff]   ;;  %v13572_v40 = vld [vmem:[#allocation4 + $0x60] ss:$12 sps:$4 sm:$0xff]  }
 0x4b6   :  { %v13570_v39 = vld [vmem:[#allocation4 + $0x1e4] ss:$12 sps:$4 sm:$0xff]   ;;  %v13573_v41 = vld [vmem:[#allocation4 + $0x1e0] ss:$12 sps:$4 sm:$0xff]   ;;  %v13578_v57 = vld [vmem:[#allocation4 + $0x48] ss:$12 sps:$4 sm:$0xff]  }
 0x4b7   :  { %5983 = vmatpush1.bf16.msra.mxu0 %v13560_v2  ;;  %v13574_v43 = vld [vmem:[#allocation4 + $0x4c] ss:$12 sps:$4 sm:$0xff]   ;;  %v13579_v58 = vld [vmem:[#allocation4 + $0x1c8] ss:$12 sps:$4 sm:$0xff]   ;;  %v13584_v50 = vld [vmem:[#allocation4 + $0x30] ss:$12 sps:$4 sm:$0xff]  }
 0x4b8   :  { %6026 = vmatpush1.bf16.msra.mxu1 %v13561_v33  ;;  %5984 = vmatprep.subr.bf16.mxu0 %v13562_v34  ;;  %v13576_v44 = vld [vmem:[#allocation4 + $0x1cc] ss:$12 sps:$4 sm:$0xff]   ;;  %v13580_v51 = vld [vmem:[#allocation4 + $0x34] ss:$12 sps:$4 sm:$0xff]   ;;  %v13585_v52 = vld [vmem:[#allocation4 + $0x1b0] ss:$12 sps:$4 sm:$0xff]  }
 0x4b9   :  { %6027 = vmatprep.subr.bf16.mxu1 %v13564_v59  ;;  %v13582_v60 = vld [vmem:[#allocation4 + $0x1b4] ss:$12 sps:$4 sm:$0xff]   ;;  %v13586_v61 = vld [vmem:[#allocation4 + $0x1c] ss:$12 sps:$4 sm:$0xff]   ;;  %v13590_v63 = vld [vmem:[#allocation4 + $0x18] ss:$12 sps:$4 sm:$0xff]  }
 0x4ba   :  { %v13588_v62 = vld [vmem:[#allocation4 + $0x19c] ss:$12 sps:$4 sm:$0xff]   ;;  %v13591_v29 = vld [vmem:[#allocation4 + $0x198] ss:$12 sps:$4 sm:$0xff]   ;;  %v13596_v46 = vld [vmem:[#allocation4] ss:$12 sps:$4 sm:$0xff]  }
 0x4bb   :  { %5985 = vmatpush1.bf16.msra.mxu0 %v13566_v35  ;;  %v13592_v0 = vld [vmem:[#allocation4 + $0x4] ss:$12 sps:$4 sm:$0xff]   ;;  %v13597_v42 = vld [vmem:[#allocation4 + $0x180] ss:$12 sps:$4 sm:$0xff]   ;;  %v13602_v7 = vld [vmem:[#allocation4 + $0x168] ss:$12 sps:$4 sm:$0xff]  }
 0x4bc   :  { %6028 = vmatpush1.bf16.msra.mxu1 %v13567_v36  ;;  %5986 = vmatprep.subr.bf16.mxu0 %v13568_v37  ;;  %v13594_v1 = vld [vmem:[#allocation4 + $0x184] ss:$12 sps:$4 sm:$0xff]   ;;  %v13598_v5 = vld [vmem:[#allocation4 + $0x16c] ss:$12 sps:$4 sm:$0xff]   ;;  %v13603_v10 = vld [vmem:[#allocation4 + $0x2e8] ss:$12 sps:$4 sm:$0xff]  }
 0x4bd   :  { %6029 = vmatprep.subr.bf16.mxu1 %v13570_v39  ;;  %v13600_v9 = vld [vmem:[#allocation4 + $0x2ec] ss:$12 sps:$4 sm:$0xff]   ;;  %v13604_v11 = vld [vmem:[#allocation4 + $0x154] ss:$12 sps:$4 sm:$0xff]   ;;  %v13608_v8 = vld [vmem:[#allocation4 + $0x150] ss:$12 sps:$4 sm:$0xff]  }
 0x4be   :  { %v13606_v49 = vld [vmem:[#allocation4 + $0x2d4] ss:$12 sps:$4 sm:$0xff]   ;;  %v13609_v12 = vld [vmem:[#allocation4 + $0x2d0] ss:$12 sps:$4 sm:$0xff]   ;;  %v13614_v15 = vld [vmem:[#allocation4 + $0x138] ss:$12 sps:$4 sm:$0xff]  }
 0x4bf   :  { %5987 = vmatpush1.bf16.msra.mxu0 %v13572_v40  ;;  %v13610_v13 = vld [vmem:[#allocation4 + $0x13c] ss:$12 sps:$4 sm:$0xff]   ;;  %v13615_v24 = vld [vmem:[#allocation4 + $0x2b8] ss:$12 sps:$4 sm:$0xff]   ;;  %v13620_v31 = vld [vmem:[#allocation4 + $0x120] ss:$12 sps:$4 sm:$0xff]  }
 0x4c0   :  { %6030 = vmatpush1.bf16.msra.mxu1 %v13573_v41  ;;  %5988 = vmatprep.subr.bf16.mxu0 %v13574_v43  ;;  %v13612_v14 = vld [vmem:[#allocation4 + $0x2bc] ss:$12 sps:$4 sm:$0xff]   ;;  %v13616_v26 = vld [vmem:[#allocation4 + $0x124] ss:$12 sps:$4 sm:$0xff]   ;;  %v13621_v20 = vld [vmem:[#allocation4 + $0x2a0] ss:$12 sps:$4 sm:$0xff]  }
 0x4c1   :  { %6031 = vmatprep.subr.bf16.mxu1 %v13576_v44  ;;  %v13618_v27 = vld [vmem:[#allocation4 + $0x2a4] ss:$12 sps:$4 sm:$0xff]   ;;  %v13622_v28 = vld [vmem:[#allocation4 + $0x10c] ss:$12 sps:$4 sm:$0xff]   ;;  %v13626_v2 = vld [vmem:[#allocation4 + $0x108] ss:$12 sps:$4 sm:$0xff]  }
 0x4c2   :  { %v13624_v32 = vld [vmem:[#allocation4 + $0x28c] ss:$12 sps:$4 sm:$0xff]   ;;  %v13627_v33 = vld [vmem:[#allocation4 + $0x288] ss:$12 sps:$4 sm:$0xff]   ;;  %v13632_v35 = vld [vmem:[#allocation4 + $0xf0] ss:$12 sps:$4 sm:$0xff]  }
 0x4c3   :  { %5989 = vmatpush1.bf16.msra.mxu0 %v13578_v57  ;;  %v13628_v34 = vld [vmem:[#allocation4 + $0xf4] ss:$12 sps:$4 sm:$0xff]   ;;  %v13633_v36 = vld [vmem:[#allocation4 + $0x270] ss:$12 sps:$4 sm:$0xff]   ;;  %v13638_v40 = vld [vmem:[#allocation4 + $0xd8] ss:$12 sps:$4 sm:$0xff]  }
 0x4c4   :  { %6032 = vmatpush1.bf16.msra.mxu1 %v13579_v58  ;;  %5990 = vmatprep.subr.bf16.mxu0 %v13580_v51  ;;  %v13630_v59 = vld [vmem:[#allocation4 + $0x274] ss:$12 sps:$4 sm:$0xff]   ;;  %v13634_v37 = vld [vmem:[#allocation4 + $0xdc] ss:$12 sps:$4 sm:$0xff]   ;;  %v13639_v41 = vld [vmem:[#allocation4 + $0x258] ss:$12 sps:$4 sm:$0xff]  }
 0x4c5   :  { %6033 = vmatprep.subr.bf16.mxu1 %v13582_v60  ;;  %v13636_v39 = vld [vmem:[#allocation4 + $0x25c] ss:$12 sps:$4 sm:$0xff]   ;;  %v13640_v43 = vld [vmem:[#allocation4 + $0xc4] ss:$12 sps:$4 sm:$0xff]   ;;  %v13644_v57 = vld [vmem:[#allocation4 + $0xc0] ss:$12 sps:$4 sm:$0xff]  }
 0x4c6   :  { %v13642_v44 = vld [vmem:[#allocation4 + $0x244] ss:$12 sps:$4 sm:$0xff]   ;;  %v13645_v58 = vld [vmem:[#allocation4 + $0x240] ss:$12 sps:$4 sm:$0xff]  }
 0x4c7   :  { %5991 = vmatpush1.bf16.msra.mxu0 %v13584_v50  ;;  %v13648_v51 = vld [vmem:[#allocation4 + $0x3ac] ss:$12 sps:$4 sm:$0xff]   ;;  %v13646_v50 = vld [vmem:[#allocation4 + $0x3a8] ss:$12 sps:$4 sm:$0xff]  }
 0x4c8   :  { %6034 = vmatpush1.bf16.msra.mxu1 %v13585_v52  ;;  %5992 = vmatprep.subr.bf16.mxu0 %v13586_v61  ;;  %v13651_v60 = vld [vmem:[#allocation4 + $0x52c] ss:$12 sps:$4 sm:$0xff]   ;;  %v13649_v52 = vld [vmem:[#allocation4 + $0x528] ss:$12 sps:$4 sm:$0xff]  }
 0x4c9   :  { %6035 = vmatprep.subr.bf16.mxu1 %v13588_v62  ;;  %v13654_v61 = vld [vmem:[#allocation4 + $0x394] ss:$12 sps:$4 sm:$0xff]  }
 0x4ca   :  { %v13657_v62 = vld [vmem:[#allocation4 + $0x514] ss:$12 sps:$4 sm:$0xff]  }
 0x4cb   :  { %5993 = vmatpush1.bf16.msra.mxu0 %v13590_v63  ;;  %v13652_v63 = vld [vmem:[#allocation4 + $0x390] ss:$12 sps:$4 sm:$0xff]  }
 0x4cc   :  { %6036 = vmatpush1.bf16.msra.mxu1 %v13591_v29  ;;  %5994 = vmatprep.subr.bf16.mxu0 %v13592_v0  ;;  %v13655_v29 = vld [vmem:[#allocation4 + $0x510] ss:$12 sps:$4 sm:$0xff]  }
 0x4cd   :  { %6037 = vmatprep.subr.bf16.mxu1 %v13594_v1  ;;  %v13660_v0 = vld [vmem:[#allocation4 + $0x37c] ss:$12 sps:$4 sm:$0xff]  }
 0x4ce   :  { %v13663_v1 = vld [vmem:[#allocation4 + $0x4fc] ss:$12 sps:$4 sm:$0xff]  }
 0x4cf   :  { %5995 = vmatpush1.bf16.msra.mxu0 %v13596_v46  ;;  %v13658_v46 = vld [vmem:[#allocation4 + $0x378] ss:$12 sps:$4 sm:$0xff]  }
 0x4d0   :  { %6038 = vmatpush1.bf16.msra.mxu1 %v13597_v42  ;;  %5996 = vmatprep.subr.bf16.mxu0 %v13598_v5  ;;  %v13661_v42 = vld [vmem:[#allocation4 + $0x4f8] ss:$12 sps:$4 sm:$0xff]  }
 0x4d1   :  { %6039 = vmatprep.subr.bf16.mxu1 %v13600_v9  ;;  %v13666_v5 = vld [vmem:[#allocation4 + $0x364] ss:$12 sps:$4 sm:$0xff]  }
 0x4d2   :  { %v13669_v9 = vld [vmem:[#allocation4 + $0x4e4] ss:$12 sps:$4 sm:$0xff]  }
 0x4d3   :  { %5997 = vmatpush2.bf16.msra.mxu0 %v13602_v7  ;;  %v13664_v7 = vld [vmem:[#allocation4 + $0x360] ss:$12 sps:$4 sm:$0xff]  }
 0x4d4   :  { %6040 = vmatpush2.bf16.msra.mxu1 %v13603_v10  ;;  %5998 = vmatprep.subr.bf16.mxu0 %v13604_v11  ;;  %v13667_v10 = vld [vmem:[#allocation4 + $0x4e0] ss:$12 sps:$4 sm:$0xff]  }
 0x4d5   :  { %6041 = vmatprep.subr.bf16.mxu1 %v13606_v49  ;;  %v13672_v11 = vld [vmem:[#allocation4 + $0x34c] ss:$12 sps:$4 sm:$0xff]  }
 0x4d6   :  { %v13675_v49 = vld [vmem:[#allocation4 + $0x4cc] ss:$12 sps:$4 sm:$0xff]  }
 0x4d7   :  { %5999 = vmatpush2.bf16.msra.mxu0 %v13608_v8  ;;  %v13670_v8 = vld [vmem:[#allocation4 + $0x348] ss:$12 sps:$4 sm:$0xff]  }
 0x4d8   :  { %6042 = vmatpush2.bf16.msra.mxu1 %v13609_v12  ;;  %6000 = vmatprep.subr.bf16.mxu0 %v13610_v13  ;;  %v13673_v12 = vld [vmem:[#allocation4 + $0x4c8] ss:$12 sps:$4 sm:$0xff]  }
 0x4d9   :  { %6043 = vmatprep.subr.bf16.mxu1 %v13612_v14  ;;  %v13678_v13 = vld [vmem:[#allocation4 + $0x334] ss:$12 sps:$4 sm:$0xff]  }
 0x4da   :  { %v13681_v14 = vld [vmem:[#allocation4 + $0x4b4] ss:$12 sps:$4 sm:$0xff]  }
 0x4db   :  { %6001 = vmatpush2.bf16.msra.mxu0 %v13614_v15  ;;  %v13676_v15 = vld [vmem:[#allocation4 + $0x330] ss:$12 sps:$4 sm:$0xff]  }
 0x4dc   :  { %6044 = vmatpush2.bf16.msra.mxu1 %v13615_v24  ;;  %6002 = vmatprep.subr.bf16.mxu0 %v13616_v26  ;;  %v13679_v24 = vld [vmem:[#allocation4 + $0x4b0] ss:$12 sps:$4 sm:$0xff]  }
 0x4dd   :  { %6045 = vmatprep.subr.bf16.mxu1 %v13618_v27  ;;  %v13684_v26 = vld [vmem:[#allocation4 + $0x31c] ss:$12 sps:$4 sm:$0xff]  }
 0x4de   :  { %v13687_v27 = vld [vmem:[#allocation4 + $0x49c] ss:$12 sps:$4 sm:$0xff]  }
 0x4df   :  { %6003 = vmatpush2.bf16.msra.mxu0 %v13620_v31  ;;  %v13682_v31 = vld [vmem:[#allocation4 + $0x318] ss:$12 sps:$4 sm:$0xff]  }
 0x4e0   :  { %6046 = vmatpush2.bf16.msra.mxu1 %v13621_v20  ;;  %6004 = vmatprep.subr.bf16.mxu0 %v13622_v28  ;;  %v13685_v20 = vld [vmem:[#allocation4 + $0x498] ss:$12 sps:$4 sm:$0xff]  }
 0x4e1   :  { %6047 = vmatprep.subr.bf16.mxu1 %v13624_v32  ;;  %v13690_v28 = vld [vmem:[#allocation4 + $0x304] ss:$12 sps:$4 sm:$0xff]  }
 0x4e2   :  { %v13693_v32 = vld [vmem:[#allocation4 + $0x484] ss:$12 sps:$4 sm:$0xff]  }
 0x4e3   :  { %6005 = vmatpush2.bf16.msra.mxu0 %v13626_v2  ;;  %v13688_v2 = vld [vmem:[#allocation4 + $0x300] ss:$12 sps:$4 sm:$0xff]  }
 0x4e4   :  { %6048 = vmatpush2.bf16.msra.mxu1 %v13627_v33  ;;  %6006 = vmatprep.subr.bf16.mxu0 %v13628_v34  ;;  %v13691_v33 = vld [vmem:[#allocation4 + $0x480] ss:$12 sps:$4 sm:$0xff]  }
 0x4e5   :  { %6049 = vmatprep.subr.bf16.mxu1 %v13630_v59  ;;  %v13696_v34 = vld [vmem:[#allocation4 + $0x46c] ss:$12 sps:$4 sm:$0xff]  }
 0x4e6   :  { %v13699_v59 = vld [vmem:[#allocation4 + $0x5ec] ss:$12 sps:$4 sm:$0xff]  }
 0x4e7   :  { %6007 = vmatpush2.bf16.msra.mxu0 %v13632_v35  ;;  %v13694_v35 = vld [vmem:[#allocation4 + $0x468] ss:$12 sps:$4 sm:$0xff]  }
 0x4e8   :  { %6050 = vmatpush2.bf16.msra.mxu1 %v13633_v36  ;;  %6008 = vmatprep.subr.bf16.mxu0 %v13634_v37  ;;  %v13697_v36 = vld [vmem:[#allocation4 + $0x5e8] ss:$12 sps:$4 sm:$0xff]  }
 0x4e9   :  { %6051 = vmatprep.subr.bf16.mxu1 %v13636_v39  ;;  %v13702_v37 = vld [vmem:[#allocation4 + $0x454] ss:$12 sps:$4 sm:$0xff]  }
 0x4ea   :  { %v13705_v39 = vld [vmem:[#allocation4 + $0x5d4] ss:$12 sps:$4 sm:$0xff]  }
 0x4eb   :  { %6009 = vmatpush2.bf16.msra.mxu0 %v13638_v40  ;;  %v13700_v40 = vld [vmem:[#allocation4 + $0x450] ss:$12 sps:$4 sm:$0xff]  }
 0x4ec   :  { %6052 = vmatpush2.bf16.msra.mxu1 %v13639_v41  ;;  %6010 = vmatprep.subr.bf16.mxu0 %v13640_v43  ;;  %v13703_v41 = vld [vmem:[#allocation4 + $0x5d0] ss:$12 sps:$4 sm:$0xff]  }
 0x4ed   :  { %6053 = vmatprep.subr.bf16.mxu1 %v13642_v44  ;;  %v13708_v43 = vld [vmem:[#allocation4 + $0x43c] ss:$12 sps:$4 sm:$0xff]  }
 0x4ee   :  { %v13711_v44 = vld [vmem:[#allocation4 + $0x5bc] ss:$12 sps:$4 sm:$0xff]  }
 0x4ef   :  { %6011 = vmatpush2.bf16.msra.mxu0 %v13644_v57  ;;  %v13706_v57 = vld [vmem:[#allocation4 + $0x438] ss:$12 sps:$4 sm:$0xff]  }
 0x4f0   :  { %6054 = vmatpush2.bf16.msra.mxu1 %v13645_v58  ;;  %6066 = vmatprep.subr.bf16.mxu0 %v13648_v51  ;;  %v13709_v58 = vld [vmem:[#allocation4 + $0x5b8] ss:$12 sps:$4 sm:$0xff]  }
 0x4f1   :  { %6109 = vmatprep.subr.bf16.mxu1 %v13651_v60  ;;  %v13714_v51 = vld [vmem:[#allocation4 + $0x424] ss:$12 sps:$4 sm:$0xff]  }
 0x4f2   :  { %6013 = vmatmul.mubr.bf16.vlgmr.msra.gmra.mxu0 %v14473_v45  ;;  %v13717_v60 = vld [vmem:[#allocation4 + $0x5a4] ss:$12 sps:$4 sm:$0xff]  }
 0x4f3   :  { %6056 = vmatmul.mubr.bf16.vlgmr.msra.gmra.mxu1 %v14489_v38  ;;  %6067 = vmatpush1.bf16.msra.mxu0 %v13646_v50  ;;  %v13712_v50 = vld [vmem:[#allocation4 + $0x420] ss:$12 sps:$4 sm:$0xff]  }
 0x4f4   :  { %6110 = vmatpush1.bf16.msra.mxu1 %v13649_v52  ;;  %6068 = vmatprep.subr.bf16.mxu0 %v13654_v61  ;;  %v13715_v52 = vld [vmem:[#allocation4 + $0x5a0] ss:$12 sps:$4 sm:$0xff]  }
 0x4f5   :  { %6111 = vmatprep.subr.bf16.mxu1 %v13657_v62  ;;  %6098 = vmatprep.mubr.bf16.mxu0 %v14499_v30  ;;  %v13720_v61 = vld [vmem:[#allocation4 + $0x40c] ss:$12 sps:$4 sm:$0xff]  }
 0x4f6   :  { %6141 = vmatprep.mubr.bf16.mxu1 %v14505_v25  ;;  %v13723_v62 = vld [vmem:[#allocation4 + $0x58c] ss:$12 sps:$4 sm:$0xff]  }
 0x4f7   :  { %6069 = vmatpush1.bf16.msra.mxu0 %v13652_v63  ;;  %v13718_v63 = vld [vmem:[#allocation4 + $0x408] ss:$12 sps:$4 sm:$0xff]  }
 0x4f8   :  { %6112 = vmatpush1.bf16.msra.mxu1 %v13655_v29  ;;  %6070 = vmatprep.subr.bf16.mxu0 %v13660_v0  ;;  %v13721_v29 = vld [vmem:[#allocation4 + $0x588] ss:$12 sps:$4 sm:$0xff]  }
 0x4f9   :  { %6113 = vmatprep.subr.bf16.mxu1 %v13663_v1  ;;  %v13726_v0 = vld [vmem:[#allocation4 + $0x3f4] ss:$12 sps:$4 sm:$0xff]  }
 0x4fa   :  { %v13729_v1 = vld [vmem:[#allocation4 + $0x574] ss:$12 sps:$4 sm:$0xff]  }
 0x4fb   :  { %6071 = vmatpush1.bf16.msra.mxu0 %v13658_v46  ;;  %v13724_v46 = vld [vmem:[#allocation4 + $0x3f0] ss:$12 sps:$4 sm:$0xff]  }
 0x4fc   :  { %6114 = vmatpush1.bf16.msra.mxu1 %v13661_v42  ;;  %6072 = vmatprep.subr.bf16.mxu0 %v13666_v5  ;;  %v13727_v42 = vld [vmem:[#allocation4 + $0x570] ss:$12 sps:$4 sm:$0xff]  }
 0x4fd   :  { %6115 = vmatprep.subr.bf16.mxu1 %v13669_v9  ;;  %v13732_v5 = vld [vmem:[#allocation4 + $0x3dc] ss:$12 sps:$4 sm:$0xff]  }
 0x4fe   :  { %v13735_v9 = vld [vmem:[#allocation4 + $0x55c] ss:$12 sps:$4 sm:$0xff]  }
 0x4ff   :  { %6073 = vmatpush1.bf16.msra.mxu0 %v13664_v7  ;;  %v13730_v7 = vld [vmem:[#allocation4 + $0x3d8] ss:$12 sps:$4 sm:$0xff]  }
 0x500   :  { %6116 = vmatpush1.bf16.msra.mxu1 %v13667_v10  ;;  %6074 = vmatprep.subr.bf16.mxu0 %v13672_v11  ;;  %v13733_v10 = vld [vmem:[#allocation4 + $0x558] ss:$12 sps:$4 sm:$0xff]  }
 0x501   :  { %6117 = vmatprep.subr.bf16.mxu1 %v13675_v49  ;;  %v13738_v11 = vld [vmem:[#allocation4 + $0x3c4] ss:$12 sps:$4 sm:$0xff]  }
 0x502   :  { %v13741_v49 = vld [vmem:[#allocation4 + $0x544] ss:$12 sps:$4 sm:$0xff]  }
 0x503   :  { %6075 = vmatpush1.bf16.msra.mxu0 %v13670_v8  ;;  %v13736_v8 = vld [vmem:[#allocation4 + $0x3c0] ss:$12 sps:$4 sm:$0xff]  }
 0x504   :  { %6118 = vmatpush1.bf16.msra.mxu1 %v13673_v12  ;;  %6076 = vmatprep.subr.bf16.mxu0 %v13678_v13  ;;  %v13739_v12 = vld [vmem:[#allocation4 + $0x540] ss:$12 sps:$4 sm:$0xff]   ;;  %v13742_v13 = vld [vmem:[#allocation4 + $0x170] ss:$12 sps:$4 sm:$0xff]  }
 0x505   :  { %6119 = vmatprep.subr.bf16.mxu1 %v13681_v14  ;;  %v13743_v14 = vld [vmem:[#allocation4 + $0x2f0] ss:$12 sps:$4 sm:$0xff]  }
 0x507   :  { %6077 = vmatpush1.bf16.msra.mxu0 %v13676_v15  ;;  %v13744_v15 = vld [vmem:[#allocation4 + $0xb0] ss:$12 sps:$4 sm:$0xff]  }
 0x508   :  { %6120 = vmatpush1.bf16.msra.mxu1 %v13679_v24  ;;  %6078 = vmatprep.subr.bf16.mxu0 %v13684_v26  ;;  %v13745_v24 = vld [vmem:[#allocation4 + $0x230] ss:$12 sps:$4 sm:$0xff]   ;;  %v13746_v26 = vld [vmem:[#allocation4 + $0x158] ss:$12 sps:$4 sm:$0xff]  }
 0x509   :  { %6121 = vmatprep.subr.bf16.mxu1 %v13687_v27  ;;  %v13747_v27 = vld [vmem:[#allocation4 + $0x2d8] ss:$12 sps:$4 sm:$0xff]  }
 0x50b   :  { %6079 = vmatpush1.bf16.msra.mxu0 %v13682_v31  ;;  %v13748_v31 = vld [vmem:[#allocation4 + $0x98] ss:$12 sps:$4 sm:$0xff]  }
 0x50c   :  { %6122 = vmatpush1.bf16.msra.mxu1 %v13685_v20  ;;  %6080 = vmatprep.subr.bf16.mxu0 %v13690_v28  ;;  %v13749_v20 = vld [vmem:[#allocation4 + $0x218] ss:$12 sps:$4 sm:$0xff]   ;;  %v13750_v28 = vld [vmem:[#allocation4 + $0x140] ss:$12 sps:$4 sm:$0xff]  }
 0x50d   :  { %6123 = vmatprep.subr.bf16.mxu1 %v13693_v32  ;;  %v13751_v32 = vld [vmem:[#allocation4 + $0x2c0] ss:$12 sps:$4 sm:$0xff]  }
 0x50f   :  { %6081 = vmatpush1.bf16.msra.mxu0 %v13688_v2  ;;  %v13752_v2 = vld [vmem:[#allocation4 + $0x80] ss:$12 sps:$4 sm:$0xff]  }
 0x510   :  { %6124 = vmatpush1.bf16.msra.mxu1 %v13691_v33  ;;  %6082 = vmatprep.subr.bf16.mxu0 %v13696_v34  ;;  %v13753_v33 = vld [vmem:[#allocation4 + $0x200] ss:$12 sps:$4 sm:$0xff]   ;;  %v13754_v34 = vld [vmem:[#allocation4 + $0x128] ss:$12 sps:$4 sm:$0xff]  }
 0x511   :  { %6125 = vmatprep.subr.bf16.mxu1 %v13699_v59  ;;  %v13755_v59 = vld [vmem:[#allocation4 + $0x2a8] ss:$12 sps:$4 sm:$0xff]  }
 0x513   :  { %6083 = vmatpush2.bf16.msra.mxu0 %v13694_v35  ;;  %v13756_v35 = vld [vmem:[#allocation4 + $0x68] ss:$12 sps:$4 sm:$0xff]  }
 0x514   :  { %6126 = vmatpush2.bf16.msra.mxu1 %v13697_v36  ;;  %6084 = vmatprep.subr.bf16.mxu0 %v13702_v37  ;;  %v13757_v36 = vld [vmem:[#allocation4 + $0x1e8] ss:$12 sps:$4 sm:$0xff]   ;;  %v13758_v37 = vld [vmem:[#allocation4 + $0x110] ss:$12 sps:$4 sm:$0xff]  }
 0x515   :  { %6127 = vmatprep.subr.bf16.mxu1 %v13705_v39  ;;  %v13759_v39 = vld [vmem:[#allocation4 + $0x290] ss:$12 sps:$4 sm:$0xff]  }
 0x517   :  { %6085 = vmatpush2.bf16.msra.mxu0 %v13700_v40  ;;  %v13760_v40 = vld [vmem:[#allocation4 + $0x50] ss:$12 sps:$4 sm:$0xff]  }
 0x518   :  { %6128 = vmatpush2.bf16.msra.mxu1 %v13703_v41  ;;  %6086 = vmatprep.subr.bf16.mxu0 %v13708_v43  ;;  %v13761_v41 = vld [vmem:[#allocation4 + $0x1d0] ss:$12 sps:$4 sm:$0xff]   ;;  %v13764_v43 = vld [vmem:[#allocation4 + $0x38] ss:$12 sps:$4 sm:$0xff]  }
 0x519   :  { %6129 = vmatprep.subr.bf16.mxu1 %v13711_v44  ;;  %v13765_v44 = vld [vmem:[#allocation4 + $0x1b8] ss:$12 sps:$4 sm:$0xff]  }
 0x51b   :  { %6087 = vmatpush2.bf16.msra.mxu0 %v13706_v57  ;;  %v13766_v57 = vld [vmem:[#allocation4 + $0xe0] ss:$12 sps:$4 sm:$0xff]  }
 0x51c   :  { %6130 = vmatpush2.bf16.msra.mxu1 %v13709_v58  ;;  %6088 = vmatprep.subr.bf16.mxu0 %v13714_v51  ;;  %v13767_v58 = vld [vmem:[#allocation4 + $0x260] ss:$12 sps:$4 sm:$0xff]  }
 0x51d   :  { %6131 = vmatprep.subr.bf16.mxu1 %v13717_v60  ;;  %v13768_v51 = vld [vmem:[#allocation4 + $0x20] ss:$12 sps:$4 sm:$0xff]  }
 0x51e   :  { %v13769_v60 = vld [vmem:[#allocation4 + $0x1a0] ss:$12 sps:$4 sm:$0xff]  }
 0x51f   :  { %6089 = vmatpush2.bf16.msra.mxu0 %v13712_v50  ;;  %v13770_v50 = vld [vmem:[#allocation4 + $0xc8] ss:$12 sps:$4 sm:$0xff]  }
 0x520   :  { %6132 = vmatpush2.bf16.msra.mxu1 %v13715_v52  ;;  %6090 = vmatprep.subr.bf16.mxu0 %v13720_v61  ;;  %v13771_v52 = vld [vmem:[#allocation4 + $0x248] ss:$12 sps:$4 sm:$0xff]  }
 0x521   :  { %6133 = vmatprep.subr.bf16.mxu1 %v13723_v62  ;;  %v13772_v61 = vld [vmem:[#allocation4 + $0x8] ss:$12 sps:$4 sm:$0xff]  }
 0x522   :  { %v13773_v62 = vld [vmem:[#allocation4 + $0x188] ss:$12 sps:$4 sm:$0xff]  }
 0x523   :  { %6091 = vmatpush2.bf16.msra.mxu0 %v13718_v63  ;;  %v13774_v63 = vld [vmem:[#allocation4 + $0x470] ss:$12 sps:$4 sm:$0xff]  }
 0x524   :  { %6134 = vmatpush2.bf16.msra.mxu1 %v13721_v29  ;;  %6092 = vmatprep.subr.bf16.mxu0 %v13726_v0  ;;  %v13775_v29 = vld [vmem:[#allocation4 + $0x5f0] ss:$12 sps:$4 sm:$0xff]  }
 0x525   :  { %6135 = vmatprep.subr.bf16.mxu1 %v13729_v1  ;;  %v13776_v0 = vld [vmem:[#allocation4 + $0x3b0] ss:$12 sps:$4 sm:$0xff]  }
 0x526   :  { %v13777_v1 = vld [vmem:[#allocation4 + $0x530] ss:$12 sps:$4 sm:$0xff]  }
 0x527   :  { %6093 = vmatpush2.bf16.msra.mxu0 %v13724_v46  ;;  %v13778_v46 = vld [vmem:[#allocation4 + $0x458] ss:$12 sps:$4 sm:$0xff]  }
 0x528   :  { %6136 = vmatpush2.bf16.msra.mxu1 %v13727_v42  ;;  %6094 = vmatprep.subr.bf16.mxu0 %v13732_v5  ;;  %v13779_v42 = vld [vmem:[#allocation4 + $0x5d8] ss:$12 sps:$4 sm:$0xff]  }
 0x529   :  { %6137 = vmatprep.subr.bf16.mxu1 %v13735_v9  ;;  %v13780_v5 = vld [vmem:[#allocation4 + $0x398] ss:$12 sps:$4 sm:$0xff]  }
 0x52a   :  { %v13781_v9 = vld [vmem:[#allocation4 + $0x518] ss:$12 sps:$4 sm:$0xff]  }
 0x52b   :  { %6095 = vmatpush2.bf16.msra.mxu0 %v13730_v7  ;;  %v13782_v7 = vld [vmem:[#allocation4 + $0x440] ss:$12 sps:$4 sm:$0xff]  }
 0x52c   :  { %6138 = vmatpush2.bf16.msra.mxu1 %v13733_v10  ;;  %6096 = vmatprep.subr.bf16.mxu0 %v13738_v11  ;;  %v13783_v10 = vld [vmem:[#allocation4 + $0x5c0] ss:$12 sps:$4 sm:$0xff]  }
 0x52d   :  { %6139 = vmatprep.subr.bf16.mxu1 %v13741_v49  ;;  %v13784_v11 = vld [vmem:[#allocation4 + $0x380] ss:$12 sps:$4 sm:$0xff]  }
 0x52e   :  { %v13785_v49 = vld [vmem:[#allocation4 + $0x500] ss:$12 sps:$4 sm:$0xff]  }
 0x52f   :  { %6097 = vmatpush2.bf16.msra.mxu0 %v13736_v8  ;;  %v13788_v8 = vld [vmem:[#allocation4 + $0x368] ss:$12 sps:$4 sm:$0xff]  }
 0x530   :  { %6140 = vmatpush2.bf16.msra.mxu1 %v13739_v12  ;;  %13301 = vmatprep.subr.bf16.mxu0 %v13742_v13  ;;  %v13789_v12 = vld [vmem:[#allocation4 + $0x4e8] ss:$12 sps:$4 sm:$0xff]   ;;  %v13790_v13 = vld [vmem:[#allocation4 + $0x410] ss:$12 sps:$4 sm:$0xff]  }
 0x531   :  { %13323 = vmatprep.subr.bf16.mxu1 %v13743_v14  ;;  %v13791_v14 = vld [vmem:[#allocation4 + $0x590] ss:$12 sps:$4 sm:$0xff]  }
 0x532   :  { %6099 = vmatmul.mubr.bf16.vlgmr.msra.gmra.mxu0 %v14497_v19 }
 0x533   :  { %6142 = vmatmul.mubr.bf16.vlgmr.msra.gmra.mxu1 %v14503_v17  ;;  %13302 = vmatpush3.bf16.msra.mxu0 %v13744_v15  ;;  %v13794_v15 = vld [vmem:[#allocation4 + $0x3f8] ss:$12 sps:$4 sm:$0xff]  }
 0x534   :  { %13324 = vmatpush3.bf16.msra.mxu1 %v13745_v24  ;;  %13303 = vmatprep.subr.bf16.mxu0 %v13746_v26  ;;  %v13795_v24 = vld [vmem:[#allocation4 + $0x578] ss:$12 sps:$4 sm:$0xff]  }
 0x535   :  { %13325 = vmatprep.subr.bf16.mxu1 %v13747_v27  ;;  %6184 = vmatprep.mubr.bf16.mxu0 %v14475_v48  ;;  %v13762_v48 = vld [vmem:[#allocation4 + $0xf8] ss:$12 sps:$4 sm:$0xff]  }
 0x536   :  { %6225 = vmatprep.mubr.bf16.mxu1 %v14491_v47  ;;  %v13763_v47 = vld [vmem:[#allocation4 + $0x278] ss:$12 sps:$4 sm:$0xff]  }
 0x537   :  { %13304 = vmatpush3.bf16.msra.mxu0 %v13748_v31  ;;  %v13796_v26 = vld [vmem:[#allocation4 + $0x338] ss:$12 sps:$4 sm:$0xff]   ;;  %v13798_v31 = vld [vmem:[#allocation4 + $0x3e0] ss:$12 sps:$4 sm:$0xff]  }
 0x538   :  { %13326 = vmatpush3.bf16.msra.mxu1 %v13749_v20  ;;  %13305 = vmatprep.subr.bf16.mxu0 %v13750_v28  ;;  %v13797_v27 = vld [vmem:[#allocation4 + $0x4b8] ss:$12 sps:$4 sm:$0xff]   ;;  %v13799_v20 = vld [vmem:[#allocation4 + $0x560] ss:$12 sps:$4 sm:$0xff]  }
 0x539   :  { %13327 = vmatprep.subr.bf16.mxu1 %v13751_v32  ;;  %v13800_v28 = vld [vmem:[#allocation4 + $0x320] ss:$12 sps:$4 sm:$0xff]  }
 0x53a   :  { %v13801_v32 = vld [vmem:[#allocation4 + $0x4a0] ss:$12 sps:$4 sm:$0xff]  }
 0x53b   :  { %13306 = vmatpush3.bf16.msra.mxu0 %v13752_v2  ;;  %v13802_v2 = vld [vmem:[#allocation4 + $0x3c8] ss:$12 sps:$4 sm:$0xff]  }
 0x53c   :  { %13328 = vmatpush3.bf16.msra.mxu1 %v13753_v33  ;;  %13307 = vmatprep.subr.bf16.mxu0 %v13754_v34  ;;  %v13803_v33 = vld [vmem:[#allocation4 + $0x548] ss:$12 sps:$4 sm:$0xff]  }
 0x53d   :  { %13329 = vmatprep.subr.bf16.mxu1 %v13755_v59  ;;  %v13804_v34 = vld [vmem:[#allocation4 + $0x308] ss:$12 sps:$4 sm:$0xff]  }
 0x53e   :  { %v13805_v59 = vld [vmem:[#allocation4 + $0x488] ss:$12 sps:$4 sm:$0xff]  }
 0x53f   :  { %13308 = vmatpush3.bf16.msra.mxu0 %v13756_v35 }
 0x540   :  { %13330 = vmatpush3.bf16.msra.mxu1 %v13757_v36  ;;  %13309 = vmatprep.subr.bf16.mxu0 %v13758_v37  ;;  %v4939_v37 = vld [vmem:[#allocation15] sm:$0x7] }
 0x541   :  { %13331 = vmatprep.subr.bf16.mxu1 %v13759_v39 }
 0x543   :  { %13310 = vmatpush3.bf16.msra.mxu0 %v13760_v40 }
 0x544   :  { %13332 = vmatpush3.bf16.msra.mxu1 %v13761_v41  ;;  %13311 = vmatprep.subr.bf16.mxu0 %v13762_v48  ;;  %v4944_v41 = vrot.slane %v4939_v37, %v14405_v18  ;;  %v4948_v48 = vrot.slane %v4939_v37, %v14409_v22 }
 0x545   :  { %13333 = vmatprep.subr.bf16.mxu1 %v13763_v47 }
 0x547   :  { %13312 = vmatpush3.bf16.msra.mxu0 %v13764_v43 }
 0x548   :  { %13334 = vmatpush3.bf16.msra.mxu1 %v13765_v44  ;;  %13313 = vmatprep.subr.bf16.mxu0 %v13766_v57 }
 0x549   :  { %13335 = vmatprep.subr.bf16.mxu1 %v13767_v58 }
 0x54b   :  { %13314 = vmatpush3.bf16.msra.mxu0 %v13768_v51 }
 0x54c   :  { %13336 = vmatpush3.bf16.msra.mxu1 %v13769_v60  ;;  %13315 = vmatprep.subr.bf16.mxu0 %v13770_v50 }
 0x54d   :  { %13337 = vmatprep.subr.bf16.mxu1 %v13771_v52 }
 0x54f   :  { %13316 = vmatpush3.bf16.msra.mxu0 %v13772_v61 }
 0x550   :  { %13338 = vmatpush3.bf16.msra.mxu1 %v13773_v62  ;;  %13345 = vmatprep.subr.bf16.mxu0 %v13774_v63 }
 0x551   :  { %13367 = vmatprep.subr.bf16.mxu1 %v13775_v29 }
 0x552   :  { %6185 = vmatmul.mubr.bf16.vlgmr.msra.gmra.mxu0 %v14473_v45  ;;  %v13786_v45 = vld [vmem:[#allocation4 + $0x428] ss:$12 sps:$4 sm:$0xff]  }
 0x553   :  { %6226 = vmatmul.mubr.bf16.vlgmr.msra.gmra.mxu1 %v14489_v38  ;;  %13346 = vmatpush3.bf16.msra.mxu0 %v13776_v0  ;;  %v13787_v38 = vld [vmem:[#allocation4 + $0x5a8] ss:$12 sps:$4 sm:$0xff]  }
 0x554   :  { %13368 = vmatpush3.bf16.msra.mxu1 %v13777_v1  ;;  %13347 = vmatprep.subr.bf16.mxu0 %v13778_v46 }
 0x555   :  { %13369 = vmatprep.subr.bf16.mxu1 %v13779_v42  ;;  %6266 = vmatprep.mubr.bf16.mxu0 %v14499_v30  ;;  %v13792_v30 = vld [vmem:[#allocation4 + $0x350] ss:$12 sps:$4 sm:$0xff]  }
 0x556   :  { %6307 = vmatprep.mubr.bf16.mxu1 %v14505_v25  ;;  %v13793_v25 = vld [vmem:[#allocation4 + $0x4d0] ss:$12 sps:$4 sm:$0xff]  }
 0x557   :  { %13348 = vmatpush3.bf16.msra.mxu0 %v13780_v5 }
 0x558   :  { %13370 = vmatpush3.bf16.msra.mxu1 %v13781_v9  ;;  %13349 = vmatprep.subr.bf16.mxu0 %v13782_v7 }
 0x559   :  { %13371 = vmatprep.subr.bf16.mxu1 %v13783_v10 }
 0x55b   :  { %13350 = vmatpush3.bf16.msra.mxu0 %v13784_v11 }
 0x55c   :  { %13372 = vmatpush3.bf16.msra.mxu1 %v13785_v49  ;;  %13351 = vmatprep.subr.bf16.mxu0 %v13786_v45 }
 0x55d   :  { %13373 = vmatprep.subr.bf16.mxu1 %v13787_v38 }
 0x55f   :  { %13352 = vmatpush3.bf16.msra.mxu0 %v13788_v8 }
 0x560   :  { %13374 = vmatpush3.bf16.msra.mxu1 %v13789_v12  ;;  %13353 = vmatprep.subr.bf16.mxu0 %v13790_v13 }
 0x561   :  { %13375 = vmatprep.subr.bf16.mxu1 %v13791_v14 }
 0x563   :  { %13354 = vmatpush3.bf16.msra.mxu0 %v13792_v30 }
 0x564   :  { %13376 = vmatpush3.bf16.msra.mxu1 %v13793_v25  ;;  %13355 = vmatprep.subr.bf16.mxu0 %v13794_v15 }
 0x565   :  { %13377 = vmatprep.subr.bf16.mxu1 %v13795_v24 }
 0x567   :  { %13356 = vmatpush3.bf16.msra.mxu0 %v13796_v26 }
 0x568   :  { %13378 = vmatpush3.bf16.msra.mxu1 %v13797_v27  ;;  %13357 = vmatprep.subr.bf16.mxu0 %v13798_v31 }
 0x569   :  { %13379 = vmatprep.subr.bf16.mxu1 %v13799_v20 }
 0x56b   :  { %13358 = vmatpush3.bf16.msra.mxu0 %v13800_v28 }
 0x56c   :  { %13380 = vmatpush3.bf16.msra.mxu1 %v13801_v32  ;;  %13359 = vmatprep.subr.bf16.mxu0 %v13802_v2  ;;  %v4952_v32 = vrot.slane %v4939_v37, %v14407_v21 }
 0x56d   :  { %13381 = vmatprep.subr.bf16.mxu1 %v13803_v33 }
 0x56f   :  { %13360 = vmatpush3.bf16.msra.mxu0 %v13804_v34 }
 0x570   :  { %13382 = vmatpush3.bf16.msra.mxu1 %v13805_v59 }
 0x572   :  { %6267 = vmatmul.mubr.bf16.vlgmr.msra.gmra.mxu0 %v14497_v19 }
 0x573   :  { %6308 = vmatmul.mubr.bf16.vlgmr.msra.gmra.mxu1 %v14503_v17 }
 0x5b2   :  { %v6014_v35 = vpop.f32.mrf.mxu0 }
 0x5b3   :  { %v6057_v36 = vpop.f32.mrf.mxu1  ;;  %v6015_v44 = vadd.f32 %v6014_v35, %v4944_v41 }
 0x5b4   :  { %v6016_v39 = vpop.f32.mrf.mxu0 }
 0x5b5   :  { %v6059_v40 = vpop.f32.mrf.mxu1  ;;  %v6017_v57 = vadd.f32 %v6016_v39, %v4948_v48  ;;  %v6058_v60 = vadd.f32 %v6057_v36, %v6015_v44 }
 0x5b6   :  { %v6018_v47 = vpop.f32.mrf.mxu0 }
 0x5b7   :  { %v6061_v43 = vpop.f32.mrf.mxu1  ;;  %v6019_v50 = vadd.f32 %v6018_v47, %v4944_v41  ;;  %v6060_v17 = vadd.f32 %v6059_v40, %v6017_v57 }
 0x5b8   :  { %v6020_v58 = vpop.f32.mrf.mxu0 }
 0x5b9   :  { %v6063_v51 = vpop.f32.mrf.mxu1  ;;  %v6021_v61 = vadd.f32 %v6020_v58, %v4948_v48  ;;  %v6062_v0 = vadd.f32 %v6061_v43, %v6019_v50 }
 0x5bb   :  { %v6064_v5 = vadd.f32 %v6063_v51, %v6021_v61 }
 0x5f2   :  { %v6100_v19 = vpop.f32.mrf.mxu0 }
 0x5f3   :  { %v6143_v52 = vpop.f32.mrf.mxu1  ;;  %v6101_v62 = vadd.f32 %v6100_v19, %v6058_v60 }
 0x5f4   :  { %v6102_v63 = vpop.f32.mrf.mxu0 }
 0x5f5   :  { %v6145_v29 = vpop.f32.mrf.mxu1  ;;  %v6103_v1 = vadd.f32 %v6102_v63, %v6060_v17  ;;  %v6144_v9 = vadd.f32 %v6143_v52, %v6101_v62 }
 0x5f6   :  { %v6104_v46 = vpop.f32.mrf.mxu0 }
 0x5f7   :  { %v6147_v42 = vpop.f32.mrf.mxu1  ;;  %v6105_v7 = vadd.f32 %v6104_v46, %v6062_v0  ;;  %v6146_v11 = vadd.f32 %v6145_v29, %v6103_v1  ;;  %v6316_v8 = vmax.f32 %v6144_v9, 0.0 }
 0x5f8   :  { %v6106_v10 = vpop.f32.mrf.mxu0 }
 0x5f9   :  { %v6148_v49 = vadd.f32 %v6147_v42, %v6105_v7  ;;  %v6107_v45 = vadd.f32 %v6106_v10, %v6064_v5  ;;  %v6149_v38 = vpop.f32.mrf.mxu1  ;;  %v6317_v14 = vmax.f32 %v6146_v11, 0.0 }
 0x5fb   :  { %v6319_v12 = vmax.f32 %v6148_v49, 0.0  ;;  %v6150_v13 = vadd.f32 %v6149_v38, %v6107_v45 }
 0x5fd   :  { %v14525_v30 = vpack.c.bf16 %v6319_v12, %v6316_v8  ;;  %v6320_v25 = vmax.f32 %v6150_v13, 0.0 }
 0x5ff   :  { %v6323_v15 = vpack.c.bf16 %v6320_v25, %v6317_v14 }
 0x612   :  { %v13317_v24 = vpop.f32.mrf.mxu0 }
 0x613   :  { %v13339_v26 = vpop.f32.mrf.mxu1 }
 0x614   :  { %v13318_v27 = vpop.f32.mrf.mxu0 }
 0x615   :  { %v13340_v31 = vpop.f32.mrf.mxu1  ;;  %v13319_v2 = vadd.f32 %v13318_v27, %v13317_v24 }
 0x616   :  { %v13320_v20 = vpop.f32.mrf.mxu0  ;;  %v13341_v35 = vadd.f32 %v13340_v31, %v13339_v26 }
 0x617   :  { %v13342_v28 = vpop.f32.mrf.mxu1  ;;  %v6187_v59 = vadd.f32 %v13319_v2, %v4952_v32 }
 0x618   :  { %v13321_v33 = vpop.f32.mrf.mxu0 }
 0x619   :  { %v13343_v34 = vpop.f32.mrf.mxu1  ;;  %v13322_v36 = vadd.f32 %v13321_v33, %v13320_v20  ;;  %v6228_v47 = vadd.f32 %v13341_v35, %v6187_v59 }
 0x61a   :  { %v13344_v51 = vadd.f32 %v13343_v34, %v13342_v28 }
 0x61b   :  { %v6190_v43 = vadd.f32 %v13322_v36, %v4952_v32 }
 0x61d   :  { %v6231_v37 = vadd.f32 %v13344_v51, %v6190_v43 }
 0x632   :  { %v13361_v39 = vpop.f32.mrf.mxu0 }
 0x633   :  { %v13383_v40 = vpop.f32.mrf.mxu1 }
 0x634   :  { %v13362_v41 = vpop.f32.mrf.mxu0 }
 0x635   :  { %v13384_v48 = vpop.f32.mrf.mxu1  ;;  %v13363_v44 = vadd.f32 %v13362_v41, %v13361_v39 }
 0x636   :  { %v13364_v57 = vpop.f32.mrf.mxu0  ;;  %v13385_v52 = vadd.f32 %v13384_v48, %v13383_v40 }
 0x637   :  { %v13386_v58 = vpop.f32.mrf.mxu1  ;;  %v6269_v60 = vadd.f32 %v13363_v44, %v6228_v47 }
 0x638   :  { %v13365_v50 = vpop.f32.mrf.mxu0 }
 0x639   :  { %v13387_v19 = vpop.f32.mrf.mxu1  ;;  %v13366_v17 = vadd.f32 %v13365_v50, %v13364_v57  ;;  %v6310_v61 = vadd.f32 %v13385_v52, %v6269_v60 }
 0x63a   :  { %v13388_v63 = vadd.f32 %v13387_v19, %v13386_v58 }
 0x63b   :  { %v6272_v62 = vadd.f32 %v13366_v17, %v6231_v37  ;;  %v6318_v0 = vmax.f32 %v6310_v61, 0.0 }
 0x63d   :  { %v6313_v29 = vadd.f32 %v13388_v63, %v6272_v62 }
 0x63f   :  { %v6321_v1 = vmax.f32 %v6313_v29, 0.0 }
 0x641   :  { %v14528_v46 = vpack.c.bf16 %v6321_v1, %v6318_v0 }
 0x642   :  { %14205 = dma.done.wait [#allocation9 + $0x3], 3072 }
 0x643   :  { %14206 = vsyncadd [#allocation9 + $0x3], 4294964224  ;;  %6560 = vmatprep.mubr.bf16.mxu0 %v6323_v15  ;;  %v14228_v42 = vmov 0.0   ;;  %vm14229_vm0 = vmmov 0   ;;  %v13806_v5 = vld [vmem:[#allocation5 + $0x78] sm:$0xff]   ;;  %v13809_v10 = vld [vmem:[#allocation5 + $0x70] sm:$0xff]  }
 0x644   :  { %13508 = vmatprep.subr.bf16.mxu1 %v14228_v42  ;;  %13524 = vmatprep.mubr.msk.bf16.mxu1 %vm14229_vm0, %v14228_v42  ;;  %v13807_v9 = vld [vmem:[#allocation5 + $0x38] sm:$0xff]   ;;  %v13810_v11 = vld [vmem:[#allocation5 + $0x30] sm:$0xff]   ;;  %v13812_v45 = vld [vmem:[#allocation5 + $0x68] sm:$0xff]   ;;  %v6612_v59 = vadd.f32 1e-20, %v14368_v3  ;;  %v6634_v29 = vand.u32 127, %v288_v16 }
 0x645   :  { %13389 = vmatprep.subr.bf16.mxu0 %v13806_v5  ;;  %v13808_v7 = vld [vmem:[#allocation5 + $0xb8] sm:$0xff]   ;;  %v13811_v49 = vld [vmem:[#allocation5 + $0xb0] sm:$0xff]   ;;  %v13813_v38 = vld [vmem:[#allocation5 + $0x28] sm:$0xff]   ;;  %v6613_v35 = vadd.f32 1e-20, %v14373_v4 }
 0x646   :  { %13390 = vmatpush3.bf16.msra.mxu0 %v13807_v9  ;;  %13509 = vmatpush3.bf16.msra.mxu1 %v13808_v7  ;;  %v13814_v8 = vld [vmem:[#allocation5 + $0xa8] sm:$0xff]   ;;  %v13815_v12 = vld [vmem:[#allocation5 + $0x60] sm:$0xff]   ;;  %v13818_v25 = vld [vmem:[#allocation5 + $0x58] sm:$0xff]   ;;  %13830 = vlog2.f32 %v6612_v59  ;;  %vm6635_vm1 = vcmp.lt.s32.totalorder %v6634_v29, 8 }
 0x647   :  { %13391 = vmatprep.subr.bf16.mxu0 %v13809_v10  ;;  %13510 = vmatprep.subr.bf16.mxu1 %v14228_v42  ;;  %v13816_v13 = vld [vmem:[#allocation5 + $0x20] sm:$0xff]   ;;  %v13819_v15 = vld [vmem:[#allocation5 + $0x18] sm:$0xff]   ;;  %v13821_v26 = vld [vmem:[#allocation5 + $0x50] sm:$0xff]   ;;  %13832 = vlog2.f32 %v6613_v35 }
 0x648   :  { %v13817_v14 = vld [vmem:[#allocation5 + $0xa0] sm:$0xff]   ;;  %v13820_v24 = vld [vmem:[#allocation5 + $0x98] sm:$0xff]   ;;  %v13822_v27 = vld [vmem:[#allocation5 + $0x10] sm:$0xff]  }
 0x649   :  { %v13823_v31 = vld [vmem:[#allocation5 + $0x90] sm:$0xff]   ;;  %v13824_v20 = vld [vmem:[#allocation5 + $0x48] sm:$0xff]   ;;  %v13827_v2 = vld [vmem:[#allocation5 + $0x40] sm:$0xff]  }
 0x64a   :  { %13392 = vmatpush3.bf16.msra.mxu0 %v13810_v11  ;;  %13511 = vmatpush3.bf16.msra.mxu1 %v13811_v49  ;;  %v13825_v28 = vld [vmem:[#allocation5 + $0x8] sm:$0xff]   ;;  %v13828_v33 = vld [vmem:[#allocation5] sm:$0xff]   ;;  %v12628_v60 = vld [vmem:[#allocation16] ss:$0 sm:$0xff] }
 0x64b   :  { %13393 = vmatprep.subr.bf16.mxu0 %v13812_v45  ;;  %13512 = vmatprep.subr.bf16.mxu1 %v14228_v42  ;;  %v13826_v32 = vld [vmem:[#allocation5 + $0x88] sm:$0xff]   ;;  %v13829_v34 = vld [vmem:[#allocation5 + $0x80] sm:$0xff]  }
 0x64e   :  { %13394 = vmatpush3.bf16.msra.mxu0 %v13813_v38  ;;  %13513 = vmatpush3.bf16.msra.mxu1 %v13814_v8 }
 0x64f   :  { %13395 = vmatprep.subr.bf16.mxu0 %v13815_v12  ;;  %13514 = vmatprep.subr.bf16.mxu1 %v14228_v42 }
 0x652   :  { %13396 = vmatpush3.bf16.msra.mxu0 %v13816_v13  ;;  %13515 = vmatpush3.bf16.msra.mxu1 %v13817_v14 }
 0x653   :  { %13397 = vmatprep.subr.bf16.mxu0 %v13818_v25  ;;  %13516 = vmatprep.subr.bf16.mxu1 %v14228_v42  ;;  %v13831_v36 = vpop.eup %13830 }
 0x654   :  { %v6615_v39 = vmul.f32 0.6931472, %v13831_v36  ;;  %v13833_v40 = vpop.eup %13832 }
 0x655   :  { %v6617_v48 = vmul.f32 0.6931472, %v13833_v40 }
 0x656   :  { %13398 = vmatpush3.bf16.msra.mxu0 %v13819_v15  ;;  %13517 = vmatpush3.bf16.msra.mxu1 %v13820_v24  ;;  %v6618_v41 = vsub.f32 0.0, %v6615_v39 }
 0x657   :  { %13399 = vmatprep.subr.bf16.mxu0 %v13821_v26  ;;  %13518 = vmatprep.subr.bf16.mxu1 %v14228_v42  ;;  %v6619_v43 = vsub.f32 0.0, %v6617_v48 }
 0x658   :  { %v6620_v47 = vadd.f32 1e-20, %v6618_v41 }
 0x659   :  { %v6621_v44 = vadd.f32 1e-20, %v6619_v43 }
 0x65a   :  { %13400 = vmatpush3.bf16.msra.mxu0 %v13822_v27  ;;  %13519 = vmatpush3.bf16.msra.mxu1 %v13823_v31  ;;  %13834 = vlog2.f32 %v6620_v47 }
 0x65b   :  { %13401 = vmatprep.subr.bf16.mxu0 %v13824_v20  ;;  %13520 = vmatprep.subr.bf16.mxu1 %v14228_v42  ;;  %13836 = vlog2.f32 %v6621_v44 }
 0x65e   :  { %13402 = vmatpush3.bf16.msra.mxu0 %v13825_v28  ;;  %13521 = vmatpush3.bf16.msra.mxu1 %v13826_v32 }
 0x65f   :  { %13403 = vmatprep.subr.bf16.mxu0 %v13827_v2  ;;  %13522 = vmatprep.subr.bf16.mxu1 %v14228_v42  ;;  %v6630_v42 = vstv %s14390_s8 }
 0x662   :  { %13404 = vmatpush3.bf16.msra.mxu0 %v13828_v33  ;;  %13523 = vmatpush3.bf16.msra.mxu1 %v13829_v34 }
 0x665   :  { %6561 = vmatmul.mubr.bf16.vlgmr.msra.gmra.mxu0 %v14525_v30  ;;  %13525 = vmatmul.mubr.bf16.vlgmr.msra.gmra.mxu1 %v14528_v46 }
 0x667   :  { %v13835_v57 = vpop.eup %13834 }
 0x668   :  { %v6623_v51 = vmul.f32 0.6931472, %v13835_v57  ;;  %v13837_v3 = vpop.eup %13836 }
 0x669   :  { %v6625_v62 = vmul.f32 0.6931472, %v13837_v3 }
 0x66a   :  { %v6626_v61 = vsub.f32 0.0, %v6623_v51 }
 0x66b   :  { %v6627_v7 = vsub.f32 0.0, %v6625_v62 }
 0x725   :  { %v13405_v30 = vpop.f32.mrf.mxu0  ;;  %v6603_v58 = vpop.f32.mrf.mxu1 }
 0x727   :  { %v13406_v50 = vpop.f32.mrf.mxu0  ;;  %v13526_v19 = vpop.f32.mrf.mxu1 }
 0x728   :  { %v13407_v4 = vadd.f32 %v13406_v50, %v13405_v30 }
 0x729   :  { %v13408_v37 = vpop.f32.mrf.mxu0  ;;  %v6606_v17 = vpop.f32.mrf.mxu1 }
 0x72a   :  { %v6563_v52 = vadd.f32 %v13407_v4, %v12628_v60 }
 0x72b   :  { %v13409_v63 = vpop.f32.mrf.mxu0  ;;  %v13527_v46 = vpop.f32.mrf.mxu1 }
 0x72c   :  { %v6604_v0 = vadd.f32 %v6603_v58, %v6563_v52  ;;  %v13410_v1 = vadd.f32 %v13409_v63, %v13408_v37 }
 0x72e   :  { %6610 = vst [vmem:[%s14674_s18] sm:$0xff] %v6604_v0  ;;  %v6566_v5 = vadd.f32 %v13410_v1, %v12628_v60  ;;  %v6628_v9 = vadd.f32 %v6626_v61, %v6604_v0 }
 0x730   :  { %v6607_v10 = vadd.f32 %v6606_v17, %v6566_v5  ;;  %v6631_v11 = vmul.f32 %v6630_v42, %v6628_v9 }
 0x732   :  { %6611 = vst [vmem:[%s14674_s18 + $0x8] sm:$0xff] %v6607_v10  ;;  %v6636_v16 = vsel %vm6635_vm1, %v6631_v11, -1e+30  ;;  %v6629_v49 = vadd.f32 %v6627_v7, %v6607_v10 }
 0x733   :  { %6638 = vmax.xlane.f32.xlu0 %v6636_v16 }
 0x734   :  { %v6632_v45 = vmul.f32 %v6630_v42, %v6629_v49 }
 0x736   :  { %v6637_v38 = vsel %vm6635_vm1, %v6632_v45, -1e+30 }
 0x737   :  { %6640 = vmax.xlane.f32.xlu0 %v6637_v38 }
 0x7bc   :  { %v6639_v8 = vpop.xlane.xlu0 %6638 }
 0x7bd   :  { %v6642_v12 = vsub.f32 %v6636_v16, %v6639_v8 }
 0x7bf   :  { %v6644_v13 = vmul.f32 1.442695, %v6642_v12 }
 0x7c0   :  { %v6641_v14 = vpop.xlane.xlu0 %6640 }
 0x7c1   :  { %13838 = vpow2.f32 %v6644_v13  ;;  %v6643_v25 = vsub.f32 %v6637_v38, %v6641_v14 }
 0x7c3   :  { %v6646_v15 = vmul.f32 1.442695, %v6643_v25 }
 0x7c5   :  { %13840 = vpow2.f32 %v6646_v15 }
 0x7ce   :  { %v13839_v24 = vpop.eup %13838 }
 0x7cf   :  { %v6648_v26 = vsel %vm6635_vm1, %v13839_v24, 0.0 }
 0x7d0   :  { %6650 = vadd.xlane.f32.xlu1 %v6648_v26 }
 0x7d2   :  { %v13841_v27 = vpop.eup %13840 }
 0x7d3   :  { %v6649_v31 = vsel %vm6635_vm1, %v13841_v27, 0.0 }
 0x7d4   :  { %6652 = vadd.xlane.f32.xlu1 %v6649_v31 }
 0x859   :  { %v6651_v20 = vpop.xlane.xlu1 %6650 }
 0x85a   :  { %13842 = vrcp.f32 %v6651_v20 }
 0x85d   :  { %v6653_v28 = vpop.xlane.xlu1 %6652 }
 0x85e   :  { %13844 = vrcp.f32 %v6653_v28 }
 0x867   :  { %v13843_v32 = vpop.eup %13842 }
 0x868   :  { %v6656_v33 = vmul.f32 %v13843_v32, %v6648_v26 }
 0x86b   :  { %v13845_v2 = vpop.eup %13844 }
 0x86c   :  { %v6657_v34 = vmul.f32 %v13845_v2, %v6649_v31 }
 0x86e   :  { %v14546_v59 = vpack.c.bf16 %v6657_v34, %v6656_v33 }
 0x86f   :  { %14207 = dma.done.wait [#allocation9 + $0x4], 8192 }
 0x870   :  { %14208 = vsyncadd [#allocation9 + $0x4], 4294959104  ;;  %7119 = vmatprep.mubr.bf16.mxu0 %v14227_v6  ;;  %7162 = vmatprep.mubr.bf16.mxu1 %v14227_v6  ;;  %v6717_v35 = vld [vmem:[#allocation6 + $0x1c0] sm:$0xff]  ;;  %v6718_v39 = vld [vmem:[#allocation6 + $0x1c8] sm:$0xff] }
 0x871   :  { %v6721_v36 = vld [vmem:[#allocation6 + $0x1e0] sm:$0xff]  ;;  %v6722_v41 = vld [vmem:[#allocation6 + $0x1e8] sm:$0xff] }
 0x872   :  { %v12710_v40 = vcombine.high %v6717_v35, %v6721_v36  ;;  %v12709_v48 = vcombine.low %v6717_v35, %v6721_v36  ;;  %v6709_v47 = vld [vmem:[#allocation6 + $0x180] sm:$0xff]  ;;  %v12712_v44 = vcombine.high %v6718_v39, %v6722_v41  ;;  %v12711_v57 = vcombine.low %v6718_v39, %v6722_v41  ;;  %v6710_v58 = vld [vmem:[#allocation6 + $0x188] sm:$0xff] }
 0x873   :  { %v6713_v43 = vld [vmem:[#allocation6 + $0x1a0] sm:$0xff]  ;;  %v6714_v51 = vld [vmem:[#allocation6 + $0x1a8] sm:$0xff] }
 0x874   :  { %v12702_v30 = vcombine.high %v6709_v47, %v6713_v43  ;;  %v6701_v3 = vld [vmem:[#allocation6 + $0x140] sm:$0xff]  ;;  %7087 = vmatprep.subr.bf16.mxu0 %v12710_v40  ;;  %v12704_v60 = vcombine.high %v6710_v58, %v6714_v51  ;;  %v6702_v4 = vld [vmem:[#allocation6 + $0x148] sm:$0xff]  ;;  %7130 = vmatprep.subr.bf16.mxu1 %v12712_v44  ;;  %v12701_v37 = vcombine.low %v6709_v47, %v6713_v43  ;;  %v6719_v44 = vld [vmem:[#allocation6 + $0x1d0] sm:$0xff] }
 0x875   :  { %v6705_v50 = vld [vmem:[#allocation6 + $0x160] sm:$0xff]  ;;  %v6706_v19 = vld [vmem:[#allocation6 + $0x168] sm:$0xff]  ;;  %7088 = vmatpush1.bf16.msra.mxu0 %v12709_v48  ;;  %7131 = vmatpush1.bf16.msra.mxu1 %v12711_v57  ;;  %v12703_v52 = vcombine.low %v6710_v58, %v6714_v51  ;;  %v6723_v57 = vld [vmem:[#allocation6 + $0x1f0] sm:$0xff] }
 0x876   :  { %7089 = vmatprep.subr.bf16.mxu0 %v12702_v30  ;;  %v12694_v17 = vcombine.high %v6701_v3, %v6705_v50  ;;  %7132 = vmatprep.subr.bf16.mxu1 %v12704_v60  ;;  %v12696_v61 = vcombine.high %v6702_v4, %v6706_v19  ;;  %v6693_v62 = vld [vmem:[#allocation6 + $0x100] sm:$0xff]  ;;  %v6694_v29 = vld [vmem:[#allocation6 + $0x108] sm:$0xff]  ;;  %v12693_v1 = vcombine.low %v6701_v3, %v6705_v50  ;;  %v6720_v30 = vld [vmem:[#allocation6 + $0x1d8] sm:$0xff] }
 0x877   :  { %v6697_v63 = vld [vmem:[#allocation6 + $0x120] sm:$0xff]  ;;  %v6698_v0 = vld [vmem:[#allocation6 + $0x128] sm:$0xff]  ;;  %v12695_v46 = vcombine.low %v6702_v4, %v6706_v19  ;;  %v6724_v58 = vld [vmem:[#allocation6 + $0x1f8] sm:$0xff]  ;;  %v12714_v60 = vcombine.high %v6719_v44, %v6723_v57 }
 0x878   :  { %v12686_v42 = vcombine.high %v6693_v62, %v6697_v63  ;;  %v12688_v5 = vcombine.high %v6694_v29, %v6698_v0  ;;  %v6685_v9 = vld [vmem:[#allocation6 + $0xc0] sm:$0xff]  ;;  %v6686_v10 = vld [vmem:[#allocation6 + $0xc8] sm:$0xff]  ;;  %v12685_v16 = vcombine.low %v6693_v62, %v6697_v63  ;;  %v12687_v49 = vcombine.low %v6694_v29, %v6698_v0  ;;  %v6711_v4 = vld [vmem:[#allocation6 + $0x190] sm:$0xff] }
 0x879   :  { %7090 = vmatpush1.bf16.msra.mxu0 %v12701_v37  ;;  %7133 = vmatpush1.bf16.msra.mxu1 %v12703_v52  ;;  %v6689_v7 = vld [vmem:[#allocation6 + $0xe0] sm:$0xff]  ;;  %v6690_v11 = vld [vmem:[#allocation6 + $0xe8] sm:$0xff]  ;;  %v12716_v50 = vcombine.high %v6720_v30, %v6724_v58  ;;  %v6715_v19 = vld [vmem:[#allocation6 + $0x1b0] sm:$0xff] }
 0x87a   :  { %7091 = vmatprep.subr.bf16.mxu0 %v12694_v17  ;;  %7134 = vmatprep.subr.bf16.mxu1 %v12696_v61  ;;  %v12678_v45 = vcombine.high %v6685_v9, %v6689_v7  ;;  %v12680_v38 = vcombine.high %v6686_v10, %v6690_v11  ;;  %v6677_v8 = vld [vmem:[#allocation6 + $0x80] sm:$0xff]  ;;  %v6678_v13 = vld [vmem:[#allocation6 + $0x88] sm:$0xff]  ;;  %v12677_v25 = vcombine.low %v6685_v9, %v6689_v7  ;;  %v6712_v37 = vld [vmem:[#allocation6 + $0x198] sm:$0xff] }
 0x87b   :  { %v6681_v12 = vld [vmem:[#allocation6 + $0xa0] sm:$0xff]  ;;  %v6682_v14 = vld [vmem:[#allocation6 + $0xa8] sm:$0xff]  ;;  %v12679_v15 = vcombine.low %v6686_v10, %v6690_v11  ;;  %v6716_v52 = vld [vmem:[#allocation6 + $0x1b8] sm:$0xff]  ;;  %v12713_v17 = vcombine.low %v6719_v44, %v6723_v57  ;;  %v12715_v61 = vcombine.low %v6720_v30, %v6724_v58  ;;  %v12706_v62 = vcombine.high %v6711_v4, %v6715_v19 }
 0x87c   :  { %v12670_v24 = vcombine.high %v6677_v8, %v6681_v12  ;;  %v12672_v26 = vcombine.high %v6678_v13, %v6682_v14  ;;  %v6669_v27 = vld [vmem:[#allocation6 + $0x40] sm:$0xff]  ;;  %v6670_v20 = vld [vmem:[#allocation6 + $0x48] sm:$0xff]  ;;  %v12669_v32 = vcombine.low %v6677_v8, %v6681_v12  ;;  %v12671_v2 = vcombine.low %v6678_v13, %v6682_v14  ;;  %v6703_v29 = vld [vmem:[#allocation6 + $0x150] sm:$0xff] }
 0x87d   :  { %7092 = vmatpush1.bf16.msra.mxu0 %v12693_v1  ;;  %7135 = vmatpush1.bf16.msra.mxu1 %v12695_v46  ;;  %v6673_v31 = vld [vmem:[#allocation6 + $0x60] sm:$0xff]  ;;  %v6674_v28 = vld [vmem:[#allocation6 + $0x68] sm:$0xff]  ;;  %v12708_v63 = vcombine.high %v6712_v37, %v6716_v52  ;;  %v6707_v0 = vld [vmem:[#allocation6 + $0x170] sm:$0xff] }
 0x87e   :  { %7093 = vmatprep.subr.bf16.mxu0 %v12686_v42  ;;  %7136 = vmatprep.subr.bf16.mxu1 %v12688_v5  ;;  %v12662_v33 = vcombine.high %v6669_v27, %v6673_v31  ;;  %v12664_v34 = vcombine.high %v6670_v20, %v6674_v28  ;;  %v6661_v35 = vld [vmem:[#allocation6] sm:$0xff]  ;;  %v6662_v39 = vld [vmem:[#allocation6 + $0x8] sm:$0xff]  ;;  %v12661_v41 = vcombine.low %v6669_v27, %v6673_v31  ;;  %v6704_v1 = vld [vmem:[#allocation6 + $0x158] sm:$0xff] }
 0x87f   :  { %v6665_v36 = vld [vmem:[#allocation6 + $0x20] sm:$0xff]  ;;  %v6666_v40 = vld [vmem:[#allocation6 + $0x28] sm:$0xff]  ;;  %v12663_v48 = vcombine.low %v6670_v20, %v6674_v28  ;;  %v6708_v46 = vld [vmem:[#allocation6 + $0x178] sm:$0xff]  ;;  %v12705_v42 = vcombine.low %v6711_v4, %v6715_v19  ;;  %v12707_v5 = vcombine.low %v6712_v37, %v6716_v52  ;;  %v12698_v9 = vcombine.high %v6703_v29, %v6707_v0 }
 0x880   :  { %v12654_v47 = vcombine.high %v6661_v35, %v6665_v36  ;;  %v12656_v43 = vcombine.high %v6662_v39, %v6666_v40  ;;  %v12653_v51 = vcombine.low %v6661_v35, %v6665_v36  ;;  %v12655_v3 = vcombine.low %v6662_v39, %v6666_v40  ;;  %v6695_v10 = vld [vmem:[#allocation6 + $0x110] sm:$0xff]  ;;  %v6680_v28 = vld [vmem:[#allocation6 + $0x98] sm:$0xff] }
 0x881   :  { %7094 = vmatpush1.bf16.msra.mxu0 %v12685_v16  ;;  %7137 = vmatpush1.bf16.msra.mxu1 %v12687_v49  ;;  %v12700_v7 = vcombine.high %v6704_v1, %v6708_v46  ;;  %v6699_v11 = vld [vmem:[#allocation6 + $0x130] sm:$0xff]  ;;  %v6696_v16 = vld [vmem:[#allocation6 + $0x118] sm:$0xff] }
 0x882   :  { %7095 = vmatprep.subr.bf16.mxu0 %v12678_v45  ;;  %7138 = vmatprep.subr.bf16.mxu1 %v12680_v38  ;;  %v6700_v49 = vld [vmem:[#allocation6 + $0x138] sm:$0xff]  ;;  %v12697_v45 = vcombine.low %v6703_v29, %v6707_v0  ;;  %v12699_v38 = vcombine.low %v6704_v1, %v6708_v46  ;;  %v12690_v8 = vcombine.high %v6695_v10, %v6699_v11  ;;  %v6687_v13 = vld [vmem:[#allocation6 + $0xd0] sm:$0xff] }
 0x883   :  { %v12692_v12 = vcombine.high %v6696_v16, %v6700_v49  ;;  %v6691_v14 = vld [vmem:[#allocation6 + $0xf0] sm:$0xff]  ;;  %v6672_v40 = vld [vmem:[#allocation6 + $0x58] sm:$0xff] }
 0x884   :  { %v12682_v27 = vcombine.high %v6687_v13, %v6691_v14  ;;  %v6679_v31 = vld [vmem:[#allocation6 + $0x90] sm:$0xff]  ;;  %v6664_v58 = vld [vmem:[#allocation6 + $0x18] sm:$0xff] }
 0x885   :  { %7096 = vmatpush1.bf16.msra.mxu0 %v12677_v25  ;;  %7139 = vmatpush1.bf16.msra.mxu1 %v12679_v15  ;;  %v6688_v25 = vld [vmem:[#allocation6 + $0xd8] sm:$0xff]  ;;  %v6683_v20 = vld [vmem:[#allocation6 + $0xb0] sm:$0xff] }
 0x886   :  { %7097 = vmatprep.subr.bf16.mxu0 %v12670_v24  ;;  %7140 = vmatprep.subr.bf16.mxu1 %v12672_v26  ;;  %v6692_v15 = vld [vmem:[#allocation6 + $0xf8] sm:$0xff]  ;;  %v12689_v24 = vcombine.low %v6695_v10, %v6699_v11  ;;  %v12691_v26 = vcombine.low %v6696_v16, %v6700_v49  ;;  %v6671_v36 = vld [vmem:[#allocation6 + $0x50] sm:$0xff] }
 0x887   :  { %v6675_v39 = vld [vmem:[#allocation6 + $0x70] sm:$0xff] }
 0x888   :  { %v6663_v57 = vld [vmem:[#allocation6 + $0x10] sm:$0xff] }
 0x889   :  { %7098 = vmatpush1.bf16.msra.mxu0 %v12669_v32  ;;  %7141 = vmatpush1.bf16.msra.mxu1 %v12671_v2  ;;  %v6684_v32 = vld [vmem:[#allocation6 + $0xb8] sm:$0xff]  ;;  %v12681_v2 = vcombine.low %v6687_v13, %v6691_v14  ;;  %v6667_v30 = vld [vmem:[#allocation6 + $0x30] sm:$0xff] }
 0x88a   :  { %7099 = vmatprep.subr.bf16.mxu0 %v12662_v33  ;;  %7142 = vmatprep.subr.bf16.mxu1 %v12664_v34  ;;  %v12683_v33 = vcombine.low %v6688_v25, %v6692_v15  ;;  %v12674_v34 = vcombine.high %v6679_v31, %v6683_v20  ;;  %v12676_v35 = vcombine.high %v6680_v28, %v6684_v32  ;;  %v6725_v52 = vld [vmem:[#allocation18] sm:$0xff] }
 0x88b   :  { %v12657_v19 = vcombine.low %v6663_v57, %v6667_v30  ;;  %v6734_v29 = vrot.slane %v6725_v52, %v14409_v22  ;;  %v6742_v1 = vrot.slane %v6725_v52, %v14411_v23 }
 0x88d   :  { %7100 = vmatpush1.bf16.msra.mxu0 %v12661_v41  ;;  %7143 = vmatpush1.bf16.msra.mxu1 %v12663_v48  ;;  %v6676_v41 = vld [vmem:[#allocation6 + $0x78] sm:$0xff]  ;;  %v12673_v48 = vcombine.low %v6679_v31, %v6683_v20 }
 0x88e   :  { %7101 = vmatprep.subr.bf16.mxu0 %v12654_v47  ;;  %7144 = vmatprep.subr.bf16.mxu1 %v12656_v43  ;;  %v12675_v47 = vcombine.low %v6680_v28, %v6684_v32  ;;  %v12666_v43 = vcombine.high %v6671_v36, %v6675_v39  ;;  %v12668_v44 = vcombine.high %v6672_v40, %v6676_v41 }
 0x88f   :  { %v6746_v32 = vrot.slane %v6725_v52, %v14425_v53 }
 0x891   :  { %7102 = vmatpush1.bf16.msra.mxu0 %v12653_v51  ;;  %7145 = vmatpush1.bf16.msra.mxu1 %v12655_v3  ;;  %v6668_v51 = vld [vmem:[#allocation6 + $0x38] sm:$0xff]  ;;  %v12665_v3 = vcombine.low %v6671_v36, %v6675_v39  ;;  %v6758_v39 = vrot.slane %v6725_v52, %v14431_v56 }
 0x892   :  { %7173 = vmatprep.subr.bf16.mxu0 %v12714_v60  ;;  %7216 = vmatprep.subr.bf16.mxu1 %v12716_v50  ;;  %v12667_v60 = vcombine.low %v6672_v40, %v6676_v41  ;;  %v12658_v50 = vcombine.high %v6663_v57, %v6667_v30  ;;  %v12660_v4 = vcombine.high %v6664_v58, %v6668_v51 }
 0x893   :  { %v12659_v37 = vcombine.low %v6664_v58, %v6668_v51 }
 0x894   :  { %7120 = vmatmul.mubr.bf16.vlgmr.msra.gmra.mxu0 %v14546_v59  ;;  %7163 = vmatmul.mubr.bf16.vlgmr.msra.gmra.mxu1 %v14546_v59 }
 0x895   :  { %7174 = vmatpush1.bf16.msra.mxu0 %v12713_v17  ;;  %7217 = vmatpush1.bf16.msra.mxu1 %v12715_v61  ;;  %v6730_v17 = vrot.slane %v6725_v52, %v14405_v18 }
 0x896   :  { %7175 = vmatprep.subr.bf16.mxu0 %v12706_v62  ;;  %7218 = vmatprep.subr.bf16.mxu1 %v12708_v63  ;;  %v6738_v62 = vrot.slane %v6725_v52, %v14407_v21 }
 0x897   :  { %7205 = vmatprep.mubr.bf16.mxu0 %v14227_v6  ;;  %7248 = vmatprep.mubr.bf16.mxu1 %v14227_v6  ;;  %v12684_v6 = vcombine.high %v6688_v25, %v6692_v15 }
 0x899   :  { %7176 = vmatpush1.bf16.msra.mxu0 %v12705_v42  ;;  %7219 = vmatpush1.bf16.msra.mxu1 %v12707_v5 }
 0x89a   :  { %7177 = vmatprep.subr.bf16.mxu0 %v12698_v9  ;;  %7220 = vmatprep.subr.bf16.mxu1 %v12700_v7 }
 0x89d   :  { %7178 = vmatpush1.bf16.msra.mxu0 %v12697_v45  ;;  %7221 = vmatpush1.bf16.msra.mxu1 %v12699_v38 }
 0x89e   :  { %7179 = vmatprep.subr.bf16.mxu0 %v12690_v8  ;;  %7222 = vmatprep.subr.bf16.mxu1 %v12692_v12 }
 0x8a1   :  { %7180 = vmatpush1.bf16.msra.mxu0 %v12689_v24  ;;  %7223 = vmatpush1.bf16.msra.mxu1 %v12691_v26 }
 0x8a2   :  { %7181 = vmatprep.subr.bf16.mxu0 %v12682_v27  ;;  %7224 = vmatprep.subr.bf16.mxu1 %v12684_v6 }
 0x8a5   :  { %7182 = vmatpush1.bf16.msra.mxu0 %v12681_v2  ;;  %7225 = vmatpush1.bf16.msra.mxu1 %v12683_v33  ;;  %v6754_v33 = vrot.slane %v6725_v52, %v14427_v54 }
 0x8a6   :  { %7183 = vmatprep.subr.bf16.mxu0 %v12674_v34  ;;  %7226 = vmatprep.subr.bf16.mxu1 %v12676_v35  ;;  %v6750_v35 = vrot.slane %v6725_v52, %v14429_v55 }
 0x8a9   :  { %7184 = vmatpush1.bf16.msra.mxu0 %v12673_v48  ;;  %7227 = vmatpush1.bf16.msra.mxu1 %v12675_v47 }
 0x8aa   :  { %7185 = vmatprep.subr.bf16.mxu0 %v12666_v43  ;;  %7228 = vmatprep.subr.bf16.mxu1 %v12668_v44 }
 0x8ad   :  { %7186 = vmatpush1.bf16.msra.mxu0 %v12665_v3  ;;  %7229 = vmatpush1.bf16.msra.mxu1 %v12667_v60 }
 0x8ae   :  { %7187 = vmatprep.subr.bf16.mxu0 %v12658_v50  ;;  %7230 = vmatprep.subr.bf16.mxu1 %v12660_v4 }
 0x8b1   :  { %7188 = vmatpush1.bf16.msra.mxu0 %v12657_v19  ;;  %7231 = vmatpush1.bf16.msra.mxu1 %v12659_v37 }
 0x8b4   :  { %7206 = vmatmul.mubr.bf16.vlgmr.msra.gmra.mxu0 %v14546_v59  ;;  %7249 = vmatmul.mubr.bf16.vlgmr.msra.gmra.mxu1 %v14546_v59 }
 0x954   :  { %v7121_v61 = vpop.f32.mrf.mxu0  ;;  %v7164_v63 = vpop.f32.mrf.mxu1 }
 0x955   :  { %v7122_v46 = vadd.f32 %v7121_v61, %v6730_v17  ;;  %v7165_v5 = vadd.f32 %v7164_v63, %v6738_v62 }
 0x956   :  { %v7123_v0 = vpop.f32.mrf.mxu0  ;;  %v7166_v42 = vpop.f32.mrf.mxu1 }
 0x957   :  { %v7124_v7 = vadd.f32 %v7123_v0, %v6734_v29  ;;  %v7167_v59 = vadd.f32 %v7166_v42, %v6742_v1  ;;  %v7259_v45 = vmax.f32 %v7122_v46, 0.0  ;;  %v7261_v13 = vmax.f32 %v7165_v5, 0.0 }
 0x958   :  { %v7125_v9 = vpop.f32.mrf.mxu0  ;;  %v7168_v11 = vpop.f32.mrf.mxu1 }
 0x959   :  { %v7126_v10 = vadd.f32 %v7125_v9, %v6730_v17  ;;  %v7169_v16 = vadd.f32 %v7168_v11, %v6738_v62  ;;  %v7260_v15 = vmax.f32 %v7124_v7, 0.0  ;;  %v7262_v27 = vmax.f32 %v7167_v59, 0.0 }
 0x95a   :  { %v7127_v49 = vpop.f32.mrf.mxu0  ;;  %v7170_v12 = vpop.f32.mrf.mxu1 }
 0x95b   :  { %v7267_v38 = vmax.f32 %v7126_v10, 0.0  ;;  %v7128_v8 = vadd.f32 %v7127_v49, %v6734_v29  ;;  %v7269_v14 = vmax.f32 %v7169_v16, 0.0  ;;  %v7171_v25 = vadd.f32 %v7170_v12, %v6742_v1 }
 0x95d   :  { %v14560_v24 = vpack.c.bf16 %v7267_v38, %v7259_v45  ;;  %v7268_v26 = vmax.f32 %v7128_v8, 0.0  ;;  %v14562_v6 = vpack.c.bf16 %v7269_v14, %v7261_v13  ;;  %v7270_v31 = vmax.f32 %v7171_v25, 0.0 }
 0x95f   :  { %v14564_v20 = vpack.c.bf16 %v7268_v26, %v7260_v15  ;;  %v14566_v28 = vpack.c.bf16 %v7270_v31, %v7262_v27 }
 0x974   :  { %v7207_v2 = vpop.f32.mrf.mxu0  ;;  %v7250_v34 = vpop.f32.mrf.mxu1 }
 0x975   :  { %v7208_v40 = vadd.f32 %v7207_v2, %v6746_v32  ;;  %v7251_v48 = vadd.f32 %v7250_v34, %v6754_v33 }
 0x976   :  { %v7209_v36 = vpop.f32.mrf.mxu0  ;;  %v7252_v41 = vpop.f32.mrf.mxu1 }
 0x977   :  { %v7210_v43 = vadd.f32 %v7209_v36, %v6750_v35  ;;  %v7253_v30 = vadd.f32 %v7252_v41, %v6758_v39  ;;  %v7263_v3 = vmax.f32 %v7208_v40, 0.0  ;;  %v7265_v19 = vmax.f32 %v7251_v48, 0.0 }
 0x978   :  { %v7211_v47 = vpop.f32.mrf.mxu0  ;;  %v7254_v57 = vpop.f32.mrf.mxu1 }
 0x979   :  { %v7212_v44 = vadd.f32 %v7211_v47, %v6746_v32  ;;  %v7255_v58 = vadd.f32 %v7254_v57, %v6754_v33  ;;  %v7264_v61 = vmax.f32 %v7210_v43, 0.0  ;;  %v7266_v63 = vmax.f32 %v7253_v30, 0.0 }
 0x97a   :  { %v7213_v51 = vpop.f32.mrf.mxu0  ;;  %v7256_v4 = vpop.f32.mrf.mxu1 }
 0x97b   :  { %v7271_v60 = vmax.f32 %v7212_v44, 0.0  ;;  %v7214_v50 = vadd.f32 %v7213_v51, %v6750_v35  ;;  %v7273_v37 = vmax.f32 %v7255_v58, 0.0  ;;  %v7257_v17 = vadd.f32 %v7256_v4, %v6758_v39 }
 0x97d   :  { %v14572_v62 = vpack.c.bf16 %v7271_v60, %v7263_v3  ;;  %v7272_v52 = vmax.f32 %v7214_v50, 0.0  ;;  %v14574_v29 = vpack.c.bf16 %v7273_v37, %v7265_v19  ;;  %v7274_v0 = vmax.f32 %v7257_v17, 0.0 }
 0x97f   :  { %v14576_v1 = vpack.c.bf16 %v7272_v52, %v7264_v61  ;;  %v14578_v46 = vpack.c.bf16 %v7274_v0, %v7266_v63 }
 0x980   :  { %14209 = dma.done.wait [#allocation9 + $0x5], 65536 }
 0x981   :  { %14210 = vsyncadd [#allocation9 + $0x5], 4294901760  ;;  %10431 = vmatprep.mubr.bf16.mxu0 %v14564_v20  ;;  %10474 = vmatprep.mubr.bf16.mxu1 %v14566_v28  ;;  %v7341_v42 = vld [vmem:[#allocation7 + $0x1c0] sm:$0xff] }
 0x982   :  { %v7345_v5 = vld [vmem:[#allocation7 + $0x1e0] sm:$0xff] }
 0x983   :  { %v7469_v9 = vld [vmem:[#allocation7 + $0x5c0] sm:$0xff]  ;;  %v12774_v7 = vcombine.high %v7341_v42, %v7345_v5  ;;  %v12773_v11 = vcombine.low %v7341_v42, %v7345_v5 }
 0x984   :  { %v7473_v10 = vld [vmem:[#allocation7 + $0x5e0] sm:$0xff] }
 0x985   :  { %v7333_v59 = vld [vmem:[#allocation7 + $0x180] sm:$0xff]  ;;  %v12902_v49 = vcombine.high %v7469_v9, %v7473_v10  ;;  %v12901_v45 = vcombine.low %v7469_v9, %v7473_v10  ;;  %10399 = vmatprep.subr.bf16.mxu0 %v12774_v7 }
 0x986   :  { %v7337_v16 = vld [vmem:[#allocation7 + $0x1a0] sm:$0xff]  ;;  %10400 = vmatpush1.bf16.msra.mxu0 %v12773_v11 }
 0x987   :  { %v12766_v38 = vcombine.high %v7333_v59, %v7337_v16  ;;  %v7461_v8 = vld [vmem:[#allocation7 + $0x580] sm:$0xff]  ;;  %10442 = vmatprep.subr.bf16.mxu1 %v12902_v49  ;;  %v12765_v27 = vcombine.low %v7333_v59, %v7337_v16 }
 0x988   :  { %v7465_v12 = vld [vmem:[#allocation7 + $0x5a0] sm:$0xff]  ;;  %10443 = vmatpush1.bf16.msra.mxu1 %v12901_v45 }
 0x989   :  { %v7325_v13 = vld [vmem:[#allocation7 + $0x140] sm:$0xff]  ;;  %v12894_v14 = vcombine.high %v7461_v8, %v7465_v12  ;;  %10401 = vmatprep.subr.bf16.mxu0 %v12766_v38  ;;  %v12893_v31 = vcombine.low %v7461_v8, %v7465_v12 }
 0x98a   :  { %v7329_v25 = vld [vmem:[#allocation7 + $0x160] sm:$0xff]  ;;  %10402 = vmatpush1.bf16.msra.mxu0 %v12765_v27 }
 0x98b   :  { %v7453_v15 = vld [vmem:[#allocation7 + $0x540] sm:$0xff]  ;;  %v12758_v32 = vcombine.high %v7325_v13, %v7329_v25  ;;  %10444 = vmatprep.subr.bf16.mxu1 %v12894_v14  ;;  %v12757_v39 = vcombine.low %v7325_v13, %v7329_v25 }
 0x98c   :  { %v7457_v26 = vld [vmem:[#allocation7 + $0x560] sm:$0xff]  ;;  %10445 = vmatpush1.bf16.msra.mxu1 %v12893_v31 }
 0x98d   :  { %v12886_v2 = vcombine.high %v7453_v15, %v7457_v26  ;;  %v7317_v33 = vld [vmem:[#allocation7 + $0x100] sm:$0xff]  ;;  %10403 = vmatprep.subr.bf16.mxu0 %v12758_v32  ;;  %v12885_v40 = vcombine.low %v7453_v15, %v7457_v26 }
 0x98e   :  { %v7321_v34 = vld [vmem:[#allocation7 + $0x120] sm:$0xff]  ;;  %10404 = vmatpush1.bf16.msra.mxu0 %v12757_v39 }
 0x98f   :  { %v7445_v35 = vld [vmem:[#allocation7 + $0x500] sm:$0xff]  ;;  %v12750_v41 = vcombine.high %v7317_v33, %v7321_v34  ;;  %10446 = vmatprep.subr.bf16.mxu1 %v12886_v2  ;;  %v12749_v30 = vcombine.low %v7317_v33, %v7321_v34 }
 0x990   :  { %v7449_v36 = vld [vmem:[#allocation7 + $0x520] sm:$0xff]  ;;  %10447 = vmatpush1.bf16.msra.mxu1 %v12885_v40 }
 0x991   :  { %v12878_v48 = vcombine.high %v7445_v35, %v7449_v36  ;;  %v7309_v47 = vld [vmem:[#allocation7 + $0xc0] sm:$0xff]  ;;  %10405 = vmatprep.subr.bf16.mxu0 %v12750_v41  ;;  %v12877_v58 = vcombine.low %v7445_v35, %v7449_v36 }
 0x992   :  { %v7313_v43 = vld [vmem:[#allocation7 + $0xe0] sm:$0xff]  ;;  %10406 = vmatpush1.bf16.msra.mxu0 %v12749_v30 }
 0x993   :  { %v7437_v44 = vld [vmem:[#allocation7 + $0x4c0] sm:$0xff]  ;;  %v12742_v51 = vcombine.high %v7309_v47, %v7313_v43  ;;  %10448 = vmatprep.subr.bf16.mxu1 %v12878_v48  ;;  %v12741_v37 = vcombine.low %v7309_v47, %v7313_v43 }
 0x994   :  { %v7441_v57 = vld [vmem:[#allocation7 + $0x4e0] sm:$0xff]  ;;  %10449 = vmatpush1.bf16.msra.mxu1 %v12877_v58 }
 0x995   :  { %v12870_v3 = vcombine.high %v7437_v44, %v7441_v57  ;;  %v7301_v60 = vld [vmem:[#allocation7 + $0x80] sm:$0xff]  ;;  %10407 = vmatprep.subr.bf16.mxu0 %v12742_v51  ;;  %v12869_v17 = vcombine.low %v7437_v44, %v7441_v57 }
 0x996   :  { %v7305_v50 = vld [vmem:[#allocation7 + $0xa0] sm:$0xff]  ;;  %10408 = vmatpush1.bf16.msra.mxu0 %v12741_v37 }
 0x997   :  { %v7429_v4 = vld [vmem:[#allocation7 + $0x480] sm:$0xff]  ;;  %v12734_v61 = vcombine.high %v7301_v60, %v7305_v50  ;;  %10450 = vmatprep.subr.bf16.mxu1 %v12870_v3  ;;  %v12733_v9 = vcombine.low %v7301_v60, %v7305_v50 }
 0x998   :  { %v7433_v19 = vld [vmem:[#allocation7 + $0x4a0] sm:$0xff]  ;;  %10451 = vmatpush1.bf16.msra.mxu1 %v12869_v17 }
 0x999   :  { %v12862_v52 = vcombine.high %v7429_v4, %v7433_v19  ;;  %v7293_v63 = vld [vmem:[#allocation7 + $0x40] sm:$0xff]  ;;  %10409 = vmatprep.subr.bf16.mxu0 %v12734_v61  ;;  %v12861_v7 = vcombine.low %v7429_v4, %v7433_v19 }
 0x99a   :  { %v7297_v0 = vld [vmem:[#allocation7 + $0x60] sm:$0xff]  ;;  %10410 = vmatpush1.bf16.msra.mxu0 %v12733_v9 }
 0x99b   :  { %v7421_v42 = vld [vmem:[#allocation7 + $0x440] sm:$0xff]  ;;  %v12726_v10 = vcombine.high %v7293_v63, %v7297_v0  ;;  %10452 = vmatprep.subr.bf16.mxu1 %v12862_v52  ;;  %v12725_v38 = vcombine.low %v7293_v63, %v7297_v0 }
 0x99c   :  { %v7425_v5 = vld [vmem:[#allocation7 + $0x460] sm:$0xff]  ;;  %10453 = vmatpush1.bf16.msra.mxu1 %v12861_v7 }
 0x99d   :  { %v12854_v11 = vcombine.high %v7421_v42, %v7425_v5  ;;  %v7285_v59 = vld [vmem:[#allocation7] sm:$0xff]  ;;  %10411 = vmatprep.subr.bf16.mxu0 %v12726_v10  ;;  %v12853_v8 = vcombine.low %v7421_v42, %v7425_v5 }
 0x99e   :  { %v7289_v16 = vld [vmem:[#allocation7 + $0x20] sm:$0xff]  ;;  %10412 = vmatpush1.bf16.msra.mxu0 %v12725_v38 }
 0x99f   :  { %v7413_v49 = vld [vmem:[#allocation7 + $0x400] sm:$0xff]  ;;  %v12718_v12 = vcombine.high %v7285_v59, %v7289_v16  ;;  %10454 = vmatprep.subr.bf16.mxu1 %v12854_v11  ;;  %v12717_v27 = vcombine.low %v7285_v59, %v7289_v16 }
 0x9a0   :  { %v7417_v45 = vld [vmem:[#allocation7 + $0x420] sm:$0xff]  ;;  %10455 = vmatpush1.bf16.msra.mxu1 %v12853_v8 }
 0x9a1   :  { %v12846_v13 = vcombine.high %v7413_v49, %v7417_v45  ;;  %v7405_v14 = vld [vmem:[#allocation7 + $0x3c0] sm:$0xff]  ;;  %10413 = vmatprep.subr.bf16.mxu0 %v12718_v12  ;;  %v12845_v31 = vcombine.low %v7413_v49, %v7417_v45 }
 0x9a2   :  { %v7409_v25 = vld [vmem:[#allocation7 + $0x3e0] sm:$0xff]  ;;  %10414 = vmatpush1.bf16.msra.mxu0 %v12717_v27 }
 0x9a3   :  { %v7533_v15 = vld [vmem:[#allocation7 + $0x7c0] sm:$0xff]  ;;  %v12838_v32 = vcombine.high %v7405_v14, %v7409_v25  ;;  %10456 = vmatprep.subr.bf16.mxu1 %v12846_v13  ;;  %v12837_v39 = vcombine.low %v7405_v14, %v7409_v25 }
 0x9a4   :  { %v7537_v26 = vld [vmem:[#allocation7 + $0x7e0] sm:$0xff]  ;;  %10457 = vmatpush1.bf16.msra.mxu1 %v12845_v31 }
 0x9a5   :  { %v12966_v2 = vcombine.high %v7533_v15, %v7537_v26  ;;  %v7397_v33 = vld [vmem:[#allocation7 + $0x380] sm:$0xff]  ;;  %10415 = vmatprep.subr.bf16.mxu0 %v12838_v32  ;;  %v12965_v40 = vcombine.low %v7533_v15, %v7537_v26 }
 0x9a6   :  { %v7401_v34 = vld [vmem:[#allocation7 + $0x3a0] sm:$0xff]  ;;  %10416 = vmatpush2.bf16.msra.mxu0 %v12837_v39 }
 0x9a7   :  { %v7525_v35 = vld [vmem:[#allocation7 + $0x780] sm:$0xff]  ;;  %v12830_v41 = vcombine.high %v7397_v33, %v7401_v34  ;;  %10458 = vmatprep.subr.bf16.mxu1 %v12966_v2  ;;  %v12829_v30 = vcombine.low %v7397_v33, %v7401_v34 }
 0x9a8   :  { %v7529_v36 = vld [vmem:[#allocation7 + $0x7a0] sm:$0xff]  ;;  %10459 = vmatpush2.bf16.msra.mxu1 %v12965_v40 }
 0x9a9   :  { %v12958_v48 = vcombine.high %v7525_v35, %v7529_v36  ;;  %v7389_v47 = vld [vmem:[#allocation7 + $0x340] sm:$0xff]  ;;  %10417 = vmatprep.subr.bf16.mxu0 %v12830_v41  ;;  %v12957_v58 = vcombine.low %v7525_v35, %v7529_v36 }
 0x9aa   :  { %v7393_v43 = vld [vmem:[#allocation7 + $0x360] sm:$0xff]  ;;  %10418 = vmatpush2.bf16.msra.mxu0 %v12829_v30 }
 0x9ab   :  { %v7517_v44 = vld [vmem:[#allocation7 + $0x740] sm:$0xff]  ;;  %v12822_v51 = vcombine.high %v7389_v47, %v7393_v43  ;;  %10460 = vmatprep.subr.bf16.mxu1 %v12958_v48  ;;  %v12821_v37 = vcombine.low %v7389_v47, %v7393_v43 }
 0x9ac   :  { %v7521_v57 = vld [vmem:[#allocation7 + $0x760] sm:$0xff]  ;;  %10461 = vmatpush2.bf16.msra.mxu1 %v12957_v58 }
 0x9ad   :  { %v12950_v3 = vcombine.high %v7517_v44, %v7521_v57  ;;  %v7381_v60 = vld [vmem:[#allocation7 + $0x300] sm:$0xff]  ;;  %10419 = vmatprep.subr.bf16.mxu0 %v12822_v51  ;;  %v12949_v17 = vcombine.low %v7517_v44, %v7521_v57 }
 0x9ae   :  { %v7385_v50 = vld [vmem:[#allocation7 + $0x320] sm:$0xff]  ;;  %10420 = vmatpush2.bf16.msra.mxu0 %v12821_v37 }
 0x9af   :  { %v7509_v4 = vld [vmem:[#allocation7 + $0x700] sm:$0xff]  ;;  %v12814_v61 = vcombine.high %v7381_v60, %v7385_v50  ;;  %10462 = vmatprep.subr.bf16.mxu1 %v12950_v3  ;;  %v12813_v9 = vcombine.low %v7381_v60, %v7385_v50 }
 0x9b0   :  { %v7513_v19 = vld [vmem:[#allocation7 + $0x720] sm:$0xff]  ;;  %10463 = vmatpush2.bf16.msra.mxu1 %v12949_v17 }
 0x9b1   :  { %v12942_v52 = vcombine.high %v7509_v4, %v7513_v19  ;;  %v7373_v63 = vld [vmem:[#allocation7 + $0x2c0] sm:$0xff]  ;;  %10421 = vmatprep.subr.bf16.mxu0 %v12814_v61  ;;  %v12941_v7 = vcombine.low %v7509_v4, %v7513_v19 }
 0x9b2   :  { %v7377_v0 = vld [vmem:[#allocation7 + $0x2e0] sm:$0xff]  ;;  %10422 = vmatpush2.bf16.msra.mxu0 %v12813_v9 }
 0x9b3   :  { %v7501_v42 = vld [vmem:[#allocation7 + $0x6c0] sm:$0xff]  ;;  %v12806_v10 = vcombine.high %v7373_v63, %v7377_v0  ;;  %10464 = vmatprep.subr.bf16.mxu1 %v12942_v52  ;;  %v12805_v38 = vcombine.low %v7373_v63, %v7377_v0 }
 0x9b4   :  { %v7505_v5 = vld [vmem:[#allocation7 + $0x6e0] sm:$0xff]  ;;  %10465 = vmatpush2.bf16.msra.mxu1 %v12941_v7 }
 0x9b5   :  { %v12934_v11 = vcombine.high %v7501_v42, %v7505_v5  ;;  %v7365_v59 = vld [vmem:[#allocation7 + $0x280] sm:$0xff]  ;;  %10423 = vmatprep.subr.bf16.mxu0 %v12806_v10  ;;  %v12933_v8 = vcombine.low %v7501_v42, %v7505_v5 }
 0x9b6   :  { %v7369_v16 = vld [vmem:[#allocation7 + $0x2a0] sm:$0xff]  ;;  %10424 = vmatpush2.bf16.msra.mxu0 %v12805_v38 }
 0x9b7   :  { %v7493_v49 = vld [vmem:[#allocation7 + $0x680] sm:$0xff]  ;;  %v12798_v12 = vcombine.high %v7365_v59, %v7369_v16  ;;  %10466 = vmatprep.subr.bf16.mxu1 %v12934_v11  ;;  %v12797_v27 = vcombine.low %v7365_v59, %v7369_v16 }
 0x9b8   :  { %v7497_v45 = vld [vmem:[#allocation7 + $0x6a0] sm:$0xff]  ;;  %10467 = vmatpush2.bf16.msra.mxu1 %v12933_v8 }
 0x9b9   :  { %v12926_v13 = vcombine.high %v7493_v49, %v7497_v45  ;;  %v7357_v14 = vld [vmem:[#allocation7 + $0x240] sm:$0xff]  ;;  %10425 = vmatprep.subr.bf16.mxu0 %v12798_v12  ;;  %v12925_v31 = vcombine.low %v7493_v49, %v7497_v45 }
 0x9ba   :  { %v7361_v25 = vld [vmem:[#allocation7 + $0x260] sm:$0xff]  ;;  %10426 = vmatpush2.bf16.msra.mxu0 %v12797_v27 }
 0x9bb   :  { %v7485_v15 = vld [vmem:[#allocation7 + $0x640] sm:$0xff]  ;;  %v12790_v32 = vcombine.high %v7357_v14, %v7361_v25  ;;  %10468 = vmatprep.subr.bf16.mxu1 %v12926_v13  ;;  %v12789_v39 = vcombine.low %v7357_v14, %v7361_v25 }
 0x9bc   :  { %v7489_v26 = vld [vmem:[#allocation7 + $0x660] sm:$0xff]  ;;  %10469 = vmatpush2.bf16.msra.mxu1 %v12925_v31 }
 0x9bd   :  { %v12918_v2 = vcombine.high %v7485_v15, %v7489_v26  ;;  %v7349_v33 = vld [vmem:[#allocation7 + $0x200] sm:$0xff]  ;;  %10427 = vmatprep.subr.bf16.mxu0 %v12790_v32  ;;  %v12917_v40 = vcombine.low %v7485_v15, %v7489_v26 }
 0x9be   :  { %v7353_v34 = vld [vmem:[#allocation7 + $0x220] sm:$0xff]  ;;  %10428 = vmatpush2.bf16.msra.mxu0 %v12789_v39 }
 0x9bf   :  { %v7477_v35 = vld [vmem:[#allocation7 + $0x600] sm:$0xff]  ;;  %v12782_v41 = vcombine.high %v7349_v33, %v7353_v34  ;;  %10470 = vmatprep.subr.bf16.mxu1 %v12918_v2  ;;  %v12781_v30 = vcombine.low %v7349_v33, %v7353_v34 }
 0x9c0   :  { %v7481_v36 = vld [vmem:[#allocation7 + $0x620] sm:$0xff]  ;;  %10471 = vmatpush2.bf16.msra.mxu1 %v12917_v40 }
 0x9c1   :  { %v12910_v48 = vcombine.high %v7477_v35, %v7481_v36  ;;  %v7597_v47 = vld [vmem:[#allocation7 + $0x9c0] sm:$0xff]  ;;  %10429 = vmatprep.subr.bf16.mxu0 %v12782_v41  ;;  %v12909_v58 = vcombine.low %v7477_v35, %v7481_v36 }
 0x9c2   :  { %v7601_v43 = vld [vmem:[#allocation7 + $0x9e0] sm:$0xff]  ;;  %10430 = vmatpush2.bf16.msra.mxu0 %v12781_v30 }
 0x9c3   :  { %v7725_v44 = vld [vmem:[#allocation7 + $0xdc0] sm:$0xff]  ;;  %v13030_v51 = vcombine.high %v7597_v47, %v7601_v43  ;;  %10472 = vmatprep.subr.bf16.mxu1 %v12910_v48  ;;  %v13029_v37 = vcombine.low %v7597_v47, %v7601_v43 }
 0x9c4   :  { %v7729_v57 = vld [vmem:[#allocation7 + $0xde0] sm:$0xff]  ;;  %10473 = vmatpush2.bf16.msra.mxu1 %v12909_v58 }
 0x9c5   :  { %v13158_v3 = vcombine.high %v7725_v44, %v7729_v57  ;;  %v7589_v60 = vld [vmem:[#allocation7 + $0x980] sm:$0xff]  ;;  %10485 = vmatprep.subr.bf16.mxu0 %v13030_v51  ;;  %v13157_v17 = vcombine.low %v7725_v44, %v7729_v57  ;;  %10432 = vmatmul.mubr.bf16.vlgmr.msra.gmra.mxu0 %v14560_v24 }
 0x9c6   :  { %v7593_v50 = vld [vmem:[#allocation7 + $0x9a0] sm:$0xff]  ;;  %10486 = vmatpush1.bf16.msra.mxu0 %v13029_v37  ;;  %10517 = vmatprep.mubr.bf16.mxu0 %v14576_v1 }
 0x9c7   :  { %v7717_v4 = vld [vmem:[#allocation7 + $0xd80] sm:$0xff]  ;;  %v13022_v61 = vcombine.high %v7589_v60, %v7593_v50  ;;  %10528 = vmatprep.subr.bf16.mxu1 %v13158_v3  ;;  %10475 = vmatmul.mubr.bf16.vlgmr.msra.gmra.mxu1 %v14562_v6  ;;  %v13021_v9 = vcombine.low %v7589_v60, %v7593_v50 }
 0x9c8   :  { %v7721_v19 = vld [vmem:[#allocation7 + $0xda0] sm:$0xff]  ;;  %10529 = vmatpush1.bf16.msra.mxu1 %v13157_v17  ;;  %10560 = vmatprep.mubr.bf16.mxu1 %v14578_v46 }
 0x9c9   :  { %v13150_v52 = vcombine.high %v7717_v4, %v7721_v19  ;;  %v7581_v63 = vld [vmem:[#allocation7 + $0x940] sm:$0xff]  ;;  %10487 = vmatprep.subr.bf16.mxu0 %v13022_v61  ;;  %v13149_v7 = vcombine.low %v7717_v4, %v7721_v19 }
 0x9ca   :  { %v7585_v0 = vld [vmem:[#allocation7 + $0x960] sm:$0xff]  ;;  %10488 = vmatpush1.bf16.msra.mxu0 %v13021_v9 }
 0x9cb   :  { %v7709_v42 = vld [vmem:[#allocation7 + $0xd40] sm:$0xff]  ;;  %v13014_v10 = vcombine.high %v7581_v63, %v7585_v0  ;;  %10530 = vmatprep.subr.bf16.mxu1 %v13150_v52  ;;  %v13013_v38 = vcombine.low %v7581_v63, %v7585_v0 }
 0x9cc   :  { %v7713_v5 = vld [vmem:[#allocation7 + $0xd60] sm:$0xff]  ;;  %10531 = vmatpush1.bf16.msra.mxu1 %v13149_v7 }
 0x9cd   :  { %v13142_v11 = vcombine.high %v7709_v42, %v7713_v5  ;;  %v7573_v59 = vld [vmem:[#allocation7 + $0x900] sm:$0xff]  ;;  %10489 = vmatprep.subr.bf16.mxu0 %v13014_v10  ;;  %v13141_v8 = vcombine.low %v7709_v42, %v7713_v5 }
 0x9ce   :  { %v7577_v16 = vld [vmem:[#allocation7 + $0x920] sm:$0xff]  ;;  %10490 = vmatpush1.bf16.msra.mxu0 %v13013_v38 }
 0x9cf   :  { %v7701_v49 = vld [vmem:[#allocation7 + $0xd00] sm:$0xff]  ;;  %v13006_v12 = vcombine.high %v7573_v59, %v7577_v16  ;;  %10532 = vmatprep.subr.bf16.mxu1 %v13142_v11  ;;  %v13005_v27 = vcombine.low %v7573_v59, %v7577_v16 }
 0x9d0   :  { %v7705_v45 = vld [vmem:[#allocation7 + $0xd20] sm:$0xff]  ;;  %10533 = vmatpush1.bf16.msra.mxu1 %v13141_v8 }
 0x9d1   :  { %v13134_v13 = vcombine.high %v7701_v49, %v7705_v45  ;;  %v7565_v14 = vld [vmem:[#allocation7 + $0x8c0] sm:$0xff]  ;;  %10491 = vmatprep.subr.bf16.mxu0 %v13006_v12  ;;  %v13133_v31 = vcombine.low %v7701_v49, %v7705_v45 }
 0x9d2   :  { %v7569_v25 = vld [vmem:[#allocation7 + $0x8e0] sm:$0xff]  ;;  %10492 = vmatpush1.bf16.msra.mxu0 %v13005_v27 }
 0x9d3   :  { %v7693_v15 = vld [vmem:[#allocation7 + $0xcc0] sm:$0xff]  ;;  %v12998_v32 = vcombine.high %v7565_v14, %v7569_v25  ;;  %10534 = vmatprep.subr.bf16.mxu1 %v13134_v13  ;;  %v12997_v39 = vcombine.low %v7565_v14, %v7569_v25 }
 0x9d4   :  { %v7697_v26 = vld [vmem:[#allocation7 + $0xce0] sm:$0xff]  ;;  %10535 = vmatpush1.bf16.msra.mxu1 %v13133_v31 }
 0x9d5   :  { %v13126_v2 = vcombine.high %v7693_v15, %v7697_v26  ;;  %v7557_v33 = vld [vmem:[#allocation7 + $0x880] sm:$0xff]  ;;  %10493 = vmatprep.subr.bf16.mxu0 %v12998_v32  ;;  %v13125_v40 = vcombine.low %v7693_v15, %v7697_v26 }
 0x9d6   :  { %v7561_v34 = vld [vmem:[#allocation7 + $0x8a0] sm:$0xff]  ;;  %10494 = vmatpush1.bf16.msra.mxu0 %v12997_v39 }
 0x9d7   :  { %v7685_v35 = vld [vmem:[#allocation7 + $0xc80] sm:$0xff]  ;;  %v12990_v41 = vcombine.high %v7557_v33, %v7561_v34  ;;  %10536 = vmatprep.subr.bf16.mxu1 %v13126_v2  ;;  %v12989_v30 = vcombine.low %v7557_v33, %v7561_v34 }
 0x9d8   :  { %v7689_v36 = vld [vmem:[#allocation7 + $0xca0] sm:$0xff]  ;;  %10537 = vmatpush1.bf16.msra.mxu1 %v13125_v40 }
 0x9d9   :  { %v13118_v48 = vcombine.high %v7685_v35, %v7689_v36  ;;  %v7549_v47 = vld [vmem:[#allocation7 + $0x840] sm:$0xff]  ;;  %10495 = vmatprep.subr.bf16.mxu0 %v12990_v41  ;;  %v13117_v58 = vcombine.low %v7685_v35, %v7689_v36 }
 0x9da   :  { %v7553_v43 = vld [vmem:[#allocation7 + $0x860] sm:$0xff]  ;;  %10496 = vmatpush1.bf16.msra.mxu0 %v12989_v30 }
 0x9db   :  { %v7677_v44 = vld [vmem:[#allocation7 + $0xc40] sm:$0xff]  ;;  %v12982_v51 = vcombine.high %v7549_v47, %v7553_v43  ;;  %10538 = vmatprep.subr.bf16.mxu1 %v13118_v48  ;;  %v12981_v37 = vcombine.low %v7549_v47, %v7553_v43 }
 0x9dc   :  { %v7681_v57 = vld [vmem:[#allocation7 + $0xc60] sm:$0xff]  ;;  %10539 = vmatpush1.bf16.msra.mxu1 %v13117_v58 }
 0x9dd   :  { %v13110_v3 = vcombine.high %v7677_v44, %v7681_v57  ;;  %v7541_v60 = vld [vmem:[#allocation7 + $0x800] sm:$0xff]  ;;  %10497 = vmatprep.subr.bf16.mxu0 %v12982_v51  ;;  %v13109_v17 = vcombine.low %v7677_v44, %v7681_v57 }
 0x9de   :  { %v7545_v50 = vld [vmem:[#allocation7 + $0x820] sm:$0xff]  ;;  %10498 = vmatpush1.bf16.msra.mxu0 %v12981_v37 }
 0x9df   :  { %v7669_v4 = vld [vmem:[#allocation7 + $0xc00] sm:$0xff]  ;;  %v12974_v61 = vcombine.high %v7541_v60, %v7545_v50  ;;  %10540 = vmatprep.subr.bf16.mxu1 %v13110_v3  ;;  %v12973_v9 = vcombine.low %v7541_v60, %v7545_v50 }
 0x9e0   :  { %v7673_v19 = vld [vmem:[#allocation7 + $0xc20] sm:$0xff]  ;;  %10541 = vmatpush1.bf16.msra.mxu1 %v13109_v17 }
 0x9e1   :  { %v13102_v52 = vcombine.high %v7669_v4, %v7673_v19  ;;  %v7661_v63 = vld [vmem:[#allocation7 + $0xbc0] sm:$0xff]  ;;  %10499 = vmatprep.subr.bf16.mxu0 %v12974_v61  ;;  %v13101_v7 = vcombine.low %v7669_v4, %v7673_v19 }
 0x9e2   :  { %v7665_v0 = vld [vmem:[#allocation7 + $0xbe0] sm:$0xff]  ;;  %10500 = vmatpush1.bf16.msra.mxu0 %v12973_v9 }
 0x9e3   :  { %v7789_v42 = vld [vmem:[#allocation7 + $0xfc0] sm:$0xff]  ;;  %v13094_v10 = vcombine.high %v7661_v63, %v7665_v0  ;;  %10542 = vmatprep.subr.bf16.mxu1 %v13102_v52  ;;  %v13093_v38 = vcombine.low %v7661_v63, %v7665_v0 }
 0x9e4   :  { %v7793_v5 = vld [vmem:[#allocation7 + $0xfe0] sm:$0xff]  ;;  %10543 = vmatpush1.bf16.msra.mxu1 %v13101_v7 }
 0x9e5   :  { %v13222_v11 = vcombine.high %v7789_v42, %v7793_v5  ;;  %v7653_v59 = vld [vmem:[#allocation7 + $0xb80] sm:$0xff]  ;;  %10501 = vmatprep.subr.bf16.mxu0 %v13094_v10  ;;  %v13221_v8 = vcombine.low %v7789_v42, %v7793_v5 }
 0x9e6   :  { %v7657_v16 = vld [vmem:[#allocation7 + $0xba0] sm:$0xff]  ;;  %10502 = vmatpush2.bf16.msra.mxu0 %v13093_v38 }
 0x9e7   :  { %v7781_v49 = vld [vmem:[#allocation7 + $0xf80] sm:$0xff]  ;;  %v13086_v12 = vcombine.high %v7653_v59, %v7657_v16  ;;  %10544 = vmatprep.subr.bf16.mxu1 %v13222_v11  ;;  %v13085_v27 = vcombine.low %v7653_v59, %v7657_v16 }
 0x9e8   :  { %v7785_v45 = vld [vmem:[#allocation7 + $0xfa0] sm:$0xff]  ;;  %10545 = vmatpush2.bf16.msra.mxu1 %v13221_v8 }
 0x9e9   :  { %v13214_v13 = vcombine.high %v7781_v49, %v7785_v45  ;;  %v7645_v14 = vld [vmem:[#allocation7 + $0xb40] sm:$0xff]  ;;  %10503 = vmatprep.subr.bf16.mxu0 %v13086_v12  ;;  %v13213_v31 = vcombine.low %v7781_v49, %v7785_v45 }
 0x9ea   :  { %v7649_v25 = vld [vmem:[#allocation7 + $0xb60] sm:$0xff]  ;;  %10504 = vmatpush2.bf16.msra.mxu0 %v13085_v27 }
 0x9eb   :  { %v7773_v15 = vld [vmem:[#allocation7 + $0xf40] sm:$0xff]  ;;  %v13078_v32 = vcombine.high %v7645_v14, %v7649_v25  ;;  %10546 = vmatprep.subr.bf16.mxu1 %v13214_v13  ;;  %v13077_v39 = vcombine.low %v7645_v14, %v7649_v25  ;;  %v7342_v14 = vld [vmem:[#allocation7 + $0x1c8] sm:$0xff] }
 0x9ec   :  { %v7777_v26 = vld [vmem:[#allocation7 + $0xf60] sm:$0xff]  ;;  %10547 = vmatpush2.bf16.msra.mxu1 %v13213_v31  ;;  %v7346_v25 = vld [vmem:[#allocation7 + $0x1e8] sm:$0xff] }
 0x9ed   :  { %v13206_v2 = vcombine.high %v7773_v15, %v7777_v26  ;;  %v7637_v33 = vld [vmem:[#allocation7 + $0xb00] sm:$0xff]  ;;  %10505 = vmatprep.subr.bf16.mxu0 %v13078_v32  ;;  %v13205_v40 = vcombine.low %v7773_v15, %v7777_v26  ;;  %v7470_v15 = vld [vmem:[#allocation7 + $0x5c8] sm:$0xff]  ;;  %v12776_v32 = vcombine.high %v7342_v14, %v7346_v25 }
 0x9ee   :  { %v7641_v34 = vld [vmem:[#allocation7 + $0xb20] sm:$0xff]  ;;  %10506 = vmatpush2.bf16.msra.mxu0 %v13077_v39  ;;  %v7474_v26 = vld [vmem:[#allocation7 + $0x5e8] sm:$0xff]  ;;  %v12775_v39 = vcombine.low %v7342_v14, %v7346_v25 }
 0x9ef   :  { %v7765_v35 = vld [vmem:[#allocation7 + $0xf00] sm:$0xff]  ;;  %v13070_v41 = vcombine.high %v7637_v33, %v7641_v34  ;;  %10548 = vmatprep.subr.bf16.mxu1 %v13206_v2  ;;  %v13069_v30 = vcombine.low %v7637_v33, %v7641_v34  ;;  %v12904_v2 = vcombine.high %v7470_v15, %v7474_v26  ;;  %v7334_v33 = vld [vmem:[#allocation7 + $0x188] sm:$0xff] }
 0x9f0   :  { %v7769_v36 = vld [vmem:[#allocation7 + $0xf20] sm:$0xff]  ;;  %10549 = vmatpush2.bf16.msra.mxu1 %v13205_v40  ;;  %v7338_v34 = vld [vmem:[#allocation7 + $0x1a8] sm:$0xff]  ;;  %v12903_v40 = vcombine.low %v7470_v15, %v7474_v26 }
 0x9f1   :  { %v13198_v48 = vcombine.high %v7765_v35, %v7769_v36  ;;  %v7629_v47 = vld [vmem:[#allocation7 + $0xac0] sm:$0xff]  ;;  %10507 = vmatprep.subr.bf16.mxu0 %v13070_v41  ;;  %v13197_v58 = vcombine.low %v7765_v35, %v7769_v36  ;;  %v7462_v35 = vld [vmem:[#allocation7 + $0x588] sm:$0xff]  ;;  %v12768_v41 = vcombine.high %v7334_v33, %v7338_v34 }
 0x9f2   :  { %v7633_v43 = vld [vmem:[#allocation7 + $0xae0] sm:$0xff]  ;;  %10508 = vmatpush2.bf16.msra.mxu0 %v13069_v30  ;;  %v7466_v36 = vld [vmem:[#allocation7 + $0x5a8] sm:$0xff]  ;;  %v12767_v30 = vcombine.low %v7334_v33, %v7338_v34 }
 0x9f3   :  { %v7757_v44 = vld [vmem:[#allocation7 + $0xec0] sm:$0xff]  ;;  %v13062_v51 = vcombine.high %v7629_v47, %v7633_v43  ;;  %10550 = vmatprep.subr.bf16.mxu1 %v13198_v48  ;;  %v13061_v37 = vcombine.low %v7629_v47, %v7633_v43  ;;  %v12896_v48 = vcombine.high %v7462_v35, %v7466_v36  ;;  %v7326_v47 = vld [vmem:[#allocation7 + $0x148] sm:$0xff] }
 0x9f4   :  { %v7761_v57 = vld [vmem:[#allocation7 + $0xee0] sm:$0xff]  ;;  %10551 = vmatpush2.bf16.msra.mxu1 %v13197_v58  ;;  %v7330_v43 = vld [vmem:[#allocation7 + $0x168] sm:$0xff]  ;;  %v12895_v58 = vcombine.low %v7462_v35, %v7466_v36 }
 0x9f5   :  { %v13190_v3 = vcombine.high %v7757_v44, %v7761_v57  ;;  %v7621_v60 = vld [vmem:[#allocation7 + $0xa80] sm:$0xff]  ;;  %10509 = vmatprep.subr.bf16.mxu0 %v13062_v51  ;;  %v13189_v17 = vcombine.low %v7757_v44, %v7761_v57  ;;  %v7454_v44 = vld [vmem:[#allocation7 + $0x548] sm:$0xff]  ;;  %v12760_v51 = vcombine.high %v7326_v47, %v7330_v43 }
 0x9f6   :  { %v7625_v50 = vld [vmem:[#allocation7 + $0xaa0] sm:$0xff]  ;;  %10510 = vmatpush2.bf16.msra.mxu0 %v13061_v37  ;;  %v7458_v57 = vld [vmem:[#allocation7 + $0x568] sm:$0xff]  ;;  %v12759_v37 = vcombine.low %v7326_v47, %v7330_v43 }
 0x9f7   :  { %v7749_v4 = vld [vmem:[#allocation7 + $0xe80] sm:$0xff]  ;;  %v13054_v61 = vcombine.high %v7621_v60, %v7625_v50  ;;  %10552 = vmatprep.subr.bf16.mxu1 %v13190_v3  ;;  %v13053_v9 = vcombine.low %v7621_v60, %v7625_v50  ;;  %v12888_v3 = vcombine.high %v7454_v44, %v7458_v57  ;;  %v7318_v60 = vld [vmem:[#allocation7 + $0x108] sm:$0xff] }
 0x9f8   :  { %v7753_v19 = vld [vmem:[#allocation7 + $0xea0] sm:$0xff]  ;;  %10553 = vmatpush2.bf16.msra.mxu1 %v13189_v17  ;;  %v7322_v50 = vld [vmem:[#allocation7 + $0x128] sm:$0xff]  ;;  %v12887_v17 = vcombine.low %v7454_v44, %v7458_v57 }
 0x9f9   :  { %v13182_v52 = vcombine.high %v7749_v4, %v7753_v19  ;;  %v7613_v63 = vld [vmem:[#allocation7 + $0xa40] sm:$0xff]  ;;  %10511 = vmatprep.subr.bf16.mxu0 %v13054_v61  ;;  %v13181_v7 = vcombine.low %v7749_v4, %v7753_v19  ;;  %v7446_v4 = vld [vmem:[#allocation7 + $0x508] sm:$0xff]  ;;  %v12752_v61 = vcombine.high %v7318_v60, %v7322_v50 }
 0x9fa   :  { %v7617_v0 = vld [vmem:[#allocation7 + $0xa60] sm:$0xff]  ;;  %10512 = vmatpush2.bf16.msra.mxu0 %v13053_v9  ;;  %v7450_v19 = vld [vmem:[#allocation7 + $0x528] sm:$0xff]  ;;  %v12751_v9 = vcombine.low %v7318_v60, %v7322_v50 }
 0x9fb   :  { %v7741_v42 = vld [vmem:[#allocation7 + $0xe40] sm:$0xff]  ;;  %v13046_v10 = vcombine.high %v7613_v63, %v7617_v0  ;;  %10554 = vmatprep.subr.bf16.mxu1 %v13182_v52  ;;  %v13045_v38 = vcombine.low %v7613_v63, %v7617_v0  ;;  %v12880_v52 = vcombine.high %v7446_v4, %v7450_v19  ;;  %v7310_v63 = vld [vmem:[#allocation7 + $0xc8] sm:$0xff] }
 0x9fc   :  { %v7745_v5 = vld [vmem:[#allocation7 + $0xe60] sm:$0xff]  ;;  %10555 = vmatpush2.bf16.msra.mxu1 %v13181_v7  ;;  %v7314_v0 = vld [vmem:[#allocation7 + $0xe8] sm:$0xff]  ;;  %v12879_v7 = vcombine.low %v7446_v4, %v7450_v19 }
 0x9fd   :  { %v13174_v11 = vcombine.high %v7741_v42, %v7745_v5  ;;  %v7605_v59 = vld [vmem:[#allocation7 + $0xa00] sm:$0xff]  ;;  %10513 = vmatprep.subr.bf16.mxu0 %v13046_v10  ;;  %v13173_v8 = vcombine.low %v7741_v42, %v7745_v5  ;;  %v7438_v42 = vld [vmem:[#allocation7 + $0x4c8] sm:$0xff]  ;;  %v12744_v10 = vcombine.high %v7310_v63, %v7314_v0 }
 0x9fe   :  { %v7609_v16 = vld [vmem:[#allocation7 + $0xa20] sm:$0xff]  ;;  %10514 = vmatpush2.bf16.msra.mxu0 %v13045_v38  ;;  %v7442_v5 = vld [vmem:[#allocation7 + $0x4e8] sm:$0xff]  ;;  %v12743_v38 = vcombine.low %v7310_v63, %v7314_v0 }
 0x9ff   :  { %v7733_v49 = vld [vmem:[#allocation7 + $0xe00] sm:$0xff]  ;;  %v13038_v12 = vcombine.high %v7605_v59, %v7609_v16  ;;  %10556 = vmatprep.subr.bf16.mxu1 %v13174_v11  ;;  %v13037_v27 = vcombine.low %v7605_v59, %v7609_v16  ;;  %v12872_v11 = vcombine.high %v7438_v42, %v7442_v5  ;;  %v7302_v59 = vld [vmem:[#allocation7 + $0x88] sm:$0xff] }
 0xa00   :  { %v7737_v45 = vld [vmem:[#allocation7 + $0xe20] sm:$0xff]  ;;  %10557 = vmatpush2.bf16.msra.mxu1 %v13173_v8  ;;  %v7306_v16 = vld [vmem:[#allocation7 + $0xa8] sm:$0xff]  ;;  %v12871_v8 = vcombine.low %v7438_v42, %v7442_v5 }
 0xa01   :  { %v13166_v13 = vcombine.high %v7733_v49, %v7737_v45  ;;  %10515 = vmatprep.subr.bf16.mxu0 %v13038_v12  ;;  %v13165_v31 = vcombine.low %v7733_v49, %v7737_v45  ;;  %v7430_v49 = vld [vmem:[#allocation7 + $0x488] sm:$0xff]  ;;  %v12736_v12 = vcombine.high %v7302_v59, %v7306_v16 }
 0xa02   :  { %10516 = vmatpush2.bf16.msra.mxu0 %v13037_v27  ;;  %v7434_v45 = vld [vmem:[#allocation7 + $0x4a8] sm:$0xff]  ;;  %v12735_v27 = vcombine.low %v7302_v59, %v7306_v16 }
 0xa03   :  { %10558 = vmatprep.subr.bf16.mxu1 %v13166_v13  ;;  %10571 = vmatprep.subr.bf16.mxu0 %v12776_v32  ;;  %v12864_v13 = vcombine.high %v7430_v49, %v7434_v45  ;;  %v7294_v14 = vld [vmem:[#allocation7 + $0x48] sm:$0xff] }
 0xa04   :  { %10559 = vmatpush2.bf16.msra.mxu1 %v13165_v31  ;;  %v7298_v25 = vld [vmem:[#allocation7 + $0x68] sm:$0xff]  ;;  %v12863_v31 = vcombine.low %v7430_v49, %v7434_v45 }
 0xa05   :  { %10614 = vmatprep.subr.bf16.mxu1 %v12904_v2  ;;  %10518 = vmatmul.mubr.bf16.vlgmr.msra.gmra.mxu0 %v14572_v62  ;;  %v7422_v15 = vld [vmem:[#allocation7 + $0x448] sm:$0xff]  ;;  %v12728_v32 = vcombine.high %v7294_v14, %v7298_v25 }
 0xa06   :  { %10572 = vmatpush1.bf16.msra.mxu0 %v12775_v39  ;;  %10603 = vmatprep.mubr.bf16.mxu0 %v14564_v20  ;;  %v7426_v26 = vld [vmem:[#allocation7 + $0x468] sm:$0xff]  ;;  %v12727_v39 = vcombine.low %v7294_v14, %v7298_v25 }
 0xa07   :  { %10561 = vmatmul.mubr.bf16.vlgmr.msra.gmra.mxu1 %v14574_v29  ;;  %10573 = vmatprep.subr.bf16.mxu0 %v12768_v41  ;;  %v12856_v2 = vcombine.high %v7422_v15, %v7426_v26  ;;  %v7286_v33 = vld [vmem:[#allocation7 + $0x8] sm:$0xff] }
 0xa08   :  { %10615 = vmatpush1.bf16.msra.mxu1 %v12903_v40  ;;  %10646 = vmatprep.mubr.bf16.mxu1 %v14566_v28  ;;  %v7290_v34 = vld [vmem:[#allocation7 + $0x28] sm:$0xff]  ;;  %v12855_v40 = vcombine.low %v7422_v15, %v7426_v26 }
 0xa09   :  { %10616 = vmatprep.subr.bf16.mxu1 %v12896_v48  ;;  %v7414_v35 = vld [vmem:[#allocation7 + $0x408] sm:$0xff]  ;;  %v12720_v41 = vcombine.high %v7286_v33, %v7290_v34 }
 0xa0a   :  { %10574 = vmatpush1.bf16.msra.mxu0 %v12767_v30  ;;  %v7418_v36 = vld [vmem:[#allocation7 + $0x428] sm:$0xff]  ;;  %v12719_v30 = vcombine.low %v7286_v33, %v7290_v34 }
 0xa0b   :  { %10575 = vmatprep.subr.bf16.mxu0 %v12760_v51  ;;  %v12848_v48 = vcombine.high %v7414_v35, %v7418_v36  ;;  %v7406_v47 = vld [vmem:[#allocation7 + $0x3c8] sm:$0xff] }
 0xa0c   :  { %10617 = vmatpush1.bf16.msra.mxu1 %v12895_v58  ;;  %v7410_v43 = vld [vmem:[#allocation7 + $0x3e8] sm:$0xff]  ;;  %v12847_v58 = vcombine.low %v7414_v35, %v7418_v36 }
 0xa0d   :  { %10618 = vmatprep.subr.bf16.mxu1 %v12888_v3  ;;  %v7534_v44 = vld [vmem:[#allocation7 + $0x7c8] sm:$0xff]  ;;  %v12840_v51 = vcombine.high %v7406_v47, %v7410_v43 }
 0xa0e   :  { %10576 = vmatpush1.bf16.msra.mxu0 %v12759_v37  ;;  %v7538_v57 = vld [vmem:[#allocation7 + $0x7e8] sm:$0xff]  ;;  %v12839_v37 = vcombine.low %v7406_v47, %v7410_v43 }
 0xa0f   :  { %10577 = vmatprep.subr.bf16.mxu0 %v12752_v61  ;;  %v12968_v3 = vcombine.high %v7534_v44, %v7538_v57  ;;  %v7398_v60 = vld [vmem:[#allocation7 + $0x388] sm:$0xff] }
 0xa10   :  { %10619 = vmatpush1.bf16.msra.mxu1 %v12887_v17  ;;  %v7402_v50 = vld [vmem:[#allocation7 + $0x3a8] sm:$0xff]  ;;  %v12967_v17 = vcombine.low %v7534_v44, %v7538_v57 }
 0xa11   :  { %10620 = vmatprep.subr.bf16.mxu1 %v12880_v52  ;;  %v7526_v4 = vld [vmem:[#allocation7 + $0x788] sm:$0xff]  ;;  %v12832_v61 = vcombine.high %v7398_v60, %v7402_v50 }
 0xa12   :  { %10578 = vmatpush1.bf16.msra.mxu0 %v12751_v9  ;;  %v7530_v19 = vld [vmem:[#allocation7 + $0x7a8] sm:$0xff]  ;;  %v12831_v9 = vcombine.low %v7398_v60, %v7402_v50 }
 0xa13   :  { %10579 = vmatprep.subr.bf16.mxu0 %v12744_v10  ;;  %v12960_v52 = vcombine.high %v7526_v4, %v7530_v19  ;;  %v7390_v63 = vld [vmem:[#allocation7 + $0x348] sm:$0xff] }
 0xa14   :  { %10621 = vmatpush1.bf16.msra.mxu1 %v12879_v7  ;;  %v7394_v0 = vld [vmem:[#allocation7 + $0x368] sm:$0xff]  ;;  %v12959_v7 = vcombine.low %v7526_v4, %v7530_v19 }
 0xa15   :  { %10622 = vmatprep.subr.bf16.mxu1 %v12872_v11  ;;  %v7518_v42 = vld [vmem:[#allocation7 + $0x748] sm:$0xff]  ;;  %v12824_v10 = vcombine.high %v7390_v63, %v7394_v0 }
 0xa16   :  { %10580 = vmatpush1.bf16.msra.mxu0 %v12743_v38  ;;  %v7522_v5 = vld [vmem:[#allocation7 + $0x768] sm:$0xff]  ;;  %v12823_v38 = vcombine.low %v7390_v63, %v7394_v0 }
 0xa17   :  { %10581 = vmatprep.subr.bf16.mxu0 %v12736_v12  ;;  %v12952_v11 = vcombine.high %v7518_v42, %v7522_v5  ;;  %v7382_v59 = vld [vmem:[#allocation7 + $0x308] sm:$0xff] }
 0xa18   :  { %10623 = vmatpush1.bf16.msra.mxu1 %v12871_v8  ;;  %v7386_v16 = vld [vmem:[#allocation7 + $0x328] sm:$0xff]  ;;  %v12951_v8 = vcombine.low %v7518_v42, %v7522_v5 }
 0xa19   :  { %10624 = vmatprep.subr.bf16.mxu1 %v12864_v13  ;;  %v7510_v49 = vld [vmem:[#allocation7 + $0x708] sm:$0xff]  ;;  %v12816_v12 = vcombine.high %v7382_v59, %v7386_v16 }
 0xa1a   :  { %10582 = vmatpush1.bf16.msra.mxu0 %v12735_v27  ;;  %v7514_v45 = vld [vmem:[#allocation7 + $0x728] sm:$0xff]  ;;  %v12815_v27 = vcombine.low %v7382_v59, %v7386_v16 }
 0xa1b   :  { %10583 = vmatprep.subr.bf16.mxu0 %v12728_v32  ;;  %v12944_v13 = vcombine.high %v7510_v49, %v7514_v45  ;;  %v7374_v14 = vld [vmem:[#allocation7 + $0x2c8] sm:$0xff] }
 0xa1c   :  { %10625 = vmatpush1.bf16.msra.mxu1 %v12863_v31  ;;  %v7378_v25 = vld [vmem:[#allocation7 + $0x2e8] sm:$0xff]  ;;  %v12943_v31 = vcombine.low %v7510_v49, %v7514_v45 }
 0xa1d   :  { %10626 = vmatprep.subr.bf16.mxu1 %v12856_v2  ;;  %v7502_v15 = vld [vmem:[#allocation7 + $0x6c8] sm:$0xff]  ;;  %v12808_v32 = vcombine.high %v7374_v14, %v7378_v25 }
 0xa1e   :  { %10584 = vmatpush1.bf16.msra.mxu0 %v12727_v39  ;;  %v7506_v26 = vld [vmem:[#allocation7 + $0x6e8] sm:$0xff]  ;;  %v12807_v39 = vcombine.low %v7374_v14, %v7378_v25 }
 0xa1f   :  { %10585 = vmatprep.subr.bf16.mxu0 %v12720_v41  ;;  %v12936_v2 = vcombine.high %v7502_v15, %v7506_v26  ;;  %v7366_v33 = vld [vmem:[#allocation7 + $0x288] sm:$0xff] }
 0xa20   :  { %10627 = vmatpush1.bf16.msra.mxu1 %v12855_v40  ;;  %v7370_v34 = vld [vmem:[#allocation7 + $0x2a8] sm:$0xff]  ;;  %v12935_v40 = vcombine.low %v7502_v15, %v7506_v26 }
 0xa21   :  { %10628 = vmatprep.subr.bf16.mxu1 %v12848_v48  ;;  %v7494_v35 = vld [vmem:[#allocation7 + $0x688] sm:$0xff]  ;;  %v12800_v41 = vcombine.high %v7366_v33, %v7370_v34 }
 0xa22   :  { %10586 = vmatpush1.bf16.msra.mxu0 %v12719_v30  ;;  %v7498_v36 = vld [vmem:[#allocation7 + $0x6a8] sm:$0xff]  ;;  %v12799_v30 = vcombine.low %v7366_v33, %v7370_v34 }
 0xa23   :  { %10587 = vmatprep.subr.bf16.mxu0 %v12840_v51  ;;  %v12928_v48 = vcombine.high %v7494_v35, %v7498_v36  ;;  %v7358_v47 = vld [vmem:[#allocation7 + $0x248] sm:$0xff] }
 0xa24   :  { %10629 = vmatpush1.bf16.msra.mxu1 %v12847_v58  ;;  %v7362_v43 = vld [vmem:[#allocation7 + $0x268] sm:$0xff]  ;;  %v12927_v58 = vcombine.low %v7494_v35, %v7498_v36 }
 0xa25   :  { %10630 = vmatprep.subr.bf16.mxu1 %v12968_v3  ;;  %v7486_v44 = vld [vmem:[#allocation7 + $0x648] sm:$0xff]  ;;  %v12792_v51 = vcombine.high %v7358_v47, %v7362_v43 }
 0xa26   :  { %10588 = vmatpush2.bf16.msra.mxu0 %v12839_v37  ;;  %v7490_v57 = vld [vmem:[#allocation7 + $0x668] sm:$0xff]  ;;  %v12791_v37 = vcombine.low %v7358_v47, %v7362_v43 }
 0xa27   :  { %10589 = vmatprep.subr.bf16.mxu0 %v12832_v61  ;;  %v12920_v3 = vcombine.high %v7486_v44, %v7490_v57  ;;  %v7350_v60 = vld [vmem:[#allocation7 + $0x208] sm:$0xff] }
 0xa28   :  { %10631 = vmatpush2.bf16.msra.mxu1 %v12967_v17  ;;  %v7354_v50 = vld [vmem:[#allocation7 + $0x228] sm:$0xff]  ;;  %v12919_v17 = vcombine.low %v7486_v44, %v7490_v57 }
 0xa29   :  { %10632 = vmatprep.subr.bf16.mxu1 %v12960_v52  ;;  %v7478_v4 = vld [vmem:[#allocation7 + $0x608] sm:$0xff]  ;;  %v12784_v61 = vcombine.high %v7350_v60, %v7354_v50 }
 0xa2a   :  { %10590 = vmatpush2.bf16.msra.mxu0 %v12831_v9  ;;  %v7482_v19 = vld [vmem:[#allocation7 + $0x628] sm:$0xff]  ;;  %v12783_v9 = vcombine.low %v7350_v60, %v7354_v50 }
 0xa2b   :  { %10591 = vmatprep.subr.bf16.mxu0 %v12824_v10  ;;  %v12912_v52 = vcombine.high %v7478_v4, %v7482_v19  ;;  %v7598_v63 = vld [vmem:[#allocation7 + $0x9c8] sm:$0xff] }
 0xa2c   :  { %10633 = vmatpush2.bf16.msra.mxu1 %v12959_v7  ;;  %v7602_v0 = vld [vmem:[#allocation7 + $0x9e8] sm:$0xff]  ;;  %v12911_v7 = vcombine.low %v7478_v4, %v7482_v19 }
 0xa2d   :  { %10634 = vmatprep.subr.bf16.mxu1 %v12952_v11  ;;  %v7726_v42 = vld [vmem:[#allocation7 + $0xdc8] sm:$0xff]  ;;  %v13032_v10 = vcombine.high %v7598_v63, %v7602_v0 }
 0xa2e   :  { %10592 = vmatpush2.bf16.msra.mxu0 %v12823_v38  ;;  %v7730_v5 = vld [vmem:[#allocation7 + $0xde8] sm:$0xff]  ;;  %v13031_v38 = vcombine.low %v7598_v63, %v7602_v0 }
 0xa2f   :  { %10593 = vmatprep.subr.bf16.mxu0 %v12816_v12  ;;  %v13160_v11 = vcombine.high %v7726_v42, %v7730_v5  ;;  %v7590_v59 = vld [vmem:[#allocation7 + $0x988] sm:$0xff] }
 0xa30   :  { %10635 = vmatpush2.bf16.msra.mxu1 %v12951_v8  ;;  %v7594_v16 = vld [vmem:[#allocation7 + $0x9a8] sm:$0xff]  ;;  %v13159_v8 = vcombine.low %v7726_v42, %v7730_v5 }
 0xa31   :  { %10636 = vmatprep.subr.bf16.mxu1 %v12944_v13  ;;  %v7718_v49 = vld [vmem:[#allocation7 + $0xd88] sm:$0xff]  ;;  %v13024_v12 = vcombine.high %v7590_v59, %v7594_v16 }
 0xa32   :  { %10594 = vmatpush2.bf16.msra.mxu0 %v12815_v27  ;;  %v7722_v45 = vld [vmem:[#allocation7 + $0xda8] sm:$0xff]  ;;  %v13023_v27 = vcombine.low %v7590_v59, %v7594_v16 }
 0xa33   :  { %10595 = vmatprep.subr.bf16.mxu0 %v12808_v32  ;;  %v13152_v13 = vcombine.high %v7718_v49, %v7722_v45  ;;  %v7582_v14 = vld [vmem:[#allocation7 + $0x948] sm:$0xff] }
 0xa34   :  { %10637 = vmatpush2.bf16.msra.mxu1 %v12943_v31  ;;  %v7586_v25 = vld [vmem:[#allocation7 + $0x968] sm:$0xff]  ;;  %v13151_v31 = vcombine.low %v7718_v49, %v7722_v45 }
 0xa35   :  { %10638 = vmatprep.subr.bf16.mxu1 %v12936_v2  ;;  %v7710_v15 = vld [vmem:[#allocation7 + $0xd48] sm:$0xff]  ;;  %v13016_v32 = vcombine.high %v7582_v14, %v7586_v25 }
 0xa36   :  { %10596 = vmatpush2.bf16.msra.mxu0 %v12807_v39  ;;  %v7714_v26 = vld [vmem:[#allocation7 + $0xd68] sm:$0xff]  ;;  %v13015_v39 = vcombine.low %v7582_v14, %v7586_v25 }
 0xa37   :  { %10597 = vmatprep.subr.bf16.mxu0 %v12800_v41  ;;  %v13144_v2 = vcombine.high %v7710_v15, %v7714_v26  ;;  %v7574_v33 = vld [vmem:[#allocation7 + $0x908] sm:$0xff] }
 0xa38   :  { %10639 = vmatpush2.bf16.msra.mxu1 %v12935_v40  ;;  %v7578_v34 = vld [vmem:[#allocation7 + $0x928] sm:$0xff]  ;;  %v13143_v40 = vcombine.low %v7710_v15, %v7714_v26 }
 0xa39   :  { %10640 = vmatprep.subr.bf16.mxu1 %v12928_v48  ;;  %v7702_v35 = vld [vmem:[#allocation7 + $0xd08] sm:$0xff]  ;;  %v13008_v41 = vcombine.high %v7574_v33, %v7578_v34 }
 0xa3a   :  { %10598 = vmatpush2.bf16.msra.mxu0 %v12799_v30  ;;  %v7706_v36 = vld [vmem:[#allocation7 + $0xd28] sm:$0xff]  ;;  %v13007_v30 = vcombine.low %v7574_v33, %v7578_v34 }
 0xa3b   :  { %10599 = vmatprep.subr.bf16.mxu0 %v12792_v51  ;;  %v13136_v48 = vcombine.high %v7702_v35, %v7706_v36  ;;  %v7566_v47 = vld [vmem:[#allocation7 + $0x8c8] sm:$0xff] }
 0xa3c   :  { %10641 = vmatpush2.bf16.msra.mxu1 %v12927_v58  ;;  %v7570_v43 = vld [vmem:[#allocation7 + $0x8e8] sm:$0xff]  ;;  %v13135_v58 = vcombine.low %v7702_v35, %v7706_v36 }
 0xa3d   :  { %10642 = vmatprep.subr.bf16.mxu1 %v12920_v3  ;;  %v7694_v44 = vld [vmem:[#allocation7 + $0xcc8] sm:$0xff]  ;;  %v13000_v51 = vcombine.high %v7566_v47, %v7570_v43 }
 0xa3e   :  { %10600 = vmatpush2.bf16.msra.mxu0 %v12791_v37  ;;  %v7698_v57 = vld [vmem:[#allocation7 + $0xce8] sm:$0xff]  ;;  %v12999_v37 = vcombine.low %v7566_v47, %v7570_v43 }
 0xa3f   :  { %10601 = vmatprep.subr.bf16.mxu0 %v12784_v61  ;;  %v13128_v3 = vcombine.high %v7694_v44, %v7698_v57  ;;  %v7558_v60 = vld [vmem:[#allocation7 + $0x888] sm:$0xff] }
 0xa40   :  { %10643 = vmatpush2.bf16.msra.mxu1 %v12919_v17  ;;  %v7562_v50 = vld [vmem:[#allocation7 + $0x8a8] sm:$0xff]  ;;  %v13127_v17 = vcombine.low %v7694_v44, %v7698_v57 }
 0xa41   :  { %10644 = vmatprep.subr.bf16.mxu1 %v12912_v52  ;;  %v7686_v4 = vld [vmem:[#allocation7 + $0xc88] sm:$0xff]  ;;  %v12992_v61 = vcombine.high %v7558_v60, %v7562_v50 }
 0xa42   :  { %10602 = vmatpush2.bf16.msra.mxu0 %v12783_v9  ;;  %v7690_v19 = vld [vmem:[#allocation7 + $0xca8] sm:$0xff]  ;;  %v12991_v9 = vcombine.low %v7558_v60, %v7562_v50 }
 0xa43   :  { %10657 = vmatprep.subr.bf16.mxu0 %v13032_v10  ;;  %v13120_v52 = vcombine.high %v7686_v4, %v7690_v19  ;;  %v7550_v63 = vld [vmem:[#allocation7 + $0x848] sm:$0xff] }
 0xa44   :  { %10645 = vmatpush2.bf16.msra.mxu1 %v12911_v7  ;;  %v7554_v0 = vld [vmem:[#allocation7 + $0x868] sm:$0xff]  ;;  %v13119_v7 = vcombine.low %v7686_v4, %v7690_v19 }
 0xa45   :  { %10700 = vmatprep.subr.bf16.mxu1 %v13160_v11  ;;  %10604 = vmatmul.mubr.bf16.vlgmr.msra.gmra.mxu0 %v14560_v24  ;;  %v7678_v42 = vld [vmem:[#allocation7 + $0xc48] sm:$0xff]  ;;  %v12984_v10 = vcombine.high %v7550_v63, %v7554_v0 }
 0xa46   :  { %10658 = vmatpush1.bf16.msra.mxu0 %v13031_v38  ;;  %10689 = vmatprep.mubr.bf16.mxu0 %v14576_v1  ;;  %v7682_v5 = vld [vmem:[#allocation7 + $0xc68] sm:$0xff]  ;;  %v12983_v38 = vcombine.low %v7550_v63, %v7554_v0 }
 0xa47   :  { %10647 = vmatmul.mubr.bf16.vlgmr.msra.gmra.mxu1 %v14562_v6  ;;  %10659 = vmatprep.subr.bf16.mxu0 %v13024_v12  ;;  %v13112_v11 = vcombine.high %v7678_v42, %v7682_v5  ;;  %v7542_v59 = vld [vmem:[#allocation7 + $0x808] sm:$0xff] }
 0xa48   :  { %10701 = vmatpush1.bf16.msra.mxu1 %v13159_v8  ;;  %10732 = vmatprep.mubr.bf16.mxu1 %v14578_v46  ;;  %v7546_v16 = vld [vmem:[#allocation7 + $0x828] sm:$0xff]  ;;  %v13111_v8 = vcombine.low %v7678_v42, %v7682_v5 }
 0xa49   :  { %10702 = vmatprep.subr.bf16.mxu1 %v13152_v13  ;;  %v7670_v49 = vld [vmem:[#allocation7 + $0xc08] sm:$0xff]  ;;  %v12976_v12 = vcombine.high %v7542_v59, %v7546_v16 }
 0xa4a   :  { %10660 = vmatpush1.bf16.msra.mxu0 %v13023_v27  ;;  %v7674_v45 = vld [vmem:[#allocation7 + $0xc28] sm:$0xff]  ;;  %v12975_v27 = vcombine.low %v7542_v59, %v7546_v16 }
 0xa4b   :  { %10661 = vmatprep.subr.bf16.mxu0 %v13016_v32  ;;  %v13104_v13 = vcombine.high %v7670_v49, %v7674_v45  ;;  %v7662_v14 = vld [vmem:[#allocation7 + $0xbc8] sm:$0xff] }
 0xa4c   :  { %10703 = vmatpush1.bf16.msra.mxu1 %v13151_v31  ;;  %v7666_v25 = vld [vmem:[#allocation7 + $0xbe8] sm:$0xff]  ;;  %v13103_v31 = vcombine.low %v7670_v49, %v7674_v45 }
 0xa4d   :  { %10704 = vmatprep.subr.bf16.mxu1 %v13144_v2  ;;  %v7790_v15 = vld [vmem:[#allocation7 + $0xfc8] sm:$0xff]  ;;  %v13096_v32 = vcombine.high %v7662_v14, %v7666_v25 }
 0xa4e   :  { %10662 = vmatpush1.bf16.msra.mxu0 %v13015_v39  ;;  %v7794_v26 = vld [vmem:[#allocation7 + $0xfe8] sm:$0xff]  ;;  %v13095_v39 = vcombine.low %v7662_v14, %v7666_v25 }
 0xa4f   :  { %10663 = vmatprep.subr.bf16.mxu0 %v13008_v41  ;;  %v13224_v2 = vcombine.high %v7790_v15, %v7794_v26  ;;  %v7654_v33 = vld [vmem:[#allocation7 + $0xb88] sm:$0xff] }
 0xa50   :  { %10705 = vmatpush1.bf16.msra.mxu1 %v13143_v40  ;;  %v7658_v34 = vld [vmem:[#allocation7 + $0xba8] sm:$0xff]  ;;  %v13223_v40 = vcombine.low %v7790_v15, %v7794_v26 }
 0xa51   :  { %10706 = vmatprep.subr.bf16.mxu1 %v13136_v48  ;;  %v7782_v35 = vld [vmem:[#allocation7 + $0xf88] sm:$0xff]  ;;  %v13088_v41 = vcombine.high %v7654_v33, %v7658_v34 }
 0xa52   :  { %10664 = vmatpush1.bf16.msra.mxu0 %v13007_v30  ;;  %v7786_v36 = vld [vmem:[#allocation7 + $0xfa8] sm:$0xff]  ;;  %v13087_v30 = vcombine.low %v7654_v33, %v7658_v34 }
 0xa53   :  { %10665 = vmatprep.subr.bf16.mxu0 %v13000_v51  ;;  %v13216_v48 = vcombine.high %v7782_v35, %v7786_v36  ;;  %v7646_v47 = vld [vmem:[#allocation7 + $0xb48] sm:$0xff] }
 0xa54   :  { %10707 = vmatpush1.bf16.msra.mxu1 %v13135_v58  ;;  %v7650_v43 = vld [vmem:[#allocation7 + $0xb68] sm:$0xff]  ;;  %v13215_v58 = vcombine.low %v7782_v35, %v7786_v36 }
 0xa55   :  { %10708 = vmatprep.subr.bf16.mxu1 %v13128_v3  ;;  %v7774_v44 = vld [vmem:[#allocation7 + $0xf48] sm:$0xff]  ;;  %v13080_v51 = vcombine.high %v7646_v47, %v7650_v43 }
 0xa56   :  { %10666 = vmatpush1.bf16.msra.mxu0 %v12999_v37  ;;  %v7778_v57 = vld [vmem:[#allocation7 + $0xf68] sm:$0xff]  ;;  %v13079_v37 = vcombine.low %v7646_v47, %v7650_v43  ;;  %v7343_v47 = vld [vmem:[#allocation7 + $0x1d0] sm:$0xff] }
 0xa57   :  { %10667 = vmatprep.subr.bf16.mxu0 %v12992_v61  ;;  %v13208_v3 = vcombine.high %v7774_v44, %v7778_v57  ;;  %v7638_v60 = vld [vmem:[#allocation7 + $0xb08] sm:$0xff]  ;;  %v7347_v43 = vld [vmem:[#allocation7 + $0x1f0] sm:$0xff] }
 0xa58   :  { %10709 = vmatpush1.bf16.msra.mxu1 %v13127_v17  ;;  %v7642_v50 = vld [vmem:[#allocation7 + $0xb28] sm:$0xff]  ;;  %v13207_v17 = vcombine.low %v7774_v44, %v7778_v57  ;;  %v7471_v44 = vld [vmem:[#allocation7 + $0x5d0] sm:$0xff] }
 0xa59   :  { %10710 = vmatprep.subr.bf16.mxu1 %v13120_v52  ;;  %v7766_v4 = vld [vmem:[#allocation7 + $0xf08] sm:$0xff]  ;;  %v13072_v61 = vcombine.high %v7638_v60, %v7642_v50  ;;  %v7475_v57 = vld [vmem:[#allocation7 + $0x5f0] sm:$0xff] }
 0xa5a   :  { %10668 = vmatpush1.bf16.msra.mxu0 %v12991_v9  ;;  %v7770_v19 = vld [vmem:[#allocation7 + $0xf28] sm:$0xff]  ;;  %v13071_v9 = vcombine.low %v7638_v60, %v7642_v50  ;;  %v7335_v60 = vld [vmem:[#allocation7 + $0x190] sm:$0xff] }
 0xa5b   :  { %10669 = vmatprep.subr.bf16.mxu0 %v12984_v10  ;;  %v13200_v52 = vcombine.high %v7766_v4, %v7770_v19  ;;  %v7630_v63 = vld [vmem:[#allocation7 + $0xac8] sm:$0xff]  ;;  %v7339_v50 = vld [vmem:[#allocation7 + $0x1b0] sm:$0xff] }
 0xa5c   :  { %10711 = vmatpush1.bf16.msra.mxu1 %v13119_v7  ;;  %v7634_v0 = vld [vmem:[#allocation7 + $0xae8] sm:$0xff]  ;;  %v13199_v7 = vcombine.low %v7766_v4, %v7770_v19  ;;  %v7463_v4 = vld [vmem:[#allocation7 + $0x590] sm:$0xff] }
 0xa5d   :  { %10712 = vmatprep.subr.bf16.mxu1 %v13112_v11  ;;  %v7758_v42 = vld [vmem:[#allocation7 + $0xec8] sm:$0xff]  ;;  %v13064_v10 = vcombine.high %v7630_v63, %v7634_v0  ;;  %v7467_v19 = vld [vmem:[#allocation7 + $0x5b0] sm:$0xff] }
 0xa5e   :  { %10670 = vmatpush1.bf16.msra.mxu0 %v12983_v38  ;;  %v7762_v5 = vld [vmem:[#allocation7 + $0xee8] sm:$0xff]  ;;  %v13063_v38 = vcombine.low %v7630_v63, %v7634_v0  ;;  %v7327_v63 = vld [vmem:[#allocation7 + $0x150] sm:$0xff] }
 0xa5f   :  { %10671 = vmatprep.subr.bf16.mxu0 %v12976_v12  ;;  %v13192_v11 = vcombine.high %v7758_v42, %v7762_v5  ;;  %v7622_v59 = vld [vmem:[#allocation7 + $0xa88] sm:$0xff]  ;;  %v7331_v0 = vld [vmem:[#allocation7 + $0x170] sm:$0xff] }
 0xa60   :  { %10713 = vmatpush1.bf16.msra.mxu1 %v13111_v8  ;;  %v7626_v16 = vld [vmem:[#allocation7 + $0xaa8] sm:$0xff]  ;;  %v13191_v8 = vcombine.low %v7758_v42, %v7762_v5  ;;  %v7455_v42 = vld [vmem:[#allocation7 + $0x550] sm:$0xff] }
 0xa61   :  { %10714 = vmatprep.subr.bf16.mxu1 %v13104_v13  ;;  %v7750_v49 = vld [vmem:[#allocation7 + $0xe88] sm:$0xff]  ;;  %v13056_v12 = vcombine.high %v7622_v59, %v7626_v16  ;;  %v7459_v5 = vld [vmem:[#allocation7 + $0x570] sm:$0xff] }
 0xa62   :  { %10672 = vmatpush1.bf16.msra.mxu0 %v12975_v27  ;;  %v7754_v45 = vld [vmem:[#allocation7 + $0xea8] sm:$0xff]  ;;  %v13055_v27 = vcombine.low %v7622_v59, %v7626_v16  ;;  %v7319_v59 = vld [vmem:[#allocation7 + $0x110] sm:$0xff] }
 0xa63   :  { %10673 = vmatprep.subr.bf16.mxu0 %v13096_v32  ;;  %v13184_v13 = vcombine.high %v7750_v49, %v7754_v45  ;;  %v7614_v14 = vld [vmem:[#allocation7 + $0xa48] sm:$0xff]  ;;  %v7323_v16 = vld [vmem:[#allocation7 + $0x130] sm:$0xff] }
 0xa64   :  { %10715 = vmatpush1.bf16.msra.mxu1 %v13103_v31  ;;  %v7618_v25 = vld [vmem:[#allocation7 + $0xa68] sm:$0xff]  ;;  %v13183_v31 = vcombine.low %v7750_v49, %v7754_v45  ;;  %v7447_v49 = vld [vmem:[#allocation7 + $0x510] sm:$0xff] }
 0xa65   :  { %10716 = vmatprep.subr.bf16.mxu1 %v13224_v2  ;;  %v7742_v15 = vld [vmem:[#allocation7 + $0xe48] sm:$0xff]  ;;  %v13048_v32 = vcombine.high %v7614_v14, %v7618_v25  ;;  %v7451_v45 = vld [vmem:[#allocation7 + $0x530] sm:$0xff] }
 0xa66   :  { %10674 = vmatpush2.bf16.msra.mxu0 %v13095_v39  ;;  %v7746_v26 = vld [vmem:[#allocation7 + $0xe68] sm:$0xff]  ;;  %v13047_v39 = vcombine.low %v7614_v14, %v7618_v25  ;;  %v7311_v14 = vld [vmem:[#allocation7 + $0xd0] sm:$0xff] }
 0xa67   :  { %10675 = vmatprep.subr.bf16.mxu0 %v13088_v41  ;;  %v13176_v2 = vcombine.high %v7742_v15, %v7746_v26  ;;  %v7606_v33 = vld [vmem:[#allocation7 + $0xa08] sm:$0xff]  ;;  %v7315_v25 = vld [vmem:[#allocation7 + $0xf0] sm:$0xff] }
 0xa68   :  { %10717 = vmatpush2.bf16.msra.mxu1 %v13223_v40  ;;  %v7610_v34 = vld [vmem:[#allocation7 + $0xa28] sm:$0xff]  ;;  %v13175_v40 = vcombine.low %v7742_v15, %v7746_v26  ;;  %v7439_v15 = vld [vmem:[#allocation7 + $0x4d0] sm:$0xff] }
 0xa69   :  { %10718 = vmatprep.subr.bf16.mxu1 %v13216_v48  ;;  %v7734_v35 = vld [vmem:[#allocation7 + $0xe08] sm:$0xff]  ;;  %v13040_v41 = vcombine.high %v7606_v33, %v7610_v34  ;;  %v7443_v26 = vld [vmem:[#allocation7 + $0x4f0] sm:$0xff] }
 0xa6a   :  { %10676 = vmatpush2.bf16.msra.mxu0 %v13087_v30  ;;  %v7738_v36 = vld [vmem:[#allocation7 + $0xe28] sm:$0xff]  ;;  %v13039_v30 = vcombine.low %v7606_v33, %v7610_v34  ;;  %v7303_v33 = vld [vmem:[#allocation7 + $0x90] sm:$0xff] }
 0xa6b   :  { %10677 = vmatprep.subr.bf16.mxu0 %v13080_v51  ;;  %v13168_v48 = vcombine.high %v7734_v35, %v7738_v36  ;;  %v12778_v51 = vcombine.high %v7343_v47, %v7347_v43  ;;  %v7307_v34 = vld [vmem:[#allocation7 + $0xb0] sm:$0xff] }
 0xa6c   :  { %10719 = vmatpush2.bf16.msra.mxu1 %v13215_v58  ;;  %v13167_v58 = vcombine.low %v7734_v35, %v7738_v36  ;;  %v7431_v35 = vld [vmem:[#allocation7 + $0x490] sm:$0xff] }
 0xa6d   :  { %10720 = vmatprep.subr.bf16.mxu1 %v13208_v3  ;;  %v12906_v3 = vcombine.high %v7471_v44, %v7475_v57  ;;  %v7435_v36 = vld [vmem:[#allocation7 + $0x4b0] sm:$0xff] }
 0xa6e   :  { %10678 = vmatpush2.bf16.msra.mxu0 %v13079_v37  ;;  %v12777_v37 = vcombine.low %v7343_v47, %v7347_v43  ;;  %v7295_v47 = vld [vmem:[#allocation7 + $0x50] sm:$0xff] }
 0xa6f   :  { %10679 = vmatprep.subr.bf16.mxu0 %v13072_v61  ;;  %v12770_v61 = vcombine.high %v7335_v60, %v7339_v50  ;;  %v7299_v43 = vld [vmem:[#allocation7 + $0x70] sm:$0xff] }
 0xa70   :  { %10721 = vmatpush2.bf16.msra.mxu1 %v13207_v17  ;;  %v12905_v17 = vcombine.low %v7471_v44, %v7475_v57  ;;  %v7423_v44 = vld [vmem:[#allocation7 + $0x450] sm:$0xff] }
 0xa71   :  { %10722 = vmatprep.subr.bf16.mxu1 %v13200_v52  ;;  %v12898_v52 = vcombine.high %v7463_v4, %v7467_v19  ;;  %v7427_v57 = vld [vmem:[#allocation7 + $0x470] sm:$0xff] }
 0xa72   :  { %10680 = vmatpush2.bf16.msra.mxu0 %v13071_v9  ;;  %v12769_v9 = vcombine.low %v7335_v60, %v7339_v50  ;;  %v7287_v60 = vld [vmem:[#allocation7 + $0x10] sm:$0xff] }
 0xa73   :  { %10681 = vmatprep.subr.bf16.mxu0 %v13064_v10  ;;  %v12762_v10 = vcombine.high %v7327_v63, %v7331_v0  ;;  %v7291_v50 = vld [vmem:[#allocation7 + $0x30] sm:$0xff] }
 0xa74   :  { %10723 = vmatpush2.bf16.msra.mxu1 %v13199_v7  ;;  %v12897_v7 = vcombine.low %v7463_v4, %v7467_v19  ;;  %v7415_v4 = vld [vmem:[#allocation7 + $0x410] sm:$0xff] }
 0xa75   :  { %10724 = vmatprep.subr.bf16.mxu1 %v13192_v11  ;;  %v12890_v11 = vcombine.high %v7455_v42, %v7459_v5  ;;  %v7419_v19 = vld [vmem:[#allocation7 + $0x430] sm:$0xff] }
 0xa76   :  { %10682 = vmatpush2.bf16.msra.mxu0 %v13063_v38  ;;  %v12761_v38 = vcombine.low %v7327_v63, %v7331_v0  ;;  %v7407_v63 = vld [vmem:[#allocation7 + $0x3d0] sm:$0xff] }
 0xa77   :  { %10683 = vmatprep.subr.bf16.mxu0 %v13056_v12  ;;  %v12754_v12 = vcombine.high %v7319_v59, %v7323_v16  ;;  %v7411_v0 = vld [vmem:[#allocation7 + $0x3f0] sm:$0xff] }
 0xa78   :  { %10725 = vmatpush2.bf16.msra.mxu1 %v13191_v8  ;;  %v12889_v8 = vcombine.low %v7455_v42, %v7459_v5  ;;  %v7535_v42 = vld [vmem:[#allocation7 + $0x7d0] sm:$0xff] }
 0xa79   :  { %10726 = vmatprep.subr.bf16.mxu1 %v13184_v13  ;;  %v12882_v13 = vcombine.high %v7447_v49, %v7451_v45  ;;  %v7539_v5 = vld [vmem:[#allocation7 + $0x7f0] sm:$0xff] }
 0xa7a   :  { %10684 = vmatpush2.bf16.msra.mxu0 %v13055_v27  ;;  %v12753_v27 = vcombine.low %v7319_v59, %v7323_v16  ;;  %v7399_v59 = vld [vmem:[#allocation7 + $0x390] sm:$0xff] }
 0xa7b   :  { %10685 = vmatprep.subr.bf16.mxu0 %v13048_v32  ;;  %v12746_v32 = vcombine.high %v7311_v14, %v7315_v25  ;;  %v7403_v16 = vld [vmem:[#allocation7 + $0x3b0] sm:$0xff] }
 0xa7c   :  { %10727 = vmatpush2.bf16.msra.mxu1 %v13183_v31  ;;  %v12881_v31 = vcombine.low %v7447_v49, %v7451_v45  ;;  %v7527_v49 = vld [vmem:[#allocation7 + $0x790] sm:$0xff] }
 0xa7d   :  { %10728 = vmatprep.subr.bf16.mxu1 %v13176_v2  ;;  %v12874_v2 = vcombine.high %v7439_v15, %v7443_v26  ;;  %v7531_v45 = vld [vmem:[#allocation7 + $0x7b0] sm:$0xff] }
 0xa7e   :  { %10686 = vmatpush2.bf16.msra.mxu0 %v13047_v39  ;;  %v12745_v39 = vcombine.low %v7311_v14, %v7315_v25  ;;  %v7391_v14 = vld [vmem:[#allocation7 + $0x350] sm:$0xff] }
 0xa7f   :  { %10687 = vmatprep.subr.bf16.mxu0 %v13040_v41  ;;  %v12738_v41 = vcombine.high %v7303_v33, %v7307_v34  ;;  %v7395_v25 = vld [vmem:[#allocation7 + $0x370] sm:$0xff] }
 0xa80   :  { %10729 = vmatpush2.bf16.msra.mxu1 %v13175_v40  ;;  %v12873_v40 = vcombine.low %v7439_v15, %v7443_v26  ;;  %v7519_v15 = vld [vmem:[#allocation7 + $0x750] sm:$0xff] }
 0xa81   :  { %10730 = vmatprep.subr.bf16.mxu1 %v13168_v48  ;;  %v12866_v48 = vcombine.high %v7431_v35, %v7435_v36  ;;  %v7523_v26 = vld [vmem:[#allocation7 + $0x770] sm:$0xff] }
 0xa82   :  { %10688 = vmatpush2.bf16.msra.mxu0 %v13039_v30  ;;  %v12737_v30 = vcombine.low %v7303_v33, %v7307_v34  ;;  %v7383_v33 = vld [vmem:[#allocation7 + $0x310] sm:$0xff] }
 0xa83   :  { %10743 = vmatprep.subr.bf16.mxu0 %v12778_v51  ;;  %v12730_v51 = vcombine.high %v7295_v47, %v7299_v43  ;;  %v7387_v34 = vld [vmem:[#allocation7 + $0x330] sm:$0xff] }
 0xa84   :  { %10731 = vmatpush2.bf16.msra.mxu1 %v13167_v58  ;;  %v12865_v58 = vcombine.low %v7431_v35, %v7435_v36  ;;  %v7511_v35 = vld [vmem:[#allocation7 + $0x710] sm:$0xff] }
 0xa85   :  { %10786 = vmatprep.subr.bf16.mxu1 %v12906_v3  ;;  %10690 = vmatmul.mubr.bf16.vlgmr.msra.gmra.mxu0 %v14572_v62  ;;  %v12858_v3 = vcombine.high %v7423_v44, %v7427_v57  ;;  %v7515_v36 = vld [vmem:[#allocation7 + $0x730] sm:$0xff] }
 0xa86   :  { %10744 = vmatpush1.bf16.msra.mxu0 %v12777_v37  ;;  %10775 = vmatprep.mubr.bf16.mxu0 %v14564_v20  ;;  %v12729_v37 = vcombine.low %v7295_v47, %v7299_v43  ;;  %v7375_v47 = vld [vmem:[#allocation7 + $0x2d0] sm:$0xff] }
 0xa87   :  { %10733 = vmatmul.mubr.bf16.vlgmr.msra.gmra.mxu1 %v14574_v29  ;;  %10745 = vmatprep.subr.bf16.mxu0 %v12770_v61  ;;  %v12722_v61 = vcombine.high %v7287_v60, %v7291_v50  ;;  %v7379_v43 = vld [vmem:[#allocation7 + $0x2f0] sm:$0xff] }
 0xa88   :  { %10787 = vmatpush1.bf16.msra.mxu1 %v12905_v17  ;;  %10818 = vmatprep.mubr.bf16.mxu1 %v14566_v28  ;;  %v12857_v17 = vcombine.low %v7423_v44, %v7427_v57  ;;  %v7503_v44 = vld [vmem:[#allocation7 + $0x6d0] sm:$0xff] }
 0xa89   :  { %10788 = vmatprep.subr.bf16.mxu1 %v12898_v52  ;;  %v12850_v52 = vcombine.high %v7415_v4, %v7419_v19  ;;  %v7507_v57 = vld [vmem:[#allocation7 + $0x6f0] sm:$0xff] }
 0xa8a   :  { %10746 = vmatpush1.bf16.msra.mxu0 %v12769_v9  ;;  %v12721_v9 = vcombine.low %v7287_v60, %v7291_v50  ;;  %v7367_v60 = vld [vmem:[#allocation7 + $0x290] sm:$0xff] }
 0xa8b   :  { %10747 = vmatprep.subr.bf16.mxu0 %v12762_v10  ;;  %v12842_v10 = vcombine.high %v7407_v63, %v7411_v0  ;;  %v7371_v50 = vld [vmem:[#allocation7 + $0x2b0] sm:$0xff] }
 0xa8c   :  { %10789 = vmatpush1.bf16.msra.mxu1 %v12897_v7  ;;  %v12849_v7 = vcombine.low %v7415_v4, %v7419_v19  ;;  %v7495_v4 = vld [vmem:[#allocation7 + $0x690] sm:$0xff] }
 0xa8d   :  { %10790 = vmatprep.subr.bf16.mxu1 %v12890_v11  ;;  %v12970_v11 = vcombine.high %v7535_v42, %v7539_v5  ;;  %v7499_v19 = vld [vmem:[#allocation7 + $0x6b0] sm:$0xff] }
 0xa8e   :  { %10748 = vmatpush1.bf16.msra.mxu0 %v12761_v38  ;;  %v12841_v38 = vcombine.low %v7407_v63, %v7411_v0  ;;  %v7359_v63 = vld [vmem:[#allocation7 + $0x250] sm:$0xff] }
 0xa8f   :  { %10749 = vmatprep.subr.bf16.mxu0 %v12754_v12  ;;  %v12834_v12 = vcombine.high %v7399_v59, %v7403_v16  ;;  %v7363_v0 = vld [vmem:[#allocation7 + $0x270] sm:$0xff] }
 0xa90   :  { %10791 = vmatpush1.bf16.msra.mxu1 %v12889_v8  ;;  %v12969_v8 = vcombine.low %v7535_v42, %v7539_v5  ;;  %v7487_v42 = vld [vmem:[#allocation7 + $0x650] sm:$0xff] }
 0xa91   :  { %10792 = vmatprep.subr.bf16.mxu1 %v12882_v13  ;;  %v12962_v13 = vcombine.high %v7527_v49, %v7531_v45  ;;  %v7491_v5 = vld [vmem:[#allocation7 + $0x670] sm:$0xff] }
 0xa92   :  { %10750 = vmatpush1.bf16.msra.mxu0 %v12753_v27  ;;  %v12833_v27 = vcombine.low %v7399_v59, %v7403_v16  ;;  %v10476_v59 = vpop.f32.mrf.mxu1  ;;  %v12922_v16 = vcombine.high %v7487_v42, %v7491_v5 }
 0xa93   :  { %10751 = vmatprep.subr.bf16.mxu0 %v12746_v32  ;;  %v12826_v32 = vcombine.high %v7391_v14, %v7395_v25 }
 0xa94   :  { %10793 = vmatpush1.bf16.msra.mxu1 %v12881_v31  ;;  %v12961_v31 = vcombine.low %v7527_v49, %v7531_v45  ;;  %v7351_v49 = vld [vmem:[#allocation7 + $0x210] sm:$0xff] }
 0xa95   :  { %10794 = vmatprep.subr.bf16.mxu1 %v12874_v2  ;;  %v12954_v2 = vcombine.high %v7519_v15, %v7523_v26  ;;  %v7355_v45 = vld [vmem:[#allocation7 + $0x230] sm:$0xff] }
 0xa96   :  { %10752 = vmatpush1.bf16.msra.mxu0 %v12745_v39  ;;  %v12825_v39 = vcombine.low %v7391_v14, %v7395_v25  ;;  %v12921_v25 = vcombine.low %v7487_v42, %v7491_v5  ;;  %v7715_v42 = vld [vmem:[#allocation7 + $0xd70] sm:$0xff] }
 0xa97   :  { %10753 = vmatprep.subr.bf16.mxu0 %v12738_v41  ;;  %v12818_v41 = vcombine.high %v7383_v33, %v7387_v34 }
 0xa98   :  { %10795 = vmatpush1.bf16.msra.mxu1 %v12873_v40  ;;  %v12953_v40 = vcombine.low %v7519_v15, %v7523_v26  ;;  %v12786_v15 = vcombine.high %v7351_v49, %v7355_v45 }
 0xa99   :  { %10796 = vmatprep.subr.bf16.mxu1 %v12866_v48  ;;  %v12946_v48 = vcombine.high %v7511_v35, %v7515_v36 }
 0xa9a   :  { %10754 = vmatpush1.bf16.msra.mxu0 %v12737_v30  ;;  %v12817_v30 = vcombine.low %v7383_v33, %v7387_v34  ;;  %v7727_v33 = vld [vmem:[#allocation7 + $0xdd0] sm:$0xff] }
 0xa9b   :  { %10755 = vmatprep.subr.bf16.mxu0 %v12730_v51  ;;  %v12810_v51 = vcombine.high %v7375_v47, %v7379_v43  ;;  %v7731_v34 = vld [vmem:[#allocation7 + $0xdf0] sm:$0xff] }
 0xa9c   :  { %10797 = vmatpush1.bf16.msra.mxu1 %v12865_v58  ;;  %v12945_v58 = vcombine.low %v7511_v35, %v7515_v36  ;;  %v12785_v36 = vcombine.low %v7351_v49, %v7355_v45 }
 0xa9d   :  { %10798 = vmatprep.subr.bf16.mxu1 %v12858_v3  ;;  %v12938_v3 = vcombine.high %v7503_v44, %v7507_v57 }
 0xa9e   :  { %10756 = vmatpush1.bf16.msra.mxu0 %v12729_v37  ;;  %v12809_v37 = vcombine.low %v7375_v47, %v7379_v43  ;;  %v7591_v43 = vld [vmem:[#allocation7 + $0x990] sm:$0xff] }
 0xa9f   :  { %10757 = vmatprep.subr.bf16.mxu0 %v12722_v61  ;;  %v12802_v61 = vcombine.high %v7367_v60, %v7371_v50 }
 0xaa0   :  { %10799 = vmatpush1.bf16.msra.mxu1 %v12857_v17  ;;  %v12937_v17 = vcombine.low %v7503_v44, %v7507_v57  ;;  %v7595_v44 = vld [vmem:[#allocation7 + $0x9b0] sm:$0xff] }
 0xaa1   :  { %10800 = vmatprep.subr.bf16.mxu1 %v12850_v52  ;;  %v12930_v52 = vcombine.high %v7495_v4, %v7499_v19  ;;  %v7719_v57 = vld [vmem:[#allocation7 + $0xd90] sm:$0xff] }
 0xaa2   :  { %10758 = vmatpush1.bf16.msra.mxu0 %v12721_v9  ;;  %v12801_v9 = vcombine.low %v7367_v60, %v7371_v50  ;;  %v13026_v60 = vcombine.high %v7591_v43, %v7595_v44 }
 0xaa3   :  { %10759 = vmatprep.subr.bf16.mxu0 %v12842_v10  ;;  %v12929_v10 = vcombine.low %v7495_v4, %v7499_v19 }
 0xaa4   :  { %10801 = vmatpush1.bf16.msra.mxu1 %v12849_v7  ;;  %v10433_v7 = vpop.f32.mrf.mxu0 }
 0xaa5   :  { %10802 = vmatprep.subr.bf16.mxu1 %v12970_v11  ;;  %v12794_v11 = vcombine.high %v7359_v63, %v7363_v0 }
 0xaa6   :  { %10760 = vmatpush2.bf16.msra.mxu0 %v12841_v38  ;;  %v14598_v38 = vld [vmem:[#allocation19] sm:$0xff]  ;;  %v10435_v14 = vpop.f32.mrf.mxu0 }
 0xaa7   :  { %10761 = vmatprep.subr.bf16.mxu0 %v12834_v12  ;;  %v7483_v12 = vld [vmem:[#allocation7 + $0x630] sm:$0xff]  ;;  %v7802_v26 = vrot.slane %v14598_v38, %v14405_v18  ;;  %v7806_v35 = vrot.slane %v14598_v38, %v14409_v22  ;;  %v13162_v18 = vcombine.high %v7727_v33, %v7731_v34  ;;  %v13161_v22 = vcombine.low %v7727_v33, %v7731_v34 }
 0xaa8   :  { %10803 = vmatpush2.bf16.msra.mxu1 %v12969_v8  ;;  %v7479_v8 = vld [vmem:[#allocation7 + $0x610] sm:$0xff] }
 0xaa9   :  { %10804 = vmatprep.subr.bf16.mxu1 %v12962_v13  ;;  %v12793_v13 = vcombine.low %v7359_v63, %v7363_v0  ;;  %v13025_v63 = vcombine.low %v7591_v43, %v7595_v44  ;;  %v7711_v0 = vld [vmem:[#allocation7 + $0xd50] sm:$0xff] }
 0xaaa   :  { %10762 = vmatpush2.bf16.msra.mxu0 %v12833_v27  ;;  %v10478_v27 = vpop.f32.mrf.mxu1  ;;  %v7695_v44 = vld [vmem:[#allocation7 + $0xcd0] sm:$0xff] }
 0xaab   :  { %10763 = vmatprep.subr.bf16.mxu0 %v12826_v32  ;;  %v7599_v32 = vld [vmem:[#allocation7 + $0x9d0] sm:$0xff] }
 0xaac   :  { %10805 = vmatpush2.bf16.msra.mxu1 %v12961_v31  ;;  %v12914_v31 = vcombine.high %v7479_v8, %v7483_v12  ;;  %v10480_v47 = vpop.f32.mrf.mxu1 }
 0xaad   :  { %10806 = vmatprep.subr.bf16.mxu1 %v12954_v2  ;;  %v7603_v2 = vld [vmem:[#allocation7 + $0x9f0] sm:$0xff] }
 0xaae   :  { %10764 = vmatpush2.bf16.msra.mxu0 %v12825_v39  ;;  %v10437_v39 = vpop.f32.mrf.mxu0  ;;  %v10482_v19 = vpop.f32.mrf.mxu1 }
 0xaaf   :  { %10765 = vmatprep.subr.bf16.mxu0 %v12818_v41  ;;  %v13034_v41 = vcombine.high %v7599_v32, %v7603_v2  ;;  %v10438_v4 = vadd.f32 %v10437_v39, %v7802_v26 }
 0xab0   :  { %10807 = vmatpush2.bf16.msra.mxu1 %v12953_v40  ;;  %v12913_v40 = vcombine.low %v7479_v8, %v7483_v12  ;;  %v13146_v12 = vcombine.high %v7711_v0, %v7715_v42 }
 0xab1   :  { %10808 = vmatprep.subr.bf16.mxu1 %v12946_v48  ;;  %v10434_v48 = vadd.f32 %v10433_v7, %v7802_v26  ;;  %v10481_v49 = vadd.f32 %v10480_v47, %v10438_v4  ;;  %v7707_v26 = vld [vmem:[#allocation7 + $0xd30] sm:$0xff] }
 0xab2   :  { %10766 = vmatpush2.bf16.msra.mxu0 %v12817_v30  ;;  %v7723_v30 = vld [vmem:[#allocation7 + $0xdb0] sm:$0xff] }
 0xab3   :  { %10767 = vmatprep.subr.bf16.mxu0 %v12810_v51  ;;  %v13033_v51 = vcombine.low %v7599_v32, %v7603_v2  ;;  %v10477_v50 = vadd.f32 %v10476_v59, %v10434_v48  ;;  %v13153_v59 = vcombine.low %v7719_v57, %v7723_v30  ;;  %v7567_v47 = vld [vmem:[#allocation7 + $0x8d0] sm:$0xff] }
 0xab4   :  { %10809 = vmatpush2.bf16.msra.mxu1 %v12945_v58  ;;  %v10436_v58 = vadd.f32 %v10435_v14, %v7806_v35  ;;  %v7579_v14 = vld [vmem:[#allocation7 + $0x930] sm:$0xff] }
 0xab5   :  { %10810 = vmatprep.subr.bf16.mxu1 %v12938_v3  ;;  %v10439_v3 = vpop.f32.mrf.mxu0 }
 0xab6   :  { %10768 = vmatpush2.bf16.msra.mxu0 %v12809_v37  ;;  %v13154_v37 = vcombine.high %v7719_v57, %v7723_v30  ;;  %v10479_v5 = vadd.f32 %v10478_v27, %v10436_v58  ;;  %v7699_v57 = vld [vmem:[#allocation7 + $0xcf0] sm:$0xff] }
 0xab7   :  { %10769 = vmatprep.subr.bf16.mxu0 %v12802_v61  ;;  %v7587_v61 = vld [vmem:[#allocation7 + $0x970] sm:$0xff] }
 0xab8   :  { %10811 = vmatpush2.bf16.msra.mxu1 %v12937_v17  ;;  %v7583_v17 = vld [vmem:[#allocation7 + $0x950] sm:$0xff] }
 0xab9   :  { %10812 = vmatprep.subr.bf16.mxu1 %v12930_v52  ;;  %v13017_v33 = vcombine.low %v7583_v17, %v7587_v61 }
 0xaba   :  { %10770 = vmatpush2.bf16.msra.mxu0 %v12801_v9  ;;  %v10440_v9 = vadd.f32 %v10439_v3, %v7806_v35  ;;  %v13145_v35 = vcombine.low %v7711_v0, %v7715_v42 }
 0xabb   :  { %10771 = vmatprep.subr.bf16.mxu0 %v12794_v11 }
 0xabc   :  { %10813 = vmatpush2.bf16.msra.mxu1 %v12929_v10  ;;  %v10483_v27 = vadd.f32 %v10482_v19, %v10440_v9 }
 0xabd   :  { %10814 = vmatprep.subr.bf16.mxu1 %v12922_v16  ;;  %v13018_v16 = vcombine.high %v7583_v17, %v7587_v61  ;;  %v7559_v17 = vld [vmem:[#allocation7 + $0x890] sm:$0xff] }
 0xabe   :  { %10772 = vmatpush2.bf16.msra.mxu0 %v12793_v13  ;;  %v7575_v13 = vld [vmem:[#allocation7 + $0x910] sm:$0xff] }
 0xabf   :  { %10773 = vmatprep.subr.bf16.mxu0 %v12786_v15  ;;  %v7703_v15 = vld [vmem:[#allocation7 + $0xd10] sm:$0xff]  ;;  %v13009_v3 = vcombine.low %v7575_v13, %v7579_v14 }
 0xac0   :  { %10815 = vmatpush2.bf16.msra.mxu1 %v12921_v25  ;;  %v13138_v48 = vcombine.high %v7703_v15, %v7707_v26  ;;  %v7563_v61 = vld [vmem:[#allocation7 + $0x8b0] sm:$0xff] }
 0xac1   :  { %10816 = vmatprep.subr.bf16.mxu1 %v12914_v31  ;;  %v12994_v9 = vcombine.high %v7559_v17, %v7563_v61 }
 0xac2   :  { %10774 = vmatpush2.bf16.msra.mxu0 %v12785_v36  ;;  %v13010_v36 = vcombine.high %v7575_v13, %v7579_v14  ;;  %v7543_v13 = vld [vmem:[#allocation7 + $0x810] sm:$0xff] }
 0xac3   :  { %10829 = vmatprep.subr.bf16.mxu0 %v13034_v41  ;;  %v7547_v14 = vld [vmem:[#allocation7 + $0x830] sm:$0xff] }
 0xac4   :  { %10817 = vmatpush2.bf16.msra.mxu1 %v12913_v40 }
 0xac5   :  { %10872 = vmatprep.subr.bf16.mxu1 %v13162_v18  ;;  %v10519_v52 = vpop.f32.mrf.mxu0  ;;  %10776 = vmatmul.mubr.bf16.vlgmr.msra.gmra.mxu0 %v14560_v24  ;;  %v7571_v18 = vld [vmem:[#allocation7 + $0x8f0] sm:$0xff] }
 0xac6   :  { %v10520_v7 = vadd.f32 %v10519_v52, %v10477_v50  ;;  %10830 = vmatpush1.bf16.msra.mxu0 %v13033_v51  ;;  %10861 = vmatprep.mubr.bf16.mxu0 %v14576_v1  ;;  %v7687_v52 = vld [vmem:[#allocation7 + $0xc90] sm:$0xff]  ;;  %v13001_v42 = vcombine.low %v7567_v47, %v7571_v18 }
 0xac7   :  { %v10562_v10 = vpop.f32.mrf.mxu1  ;;  %10819 = vmatmul.mubr.bf16.vlgmr.msra.gmra.mxu1 %v14562_v6  ;;  %v10521_v11 = vpop.f32.mrf.mxu0  ;;  %10831 = vmatprep.subr.bf16.mxu0 %v13026_v60  ;;  %v13002_v60 = vcombine.high %v7567_v47, %v7571_v18  ;;  %v7659_v47 = vld [vmem:[#allocation7 + $0xbb0] sm:$0xff] }
 0xac8   :  { %10873 = vmatpush1.bf16.msra.mxu1 %v13161_v22  ;;  %v10522_v45 = vadd.f32 %v10521_v11, %v10479_v5  ;;  %10904 = vmatprep.mubr.bf16.mxu1 %v14578_v46  ;;  %v10563_v31 = vadd.f32 %v10562_v10, %v10520_v7  ;;  %v13137_v22 = vcombine.low %v7703_v15, %v7707_v26  ;;  %v7551_v10 = vld [vmem:[#allocation7 + $0x850] sm:$0xff] }
 0xac9   :  { %v10564_v8 = vpop.f32.mrf.mxu1  ;;  %10874 = vmatprep.subr.bf16.mxu1 %v13154_v37  ;;  %v10523_v25 = vpop.f32.mrf.mxu0  ;;  %v13130_v37 = vcombine.high %v7695_v44, %v7699_v57  ;;  %v13129_v5 = vcombine.low %v7695_v44, %v7699_v57  ;;  %v7555_v11 = vld [vmem:[#allocation7 + $0x870] sm:$0xff] }
 0xaca   :  { %v10524_v32 = vadd.f32 %v10523_v25, %v10481_v49  ;;  %10832 = vmatpush1.bf16.msra.mxu0 %v13025_v63  ;;  %v10565_v39 = vadd.f32 %v10564_v8, %v10522_v45  ;;  %v11087_v30 = vmax.f32 %v10563_v31, 0.0  ;;  %v7691_v63 = vld [vmem:[#allocation7 + $0xcb0] sm:$0xff]  ;;  %v12993_v49 = vcombine.low %v7559_v17, %v7563_v61 }
 0xacb   :  { %v10566_v2 = vpop.f32.mrf.mxu1  ;;  %v10525_v34 = vpop.f32.mrf.mxu0  ;;  %10833 = vmatprep.subr.bf16.mxu0 %v13018_v16  ;;  %v13122_v7 = vcombine.high %v7687_v52, %v7691_v63  ;;  %v7683_v16 = vld [vmem:[#allocation7 + $0xc70] sm:$0xff]  ;;  %v13121_v45 = vcombine.low %v7687_v52, %v7691_v63  ;;  %v12986_v8 = vcombine.high %v7551_v10, %v7555_v11  ;;  %v12985_v26 = vcombine.low %v7551_v10, %v7555_v11 }
 0xacc   :  { %10875 = vmatpush1.bf16.msra.mxu1 %v13153_v59  ;;  %v10567_v40 = vadd.f32 %v10566_v2, %v10524_v32  ;;  %v10526_v41 = vadd.f32 %v10525_v34, %v10483_v27  ;;  %v11088_v50 = vmax.f32 %v10565_v39, 0.0  ;;  %v7679_v59 = vld [vmem:[#allocation7 + $0xc50] sm:$0xff]  ;;  %v12978_v31 = vcombine.high %v7543_v13, %v7547_v14 }
 0xacd   :  { %10876 = vmatprep.subr.bf16.mxu1 %v13146_v12  ;;  %v10568_v43 = vpop.f32.mrf.mxu1  ;;  %v13114_v12 = vcombine.high %v7679_v59, %v7683_v16  ;;  %v7671_v25 = vld [vmem:[#allocation7 + $0xc10] sm:$0xff]  ;;  %v13113_v27 = vcombine.low %v7679_v59, %v7683_v16 }
 0xace   :  { %v11095_v58 = vmax.f32 %v10567_v40, 0.0  ;;  %v10569_v51 = vadd.f32 %v10568_v43, %v10526_v41  ;;  %10834 = vmatpush1.bf16.msra.mxu0 %v13017_v33  ;;  %v7675_v15 = vld [vmem:[#allocation7 + $0xc30] sm:$0xff] }
 0xacf   :  { %10835 = vmatprep.subr.bf16.mxu0 %v13010_v36  ;;  %v13106_v32 = vcombine.high %v7671_v25, %v7675_v15  ;;  %v7663_v2 = vld [vmem:[#allocation7 + $0xbd0] sm:$0xff]  ;;  %v12977_v36 = vcombine.low %v7543_v13, %v7547_v14  ;;  %v13105_v39 = vcombine.low %v7671_v25, %v7675_v15 }
 0xad0   :  { %10877 = vmatpush1.bf16.msra.mxu1 %v13145_v35  ;;  %v14608_v4 = vpack.c.bf16 %v11095_v58, %v11087_v30  ;;  %v11096_v19 = vmax.f32 %v10569_v51, 0.0  ;;  %v7667_v33 = vld [vmem:[#allocation7 + $0xbf0] sm:$0xff] }
 0xad1   :  { %10878 = vmatprep.subr.bf16.mxu1 %v13138_v48  ;;  %v7791_v34 = vld [vmem:[#allocation7 + $0xfd0] sm:$0xff]  ;;  %v13098_v40 = vcombine.high %v7663_v2, %v7667_v33  ;;  %v13097_v44 = vcombine.low %v7663_v2, %v7667_v33 }
 0xad2   :  { %v14610_v0 = vpack.c.bf16 %v11096_v19, %v11088_v50  ;;  %10836 = vmatpush1.bf16.msra.mxu0 %v13009_v3  ;;  %v7795_v35 = vld [vmem:[#allocation7 + $0xff0] sm:$0xff] }
 0xad3   :  { %10837 = vmatprep.subr.bf16.mxu0 %v13002_v60  ;;  %v13226_v41 = vcombine.high %v7791_v34, %v7795_v35  ;;  %v7655_v48 = vld [vmem:[#allocation7 + $0xb90] sm:$0xff]  ;;  %v13225_v57 = vcombine.low %v7791_v34, %v7795_v35 }
 0xad4   :  { %10879 = vmatpush1.bf16.msra.mxu1 %v13137_v22  ;;  %v7783_v18 = vld [vmem:[#allocation7 + $0xf90] sm:$0xff]  ;;  %v13090_v30 = vcombine.high %v7655_v48, %v7659_v47  ;;  %v13089_v50 = vcombine.low %v7655_v48, %v7659_v47 }
 0xad5   :  { %10880 = vmatprep.subr.bf16.mxu1 %v13130_v37  ;;  %v7787_v43 = vld [vmem:[#allocation7 + $0xfb0] sm:$0xff] }
 0xad6   :  { %10838 = vmatpush1.bf16.msra.mxu0 %v13001_v42  ;;  %v13218_v58 = vcombine.high %v7783_v18, %v7787_v43  ;;  %v7647_v51 = vld [vmem:[#allocation7 + $0xb50] sm:$0xff]  ;;  %v13217_v19 = vcombine.low %v7783_v18, %v7787_v43 }
 0xad7   :  { %10839 = vmatprep.subr.bf16.mxu0 %v12994_v9  ;;  %v7651_v3 = vld [vmem:[#allocation7 + $0xb70] sm:$0xff] }
 0xad8   :  { %10881 = vmatpush1.bf16.msra.mxu1 %v13129_v5  ;;  %v7775_v22 = vld [vmem:[#allocation7 + $0xf50] sm:$0xff]  ;;  %v13082_v37 = vcombine.high %v7647_v51, %v7651_v3  ;;  %v13081_v5 = vcombine.low %v7647_v51, %v7651_v3  ;;  %v7344_v3 = vld [vmem:[#allocation7 + $0x1d8] sm:$0xff] }
 0xad9   :  { %10882 = vmatprep.subr.bf16.mxu1 %v13122_v7  ;;  %v7779_v60 = vld [vmem:[#allocation7 + $0xf70] sm:$0xff] }
 0xada   :  { %10840 = vmatpush1.bf16.msra.mxu0 %v12993_v49  ;;  %v13210_v17 = vcombine.high %v7775_v22, %v7779_v60  ;;  %v7639_v61 = vld [vmem:[#allocation7 + $0xb10] sm:$0xff]  ;;  %v13209_v9 = vcombine.low %v7775_v22, %v7779_v60  ;;  %v7348_v22 = vld [vmem:[#allocation7 + $0x1f8] sm:$0xff] }
 0xadb   :  { %10841 = vmatprep.subr.bf16.mxu0 %v12986_v8  ;;  %v7643_v52 = vld [vmem:[#allocation7 + $0xb30] sm:$0xff]  ;;  %v7472_v60 = vld [vmem:[#allocation7 + $0x5d8] sm:$0xff] }
 0xadc   :  { %10883 = vmatpush1.bf16.msra.mxu1 %v13121_v45  ;;  %v7767_v63 = vld [vmem:[#allocation7 + $0xf10] sm:$0xff]  ;;  %v13074_v7 = vcombine.high %v7639_v61, %v7643_v52  ;;  %v13073_v45 = vcombine.low %v7639_v61, %v7643_v52  ;;  %v7336_v52 = vld [vmem:[#allocation7 + $0x198] sm:$0xff] }
 0xadd   :  { %10884 = vmatprep.subr.bf16.mxu1 %v13114_v12  ;;  %v7771_v42 = vld [vmem:[#allocation7 + $0xf30] sm:$0xff] }
 0xade   :  { %10842 = vmatpush1.bf16.msra.mxu0 %v12985_v26  ;;  %v13202_v10 = vcombine.high %v7767_v63, %v7771_v42  ;;  %v7631_v11 = vld [vmem:[#allocation7 + $0xad0] sm:$0xff]  ;;  %v13201_v8 = vcombine.low %v7767_v63, %v7771_v42  ;;  %v7340_v63 = vld [vmem:[#allocation7 + $0x1b8] sm:$0xff] }
 0xadf   :  { %10843 = vmatprep.subr.bf16.mxu0 %v12978_v31  ;;  %v7635_v59 = vld [vmem:[#allocation7 + $0xaf0] sm:$0xff]  ;;  %v7464_v42 = vld [vmem:[#allocation7 + $0x598] sm:$0xff] }
 0xae0   :  { %10885 = vmatpush1.bf16.msra.mxu1 %v13113_v27  ;;  %v7759_v16 = vld [vmem:[#allocation7 + $0xed0] sm:$0xff]  ;;  %v13066_v12 = vcombine.high %v7631_v11, %v7635_v59  ;;  %v13065_v27 = vcombine.low %v7631_v11, %v7635_v59  ;;  %v7328_v59 = vld [vmem:[#allocation7 + $0x158] sm:$0xff] }
 0xae1   :  { %10886 = vmatprep.subr.bf16.mxu1 %v13106_v32  ;;  %v7763_v49 = vld [vmem:[#allocation7 + $0xef0] sm:$0xff] }
 0xae2   :  { %10844 = vmatpush1.bf16.msra.mxu0 %v12977_v36  ;;  %v13194_v13 = vcombine.high %v7759_v16, %v7763_v49  ;;  %v7623_v14 = vld [vmem:[#allocation7 + $0xa90] sm:$0xff]  ;;  %v13193_v31 = vcombine.low %v7759_v16, %v7763_v49  ;;  %v7332_v16 = vld [vmem:[#allocation7 + $0x178] sm:$0xff] }
 0xae3   :  { %10845 = vmatprep.subr.bf16.mxu0 %v13098_v40  ;;  %v7627_v25 = vld [vmem:[#allocation7 + $0xab0] sm:$0xff]  ;;  %v7456_v49 = vld [vmem:[#allocation7 + $0x558] sm:$0xff] }
 0xae4   :  { %10887 = vmatpush1.bf16.msra.mxu1 %v13105_v39  ;;  %v7751_v15 = vld [vmem:[#allocation7 + $0xe90] sm:$0xff]  ;;  %v13058_v32 = vcombine.high %v7623_v14, %v7627_v25  ;;  %v13057_v39 = vcombine.low %v7623_v14, %v7627_v25  ;;  %v7320_v25 = vld [vmem:[#allocation7 + $0x118] sm:$0xff] }
 0xae5   :  { %10888 = vmatprep.subr.bf16.mxu1 %v13226_v41  ;;  %v7755_v26 = vld [vmem:[#allocation7 + $0xeb0] sm:$0xff] }
 0xae6   :  { %10846 = vmatpush2.bf16.msra.mxu0 %v13097_v44  ;;  %v13186_v2 = vcombine.high %v7751_v15, %v7755_v26  ;;  %v7615_v33 = vld [vmem:[#allocation7 + $0xa50] sm:$0xff]  ;;  %v13185_v40 = vcombine.low %v7751_v15, %v7755_v26  ;;  %v7324_v15 = vld [vmem:[#allocation7 + $0x138] sm:$0xff] }
 0xae7   :  { %10847 = vmatprep.subr.bf16.mxu0 %v13090_v30  ;;  %v7619_v34 = vld [vmem:[#allocation7 + $0xa70] sm:$0xff]  ;;  %v7448_v26 = vld [vmem:[#allocation7 + $0x518] sm:$0xff] }
 0xae8   :  { %10889 = vmatpush2.bf16.msra.mxu1 %v13225_v57  ;;  %v7743_v35 = vld [vmem:[#allocation7 + $0xe50] sm:$0xff]  ;;  %v13050_v41 = vcombine.high %v7615_v33, %v7619_v34  ;;  %v13049_v57 = vcombine.low %v7615_v33, %v7619_v34  ;;  %v7312_v34 = vld [vmem:[#allocation7 + $0xd8] sm:$0xff] }
 0xae9   :  { %10890 = vmatprep.subr.bf16.mxu1 %v13218_v58  ;;  %v7747_v36 = vld [vmem:[#allocation7 + $0xe70] sm:$0xff] }
 0xaea   :  { %10848 = vmatpush2.bf16.msra.mxu0 %v13089_v50  ;;  %v13178_v48 = vcombine.high %v7743_v35, %v7747_v36  ;;  %v7607_v47 = vld [vmem:[#allocation7 + $0xa10] sm:$0xff]  ;;  %v13177_v30 = vcombine.low %v7743_v35, %v7747_v36  ;;  %v7476_v50 = vld [vmem:[#allocation7 + $0x5f8] sm:$0xff] }
 0xaeb   :  { %10849 = vmatprep.subr.bf16.mxu0 %v13082_v37  ;;  %v7611_v18 = vld [vmem:[#allocation7 + $0xa30] sm:$0xff]  ;;  %v12908_v61 = vcombine.high %v7472_v60, %v7476_v50  ;;  %v7316_v35 = vld [vmem:[#allocation7 + $0xf8] sm:$0xff] }
 0xaec   :  { %10891 = vmatpush2.bf16.msra.mxu1 %v13217_v19  ;;  %v7735_v43 = vld [vmem:[#allocation7 + $0xe10] sm:$0xff]  ;;  %v13042_v58 = vcombine.high %v7607_v47, %v7611_v18  ;;  %v13041_v19 = vcombine.low %v7607_v47, %v7611_v18  ;;  %v7440_v36 = vld [vmem:[#allocation7 + $0x4d8] sm:$0xff] }
 0xaed   :  { %10892 = vmatprep.subr.bf16.mxu1 %v13210_v17  ;;  %v7739_v44 = vld [vmem:[#allocation7 + $0xe30] sm:$0xff]  ;;  %v12780_v17 = vcombine.high %v7344_v3, %v7348_v22  ;;  %v7308_v47 = vld [vmem:[#allocation7 + $0xb8] sm:$0xff] }
 0xaee   :  { %10850 = vmatpush2.bf16.msra.mxu0 %v13081_v5  ;;  %v13170_v51 = vcombine.high %v7735_v43, %v7739_v44  ;;  %v13169_v37 = vcombine.low %v7735_v43, %v7739_v44  ;;  %v7468_v5 = vld [vmem:[#allocation7 + $0x5b8] sm:$0xff]  ;;  %v12747_v44 = vcombine.low %v7312_v34, %v7316_v35 }
 0xaef   :  { %10851 = vmatprep.subr.bf16.mxu0 %v13074_v7  ;;  %v12907_v7 = vcombine.low %v7472_v60, %v7476_v50  ;;  %v12900_v11 = vcombine.high %v7464_v42, %v7468_v5  ;;  %v7432_v18 = vld [vmem:[#allocation7 + $0x498] sm:$0xff] }
 0xaf0   :  { %10893 = vmatpush2.bf16.msra.mxu1 %v13209_v9  ;;  %v12779_v9 = vcombine.low %v7344_v3, %v7348_v22  ;;  %v7436_v43 = vld [vmem:[#allocation7 + $0x4b8] sm:$0xff] }
 0xaf1   :  { %10894 = vmatprep.subr.bf16.mxu1 %v13202_v10  ;;  %v12772_v10 = vcombine.high %v7336_v52, %v7340_v63  ;;  %v7300_v3 = vld [vmem:[#allocation7 + $0x78] sm:$0xff] }
 0xaf2   :  { %10852 = vmatpush2.bf16.msra.mxu0 %v13073_v45  ;;  %v7460_v45 = vld [vmem:[#allocation7 + $0x578] sm:$0xff] }
 0xaf3   :  { %10853 = vmatprep.subr.bf16.mxu0 %v13066_v12  ;;  %v12899_v12 = vcombine.low %v7464_v42, %v7468_v5  ;;  %v12892_v14 = vcombine.high %v7456_v49, %v7460_v45  ;;  %v7424_v22 = vld [vmem:[#allocation7 + $0x458] sm:$0xff] }
 0xaf4   :  { %10895 = vmatpush2.bf16.msra.mxu1 %v13201_v8  ;;  %v12771_v8 = vcombine.low %v7336_v52, %v7340_v63  ;;  %v7428_v60 = vld [vmem:[#allocation7 + $0x478] sm:$0xff] }
 0xaf5   :  { %10896 = vmatprep.subr.bf16.mxu1 %v13194_v13  ;;  %v12764_v13 = vcombine.high %v7328_v59, %v7332_v16  ;;  %v7292_v52 = vld [vmem:[#allocation7 + $0x38] sm:$0xff] }
 0xaf6   :  { %10854 = vmatpush2.bf16.msra.mxu0 %v13065_v27  ;;  %v7452_v27 = vld [vmem:[#allocation7 + $0x538] sm:$0xff] }
 0xaf7   :  { %10855 = vmatprep.subr.bf16.mxu0 %v13058_v32  ;;  %v12891_v32 = vcombine.low %v7456_v49, %v7460_v45  ;;  %v12884_v33 = vcombine.high %v7448_v26, %v7452_v27  ;;  %v7416_v63 = vld [vmem:[#allocation7 + $0x418] sm:$0xff] }
 0xaf8   :  { %10897 = vmatpush2.bf16.msra.mxu1 %v13193_v31  ;;  %v12763_v31 = vcombine.low %v7328_v59, %v7332_v16  ;;  %v7420_v42 = vld [vmem:[#allocation7 + $0x438] sm:$0xff] }
 0xaf9   :  { %10898 = vmatprep.subr.bf16.mxu1 %v13186_v2  ;;  %v12756_v2 = vcombine.high %v7320_v25, %v7324_v15  ;;  %v7412_v59 = vld [vmem:[#allocation7 + $0x3f8] sm:$0xff] }
 0xafa   :  { %10856 = vmatpush2.bf16.msra.mxu0 %v13057_v39  ;;  %v7444_v39 = vld [vmem:[#allocation7 + $0x4f8] sm:$0xff] }
 0xafb   :  { %10857 = vmatprep.subr.bf16.mxu0 %v13050_v41  ;;  %v12748_v41 = vcombine.high %v7312_v34, %v7316_v35  ;;  %v7536_v16 = vld [vmem:[#allocation7 + $0x7d8] sm:$0xff] }
 0xafc   :  { %10899 = vmatpush2.bf16.msra.mxu1 %v13185_v40  ;;  %v12755_v40 = vcombine.low %v7320_v25, %v7324_v15  ;;  %v7540_v49 = vld [vmem:[#allocation7 + $0x7f8] sm:$0xff] }
 0xafd   :  { %10900 = vmatprep.subr.bf16.mxu1 %v13178_v48  ;;  %v7304_v48 = vld [vmem:[#allocation7 + $0x98] sm:$0xff] }
 0xafe   :  { %10858 = vmatpush2.bf16.msra.mxu0 %v13049_v57  ;;  %v12875_v57 = vcombine.low %v7440_v36, %v7444_v39  ;;  %v12739_v50 = vcombine.low %v7304_v48, %v7308_v47  ;;  %v7404_v25 = vld [vmem:[#allocation7 + $0x3b8] sm:$0xff] }
 0xaff   :  { %10859 = vmatprep.subr.bf16.mxu0 %v13042_v58  ;;  %v12868_v58 = vcombine.high %v7432_v18, %v7436_v43  ;;  %v7528_v15 = vld [vmem:[#allocation7 + $0x798] sm:$0xff] }
 0xb00   :  { %10901 = vmatpush2.bf16.msra.mxu1 %v13177_v30  ;;  %v12740_v30 = vcombine.high %v7304_v48, %v7308_v47  ;;  %v7396_v34 = vld [vmem:[#allocation7 + $0x378] sm:$0xff] }
 0xb01   :  { %10902 = vmatprep.subr.bf16.mxu1 %v13170_v51  ;;  %v7296_v51 = vld [vmem:[#allocation7 + $0x58] sm:$0xff] }
 0xb02   :  { %10860 = vmatpush2.bf16.msra.mxu0 %v13041_v19  ;;  %v12867_v19 = vcombine.low %v7432_v18, %v7436_v43  ;;  %v12731_v5 = vcombine.low %v7296_v51, %v7300_v3  ;;  %v7520_v35 = vld [vmem:[#allocation7 + $0x758] sm:$0xff] }
 0xb03   :  { %10915 = vmatprep.subr.bf16.mxu0 %v12780_v17  ;;  %v12860_v17 = vcombine.high %v7424_v22, %v7428_v60  ;;  %v7388_v48 = vld [vmem:[#allocation7 + $0x338] sm:$0xff] }
 0xb04   :  { %10903 = vmatpush2.bf16.msra.mxu1 %v13169_v37  ;;  %v12732_v37 = vcombine.high %v7296_v51, %v7300_v3  ;;  %v7512_v47 = vld [vmem:[#allocation7 + $0x718] sm:$0xff] }
 0xb05   :  { %10958 = vmatprep.subr.bf16.mxu1 %v12908_v61  ;;  %10862 = vmatmul.mubr.bf16.vlgmr.msra.gmra.mxu0 %v14572_v62  ;;  %v7288_v61 = vld [vmem:[#allocation7 + $0x18] sm:$0xff] }
 0xb06   :  { %10916 = vmatpush1.bf16.msra.mxu0 %v12779_v9  ;;  %10947 = vmatprep.mubr.bf16.mxu0 %v14564_v20  ;;  %v12883_v20 = vcombine.low %v7448_v26, %v7452_v27  ;;  %v12859_v9 = vcombine.low %v7424_v22, %v7428_v60  ;;  %v12723_v45 = vcombine.low %v7288_v61, %v7292_v52  ;;  %v7532_v26 = vld [vmem:[#allocation7 + $0x7b8] sm:$0xff] }
 0xb07   :  { %10905 = vmatmul.mubr.bf16.vlgmr.msra.gmra.mxu1 %v14574_v29  ;;  %10917 = vmatprep.subr.bf16.mxu0 %v12772_v10  ;;  %v12852_v10 = vcombine.high %v7416_v63, %v7420_v42  ;;  %v7516_v18 = vld [vmem:[#allocation7 + $0x738] sm:$0xff] }
 0xb08   :  { %10959 = vmatpush1.bf16.msra.mxu1 %v12907_v7  ;;  %10990 = vmatprep.mubr.bf16.mxu1 %v14566_v28  ;;  %v12876_v28 = vcombine.high %v7440_v36, %v7444_v39  ;;  %v12724_v7 = vcombine.high %v7288_v61, %v7292_v52  ;;  %v7524_v36 = vld [vmem:[#allocation7 + $0x778] sm:$0xff] }
 0xb09   :  { %10960 = vmatprep.subr.bf16.mxu1 %v12900_v11  ;;  %v7408_v11 = vld [vmem:[#allocation7 + $0x3d8] sm:$0xff] }
 0xb0a   :  { %10918 = vmatpush1.bf16.msra.mxu0 %v12771_v8  ;;  %v12851_v8 = vcombine.low %v7416_v63, %v7420_v42  ;;  %v12843_v27 = vcombine.low %v7408_v11, %v7412_v59  ;;  %v7380_v51 = vld [vmem:[#allocation7 + $0x2f8] sm:$0xff] }
 0xb0b   :  { %10919 = vmatprep.subr.bf16.mxu0 %v12764_v13  ;;  %v12972_v13 = vcombine.high %v7536_v16, %v7540_v49  ;;  %v7504_v3 = vld [vmem:[#allocation7 + $0x6d8] sm:$0xff] }
 0xb0c   :  { %10961 = vmatpush1.bf16.msra.mxu1 %v12899_v12  ;;  %v12844_v12 = vcombine.high %v7408_v11, %v7412_v59  ;;  %v7508_v22 = vld [vmem:[#allocation7 + $0x6f8] sm:$0xff] }
 0xb0d   :  { %10962 = vmatprep.subr.bf16.mxu1 %v12892_v14  ;;  %v7400_v14 = vld [vmem:[#allocation7 + $0x398] sm:$0xff] }
 0xb0e   :  { %10920 = vmatpush1.bf16.msra.mxu0 %v12763_v31  ;;  %v12971_v31 = vcombine.low %v7536_v16, %v7540_v49  ;;  %v12835_v39 = vcombine.low %v7400_v14, %v7404_v25  ;;  %v7372_v61 = vld [vmem:[#allocation7 + $0x2b8] sm:$0xff] }
 0xb0f   :  { %10921 = vmatprep.subr.bf16.mxu0 %v12756_v2  ;;  %v12964_v2 = vcombine.high %v7528_v15, %v7532_v26  ;;  %v7496_v52 = vld [vmem:[#allocation7 + $0x698] sm:$0xff] }
 0xb10   :  { %10963 = vmatpush1.bf16.msra.mxu1 %v12891_v32  ;;  %v12836_v32 = vcombine.high %v7400_v14, %v7404_v25  ;;  %v7500_v63 = vld [vmem:[#allocation7 + $0x6b8] sm:$0xff] }
 0xb11   :  { %10964 = vmatprep.subr.bf16.mxu1 %v12884_v33  ;;  %v7392_v33 = vld [vmem:[#allocation7 + $0x358] sm:$0xff] }
 0xb12   :  { %10922 = vmatpush1.bf16.msra.mxu0 %v12755_v40  ;;  %v12963_v40 = vcombine.low %v7528_v15, %v7532_v26  ;;  %v12827_v43 = vcombine.low %v7392_v33, %v7396_v34  ;;  %v7364_v11 = vld [vmem:[#allocation7 + $0x278] sm:$0xff] }
 0xb13   :  { %10923 = vmatprep.subr.bf16.mxu0 %v12748_v41  ;;  %v12956_v41 = vcombine.high %v7520_v35, %v7524_v36  ;;  %v7488_v59 = vld [vmem:[#allocation7 + $0x658] sm:$0xff] }
 0xb14   :  { %10965 = vmatpush1.bf16.msra.mxu1 %v12883_v20  ;;  %v12828_v20 = vcombine.high %v7392_v33, %v7396_v34  ;;  %v7492_v16 = vld [vmem:[#allocation7 + $0x678] sm:$0xff]  ;;  %v7810_v34 = vrot.slane %v14598_v38, %v14407_v21 }
 0xb15   :  { %10966 = vmatprep.subr.bf16.mxu1 %v12876_v28  ;;  %v7384_v28 = vld [vmem:[#allocation7 + $0x318] sm:$0xff]  ;;  %v12924_v14 = vcombine.high %v7488_v59, %v7492_v16 }
 0xb16   :  { %10924 = vmatpush1.bf16.msra.mxu0 %v12747_v44  ;;  %v12955_v44 = vcombine.low %v7520_v35, %v7524_v36  ;;  %v12819_v60 = vcombine.low %v7384_v28, %v7388_v48  ;;  %v7352_v25 = vld [vmem:[#allocation7 + $0x218] sm:$0xff] }
 0xb17   :  { %10925 = vmatprep.subr.bf16.mxu0 %v12740_v30  ;;  %v12948_v30 = vcombine.high %v7512_v47, %v7516_v18  ;;  %v7356_v15 = vld [vmem:[#allocation7 + $0x238] sm:$0xff] }
 0xb18   :  { %10967 = vmatpush1.bf16.msra.mxu1 %v12875_v57  ;;  %v12820_v57 = vcombine.high %v7384_v28, %v7388_v48  ;;  %v7480_v26 = vld [vmem:[#allocation7 + $0x618] sm:$0xff]  ;;  %v12788_v33 = vcombine.high %v7352_v25, %v7356_v15  ;;  %v7814_v28 = vrot.slane %v14598_v38, %v14411_v23  ;;  %v12787_v48 = vcombine.low %v7352_v25, %v7356_v15 }
 0xb19   :  { %10968 = vmatprep.subr.bf16.mxu1 %v12868_v58  ;;  %v7376_v58 = vld [vmem:[#allocation7 + $0x2d8] sm:$0xff] }
 0xb1a   :  { %10926 = vmatpush1.bf16.msra.mxu0 %v12739_v50  ;;  %v12947_v50 = vcombine.low %v7512_v47, %v7516_v18  ;;  %v12811_v42 = vcombine.low %v7376_v58, %v7380_v51  ;;  %v7576_v25 = vld [vmem:[#allocation7 + $0x918] sm:$0xff] }
 0xb1b   :  { %10927 = vmatprep.subr.bf16.mxu0 %v12732_v37  ;;  %v12940_v37 = vcombine.high %v7504_v3, %v7508_v22  ;;  %v7580_v15 = vld [vmem:[#allocation7 + $0x938] sm:$0xff] }
 0xb1c   :  { %10969 = vmatpush1.bf16.msra.mxu1 %v12867_v19  ;;  %v12812_v19 = vcombine.high %v7376_v58, %v7380_v51  ;;  %v7596_v58 = vld [vmem:[#allocation7 + $0x9b8] sm:$0xff] }
 0xb1d   :  { %10970 = vmatprep.subr.bf16.mxu1 %v12860_v17  ;;  %v7368_v17 = vld [vmem:[#allocation7 + $0x298] sm:$0xff] }
 0xb1e   :  { %10928 = vmatpush1.bf16.msra.mxu0 %v12731_v5  ;;  %v12939_v5 = vcombine.low %v7504_v3, %v7508_v22  ;;  %v12803_v49 = vcombine.low %v7368_v17, %v7372_v61  ;;  %v7720_v51 = vld [vmem:[#allocation7 + $0xd98] sm:$0xff] }
 0xb1f   :  { %10929 = vmatprep.subr.bf16.mxu0 %v12724_v7  ;;  %v12932_v7 = vcombine.high %v7496_v52, %v7500_v63  ;;  %v7724_v3 = vld [vmem:[#allocation7 + $0xdb8] sm:$0xff] }
 0xb20   :  { %10971 = vmatpush1.bf16.msra.mxu1 %v12859_v9  ;;  %v12804_v9 = vcombine.high %v7368_v17, %v7372_v61  ;;  %v13156_v61 = vcombine.high %v7720_v51, %v7724_v3 }
 0xb21   :  { %10972 = vmatprep.subr.bf16.mxu1 %v12852_v10  ;;  %v7360_v10 = vld [vmem:[#allocation7 + $0x258] sm:$0xff] }
 0xb22   :  { %10930 = vmatpush1.bf16.msra.mxu0 %v12723_v45  ;;  %v10605_v45 = vpop.f32.mrf.mxu0 }
 0xb23   :  { %10931 = vmatprep.subr.bf16.mxu0 %v12844_v12  ;;  %v12796_v12 = vcombine.high %v7360_v10, %v7364_v11 }
 0xb24   :  { %10973 = vmatpush1.bf16.msra.mxu1 %v12851_v8  ;;  %v12931_v8 = vcombine.low %v7496_v52, %v7500_v63  ;;  %v7584_v52 = vld [vmem:[#allocation7 + $0x958] sm:$0xff] }
 0xb25   :  { %10974 = vmatprep.subr.bf16.mxu1 %v12972_v13  ;;  %v10648_v13 = vpop.f32.mrf.mxu1  ;;  %v7588_v63 = vld [vmem:[#allocation7 + $0x978] sm:$0xff] }
 0xb26   :  { %10932 = vmatpush2.bf16.msra.mxu0 %v12843_v27  ;;  %v7484_v27 = vld [vmem:[#allocation7 + $0x638] sm:$0xff] }
 0xb27   :  { %10933 = vmatprep.subr.bf16.mxu0 %v12836_v32  ;;  %v10607_v32 = vpop.f32.mrf.mxu0  ;;  %v10650_v35 = vpop.f32.mrf.mxu1  ;;  %v12916_v36 = vcombine.high %v7480_v26, %v7484_v27  ;;  %v12915_v18 = vcombine.low %v7480_v26, %v7484_v27  ;;  %v7704_v27 = vld [vmem:[#allocation7 + $0xd18] sm:$0xff] }
 0xb28   :  { %10975 = vmatpush2.bf16.msra.mxu1 %v12971_v31  ;;  %v12795_v31 = vcombine.low %v7360_v10, %v7364_v11  ;;  %v10608_v22 = vadd.f32 %v10607_v32, %v7814_v28 }
 0xb29   :  { %10976 = vmatprep.subr.bf16.mxu1 %v12964_v2  ;;  %v12923_v2 = vcombine.low %v7488_v59, %v7492_v16  ;;  %v10609_v47 = vpop.f32.mrf.mxu0 }
 0xb2a   :  { %10934 = vmatpush2.bf16.msra.mxu0 %v12835_v39  ;;  %v7600_v39 = vld [vmem:[#allocation7 + $0x9d8] sm:$0xff]  ;;  %v10651_v10 = vadd.f32 %v10650_v35, %v10608_v22 }
 0xb2b   :  { %10935 = vmatprep.subr.bf16.mxu0 %v12828_v20  ;;  %v7728_v20 = vld [vmem:[#allocation7 + $0xdd8] sm:$0xff] }
 0xb2c   :  { %10977 = vmatpush2.bf16.msra.mxu1 %v12963_v40  ;;  %v7604_v40 = vld [vmem:[#allocation7 + $0x9f8] sm:$0xff] }
 0xb2d   :  { %10978 = vmatprep.subr.bf16.mxu1 %v12956_v41  ;;  %v7732_v41 = vld [vmem:[#allocation7 + $0xdf8] sm:$0xff] }
 0xb2e   :  { %10936 = vmatpush2.bf16.msra.mxu0 %v12827_v43  ;;  %v13036_v43 = vcombine.high %v7600_v39, %v7604_v40  ;;  %v13164_v21 = vcombine.high %v7728_v20, %v7732_v41  ;;  %v13163_v23 = vcombine.low %v7728_v20, %v7732_v41 }
 0xb2f   :  { %10937 = vmatprep.subr.bf16.mxu0 %v12820_v57  ;;  %v10652_v57 = vpop.f32.mrf.mxu1 }
 0xb30   :  { %10979 = vmatpush2.bf16.msra.mxu1 %v12955_v44  ;;  %v10606_v44 = vadd.f32 %v10605_v45, %v7810_v34  ;;  %v13155_v45 = vcombine.low %v7720_v51, %v7724_v3 }
 0xb31   :  { %10980 = vmatprep.subr.bf16.mxu1 %v12948_v30  ;;  %v7592_v30 = vld [vmem:[#allocation7 + $0x998] sm:$0xff]  ;;  %v10654_v17 = vpop.f32.mrf.mxu1 }
 0xb32   :  { %10938 = vmatpush2.bf16.msra.mxu0 %v12819_v60  ;;  %v13035_v60 = vcombine.low %v7600_v39, %v7604_v40  ;;  %v13028_v38 = vcombine.high %v7592_v30, %v7596_v58  ;;  %v13012_v39 = vcombine.high %v7576_v25, %v7580_v15 }
 0xb33   :  { %10939 = vmatprep.subr.bf16.mxu0 %v12812_v19  ;;  %v10649_v19 = vadd.f32 %v10648_v13, %v10606_v44 }
 0xb34   :  { %10981 = vmatpush2.bf16.msra.mxu1 %v12947_v50  ;;  %v10611_v50 = vpop.f32.mrf.mxu0 }
 0xb35   :  { %10982 = vmatprep.subr.bf16.mxu1 %v12940_v37  ;;  %v10610_v37 = vadd.f32 %v10609_v47, %v7810_v34  ;;  %v10612_v11 = vadd.f32 %v10611_v50, %v7814_v28  ;;  %v13019_v34 = vcombine.low %v7584_v52, %v7588_v63  ;;  %v7568_v28 = vld [vmem:[#allocation7 + $0x8d8] sm:$0xff] }
 0xb36   :  { %10940 = vmatpush2.bf16.msra.mxu0 %v12811_v42  ;;  %v7560_v50 = vld [vmem:[#allocation7 + $0x898] sm:$0xff] }
 0xb37   :  { %10941 = vmatprep.subr.bf16.mxu0 %v12804_v9  ;;  %v7712_v9 = vld [vmem:[#allocation7 + $0xd58] sm:$0xff] }
 0xb38   :  { %10983 = vmatpush2.bf16.msra.mxu1 %v12939_v5  ;;  %v13027_v5 = vcombine.low %v7592_v30, %v7596_v58 }
 0xb39   :  { %10984 = vmatprep.subr.bf16.mxu1 %v12932_v7  ;;  %v7716_v7 = vld [vmem:[#allocation7 + $0xd78] sm:$0xff] }
 0xb3a   :  { %10942 = vmatpush2.bf16.msra.mxu0 %v12803_v49 }
 0xb3b   :  { %10943 = vmatprep.subr.bf16.mxu0 %v12796_v12  ;;  %v10653_v12 = vadd.f32 %v10652_v57, %v10610_v37 }
 0xb3c   :  { %10985 = vmatpush2.bf16.msra.mxu1 %v12931_v8  ;;  %v13020_v8 = vcombine.high %v7584_v52, %v7588_v63 }
 0xb3d   :  { %10986 = vmatprep.subr.bf16.mxu1 %v12924_v14 }
 0xb3e   :  { %10944 = vmatpush2.bf16.msra.mxu0 %v12795_v31  ;;  %v7708_v31 = vld [vmem:[#allocation7 + $0xd38] sm:$0xff] }
 0xb3f   :  { %10945 = vmatprep.subr.bf16.mxu0 %v12788_v33  ;;  %v13139_v30 = vcombine.low %v7704_v27, %v7708_v31 }
 0xb40   :  { %10987 = vmatpush2.bf16.msra.mxu1 %v12923_v2 }
 0xb41   :  { %10988 = vmatprep.subr.bf16.mxu1 %v12916_v36  ;;  %v13147_v36 = vcombine.low %v7712_v9, %v7716_v7 }
 0xb42   :  { %10946 = vmatpush2.bf16.msra.mxu0 %v12787_v48  ;;  %v7572_v48 = vld [vmem:[#allocation7 + $0x8f8] sm:$0xff] }
 0xb43   :  { %11001 = vmatprep.subr.bf16.mxu0 %v13036_v43  ;;  %v13004_v58 = vcombine.high %v7568_v28, %v7572_v48 }
 0xb44   :  { %10989 = vmatpush2.bf16.msra.mxu1 %v12915_v18  ;;  %v7700_v18 = vld [vmem:[#allocation7 + $0xcf8] sm:$0xff] }
 0xb45   :  { %11044 = vmatprep.subr.bf16.mxu1 %v13164_v21  ;;  %v10691_v42 = vpop.f32.mrf.mxu0  ;;  %10948 = vmatmul.mubr.bf16.vlgmr.msra.gmra.mxu0 %v14560_v24  ;;  %v13148_v24 = vcombine.high %v7712_v9, %v7716_v7  ;;  %v13011_v21 = vcombine.low %v7576_v25, %v7580_v15  ;;  %v7680_v9 = vld [vmem:[#allocation7 + $0xc58] sm:$0xff] }
 0xb46   :  { %v10692_v59 = vadd.f32 %v10691_v42, %v10649_v19  ;;  %11002 = vmatpush1.bf16.msra.mxu0 %v13035_v60  ;;  %11033 = vmatprep.mubr.bf16.mxu0 %v14576_v1  ;;  %v13140_v1 = vcombine.high %v7704_v27, %v7708_v31  ;;  %v7692_v19 = vld [vmem:[#allocation7 + $0xcb8] sm:$0xff] }
 0xb47   :  { %v10734_v16 = vpop.f32.mrf.mxu1  ;;  %10991 = vmatmul.mubr.bf16.vlgmr.msra.gmra.mxu1 %v14562_v6  ;;  %v10693_v49 = vpop.f32.mrf.mxu0  ;;  %11003 = vmatprep.subr.bf16.mxu0 %v13028_v38  ;;  %v10655_v6 = vadd.f32 %v10654_v17, %v10612_v11  ;;  %v7688_v38 = vld [vmem:[#allocation7 + $0xc98] sm:$0xff]  ;;  %v13003_v17 = vcombine.low %v7568_v28, %v7572_v48 }
 0xb48   :  { %11045 = vmatpush1.bf16.msra.mxu1 %v13163_v23  ;;  %v10694_v13 = vadd.f32 %v10693_v49, %v10651_v10  ;;  %11076 = vmatprep.mubr.bf16.mxu1 %v14578_v46  ;;  %v10735_v32 = vadd.f32 %v10734_v16, %v10692_v59  ;;  %v7696_v46 = vld [vmem:[#allocation7 + $0xcd8] sm:$0xff]  ;;  %v13124_v63 = vcombine.high %v7688_v38, %v7692_v19 }
 0xb49   :  { %v10736_v14 = vpop.f32.mrf.mxu1  ;;  %11046 = vmatprep.subr.bf16.mxu1 %v13156_v61  ;;  %v10695_v26 = vpop.f32.mrf.mxu0  ;;  %v13132_v60 = vcombine.high %v7696_v46, %v7700_v18  ;;  %v7564_v23 = vld [vmem:[#allocation7 + $0x8b8] sm:$0xff]  ;;  %v13131_v61 = vcombine.low %v7696_v46, %v7700_v18  ;;  %v13123_v11 = vcombine.low %v7688_v38, %v7692_v19 }
 0xb4a   :  { %v10696_v2 = vadd.f32 %v10695_v26, %v10653_v12  ;;  %11004 = vmatpush1.bf16.msra.mxu0 %v13027_v5  ;;  %v10737_v40 = vadd.f32 %v10736_v14, %v10694_v13  ;;  %v11089_v43 = vmax.f32 %v10735_v32, 0.0  ;;  %v12996_v52 = vcombine.high %v7560_v50, %v7564_v23  ;;  %v7552_v42 = vld [vmem:[#allocation7 + $0x858] sm:$0xff] }
 0xb4b   :  { %v10738_v33 = vpop.f32.mrf.mxu1  ;;  %v10697_v35 = vpop.f32.mrf.mxu0  ;;  %11005 = vmatprep.subr.bf16.mxu0 %v13020_v8  ;;  %v7556_v5 = vld [vmem:[#allocation7 + $0x878] sm:$0xff]  ;;  %v12995_v10 = vcombine.low %v7560_v50, %v7564_v23 }
 0xb4c   :  { %11047 = vmatpush1.bf16.msra.mxu1 %v13155_v45  ;;  %v10739_v20 = vadd.f32 %v10738_v33, %v10696_v2  ;;  %v10698_v41 = vadd.f32 %v10697_v35, %v10655_v6  ;;  %v11090_v51 = vmax.f32 %v10737_v40, 0.0  ;;  %v7684_v7 = vld [vmem:[#allocation7 + $0xc78] sm:$0xff]  ;;  %v12988_v59 = vcombine.high %v7552_v42, %v7556_v5 }
 0xb4d   :  { %11048 = vmatprep.subr.bf16.mxu1 %v13148_v24  ;;  %v10740_v47 = vpop.f32.mrf.mxu1  ;;  %v13116_v16 = vcombine.high %v7680_v9, %v7684_v7  ;;  %v7544_v49 = vld [vmem:[#allocation7 + $0x818] sm:$0xff]  ;;  %v12987_v13 = vcombine.low %v7552_v42, %v7556_v5  ;;  %v13115_v14 = vcombine.low %v7680_v9, %v7684_v7 }
 0xb4e   :  { %v11097_v44 = vmax.f32 %v10739_v20, 0.0  ;;  %v10741_v57 = vadd.f32 %v10740_v47, %v10698_v41  ;;  %11006 = vmatpush1.bf16.msra.mxu0 %v13019_v34  ;;  %v7548_v45 = vld [vmem:[#allocation7 + $0x838] sm:$0xff] }
 0xb4f   :  { %11007 = vmatprep.subr.bf16.mxu0 %v13012_v39  ;;  %v7672_v8 = vld [vmem:[#allocation7 + $0xc18] sm:$0xff]  ;;  %v12980_v24 = vcombine.high %v7544_v49, %v7548_v45  ;;  %v12979_v6 = vcombine.low %v7544_v49, %v7548_v45 }
 0xb50   :  { %11049 = vmatpush1.bf16.msra.mxu1 %v13147_v36  ;;  %v14624_v3 = vpack.c.bf16 %v11097_v44, %v11089_v43  ;;  %v11098_v22 = vmax.f32 %v10741_v57, 0.0  ;;  %v7676_v12 = vld [vmem:[#allocation7 + $0xc38] sm:$0xff] }
 0xb51   :  { %11050 = vmatprep.subr.bf16.mxu1 %v13140_v1  ;;  %v13108_v25 = vcombine.high %v7672_v8, %v7676_v12  ;;  %v7664_v15 = vld [vmem:[#allocation7 + $0xbd8] sm:$0xff]  ;;  %v13107_v32 = vcombine.low %v7672_v8, %v7676_v12 }
 0xb52   :  { %v14626_v37 = vpack.c.bf16 %v11098_v22, %v11090_v51  ;;  %11008 = vmatpush1.bf16.msra.mxu0 %v13011_v21  ;;  %v7668_v26 = vld [vmem:[#allocation7 + $0xbf8] sm:$0xff] }
 0xb53   :  { %11009 = vmatprep.subr.bf16.mxu0 %v13004_v58  ;;  %v7792_v27 = vld [vmem:[#allocation7 + $0xfd8] sm:$0xff]  ;;  %v13100_v2 = vcombine.high %v7664_v15, %v7668_v26  ;;  %v13099_v40 = vcombine.low %v7664_v15, %v7668_v26 }
 0xb54   :  { %11051 = vmatpush1.bf16.msra.mxu1 %v13139_v30  ;;  %v7796_v31 = vld [vmem:[#allocation7 + $0xff8] sm:$0xff] }
 0xb55   :  { %11052 = vmatprep.subr.bf16.mxu1 %v13132_v60  ;;  %v13228_v33 = vcombine.high %v7792_v27, %v7796_v31  ;;  %v7656_v34 = vld [vmem:[#allocation7 + $0xb98] sm:$0xff]  ;;  %v13227_v20 = vcombine.low %v7792_v27, %v7796_v31 }
 0xb56   :  { %11010 = vmatpush1.bf16.msra.mxu0 %v13003_v17  ;;  %v7660_v35 = vld [vmem:[#allocation7 + $0xbb8] sm:$0xff] }
 0xb57   :  { %11011 = vmatprep.subr.bf16.mxu0 %v12996_v52  ;;  %v7784_v36 = vld [vmem:[#allocation7 + $0xf98] sm:$0xff]  ;;  %v13092_v41 = vcombine.high %v7656_v34, %v7660_v35  ;;  %v13091_v18 = vcombine.low %v7656_v34, %v7660_v35 }
 0xb58   :  { %11053 = vmatpush1.bf16.msra.mxu1 %v13131_v61  ;;  %v7788_v39 = vld [vmem:[#allocation7 + $0xfb8] sm:$0xff] }
 0xb59   :  { %11054 = vmatprep.subr.bf16.mxu1 %v13124_v63  ;;  %v13220_v1 = vcombine.high %v7784_v36, %v7788_v39  ;;  %v7648_v28 = vld [vmem:[#allocation7 + $0xb58] sm:$0xff]  ;;  %v13219_v43 = vcombine.low %v7784_v36, %v7788_v39 }
 0xb5a   :  { %11012 = vmatpush1.bf16.msra.mxu0 %v12995_v10  ;;  %v7652_v48 = vld [vmem:[#allocation7 + $0xb78] sm:$0xff] }
 0xb5b   :  { %11013 = vmatprep.subr.bf16.mxu0 %v12988_v59  ;;  %v7776_v47 = vld [vmem:[#allocation7 + $0xf58] sm:$0xff]  ;;  %v13084_v44 = vcombine.high %v7648_v28, %v7652_v48  ;;  %v13083_v22 = vcombine.low %v7648_v28, %v7652_v48 }
 0xb5c   :  { %11055 = vmatpush1.bf16.msra.mxu1 %v13123_v11  ;;  %v7780_v46 = vld [vmem:[#allocation7 + $0xf78] sm:$0xff] }
 0xb5d   :  { %11056 = vmatprep.subr.bf16.mxu1 %v13116_v16  ;;  %v13212_v57 = vcombine.high %v7776_v47, %v7780_v46  ;;  %v7640_v21 = vld [vmem:[#allocation7 + $0xb18] sm:$0xff]  ;;  %v13211_v60 = vcombine.low %v7776_v47, %v7780_v46 }
 0xb5e   :  { %11014 = vmatpush1.bf16.msra.mxu0 %v12987_v13  ;;  %v7644_v30 = vld [vmem:[#allocation7 + $0xb38] sm:$0xff] }
 0xb5f   :  { %11015 = vmatprep.subr.bf16.mxu0 %v12980_v24  ;;  %v7768_v58 = vld [vmem:[#allocation7 + $0xf18] sm:$0xff]  ;;  %v13076_v50 = vcombine.high %v7640_v21, %v7644_v30  ;;  %v13075_v52 = vcombine.low %v7640_v21, %v7644_v30 }
 0xb60   :  { %11057 = vmatpush1.bf16.msra.mxu1 %v13115_v14  ;;  %v7772_v51 = vld [vmem:[#allocation7 + $0xf38] sm:$0xff] }
 0xb61   :  { %11058 = vmatprep.subr.bf16.mxu1 %v13108_v25  ;;  %v13204_v23 = vcombine.high %v7768_v58, %v7772_v51  ;;  %v7632_v38 = vld [vmem:[#allocation7 + $0xad8] sm:$0xff]  ;;  %v13203_v63 = vcombine.low %v7768_v58, %v7772_v51 }
 0xb62   :  { %11016 = vmatpush1.bf16.msra.mxu0 %v12979_v6  ;;  %v7636_v19 = vld [vmem:[#allocation7 + $0xaf8] sm:$0xff] }
 0xb63   :  { %11017 = vmatprep.subr.bf16.mxu0 %v13100_v2  ;;  %v7760_v17 = vld [vmem:[#allocation7 + $0xed8] sm:$0xff]  ;;  %v13068_v42 = vcombine.high %v7632_v38, %v7636_v19  ;;  %v13067_v59 = vcombine.low %v7632_v38, %v7636_v19 }
 0xb64   :  { %11059 = vmatpush1.bf16.msra.mxu1 %v13107_v32  ;;  %v7764_v61 = vld [vmem:[#allocation7 + $0xef8] sm:$0xff] }
 0xb65   :  { %11060 = vmatprep.subr.bf16.mxu1 %v13228_v33  ;;  %v13196_v5 = vcombine.high %v7760_v17, %v7764_v61  ;;  %v7624_v9 = vld [vmem:[#allocation7 + $0xa98] sm:$0xff]  ;;  %v13195_v16 = vcombine.low %v7760_v17, %v7764_v61 }
 0xb66   :  { %11018 = vmatpush2.bf16.msra.mxu0 %v13099_v40  ;;  %v7628_v7 = vld [vmem:[#allocation7 + $0xab8] sm:$0xff] }
 0xb67   :  { %11019 = vmatprep.subr.bf16.mxu0 %v13092_v41  ;;  %v7752_v10 = vld [vmem:[#allocation7 + $0xe98] sm:$0xff]  ;;  %v13060_v49 = vcombine.high %v7624_v9, %v7628_v7  ;;  %v13059_v24 = vcombine.low %v7624_v9, %v7628_v7 }
 0xb68   :  { %11061 = vmatpush2.bf16.msra.mxu1 %v13227_v20  ;;  %v7756_v11 = vld [vmem:[#allocation7 + $0xeb8] sm:$0xff] }
 0xb69   :  { %11062 = vmatprep.subr.bf16.mxu1 %v13220_v1  ;;  %v13188_v45 = vcombine.high %v7752_v10, %v7756_v11  ;;  %v7616_v8 = vld [vmem:[#allocation7 + $0xa58] sm:$0xff]  ;;  %v13187_v25 = vcombine.low %v7752_v10, %v7756_v11 }
 0xb6a   :  { %11020 = vmatpush2.bf16.msra.mxu0 %v13091_v18  ;;  %v7620_v12 = vld [vmem:[#allocation7 + $0xa78] sm:$0xff] }
 0xb6b   :  { %11021 = vmatprep.subr.bf16.mxu0 %v13084_v44  ;;  %v7744_v13 = vld [vmem:[#allocation7 + $0xe58] sm:$0xff]  ;;  %v13052_v15 = vcombine.high %v7616_v8, %v7620_v12  ;;  %v13051_v2 = vcombine.low %v7616_v8, %v7620_v12 }
 0xb6c   :  { %11063 = vmatpush2.bf16.msra.mxu1 %v13219_v43  ;;  %v7748_v14 = vld [vmem:[#allocation7 + $0xe78] sm:$0xff] }
 0xb6d   :  { %11064 = vmatprep.subr.bf16.mxu1 %v13212_v57  ;;  %v13180_v26 = vcombine.high %v7744_v13, %v7748_v14  ;;  %v7608_v27 = vld [vmem:[#allocation7 + $0xa18] sm:$0xff]  ;;  %v13179_v33 = vcombine.low %v7744_v13, %v7748_v14 }
 0xb6e   :  { %11022 = vmatpush2.bf16.msra.mxu0 %v13083_v22  ;;  %v7612_v31 = vld [vmem:[#allocation7 + $0xa38] sm:$0xff] }
 0xb6f   :  { %11023 = vmatprep.subr.bf16.mxu0 %v13076_v50  ;;  %v7736_v6 = vld [vmem:[#allocation7 + $0xe18] sm:$0xff]  ;;  %v13044_v34 = vcombine.high %v7608_v27, %v7612_v31  ;;  %v13043_v36 = vcombine.low %v7608_v27, %v7612_v31 }
 0xb70   :  { %11065 = vmatpush2.bf16.msra.mxu1 %v13211_v60  ;;  %v7740_v32 = vld [vmem:[#allocation7 + $0xe38] sm:$0xff] }
 0xb71   :  { %11066 = vmatprep.subr.bf16.mxu1 %v13204_v23  ;;  %v13172_v35 = vcombine.high %v7736_v6, %v7740_v32  ;;  %v13171_v39 = vcombine.low %v7736_v6, %v7740_v32  ;;  %v13846_v1 = vld [vmem:[#allocation19] sm:$0xff] }
 0xb72   :  { %11024 = vmatpush2.bf16.msra.mxu0 %v13075_v52  ;;  %v7818_v28 = vrot.slane %v13846_v1, %v14425_v53  ;;  %v7822_v47 = vrot.slane %v13846_v1, %v14429_v55 }
 0xb73   :  { %11025 = vmatprep.subr.bf16.mxu0 %v13068_v42 }
 0xb74   :  { %11067 = vmatpush2.bf16.msra.mxu1 %v13203_v63 }
 0xb75   :  { %11068 = vmatprep.subr.bf16.mxu1 %v13196_v5 }
 0xb76   :  { %11026 = vmatpush2.bf16.msra.mxu0 %v13067_v59 }
 0xb77   :  { %11027 = vmatprep.subr.bf16.mxu0 %v13060_v49 }
 0xb78   :  { %11069 = vmatpush2.bf16.msra.mxu1 %v13195_v16 }
 0xb79   :  { %11070 = vmatprep.subr.bf16.mxu1 %v13188_v45 }
 0xb7a   :  { %11028 = vmatpush2.bf16.msra.mxu0 %v13059_v24  ;;  %v7826_v24 = vrot.slane %v13846_v1, %v14427_v54 }
 0xb7b   :  { %11029 = vmatprep.subr.bf16.mxu0 %v13052_v15  ;;  %v7830_v15 = vrot.slane %v13846_v1, %v14431_v56 }
 0xb7c   :  { %11071 = vmatpush2.bf16.msra.mxu1 %v13187_v25 }
 0xb7d   :  { %11072 = vmatprep.subr.bf16.mxu1 %v13180_v26 }
 0xb7e   :  { %11030 = vmatpush2.bf16.msra.mxu0 %v13051_v2 }
 0xb7f   :  { %11031 = vmatprep.subr.bf16.mxu0 %v13044_v34 }
 0xb80   :  { %11073 = vmatpush2.bf16.msra.mxu1 %v13179_v33 }
 0xb81   :  { %11074 = vmatprep.subr.bf16.mxu1 %v13172_v35 }
 0xb82   :  { %11032 = vmatpush2.bf16.msra.mxu0 %v13043_v36 }
 0xb84   :  { %11075 = vmatpush2.bf16.msra.mxu1 %v13171_v39 }
 0xb85   :  { %11034 = vmatmul.mubr.bf16.vlgmr.msra.gmra.mxu0 %v14572_v62  ;;  %v10777_v40 = vpop.f32.mrf.mxu0 }
 0xb86   :  { %v10778_v18 = vadd.f32 %v10777_v40, %v7818_v28 }
 0xb87   :  { %11077 = vmatmul.mubr.bf16.vlgmr.msra.gmra.mxu1 %v14574_v29  ;;  %v10820_v20 = vpop.f32.mrf.mxu1  ;;  %v10779_v41 = vpop.f32.mrf.mxu0 }
 0xb88   :  { %v10780_v44 = vadd.f32 %v10779_v41, %v7822_v47  ;;  %v10821_v21 = vadd.f32 %v10820_v20, %v10778_v18 }
 0xb89   :  { %v10822_v48 = vpop.f32.mrf.mxu1  ;;  %v10781_v46 = vpop.f32.mrf.mxu0 }
 0xb8a   :  { %v10782_v30 = vadd.f32 %v10781_v46, %v7818_v28  ;;  %v10823_v51 = vadd.f32 %v10822_v48, %v10780_v44 }
 0xb8b   :  { %v10824_v43 = vpop.f32.mrf.mxu1  ;;  %v10783_v57 = vpop.f32.mrf.mxu0 }
 0xb8c   :  { %v10784_v29 = vadd.f32 %v10783_v57, %v7822_v47  ;;  %v10825_v23 = vadd.f32 %v10824_v43, %v10782_v30 }
 0xb8d   :  { %v10826_v58 = vpop.f32.mrf.mxu1 }
 0xb8e   :  { %v10827_v17 = vadd.f32 %v10826_v58, %v10784_v29 }
 0xbc5   :  { %v10863_v62 = vpop.f32.mrf.mxu0 }
 0xbc6   :  { %v10864_v22 = vadd.f32 %v10863_v62, %v10821_v21 }
 0xbc7   :  { %v10906_v60 = vpop.f32.mrf.mxu1  ;;  %v10865_v50 = vpop.f32.mrf.mxu0 }
 0xbc8   :  { %v10866_v38 = vadd.f32 %v10865_v50, %v10823_v51  ;;  %v10907_v55 = vadd.f32 %v10906_v60, %v10864_v22 }
 0xbc9   :  { %v10908_v53 = vpop.f32.mrf.mxu1  ;;  %v10867_v19 = vpop.f32.mrf.mxu0 }
 0xbca   :  { %v10868_v61 = vadd.f32 %v10867_v19, %v10825_v23  ;;  %v10909_v42 = vadd.f32 %v10908_v53, %v10866_v38  ;;  %v11091_v10 = vmax.f32 %v10907_v55, 0.0 }
 0xbcb   :  { %v10910_v52 = vpop.f32.mrf.mxu1  ;;  %v10869_v63 = vpop.f32.mrf.mxu0 }
 0xbcc   :  { %v10911_v5 = vadd.f32 %v10910_v52, %v10868_v61  ;;  %v10870_v9 = vadd.f32 %v10869_v63, %v10827_v17  ;;  %v11092_v16 = vmax.f32 %v10909_v42, 0.0 }
 0xbcd   :  { %v10912_v7 = vpop.f32.mrf.mxu1 }
 0xbce   :  { %v11099_v11 = vmax.f32 %v10911_v5, 0.0  ;;  %v10913_v59 = vadd.f32 %v10912_v7, %v10870_v9 }
 0xbd0   :  { %v14632_v49 = vpack.c.bf16 %v11099_v11, %v11091_v10  ;;  %v11100_v45 = vmax.f32 %v10913_v59, 0.0 }
 0xbd2   :  { %v14634_v8 = vpack.c.bf16 %v11100_v45, %v11092_v16 }
 0xc05   :  { %v10949_v12 = vpop.f32.mrf.mxu0 }
 0xc06   :  { %v10950_v27 = vadd.f32 %v10949_v12, %v7826_v24 }
 0xc07   :  { %v10992_v13 = vpop.f32.mrf.mxu1  ;;  %v10951_v14 = vpop.f32.mrf.mxu0 }
 0xc08   :  { %v10952_v6 = vadd.f32 %v10951_v14, %v7830_v15  ;;  %v10993_v2 = vadd.f32 %v10992_v13, %v10950_v27 }
 0xc09   :  { %v10994_v25 = vpop.f32.mrf.mxu1  ;;  %v10953_v26 = vpop.f32.mrf.mxu0 }
 0xc0a   :  { %v10954_v33 = vadd.f32 %v10953_v26, %v7826_v24  ;;  %v10995_v36 = vadd.f32 %v10994_v25, %v10952_v6 }
 0xc0b   :  { %v10996_v31 = vpop.f32.mrf.mxu1  ;;  %v10955_v32 = vpop.f32.mrf.mxu0 }
 0xc0c   :  { %v10956_v39 = vadd.f32 %v10955_v32, %v7830_v15  ;;  %v10997_v28 = vadd.f32 %v10996_v31, %v10954_v33 }
 0xc0d   :  { %v10998_v34 = vpop.f32.mrf.mxu1 }
 0xc0e   :  { %v10999_v46 = vadd.f32 %v10998_v34, %v10956_v39 }
 0xc45   :  { %v11035_v35 = vpop.f32.mrf.mxu0 }
 0xc46   :  { %v11036_v40 = vadd.f32 %v11035_v35, %v10993_v2 }
 0xc47   :  { %v11078_v20 = vpop.f32.mrf.mxu1  ;;  %v11037_v41 = vpop.f32.mrf.mxu0 }
 0xc48   :  { %v11038_v48 = vadd.f32 %v11037_v41, %v10995_v36  ;;  %v11079_v56 = vadd.f32 %v11078_v20, %v11036_v40 }
 0xc49   :  { %v11080_v54 = vpop.f32.mrf.mxu1  ;;  %v11039_v47 = vpop.f32.mrf.mxu0 }
 0xc4a   :  { %v11040_v1 = vadd.f32 %v11039_v47, %v10997_v28  ;;  %v11081_v44 = vadd.f32 %v11080_v54, %v11038_v48  ;;  %v11093_v58 = vmax.f32 %v11079_v56, 0.0 }
 0xc4b   :  { %v11082_v18 = vpop.f32.mrf.mxu1  ;;  %v11041_v43 = vpop.f32.mrf.mxu0 }
 0xc4c   :  { %v11083_v57 = vadd.f32 %v11082_v18, %v11040_v1  ;;  %v11042_v21 = vadd.f32 %v11041_v43, %v10999_v46  ;;  %v11094_v29 = vmax.f32 %v11081_v44, 0.0 }
 0xc4d   :  { %v11084_v30 = vpop.f32.mrf.mxu1 }
 0xc4e   :  { %v11101_v62 = vmax.f32 %v11083_v57, 0.0  ;;  %v11085_v51 = vadd.f32 %v11084_v30, %v11042_v21 }
 0xc50   :  { %v14638_v22 = vpack.c.bf16 %v11101_v62, %v11093_v58  ;;  %v11102_v60 = vmax.f32 %v11085_v51, 0.0 }
 0xc52   :  { %v14640_v50 = vpack.c.bf16 %v11102_v60, %v11094_v29 }
 0xc53   :  { %14211 = dma.done.wait [#allocation9 + $0x6], 8192 }
 0xc54   :  { %14212 = vsyncadd [#allocation9 + $0x6], 4294959104  ;;  %11665 = vmatprep.mubr.bf16.mxu0 %v14610_v0  ;;  %11706 = vmatprep.mubr.bf16.mxu1 %v14626_v37  ;;  %v13847_v23 = vld [vmem:[#allocation8 + $0x78] sm:$0xff]   ;;  %v13851_v17 = vld [vmem:[#allocation8 + $0x70] sm:$0xff]  }
 0xc55   :  { %v13848_v38 = vld [vmem:[#allocation8 + $0xf8] sm:$0xff]   ;;  %13420 = vmatprep.subr.bf16.mxu0 %v13847_v23  ;;  %v13852_v55 = vld [vmem:[#allocation8 + $0xf0] sm:$0xff]   ;;  %v13855_v63 = vld [vmem:[#allocation8 + $0x68] sm:$0xff]  }
 0xc56   :  { %v13849_v53 = vld [vmem:[#allocation8 + $0x38] sm:$0xff]   ;;  %13442 = vmatprep.subr.bf16.mxu1 %v13848_v38  ;;  %v13853_v61 = vld [vmem:[#allocation8 + $0x30] sm:$0xff]   ;;  %v13856_v0 = vld [vmem:[#allocation8 + $0xe8] sm:$0xff]  }
 0xc57   :  { %v13850_v19 = vld [vmem:[#allocation8 + $0xb8] sm:$0xff]   ;;  %13421 = vmatpush3.bf16.msra.mxu0 %v13849_v53  ;;  %v13854_v52 = vld [vmem:[#allocation8 + $0xb0] sm:$0xff]   ;;  %v13857_v37 = vld [vmem:[#allocation8 + $0x28] sm:$0xff]  }
 0xc58   :  { %13443 = vmatpush3.bf16.msra.mxu1 %v13850_v19  ;;  %13422 = vmatprep.subr.bf16.mxu0 %v13851_v17  ;;  %v13858_v42 = vld [vmem:[#allocation8 + $0xa8] sm:$0xff]   ;;  %v13859_v5 = vld [vmem:[#allocation8 + $0x60] sm:$0xff]   ;;  %v13863_v11 = vld [vmem:[#allocation8 + $0x58] sm:$0xff]  }
 0xc59   :  { %13444 = vmatprep.subr.bf16.mxu1 %v13852_v55  ;;  %v13860_v9 = vld [vmem:[#allocation8 + $0xe0] sm:$0xff]   ;;  %v13864_v59 = vld [vmem:[#allocation8 + $0xd8] sm:$0xff]   ;;  %v13867_v12 = vld [vmem:[#allocation8 + $0x50] sm:$0xff]  }
 0xc5a   :  { %v13861_v7 = vld [vmem:[#allocation8 + $0x20] sm:$0xff]   ;;  %v13865_v16 = vld [vmem:[#allocation8 + $0x18] sm:$0xff]   ;;  %v13868_v13 = vld [vmem:[#allocation8 + $0xd0] sm:$0xff]  }
 0xc5b   :  { %13423 = vmatpush3.bf16.msra.mxu0 %v13853_v61  ;;  %v13862_v10 = vld [vmem:[#allocation8 + $0xa0] sm:$0xff]   ;;  %v13866_v45 = vld [vmem:[#allocation8 + $0x98] sm:$0xff]   ;;  %v13869_v14 = vld [vmem:[#allocation8 + $0x10] sm:$0xff]  }
 0xc5c   :  { %13445 = vmatpush3.bf16.msra.mxu1 %v13854_v52  ;;  %13424 = vmatprep.subr.bf16.mxu0 %v13855_v63  ;;  %v13870_v24 = vld [vmem:[#allocation8 + $0x90] sm:$0xff]   ;;  %v13871_v25 = vld [vmem:[#allocation8 + $0x48] sm:$0xff]   ;;  %v13875_v31 = vld [vmem:[#allocation8 + $0x40] sm:$0xff]  }
 0xc5d   :  { %13446 = vmatprep.subr.bf16.mxu1 %v13856_v0  ;;  %v13872_v15 = vld [vmem:[#allocation8 + $0xc8] sm:$0xff]   ;;  %v13876_v6 = vld [vmem:[#allocation8 + $0xc0] sm:$0xff]   ;;  %v13879_v33 = vld [vmem:[#allocation8 + $0x178] sm:$0xff]  }
 0xc5e   :  { %v13873_v26 = vld [vmem:[#allocation8 + $0x8] sm:$0xff]   ;;  %v13877_v32 = vld [vmem:[#allocation8] sm:$0xff]   ;;  %v13880_v34 = vld [vmem:[#allocation8 + $0x1f8] sm:$0xff]  }
 0xc5f   :  { %13425 = vmatpush3.bf16.msra.mxu0 %v13857_v37  ;;  %v13874_v27 = vld [vmem:[#allocation8 + $0x88] sm:$0xff]   ;;  %v13878_v2 = vld [vmem:[#allocation8 + $0x80] sm:$0xff]   ;;  %v13881_v35 = vld [vmem:[#allocation8 + $0x138] sm:$0xff]  }
 0xc60   :  { %13447 = vmatpush3.bf16.msra.mxu1 %v13858_v42  ;;  %13426 = vmatprep.subr.bf16.mxu0 %v13859_v5  ;;  %v13882_v36 = vld [vmem:[#allocation8 + $0x1b8] sm:$0xff]   ;;  %v13883_v39 = vld [vmem:[#allocation8 + $0x170] sm:$0xff]   ;;  %v13887_v28 = vld [vmem:[#allocation8 + $0x168] sm:$0xff]  }
 0xc61   :  { %13448 = vmatprep.subr.bf16.mxu1 %v13860_v9  ;;  %v13884_v40 = vld [vmem:[#allocation8 + $0x1f0] sm:$0xff]   ;;  %v13889_v48 = vld [vmem:[#allocation8 + $0x128] sm:$0xff]   ;;  %v13891_v54 = vld [vmem:[#allocation8 + $0x160] sm:$0xff]  }
 0xc62   :  { %v13885_v20 = vld [vmem:[#allocation8 + $0x130] sm:$0xff]   ;;  %v13892_v47 = vld [vmem:[#allocation8 + $0x1e0] sm:$0xff]   ;;  %v13895_v56 = vld [vmem:[#allocation8 + $0x158] sm:$0xff]  }
 0xc63   :  { %13427 = vmatpush3.bf16.msra.mxu0 %v13861_v7  ;;  %v13886_v41 = vld [vmem:[#allocation8 + $0x1b0] sm:$0xff]   ;;  %v13894_v46 = vld [vmem:[#allocation8 + $0x1a0] sm:$0xff]   ;;  %v13896_v1 = vld [vmem:[#allocation8 + $0x1d8] sm:$0xff]  }
 0xc64   :  { %13449 = vmatpush3.bf16.msra.mxu1 %v13862_v10  ;;  %13428 = vmatprep.subr.bf16.mxu0 %v13863_v11  ;;  %v13897_v18 = vld [vmem:[#allocation8 + $0x118] sm:$0xff]   ;;  %v13899_v44 = vld [vmem:[#allocation8 + $0x150] sm:$0xff]   ;;  %v13903_v58 = vld [vmem:[#allocation8 + $0x148] sm:$0xff]  }
 0xc65   :  { %13450 = vmatprep.subr.bf16.mxu1 %v13864_v59  ;;  %v13898_v43 = vld [vmem:[#allocation8 + $0x198] sm:$0xff]   ;;  %v13900_v57 = vld [vmem:[#allocation8 + $0x1d0] sm:$0xff]   ;;  %v13904_v62 = vld [vmem:[#allocation8 + $0x1c8] sm:$0xff]  }
 0xc66   :  { %v13901_v21 = vld [vmem:[#allocation8 + $0x110] sm:$0xff]   ;;  %v13905_v51 = vld [vmem:[#allocation8 + $0x108] sm:$0xff]   ;;  %v13907_v60 = vld [vmem:[#allocation8 + $0x140] sm:$0xff]  }
 0xc67   :  { %13429 = vmatpush3.bf16.msra.mxu0 %v13865_v16  ;;  %v13902_v30 = vld [vmem:[#allocation8 + $0x190] sm:$0xff]   ;;  %v13906_v29 = vld [vmem:[#allocation8 + $0x188] sm:$0xff]   ;;  %v13909_v23 = vld [vmem:[#allocation8 + $0x100] sm:$0xff]  }
 0xc68   :  { %13451 = vmatpush3.bf16.msra.mxu1 %v13866_v45  ;;  %13430 = vmatprep.subr.bf16.mxu0 %v13867_v12  ;;  %v13910_v38 = vld [vmem:[#allocation8 + $0x180] sm:$0xff]  }
 0xc69   :  { %13452 = vmatprep.subr.bf16.mxu1 %v13868_v13  ;;  %v13229_v0 = vld [vmem:[#allocation21] ss:$0 sm:$0xff] }
 0xc6b   :  { %13431 = vmatpush3.bf16.msra.mxu0 %v13869_v14 }
 0xc6c   :  { %13453 = vmatpush3.bf16.msra.mxu1 %v13870_v24  ;;  %13432 = vmatprep.subr.bf16.mxu0 %v13871_v25 }
 0xc6d   :  { %13454 = vmatprep.subr.bf16.mxu1 %v13872_v15 }
 0xc6f   :  { %13433 = vmatpush3.bf16.msra.mxu0 %v13873_v26 }
 0xc70   :  { %13455 = vmatpush3.bf16.msra.mxu1 %v13874_v27  ;;  %13434 = vmatprep.subr.bf16.mxu0 %v13875_v31 }
 0xc71   :  { %13456 = vmatprep.subr.bf16.mxu1 %v13876_v6 }
 0xc73   :  { %13435 = vmatpush3.bf16.msra.mxu0 %v13877_v32 }
 0xc74   :  { %13457 = vmatpush3.bf16.msra.mxu1 %v13878_v2  ;;  %13464 = vmatprep.subr.bf16.mxu0 %v13879_v33 }
 0xc75   :  { %13486 = vmatprep.subr.bf16.mxu1 %v13880_v34 }
 0xc76   :  { %11666 = vmatmul.mubr.bf16.vlgmr.msra.gmra.mxu0 %v14608_v4  ;;  %v13888_v4 = vld [vmem:[#allocation8 + $0x1e8] sm:$0xff]  }
 0xc77   :  { %11707 = vmatmul.mubr.bf16.vlgmr.msra.gmra.mxu1 %v14624_v3  ;;  %13465 = vmatpush3.bf16.msra.mxu0 %v13881_v35  ;;  %v13890_v3 = vld [vmem:[#allocation8 + $0x1a8] sm:$0xff]  }
 0xc78   :  { %13487 = vmatpush3.bf16.msra.mxu1 %v13882_v36  ;;  %11747 = vmatprep.mubr.bf16.mxu0 %v14634_v8  ;;  %v13893_v8 = vld [vmem:[#allocation8 + $0x120] sm:$0xff]  }
 0xc79   :  { %13466 = vmatprep.subr.bf16.mxu0 %v13883_v39  ;;  %11788 = vmatprep.mubr.bf16.mxu1 %v14640_v50  ;;  %v13908_v50 = vld [vmem:[#allocation8 + $0x1c0] sm:$0xff]  }
 0xc7a   :  { %13488 = vmatprep.subr.bf16.mxu1 %v13884_v40 }
 0xc7b   :  { %13467 = vmatpush3.bf16.msra.mxu0 %v13885_v20 }
 0xc7c   :  { %13489 = vmatpush3.bf16.msra.mxu1 %v13886_v41  ;;  %13468 = vmatprep.subr.bf16.mxu0 %v13887_v28 }
 0xc7d   :  { %13490 = vmatprep.subr.bf16.mxu1 %v13888_v4 }
 0xc7f   :  { %13469 = vmatpush3.bf16.msra.mxu0 %v13889_v48 }
 0xc80   :  { %13491 = vmatpush3.bf16.msra.mxu1 %v13890_v3  ;;  %13470 = vmatprep.subr.bf16.mxu0 %v13891_v54 }
 0xc81   :  { %13492 = vmatprep.subr.bf16.mxu1 %v13892_v47 }
 0xc83   :  { %13471 = vmatpush3.bf16.msra.mxu0 %v13893_v8 }
 0xc84   :  { %13493 = vmatpush3.bf16.msra.mxu1 %v13894_v46  ;;  %13472 = vmatprep.subr.bf16.mxu0 %v13895_v56 }
 0xc85   :  { %13494 = vmatprep.subr.bf16.mxu1 %v13896_v1 }
 0xc87   :  { %13473 = vmatpush3.bf16.msra.mxu0 %v13897_v18 }
 0xc88   :  { %13495 = vmatpush3.bf16.msra.mxu1 %v13898_v43  ;;  %13474 = vmatprep.subr.bf16.mxu0 %v13899_v44 }
 0xc89   :  { %13496 = vmatprep.subr.bf16.mxu1 %v13900_v57 }
 0xc8b   :  { %13475 = vmatpush3.bf16.msra.mxu0 %v13901_v21 }
 0xc8c   :  { %13497 = vmatpush3.bf16.msra.mxu1 %v13902_v30  ;;  %13476 = vmatprep.subr.bf16.mxu0 %v13903_v58 }
 0xc8d   :  { %13498 = vmatprep.subr.bf16.mxu1 %v13904_v62 }
 0xc8f   :  { %13477 = vmatpush3.bf16.msra.mxu0 %v13905_v51 }
 0xc90   :  { %13499 = vmatpush3.bf16.msra.mxu1 %v13906_v29  ;;  %13478 = vmatprep.subr.bf16.mxu0 %v13907_v60 }
 0xc91   :  { %13500 = vmatprep.subr.bf16.mxu1 %v13908_v50 }
 0xc93   :  { %13479 = vmatpush3.bf16.msra.mxu0 %v13909_v23 }
 0xc94   :  { %13501 = vmatpush3.bf16.msra.mxu1 %v13910_v38 }
 0xc96   :  { %11748 = vmatmul.mubr.bf16.vlgmr.msra.gmra.mxu0 %v14632_v49 }
 0xc97   :  { %11789 = vmatmul.mubr.bf16.vlgmr.msra.gmra.mxu1 %v14638_v22 }
 0xd36   :  { %v13436_v53 = vpop.f32.mrf.mxu0 }
 0xd37   :  { %v13458_v19 = vpop.f32.mrf.mxu1 }
 0xd38   :  { %v13437_v17 = vpop.f32.mrf.mxu0 }
 0xd39   :  { %v13459_v55 = vpop.f32.mrf.mxu1  ;;  %v13438_v52 = vadd.f32 %v13437_v17, %v13436_v53 }
 0xd3a   :  { %v13439_v61 = vpop.f32.mrf.mxu0  ;;  %v13460_v5 = vadd.f32 %v13459_v55, %v13458_v19 }
 0xd3b   :  { %v13461_v63 = vpop.f32.mrf.mxu1  ;;  %v11668_v42 = vadd.f32 %v13438_v52, %v13229_v0 }
 0xd3c   :  { %v13440_v37 = vpop.f32.mrf.mxu0 }
 0xd3d   :  { %v13441_v9 = vadd.f32 %v13440_v37, %v13439_v61  ;;  %v13462_v7 = vpop.f32.mrf.mxu1  ;;  %v11709_v16 = vadd.f32 %v13460_v5, %v11668_v42 }
 0xd3e   :  { %v13463_v13 = vadd.f32 %v13462_v7, %v13461_v63 }
 0xd3f   :  { %v11671_v49 = vadd.f32 %v13441_v9, %v13229_v0 }
 0xd41   :  { %v11712_v26 = vadd.f32 %v13463_v13, %v11671_v49 }
 0xd56   :  { %v13480_v10 = vpop.f32.mrf.mxu0 }
 0xd57   :  { %v13502_v11 = vpop.f32.mrf.mxu1 }
 0xd58   :  { %v13481_v59 = vpop.f32.mrf.mxu0 }
 0xd59   :  { %v13482_v45 = vadd.f32 %v13481_v59, %v13480_v10  ;;  %v13503_v22 = vpop.f32.mrf.mxu1 }
 0xd5a   :  { %v13483_v12 = vpop.f32.mrf.mxu0  ;;  %v13504_v24 = vadd.f32 %v13503_v22, %v13502_v11 }
 0xd5b   :  { %v11750_v14 = vadd.f32 %v13482_v45, %v11709_v16  ;;  %v13505_v25 = vpop.f32.mrf.mxu1 }
 0xd5c   :  { %v13484_v15 = vpop.f32.mrf.mxu0 }
 0xd5d   :  { %v11791_v27 = vadd.f32 %v13504_v24, %v11750_v14  ;;  %v13485_v31 = vadd.f32 %v13484_v15, %v13483_v12  ;;  %v13506_v6 = vpop.f32.mrf.mxu1 }
 0xd5e   :  { %v13507_v2 = vadd.f32 %v13506_v6, %v13505_v25 }
 0xd5f   :  { %11797 = vst [vmem:[%s14673_s17] sm:$0xff] %v11791_v27  ;;  %v11753_v32 = vadd.f32 %v13485_v31, %v11712_v26 }
 0xd61   :  { %v11794_v33 = vadd.f32 %v13507_v2, %v11753_v32 }
 0xd63   :  { %11798 = vst [vmem:[%s14673_s17 + $0x8] sm:$0xff] %v11794_v33 }
 0xd64   :  { %11807 = vsyncpa [#allocation12], 1 }
 0xd65   :  { %11808 = vsyncpa [#allocation14], 1 }
 0xd66   :  { %11809 = vsyncpa [#allocation17], 1 }
 0xd67   :  { %11810 = vsyncpa [#allocation20], 1 }
 0xd68   :  { %11811 = vsyncmov [#allocation9] }
 0xd6b   :  { %s11812_s30 = vpop.sfrf %11811 }
 0xd6c   :  { %p13294_p0 = scmp.ne.s32.totalorder %s11812_s30, 0 }
 0xd6e   :  { %11816 = shalt.err (%p13294_p0)  }
 0xd6f   :  { %11818 = vsyncmov [#allocation9 + $0x1] }
 0xd72   :  { %s11819_s0 = vpop.sfrf %11818 }
 0xd73   :  { %p13295_p1 = scmp.ne.s32.totalorder %s11819_s0, 0 }
 0xd75   :  { %11823 = shalt.err (%p13295_p1)  }
 0xd76   :  { %11825 = vsyncmov [#allocation9 + $0x2] }
 0xd79   :  { %s11826_s19 = vpop.sfrf %11825 }
 0xd7a   :  { %p13296_p2 = scmp.ne.s32.totalorder %s11826_s19, 0 }
 0xd7c   :  { %11830 = shalt.err (%p13296_p2)  }
 0xd7d   :  { %11832 = vsyncmov [#allocation9 + $0x3] }
 0xd80   :  { %s11833_s1 = vpop.sfrf %11832 }
 0xd81   :  { %p13297_p3 = scmp.ne.s32.totalorder %s11833_s1, 0 }
 0xd83   :  { %11837 = shalt.err (%p13297_p3)  }
 0xd84   :  { %11839 = vsyncmov [#allocation9 + $0x4] }
 0xd87   :  { %s11840_s17 = vpop.sfrf %11839 }
 0xd88   :  { %p13298_p4 = scmp.ne.s32.totalorder %s11840_s17, 0 }
 0xd8a   :  { %11844 = shalt.err (%p13298_p4)  }
 0xd8b   :  { %11846 = vsyncmov [#allocation9 + $0x5] }
 0xd8e   :  { %s11847_s16 = vpop.sfrf %11846 }
 0xd8f   :  { %p13299_p5 = scmp.ne.s32.totalorder %s11847_s16, 0 }
 0xd91   :  { %11851 = shalt.err (%p13299_p5)  }
 0xd92   :  { %11853 = vsyncmov [#allocation9 + $0x6] }
 0xd95   :  { %s11854_s20 = vpop.sfrf %11853 }
 0xd96   :  { %p13300_p6 = scmp.ne.s32.totalorder %s11854_s20, 0 }
 0xd98   :  { %11858 = shalt.err (%p13300_p6)  }

</bundles_post_ra>
